<compile_context>
chip_gen: v5e
topology: v5e:2x2
jax: 0.10.0
libtpu: 0.0.40
codegen_flags: <defaults>
</compile_context>

<pallas_src>
import functools
import math

import jax
import jax.numpy as jnp
from jax import lax
from jax.experimental import pallas as pl
from jax.experimental.pallas import tpu as pltpu

LANE = 128
M1_PAD = 208   # stage 1: 14*14 = 196 pooled rows per pool-offset group -> 208
M2_PAD = 32    # stage 2: 5*5 = 25 pooled rows per pool-offset group   -> 32
K1_PAD = 128   # stage 1: 5*5*3 = 75  -> 128
K2_PAD = 256   # stage 2: 5*5*6 = 150 -> 256


# ---------------------------------------------------------------------------
# Kernel A: conv1 (single im2col matmul over all 4 pool offsets) + pool + ReLU
# ---------------------------------------------------------------------------
def _conv1_pool_relu_kernel(p_ref, w_ref, b_ref, y_ref):
    bt, rows, kp = p_ref.shape            # (Bt, 4*M1_PAD, K1_PAD)
    n = w_ref.shape[1]
    m = rows // 4
    z = jnp.dot(p_ref[...].reshape(bt * rows, kp), w_ref[...],
                preferred_element_type=jnp.float32)
    z = z.reshape(bt, 4, m, n)            # 8-aligned group slabs (f32)
    pooled = jnp.maximum(jnp.maximum(z[:, 0], z[:, 1]),
                         jnp.maximum(z[:, 2], z[:, 3]))     # (Bt, m, n)
    # bias constant over pool offsets: relu(max(z)+b) == pool(relu(z+b))
    y_ref[...] = jnp.maximum(pooled + b_ref[...], 0.0).astype(y_ref.dtype)


def conv1_pool_relu(p, w, b, *, bt):
    Bp, rows, kp = p.shape
    n = w.shape[1]
    return pl.pallas_call(
        _conv1_pool_relu_kernel,
        out_shape=jax.ShapeDtypeStruct((Bp, rows // 4, n), jnp.bfloat16),
        grid=(Bp // bt,),
        in_specs=[
            pl.BlockSpec((bt, rows, kp), lambda i: (i, 0, 0)),
            pl.BlockSpec((kp, n), lambda i: (0, 0)),
            pl.BlockSpec((1, n), lambda i: (0, 0)),
        ],
        out_specs=pl.BlockSpec((bt, rows // 4, n), lambda i: (i, 0, 0)),
        compiler_params=pltpu.CompilerParams(
            dimension_semantics=("parallel",),
            vmem_limit_bytes=48 * 1024 * 1024),
    )(p, w, b)


# ---------------------------------------------------------------------------
# Kernel B: conv2 + pool + ReLU fused with fc1+ReLU -> fc2+ReLU (=h) -> l3 (=y)
# ---------------------------------------------------------------------------
def _conv2_fc_kernel(p_ref, w2_ref, b2_ref, wf1_ref, bf1_ref, wf2_ref, bf2_ref,
                     wf3_ref, bf3_ref, h_ref, y_ref, *, n_spatial):
    bt, rows, kp = p_ref.shape            # (Bt, 4*M2_PAD, K2_PAD)
    n = w2_ref.shape[1]
    m = rows // 4
    z = jnp.dot(p_ref[...].reshape(bt * rows, kp), w2_ref[...],
                preferred_element_type=jnp.float32).reshape(bt, 4, m, n)
    pooled = jnp.maximum(jnp.maximum(z[:, 0], z[:, 1]),
                         jnp.maximum(z[:, 2], z[:, 3]))     # (Bt, m, n)
    y2 = jnp.maximum(pooled + b2_ref[...], 0.0)             # (Bt, m, 128) f32

    # fc1 as a blocked accumulation over the 25 spatial positions.  wf1_ref is
    # host-permuted to (s, c, n) so this reproduces torch's view(-1, 16*5*5).
    acc = jnp.zeros((bt, n), jnp.float32)
    for s in range(n_spatial):            # static, fully unrolled (25 iters)
        acc = acc + jnp.dot(y2[:, s, :], wf1_ref[s],
                            preferred_element_type=jnp.float32)
    h1 = jnp.maximum(acc + bf1_ref[...], 0.0)
    h2 = jnp.maximum(
        jnp.dot(h1, wf2_ref[...], preferred_element_type=jnp.float32)
        + bf2_ref[...], 0.0)
    yv = jnp.dot(h2, wf3_ref[...],
                 preferred_element_type=jnp.float32) + bf3_ref[...]
    h_ref[...] = h2
    y_ref[...] = yv


def conv2_fc(p, w2, b2, wf1, bf1, wf2, bf2, wf3, bf3, *, bt, n_spatial):
    Bp, rows, kp = p.shape
    n = w2.shape[1]
    vec = lambda: pl.BlockSpec((1, n), lambda i: (0, 0))
    return pl.pallas_call(
        functools.partial(_conv2_fc_kernel, n_spatial=n_spatial),
        out_shape=(jax.ShapeDtypeStruct((Bp, n), jnp.float32),
                   jax.ShapeDtypeStruct((Bp, n), jnp.float32)),
        grid=(Bp // bt,),
        in_specs=[
            pl.BlockSpec((bt, rows, kp), lambda i: (i, 0, 0)),
            pl.BlockSpec((kp, n), lambda i: (0, 0)),
            vec(),
            pl.BlockSpec(wf1.shape, lambda i: (0, 0, 0)),
            vec(),
            pl.BlockSpec((n, n), lambda i: (0, 0)),
            vec(),
            pl.BlockSpec((n, n), lambda i: (0, 0)),
            vec(),
        ],
        out_specs=(pl.BlockSpec((bt, n), lambda i: (i, 0)),
                   pl.BlockSpec((bt, n), lambda i: (i, 0))),
        compiler_params=pltpu.CompilerParams(
            dimension_semantics=("parallel",),
            vmem_limit_bytes=48 * 1024 * 1024),
    )(p, w2, b2, wf1, bf1, wf2, bf2, wf3, bf3)


# ---------------------------------------------------------------------------
# XLA glue: im2col grouped by pool offset, weight packing / padding
# ---------------------------------------------------------------------------
def _im2col_pool_groups(x_nhwc, k, pool, m_pad, k_pad, dtype):
    """VALID-conv patches grouped by pool-window offset.

    Returns (B, pool*pool*m_pad, k_pad): 4 contiguous row blocks (one per pool
    offset), each 8/16-aligned (rows past ho*wo are zero padding), K padded.
    """
    B, H, W, C = x_nhwc.shape
    hc, wc = H - k + 1, W - k + 1
    ho, wo = hc // pool, wc // pool
    cols = [x_nhwc[:, kh:kh + hc, kw:kw + wc, :]
            for kh in range(k) for kw in range(k)]
    patches = jnp.concatenate(cols, axis=-1)               # (B, hc, wc, k*k*C)
    kr = k * k * C
    groups = []
    for da in range(pool):
        for db in range(pool):
            g = patches[:, da::pool, db::pool, :][:, :ho, :wo, :]
            g = g.reshape(B, ho * wo, kr)
            g = jnp.pad(g, ((0, 0), (0, m_pad - ho * wo), (0, k_pad - kr)))
            groups.append(g)
    p = jnp.concatenate(groups, axis=1)                    # (B, 4*m_pad, k_pad)
    return p.astype(dtype), (ho, wo)


def _pad2(x, r, c):
    return jnp.pad(x, ((0, r - x.shape[0]), (0, c - x.shape[1])))


def prepare_params(params, n_classes):
    (w1, b1), (w2, b2), (wf1, bf1), (wf2, bf2), (wf3, bf3) = params
    # conv weights -> (K, N) im2col matrices, lane-padded, bf16 (accum is f32)
    w1m = _pad2(jnp.transpose(w1, (2, 3, 1, 0)).reshape(75, 6),
                K1_PAD, LANE).astype(jnp.bfloat16)
    b1m = _pad2(b1.reshape(1, 6), 1, LANE)
    w2m = _pad2(jnp.transpose(w2, (2, 3, 1, 0)).reshape(150, 16),
                K2_PAD, LANE).astype(jnp.bfloat16)
    b2m = _pad2(b2.reshape(1, 16), 1, LANE)
    # fc1: torch flattens NCHW as c*25 + s (s = h*5 + w); kernel contracts
    # per-spatial-row, so permute to (s, c, n) and pad c->128, n->128 (f32).
    wf1r = jnp.transpose(wf1.reshape(120, 16, 25), (2, 1, 0))     # (25, 16, 120)
    wf1m = jnp.pad(wf1r, ((0, 0), (0, LANE - 16), (0, LANE - 120)))
    bf1m = _pad2(bf1.reshape(1, 120), 1, LANE)
    wf2m = _pad2(wf2.T, LANE, LANE)
    bf2m = _pad2(bf2.reshape(1, 84), 1, LANE)
    wf3m = _pad2(wf3.T, LANE, LANE)
    bf3m = _pad2(bf3.reshape(1, n_classes), 1, LANE)
    return (w1m, b1m, w2m, b2m, wf1m, bf1m, wf2m, bf2m, wf3m, bf3m)


def modelfedcon_forward(x_nchw, params, n_classes, batch_tile=8):
    """ModelFedCon_noheader('simple-cnn').forward(x) -> (h, h, y)."""
    assert batch_tile % 8 == 0, "batch_tile must be a multiple of 8"
    (w1m, b1m, w2m, b2m, wf1m, bf1m, wf2m, bf2m, wf3m, bf3m) = prepare_params(
        params, n_classes)
    B = x_nchw.shape[0]
    bt = batch_tile
    B_pad = -(-B // bt) * bt
    x = jnp.transpose(x_nchw, (0, 2, 3, 1))                # NCHW -> NHWC glue
    if B_pad > B:
        x = jnp.pad(x, ((0, B_pad - B), (0, 0), (0, 0), (0, 0)))

    # stage 1: conv1 + ReLU + maxpool : 32x32 -> 28x28 -> 14x14
    p1, (h1s, w1s) = _im2col_pool_groups(x, 5, 2, M1_PAD, K1_PAD, jnp.bfloat16)
    y1 = conv1_pool_relu(p1, w1m, b1m, bt=bt)              # (B_pad, 208, 128) bf16
    y1 = y1[:, :h1s * w1s, :6].reshape(B_pad, h1s, w1s, 6)

    # stage 2 + FC head fused: conv2 + ReLU + maxpool : 14 -> 10 -> 5, then
    # fc1+relu -> fc2+relu (=h) -> l3 (=y)
    p2, (h2s, w2s) = _im2col_pool_groups(y1, 5, 2, M2_PAD, K2_PAD, jnp.bfloat16)
    h_pad, y_pad = conv2_fc(p2, w2m, b2m, wf1m, bf1m, wf2m, bf2m, wf3m, bf3m,
                            bt=bt, n_spatial=h2s * w2s)
    h = h_pad[:B, :84]
    y = y_pad[:B, :n_classes]
    return h, h, y


# ---------------------------------------------------------------------------
# Pure-JAX reference + test harness
# ---------------------------------------------------------------------------
def reference_forward(x, params, n_classes):
    (w1, b1), (w2, b2), (wf1, bf1), (wf2, bf2), (wf3, bf3) = params
    hp = lax.Precision.HIGHEST

    def conv_stage(x, w, b):
        y = lax.conv_general_dilated(x, w, (1, 1), 'VALID',
                                     dimension_numbers=('NCHW', 'OIHW', 'NCHW'),
                                     precision=hp)
        y = jnp.maximum(y + b[None, :, None, None], 0.0)
        return lax.reduce_window(y, -jnp.inf, lax.max,
                                 (1, 1, 2, 2), (1, 1, 2, 2), 'VALID')

    y = conv_stage(x, w1, b1)
    y = conv_stage(y, w2, b2)
    hflat = y.reshape(x.shape[0], -1)
    h1 = jnp.maximum(jnp.dot(hflat, wf1.T, precision=hp) + bf1, 0.0)
    h2 = jnp.maximum(jnp.dot(h1, wf2.T, precision=hp) + bf2, 0.0)
    yy = jnp.dot(h2, wf3.T, precision=hp) + bf3
    return h2, h2, yy


def init_params(key, n_classes):
    ks = jax.random.split(key, 10)

    def u(k, shape, fan_in):
        bound = 1.0 / math.sqrt(fan_in)
        return jax.random.uniform(k, shape, jnp.float32, -bound, bound)

    return (
        (u(ks[0], (6, 3, 5, 5), 3 * 25), u(ks[1], (6,), 3 * 25)),
        (u(ks[2], (16, 6, 5, 5), 6 * 25), u(ks[3], (16,), 6 * 25)),
        (u(ks[4], (120, 400), 400), u(ks[5], (120,), 400)),
        (u(ks[6], (84, 120), 120), u(ks[7], (84,), 120)),
        (u(ks[8], (n_classes, 84), 84), u(ks[9], (n_classes,), 84)),
    )


if __name__ == "__main__":
    n_classes = 10
    key = jax.random.PRNGKey(0)
    kx, kp = jax.random.split(key)
    # 32x32 spatial is required for the final view(-1, 16*5*5); B=16 with
    # batch_tile=8 gives a 2-step parallel grid (feeds both v7x TensorCores).
    B = 16
    x = jax.random.normal(kx, (B, 3, 32, 32), jnp.float32)   # NCHW like PyTorch
    params = init_params(kp, n_classes)

    fwd = jax.jit(functools.partial(modelfedcon_forward, n_classes=n_classes,
                                    batch_tile=8))
    h, h_again, y = jax.block_until_ready(fwd(x, params))
    h_ref, _, y_ref = jax.block_until_ready(
        reference_forward(x, params, n_classes))

    assert h.shape == (B, 84), h.shape
    assert y.shape == (B, n_classes), y.shape
    # patches / conv weights / y1 are bf16 -> compare with relaxed tolerance
    assert jnp.allclose(h, h_ref, atol=2e-2, rtol=2e-2), \
        float(jnp.max(jnp.abs(h - h_ref)))
    assert jnp.allclose(y, y_ref, atol=2e-2, rtol=2e-2), \
        float(jnp.max(jnp.abs(y - y_ref)))
    print("KERNEL_OK")
</pallas_src>

<mosaic_0001>
module attributes {stable_mosaic.version = 11 : i64} {
  func.func @_conv1_pool_relu_kernel(%arg0: i32, %arg1: memref<8x832x128xbf16, #tpu.memory_space<vmem>>, %arg2: memref<128x128xbf16, #tpu.memory_space<vmem>>, %arg3: memref<1x128xf32, #tpu.memory_space<vmem>>, %arg4: memref<8x208x128xbf16, #tpu.memory_space<vmem>>) attributes {dimension_semantics = [#tpu.dimension_semantics<parallel>], iteration_bounds = array<i64: 2>, scalar_prefetch = 0 : i64, scratch_operands = 0 : i64, tpu.core_type = #tpu.core_type<tc>, window_params = [{transform_indices = @transform_0, window_bounds = array<i64: 8, 832, 128>}, {pipeline_mode = #tpu.pipeline_mode<synchronous>, transform_indices = @transform_1, window_bounds = array<i64: 128, 128>}, {pipeline_mode = #tpu.pipeline_mode<synchronous>, transform_indices = @transform_2, window_bounds = array<i64: 1, 128>}, {transform_indices = @transform_3, window_bounds = array<i64: 8, 208, 128>}]} {
    %c0 = arith.constant 0 : index
    %c0_0 = arith.constant 0 : index
    %c0_1 = arith.constant 0 : index
    %0 = vector.load %arg1[%c0, %c0_0, %c0_1] : memref<8x832x128xbf16, #tpu.memory_space<vmem>>, vector<8x832x128xbf16>
    %1 = vector.shape_cast %0 : vector<8x832x128xbf16> to vector<6656x128xbf16>
    %c0_2 = arith.constant 0 : index
    %c0_3 = arith.constant 0 : index
    %2 = vector.load %arg2[%c0_2, %c0_3] : memref<128x128xbf16, #tpu.memory_space<vmem>>, vector<128x128xbf16>
    %cst = arith.constant dense<0.000000e+00> : vector<6656x128xf32>
    %3 = tpu.matmul %1, %2, %cst {dimension_numbers = #tpu.dot_dimension_numbers<[1], [0], [0], [1], [0, 0, 1, 1], [], []>} : vector<6656x128xbf16>, vector<128x128xbf16>, vector<6656x128xf32> -> vector<6656x128xf32>
    %4 = vector.shape_cast %3 : vector<6656x128xf32> to vector<8x4x208x128xf32>
    %5 = vector.extract_strided_slice %4 {offsets = [0, 0, 0, 0], sizes = [8, 1, 208, 128], strides = [1, 1, 1, 1]} : vector<8x4x208x128xf32> to vector<8x1x208x128xf32>
    %6 = vector.shape_cast %5 : vector<8x1x208x128xf32> to vector<8x208x128xf32>
    %7 = vector.extract_strided_slice %4 {offsets = [0, 1, 0, 0], sizes = [8, 1, 208, 128], strides = [1, 1, 1, 1]} : vector<8x4x208x128xf32> to vector<8x1x208x128xf32>
    %8 = vector.shape_cast %7 : vector<8x1x208x128xf32> to vector<8x208x128xf32>
    %9 = arith.maximumf %6, %8 : vector<8x208x128xf32>
    %10 = vector.extract_strided_slice %4 {offsets = [0, 2, 0, 0], sizes = [8, 1, 208, 128], strides = [1, 1, 1, 1]} : vector<8x4x208x128xf32> to vector<8x1x208x128xf32>
    %11 = vector.shape_cast %10 : vector<8x1x208x128xf32> to vector<8x208x128xf32>
    %12 = vector.extract_strided_slice %4 {offsets = [0, 3, 0, 0], sizes = [8, 1, 208, 128], strides = [1, 1, 1, 1]} : vector<8x4x208x128xf32> to vector<8x1x208x128xf32>
    %13 = vector.shape_cast %12 : vector<8x1x208x128xf32> to vector<8x208x128xf32>
    %14 = arith.maximumf %11, %13 : vector<8x208x128xf32>
    %15 = arith.maximumf %9, %14 : vector<8x208x128xf32>
    %c0_4 = arith.constant 0 : index
    %c0_5 = arith.constant 0 : index
    %16 = vector.load %arg3[%c0_4, %c0_5] : memref<1x128xf32, #tpu.memory_space<vmem>>, vector<1x128xf32>
    %17 = vector.shape_cast %16 : vector<1x128xf32> to vector<1x1x128xf32>
    %18 = vector.broadcast %17 : vector<1x1x128xf32> to vector<8x208x128xf32>
    %19 = arith.addf %15, %18 : vector<8x208x128xf32>
    %cst_6 = arith.constant 0.000000e+00 : f32
    %20 = vector.broadcast %cst_6 : f32 to vector<8x208x128xf32>
    %21 = arith.maximumf %19, %20 : vector<8x208x128xf32>
    %22 = arith.truncf %21 : vector<8x208x128xf32> to vector<8x208x128xbf16>
    %c0_7 = arith.constant 0 : index
    %c0_8 = arith.constant 0 : index
    %c0_9 = arith.constant 0 : index
    %23 = vector.load %arg4[%c0_7, %c0_8, %c0_9] : memref<8x208x128xbf16, #tpu.memory_space<vmem>>, vector<8x208x128xbf16>
    tpu.vector_store %arg4[%c0_7, %c0_8, %c0_9], %22 {strides = array<i32>} : memref<8x208x128xbf16, #tpu.memory_space<vmem>>, vector<8x208x128xbf16>,
    return
  }
  func.func @transform_0(%arg0: i32) -> (i32, i32, i32) {
    %c0_i32 = arith.constant 0 : i32
    %c0_i32_0 = arith.constant 0 : i32
    %c0_i32_1 = arith.constant 0 : i32
    return %arg0, %c0_i32, %c0_i32_0 : i32, i32, i32
  }
  func.func @transform_1(%arg0: i32) -> (i32, i32) {
    %c0_i32 = arith.constant 0 : i32
    %c0_i32_0 = arith.constant 0 : i32
    %c0_i32_1 = arith.constant 0 : i32
    return %c0_i32, %c0_i32_0 : i32, i32
  }
  func.func @transform_2(%arg0: i32) -> (i32, i32) {
    %c0_i32 = arith.constant 0 : i32
    %c0_i32_0 = arith.constant 0 : i32
    %c0_i32_1 = arith.constant 0 : i32
    return %c0_i32, %c0_i32_0 : i32, i32
  }
  func.func @transform_3(%arg0: i32) -> (i32, i32, i32) {
    %c0_i32 = arith.constant 0 : i32
    %c0_i32_0 = arith.constant 0 : i32
    %c0_i32_1 = arith.constant 0 : i32
    return %arg0, %c0_i32, %c0_i32_0 : i32, i32, i32
  }
}

module attributes {stable_mosaic.version = 11 : i64} {
  func.func @_conv2_fc_kernel(%arg0: i32, %arg1: memref<8x128x256xbf16, #tpu.memory_space<vmem>>, %arg2: memref<256x128xbf16, #tpu.memory_space<vmem>>, %arg3: memref<1x128xf32, #tpu.memory_space<vmem>>, %arg4: memref<25x128x128xf32, #tpu.memory_space<vmem>>, %arg5: memref<1x128xf32, #tpu.memory_space<vmem>>, %arg6: memref<128x128xf32, #tpu.memory_space<vmem>>, %arg7: memref<1x128xf32, #tpu.memory_space<vmem>>, %arg8: memref<128x128xf32, #tpu.memory_space<vmem>>, %arg9: memref<1x128xf32, #tpu.memory_space<vmem>>, %arg10: memref<8x128xf32, #tpu.memory_space<vmem>>, %arg11: memref<8x128xf32, #tpu.memory_space<vmem>>) attributes {dimension_semantics = [#tpu.dimension_semantics<parallel>], iteration_bounds = array<i64: 2>, scalar_prefetch = 0 : i64, scratch_operands = 0 : i64, tpu.core_type = #tpu.core_type<tc>, window_params = [{transform_indices = @transform_0, window_bounds = array<i64: 8, 128, 256>}, {pipeline_mode = #tpu.pipeline_mode<synchronous>, transform_indices = @transform_1, window_bounds = array<i64: 256, 128>}, {pipeline_mode = #tpu.pipeline_mode<synchronous>, transform_indices = @transform_2, window_bounds = array<i64: 1, 128>}, {pipeline_mode = #tpu.pipeline_mode<synchronous>, transform_indices = @transform_3, window_bounds = array<i64: 25, 128, 128>}, {pipeline_mode = #tpu.pipeline_mode<synchronous>, transform_indices = @transform_4, window_bounds = array<i64: 1, 128>}, {pipeline_mode = #tpu.pipeline_mode<synchronous>, transform_indices = @transform_5, window_bounds = array<i64: 128, 128>}, {pipeline_mode = #tpu.pipeline_mode<synchronous>, transform_indices = @transform_6, window_bounds = array<i64: 1, 128>}, {pipeline_mode = #tpu.pipeline_mode<synchronous>, transform_indices = @transform_7, window_bounds = array<i64: 128, 128>}, {pipeline_mode = #tpu.pipeline_mode<synchronous>, transform_indices = @transform_8, window_bounds = array<i64: 1, 128>}, {transform_indices = @transform_9, window_bounds = array<i64: 8, 128>}, {transform_indices = @transform_10, window_bounds = array<i64: 8, 128>}]} {
    %c0 = arith.constant 0 : index
    %c0_0 = arith.constant 0 : index
    %c0_1 = arith.constant 0 : index
    %0 = vector.load %arg1[%c0, %c0_0, %c0_1] : memref<8x128x256xbf16, #tpu.memory_space<vmem>>, vector<8x128x256xbf16>
    %1 = vector.shape_cast %0 : vector<8x128x256xbf16> to vector<1024x256xbf16>
    %c0_2 = arith.constant 0 : index
    %c0_3 = arith.constant 0 : index
    %2 = vector.load %arg2[%c0_2, %c0_3] : memref<256x128xbf16, #tpu.memory_space<vmem>>, vector<256x128xbf16>
    %cst = arith.constant dense<0.000000e+00> : vector<1024x128xf32>
    %3 = tpu.matmul %1, %2, %cst {dimension_numbers = #tpu.dot_dimension_numbers<[1], [0], [0], [1], [0, 0, 1, 1], [], []>} : vector<1024x256xbf16>, vector<256x128xbf16>, vector<1024x128xf32> -> vector<1024x128xf32>
    %4 = vector.shape_cast %3 : vector<1024x128xf32> to vector<8x4x32x128xf32>
    %5 = vector.extract_strided_slice %4 {offsets = [0, 0, 0, 0], sizes = [8, 1, 32, 128], strides = [1, 1, 1, 1]} : vector<8x4x32x128xf32> to vector<8x1x32x128xf32>
    %6 = vector.shape_cast %5 : vector<8x1x32x128xf32> to vector<8x32x128xf32>
    %7 = vector.extract_strided_slice %4 {offsets = [0, 1, 0, 0], sizes = [8, 1, 32, 128], strides = [1, 1, 1, 1]} : vector<8x4x32x128xf32> to vector<8x1x32x128xf32>
    %8 = vector.shape_cast %7 : vector<8x1x32x128xf32> to vector<8x32x128xf32>
    %9 = arith.maximumf %6, %8 : vector<8x32x128xf32>
    %10 = vector.extract_strided_slice %4 {offsets = [0, 2, 0, 0], sizes = [8, 1, 32, 128], strides = [1, 1, 1, 1]} : vector<8x4x32x128xf32> to vector<8x1x32x128xf32>
    %11 = vector.shape_cast %10 : vector<8x1x32x128xf32> to vector<8x32x128xf32>
    %12 = vector.extract_strided_slice %4 {offsets = [0, 3, 0, 0], sizes = [8, 1, 32, 128], strides = [1, 1, 1, 1]} : vector<8x4x32x128xf32> to vector<8x1x32x128xf32>
    %13 = vector.shape_cast %12 : vector<8x1x32x128xf32> to vector<8x32x128xf32>
    %14 = arith.maximumf %11, %13 : vector<8x32x128xf32>
    %15 = arith.maximumf %9, %14 : vector<8x32x128xf32>
    %c0_4 = arith.constant 0 : index
    %c0_5 = arith.constant 0 : index
    %16 = vector.load %arg3[%c0_4, %c0_5] : memref<1x128xf32, #tpu.memory_space<vmem>>, vector<1x128xf32>
    %17 = vector.shape_cast %16 : vector<1x128xf32> to vector<1x1x128xf32>
    %18 = vector.broadcast %17 : vector<1x1x128xf32> to vector<8x32x128xf32>
    %19 = arith.addf %15, %18 : vector<8x32x128xf32>
    %cst_6 = arith.constant 0.000000e+00 : f32
    %20 = vector.broadcast %cst_6 : f32 to vector<8x32x128xf32>
    %21 = arith.maximumf %19, %20 : vector<8x32x128xf32>
    %cst_7 = arith.constant 0.000000e+00 : f32
    %22 = vector.broadcast %cst_7 : f32 to vector<8x128xf32>
    %23 = vector.extract_strided_slice %21 {offsets = [0, 0, 0], sizes = [8, 1, 128], strides = [1, 1, 1]} : vector<8x32x128xf32> to vector<8x1x128xf32>
    %24 = vector.shape_cast %23 : vector<8x1x128xf32> to vector<8x128xf32>
    %c0_8 = arith.constant 0 : index
    %c0_9 = arith.constant 0 : index
    %c0_10 = arith.constant 0 : index
    %25 = vector.load %arg4[%c0_8, %c0_9, %c0_10] : memref<25x128x128xf32, #tpu.memory_space<vmem>>, vector<1x128x128xf32>
    %26 = vector.shape_cast %25 : vector<1x128x128xf32> to vector<128x128xf32>
    %cst_11 = arith.constant dense<0.000000e+00> : vector<8x128xf32>
    %27 = tpu.matmul %24, %26, %cst_11 {dimension_numbers = #tpu.dot_dimension_numbers<[1], [0], [0], [1], [0, 0, 1, 1], [], []>} : vector<8x128xf32>, vector<128x128xf32>, vector<8x128xf32> -> vector<8x128xf32>
    %28 = arith.addf %22, %27 : vector<8x128xf32>
    %29 = vector.extract_strided_slice %21 {offsets = [0, 1, 0], sizes = [8, 1, 128], strides = [1, 1, 1]} : vector<8x32x128xf32> to vector<8x1x128xf32>
    %30 = vector.shape_cast %29 : vector<8x1x128xf32> to vector<8x128xf32>
    %c1 = arith.constant 1 : index
    %c0_12 = arith.constant 0 : index
    %c0_13 = arith.constant 0 : index
    %31 = vector.load %arg4[%c1, %c0_12, %c0_13] : memref<25x128x128xf32, #tpu.memory_space<vmem>>, vector<1x128x128xf32>
    %32 = vector.shape_cast %31 : vector<1x128x128xf32> to vector<128x128xf32>
    %cst_14 = arith.constant dense<0.000000e+00> : vector<8x128xf32>
    %33 = tpu.matmul %30, %32, %cst_14 {dimension_numbers = #tpu.dot_dimension_numbers<[1], [0], [0], [1], [0, 0, 1, 1], [], []>} : vector<8x128xf32>, vector<128x128xf32>, vector<8x128xf32> -> vector<8x128xf32>
    %34 = arith.addf %28, %33 : vector<8x128xf32>
    %35 = vector.extract_strided_slice %21 {offsets = [0, 2, 0], sizes = [8, 1, 128], strides = [1, 1, 1]} : vector<8x32x128xf32> to vector<8x1x128xf32>
    %36 = vector.shape_cast %35 : vector<8x1x128xf32> to vector<8x128xf32>
    %c2 = arith.constant 2 : index
    %c0_15 = arith.constant 0 : index
    %c0_16 = arith.constant 0 : index
    %37 = vector.load %arg4[%c2, %c0_15, %c0_16] : memref<25x128x128xf32, #tpu.memory_space<vmem>>, vector<1x128x128xf32>
    %38 = vector.shape_cast %37 : vector<1x128x128xf32> to vector<128x128xf32>
    %cst_17 = arith.constant dense<0.000000e+00> : vector<8x128xf32>
    %39 = tpu.matmul %36, %38, %cst_17 {dimension_numbers = #tpu.dot_dimension_numbers<[1], [0], [0], [1], [0, 0, 1, 1], [], []>} : vector<8x128xf32>, vector<128x128xf32>, vector<8x128xf32> -> vector<8x128xf32>
    %40 = arith.addf %34, %39 : vector<8x128xf32>
    %41 = vector.extract_strided_slice %21 {offsets = [0, 3, 0], sizes = [8, 1, 128], strides = [1, 1, 1]} : vector<8x32x128xf32> to vector<8x1x128xf32>
    %42 = vector.shape_cast %41 : vector<8x1x128xf32> to vector<8x128xf32>
    %c3 = arith.constant 3 : index
    %c0_18 = arith.constant 0 : index
    %c0_19 = arith.constant 0 : index
    %43 = vector.load %arg4[%c3, %c0_18, %c0_19] : memref<25x128x128xf32, #tpu.memory_space<vmem>>, vector<1x128x128xf32>
    %44 = vector.shape_cast %43 : vector<1x128x128xf32> to vector<128x128xf32>
    %cst_20 = arith.constant dense<0.000000e+00> : vector<8x128xf32>
    %45 = tpu.matmul %42, %44, %cst_20 {dimension_numbers = #tpu.dot_dimension_numbers<[1], [0], [0], [1], [0, 0, 1, 1], [], []>} : vector<8x128xf32>, vector<128x128xf32>, vector<8x128xf32> -> vector<8x128xf32>
    %46 = arith.addf %40, %45 : vector<8x128xf32>
    %47 = vector.extract_strided_slice %21 {offsets = [0, 4, 0], sizes = [8, 1, 128], strides = [1, 1, 1]} : vector<8x32x128xf32> to vector<8x1x128xf32>
    %48 = vector.shape_cast %47 : vector<8x1x128xf32> to vector<8x128xf32>
    %c4 = arith.constant 4 : index
    %c0_21 = arith.constant 0 : index
    %c0_22 = arith.constant 0 : index
    %49 = vector.load %arg4[%c4, %c0_21, %c0_22] : memref<25x128x128xf32, #tpu.memory_space<vmem>>, vector<1x128x128xf32>
    %50 = vector.shape_cast %49 : vector<1x128x128xf32> to vector<128x128xf32>
    %cst_23 = arith.constant dense<0.000000e+00> : vector<8x128xf32>
    %51 = tpu.matmul %48, %50, %cst_23 {dimension_numbers = #tpu.dot_dimension_numbers<[1], [0], [0], [1], [0, 0, 1, 1], [], []>} : vector<8x128xf32>, vector<128x128xf32>, vector<8x128xf32> -> vector<8x128xf32>
    %52 = arith.addf %46, %51 : vector<8x128xf32>
    %53 = vector.extract_strided_slice %21 {offsets = [0, 5, 0], sizes = [8, 1, 128], strides = [1, 1, 1]} : vector<8x32x128xf32> to vector<8x1x128xf32>
    %54 = vector.shape_cast %53 : vector<8x1x128xf32> to vector<8x128xf32>
    %c5 = arith.constant 5 : index
    %c0_24 = arith.constant 0 : index
    %c0_25 = arith.constant 0 : index
    %55 = vector.load %arg4[%c5, %c0_24, %c0_25] : memref<25x128x128xf32, #tpu.memory_space<vmem>>, vector<1x128x128xf32>
    %56 = vector.shape_cast %55 : vector<1x128x128xf32> to vector<128x128xf32>
    %cst_26 = arith.constant dense<0.000000e+00> : vector<8x128xf32>
    %57 = tpu.matmul %54, %56, %cst_26 {dimension_numbers = #tpu.dot_dimension_numbers<[1], [0], [0], [1], [0, 0, 1, 1], [], []>} : vector<8x128xf32>, vector<128x128xf32>, vector<8x128xf32> -> vector<8x128xf32>
    %58 = arith.addf %52, %57 : vector<8x128xf32>
    %59 = vector.extract_strided_slice %21 {offsets = [0, 6, 0], sizes = [8, 1, 128], strides = [1, 1, 1]} : vector<8x32x128xf32> to vector<8x1x128xf32>
    %60 = vector.shape_cast %59 : vector<8x1x128xf32> to vector<8x128xf32>
    %c6 = arith.constant 6 : index
    %c0_27 = arith.constant 0 : index
    %c0_28 = arith.constant 0 : index
    %61 = vector.load %arg4[%c6, %c0_27, %c0_28] : memref<25x128x128xf32, #tpu.memory_space<vmem>>, vector<1x128x128xf32>
    %62 = vector.shape_cast %61 : vector<1x128x128xf32> to vector<128x128xf32>
    %cst_29 = arith.constant dense<0.000000e+00> : vector<8x128xf32>
    %63 = tpu.matmul %60, %62, %cst_29 {dimension_numbers = #tpu.dot_dimension_numbers<[1], [0], [0], [1], [0, 0, 1, 1], [], []>} : vector<8x128xf32>, vector<128x128xf32>, vector<8x128xf32> -> vector<8x128xf32>
    %64 = arith.addf %58, %63 : vector<8x128xf32>
    %65 = vector.extract_strided_slice %21 {offsets = [0, 7, 0], sizes = [8, 1, 128], strides = [1, 1, 1]} : vector<8x32x128xf32> to vector<8x1x128xf32>
    %66 = vector.shape_cast %65 : vector<8x1x128xf32> to vector<8x128xf32>
    %c7 = arith.constant 7 : index
    %c0_30 = arith.constant 0 : index
    %c0_31 = arith.constant 0 : index
    %67 = vector.load %arg4[%c7, %c0_30, %c0_31] : memref<25x128x128xf32, #tpu.memory_space<vmem>>, vector<1x128x128xf32>
    %68 = vector.shape_cast %67 : vector<1x128x128xf32> to vector<128x128xf32>
    %cst_32 = arith.constant dense<0.000000e+00> : vector<8x128xf32>
    %69 = tpu.matmul %66, %68, %cst_32 {dimension_numbers = #tpu.dot_dimension_numbers<[1], [0], [0], [1], [0, 0, 1, 1], [], []>} : vector<8x128xf32>, vector<128x128xf32>, vector<8x128xf32> -> vector<8x128xf32>
    %70 = arith.addf %64, %69 : vector<8x128xf32>
    %71 = vector.extract_strided_slice %21 {offsets = [0, 8, 0], sizes = [8, 1, 128], strides = [1, 1, 1]} : vector<8x32x128xf32> to vector<8x1x128xf32>
    %72 = vector.shape_cast %71 : vector<8x1x128xf32> to vector<8x128xf32>
    %c8 = arith.constant 8 : index
    %c0_33 = arith.constant 0 : index
    %c0_34 = arith.constant 0 : index
    %73 = vector.load %arg4[%c8, %c0_33, %c0_34] : memref<25x128x128xf32, #tpu.memory_space<vmem>>, vector<1x128x128xf32>
    %74 = vector.shape_cast %73 : vector<1x128x128xf32> to vector<128x128xf32>
    %cst_35 = arith.constant dense<0.000000e+00> : vector<8x128xf32>
    %75 = tpu.matmul %72, %74, %cst_35 {dimension_numbers = #tpu.dot_dimension_numbers<[1], [0], [0], [1], [0, 0, 1, 1], [], []>} : vector<8x128xf32>, vector<128x128xf32>, vector<8x128xf32> -> vector<8x128xf32>
    %76 = arith.addf %70, %75 : vector<8x128xf32>
    %77 = vector.extract_strided_slice %21 {offsets = [0, 9, 0], sizes = [8, 1, 128], strides = [1, 1, 1]} : vector<8x32x128xf32> to vector<8x1x128xf32>
    %78 = vector.shape_cast %77 : vector<8x1x128xf32> to vector<8x128xf32>
    %c9 = arith.constant 9 : index
    %c0_36 = arith.constant 0 : index
    %c0_37 = arith.constant 0 : index
    %79 = vector.load %arg4[%c9, %c0_36, %c0_37] : memref<25x128x128xf32, #tpu.memory_space<vmem>>, vector<1x128x128xf32>
    %80 = vector.shape_cast %79 : vector<1x128x128xf32> to vector<128x128xf32>
    %cst_38 = arith.constant dense<0.000000e+00> : vector<8x128xf32>
    %81 = tpu.matmul %78, %80, %cst_38 {dimension_numbers = #tpu.dot_dimension_numbers<[1], [0], [0], [1], [0, 0, 1, 1], [], []>} : vector<8x128xf32>, vector<128x128xf32>, vector<8x128xf32> -> vector<8x128xf32>
    %82 = arith.addf %76, %81 : vector<8x128xf32>
    %83 = vector.extract_strided_slice %21 {offsets = [0, 10, 0], sizes = [8, 1, 128], strides = [1, 1, 1]} : vector<8x32x128xf32> to vector<8x1x128xf32>
    %84 = vector.shape_cast %83 : vector<8x1x128xf32> to vector<8x128xf32>
    %c10 = arith.constant 10 : index
    %c0_39 = arith.constant 0 : index
    %c0_40 = arith.constant 0 : index
    %85 = vector.load %arg4[%c10, %c0_39, %c0_40] : memref<25x128x128xf32, #tpu.memory_space<vmem>>, vector<1x128x128xf32>
    %86 = vector.shape_cast %85 : vector<1x128x128xf32> to vector<128x128xf32>
    %cst_41 = arith.constant dense<0.000000e+00> : vector<8x128xf32>
    %87 = tpu.matmul %84, %86, %cst_41 {dimension_numbers = #tpu.dot_dimension_numbers<[1], [0], [0], [1], [0, 0, 1, 1], [], []>} : vector<8x128xf32>, vector<128x128xf32>, vector<8x128xf32> -> vector<8x128xf32>
    %88 = arith.addf %82, %87 : vector<8x128xf32>
    %89 = vector.extract_strided_slice %21 {offsets = [0, 11, 0], sizes = [8, 1, 128], strides = [1, 1, 1]} : vector<8x32x128xf32> to vector<8x1x128xf32>
    %90 = vector.shape_cast %89 : vector<8x1x128xf32> to vector<8x128xf32>
    %c11 = arith.constant 11 : index
    %c0_42 = arith.constant 0 : index
    %c0_43 = arith.constant 0 : index
    %91 = vector.load %arg4[%c11, %c0_42, %c0_43] : memref<25x128x128xf32, #tpu.memory_space<vmem>>, vector<1x128x128xf32>
    %92 = vector.shape_cast %91 : vector<1x128x128xf32> to vector<128x128xf32>
    %cst_44 = arith.constant dense<0.000000e+00> : vector<8x128xf32>
    %93 = tpu.matmul %90, %92, %cst_44 {dimension_numbers = #tpu.dot_dimension_numbers<[1], [0], [0], [1], [0, 0, 1, 1], [], []>} : vector<8x128xf32>, vector<128x128xf32>, vector<8x128xf32> -> vector<8x128xf32>
    %94 = arith.addf %88, %93 : vector<8x128xf32>
    %95 = vector.extract_strided_slice %21 {offsets = [0, 12, 0], sizes = [8, 1, 128], strides = [1, 1, 1]} : vector<8x32x128xf32> to vector<8x1x128xf32>
    %96 = vector.shape_cast %95 : vector<8x1x128xf32> to vector<8x128xf32>
    %c12 = arith.constant 12 : index
    %c0_45 = arith.constant 0 : index
    %c0_46 = arith.constant 0 : index
    %97 = vector.load %arg4[%c12, %c0_45, %c0_46] : memref<25x128x128xf32, #tpu.memory_space<vmem>>, vector<1x128x128xf32>
    %98 = vector.shape_cast %97 : vector<1x128x128xf32> to vector<128x128xf32>
    %cst_47 = arith.constant dense<0.000000e+00> : vector<8x128xf32>
    %99 = tpu.matmul %96, %98, %cst_47 {dimension_numbers = #tpu.dot_dimension_numbers<[1], [0], [0], [1], [0, 0, 1, 1], [], []>} : vector<8x128xf32>, vector<128x128xf32>, vector<8x128xf32> -> vector<8x128xf32>
    %100 = arith.addf %94, %99 : vector<8x128xf32>
    %101 = vector.extract_strided_slice %21 {offsets = [0, 13, 0], sizes = [8, 1, 128], strides = [1, 1, 1]} : vector<8x32x128xf32> to vector<8x1x128xf32>
    %102 = vector.shape_cast %101 : vector<8x1x128xf32> to vector<8x128xf32>
    %c13 = arith.constant 13 : index
    %c0_48 = arith.constant 0 : index
    %c0_49 = arith.constant 0 : index
    %103 = vector.load %arg4[%c13, %c0_48, %c0_49] : memref<25x128x128xf32, #tpu.memory_space<vmem>>, vector<1x128x128xf32>
    %104 = vector.shape_cast %103 : vector<1x128x128xf32> to vector<128x128xf32>
    %cst_50 = arith.constant dense<0.000000e+00> : vector<8x128xf32>
    %105 = tpu.matmul %102, %104, %cst_50 {dimension_numbers = #tpu.dot_dimension_numbers<[1], [0], [0], [1], [0, 0, 1, 1], [], []>} : vector<8x128xf32>, vector<128x128xf32>, vector<8x128xf32> -> vector<8x128xf32>
    %106 = arith.addf %100, %105 : vector<8x128xf32>
    %107 = vector.extract_strided_slice %21 {offsets = [0, 14, 0], sizes = [8, 1, 128], strides = [1, 1, 1]} : vector<8x32x128xf32> to vector<8x1x128xf32>
    %108 = vector.shape_cast %107 : vector<8x1x128xf32> to vector<8x128xf32>
    %c14 = arith.constant 14 : index
    %c0_51 = arith.constant 0 : index
    %c0_52 = arith.constant 0 : index
    %109 = vector.load %arg4[%c14, %c0_51, %c0_52] : memref<25x128x128xf32, #tpu.memory_space<vmem>>, vector<1x128x128xf32>
    %110 = vector.shape_cast %109 : vector<1x128x128xf32> to vector<128x128xf32>
    %cst_53 = arith.constant dense<0.000000e+00> : vector<8x128xf32>
    %111 = tpu.matmul %108, %110, %cst_53 {dimension_numbers = #tpu.dot_dimension_numbers<[1], [0], [0], [1], [0, 0, 1, 1], [], []>} : vector<8x128xf32>, vector<128x128xf32>, vector<8x128xf32> -> vector<8x128xf32>
    %112 = arith.addf %106, %111 : vector<8x128xf32>
    %113 = vector.extract_strided_slice %21 {offsets = [0, 15, 0], sizes = [8, 1, 128], strides = [1, 1, 1]} : vector<8x32x128xf32> to vector<8x1x128xf32>
    %114 = vector.shape_cast %113 : vector<8x1x128xf32> to vector<8x128xf32>
    %c15 = arith.constant 15 : index
    %c0_54 = arith.constant 0 : index
    %c0_55 = arith.constant 0 : index
    %115 = vector.load %arg4[%c15, %c0_54, %c0_55] : memref<25x128x128xf32, #tpu.memory_space<vmem>>, vector<1x128x128xf32>
    %116 = vector.shape_cast %115 : vector<1x128x128xf32> to vector<128x128xf32>
    %cst_56 = arith.constant dense<0.000000e+00> : vector<8x128xf32>
    %117 = tpu.matmul %114, %116, %cst_56 {dimension_numbers = #tpu.dot_dimension_numbers<[1], [0], [0], [1], [0, 0, 1, 1], [], []>} : vector<8x128xf32>, vector<128x128xf32>, vector<8x128xf32> -> vector<8x128xf32>
    %118 = arith.addf %112, %117 : vector<8x128xf32>
    %119 = vector.extract_strided_slice %21 {offsets = [0, 16, 0], sizes = [8, 1, 128], strides = [1, 1, 1]} : vector<8x32x128xf32> to vector<8x1x128xf32>
    %120 = vector.shape_cast %119 : vector<8x1x128xf32> to vector<8x128xf32>
    %c16 = arith.constant 16 : index
    %c0_57 = arith.constant 0 : index
    %c0_58 = arith.constant 0 : index
    %121 = vector.load %arg4[%c16, %c0_57, %c0_58] : memref<25x128x128xf32, #tpu.memory_space<vmem>>, vector<1x128x128xf32>
    %122 = vector.shape_cast %121 : vector<1x128x128xf32> to vector<128x128xf32>
    %cst_59 = arith.constant dense<0.000000e+00> : vector<8x128xf32>
    %123 = tpu.matmul %120, %122, %cst_59 {dimension_numbers = #tpu.dot_dimension_numbers<[1], [0], [0], [1], [0, 0, 1, 1], [], []>} : vector<8x128xf32>, vector<128x128xf32>, vector<8x128xf32> -> vector<8x128xf32>
    %124 = arith.addf %118, %123 : vector<8x128xf32>
    %125 = vector.extract_strided_slice %21 {offsets = [0, 17, 0], sizes = [8, 1, 128], strides = [1, 1, 1]} : vector<8x32x128xf32> to vector<8x1x128xf32>
    %126 = vector.shape_cast %125 : vector<8x1x128xf32> to vector<8x128xf32>
    %c17 = arith.constant 17 : index
    %c0_60 = arith.constant 0 : index
    %c0_61 = arith.constant 0 : index
    %127 = vector.load %arg4[%c17, %c0_60, %c0_61] : memref<25x128x128xf32, #tpu.memory_space<vmem>>, vector<1x128x128xf32>
    %128 = vector.shape_cast %127 : vector<1x128x128xf32> to vector<128x128xf32>
    %cst_62 = arith.constant dense<0.000000e+00> : vector<8x128xf32>
    %129 = tpu.matmul %126, %128, %cst_62 {dimension_numbers = #tpu.dot_dimension_numbers<[1], [0], [0], [1], [0, 0, 1, 1], [], []>} : vector<8x128xf32>, vector<128x128xf32>, vector<8x128xf32> -> vector<8x128xf32>
    %130 = arith.addf %124, %129 : vector<8x128xf32>
    %131 = vector.extract_strided_slice %21 {offsets = [0, 18, 0], sizes = [8, 1, 128], strides = [1, 1, 1]} : vector<8x32x128xf32> to vector<8x1x128xf32>
    %132 = vector.shape_cast %131 : vector<8x1x128xf32> to vector<8x128xf32>
    %c18 = arith.constant 18 : index
    %c0_63 = arith.constant 0 : index
    %c0_64 = arith.constant 0 : index
    %133 = vector.load %arg4[%c18, %c0_63, %c0_64] : memref<25x128x128xf32, #tpu.memory_space<vmem>>, vector<1x128x128xf32>
    %134 = vector.shape_cast %133 : vector<1x128x128xf32> to vector<128x128xf32>
    %cst_65 = arith.constant dense<0.000000e+00> : vector<8x128xf32>
    %135 = tpu.matmul %132, %134, %cst_65 {dimension_numbers = #tpu.dot_dimension_numbers<[1], [0], [0], [1], [0, 0, 1, 1], [], []>} : vector<8x128xf32>, vector<128x128xf32>, vector<8x128xf32> -> vector<8x128xf32>
    %136 = arith.addf %130, %135 : vector<8x128xf32>
    %137 = vector.extract_strided_slice %21 {offsets = [0, 19, 0], sizes = [8, 1, 128], strides = [1, 1, 1]} : vector<8x32x128xf32> to vector<8x1x128xf32>
    %138 = vector.shape_cast %137 : vector<8x1x128xf32> to vector<8x128xf32>
    %c19 = arith.constant 19 : index
    %c0_66 = arith.constant 0 : index
    %c0_67 = arith.constant 0 : index
    %139 = vector.load %arg4[%c19, %c0_66, %c0_67] : memref<25x128x128xf32, #tpu.memory_space<vmem>>, vector<1x128x128xf32>
    %140 = vector.shape_cast %139 : vector<1x128x128xf32> to vector<128x128xf32>
    %cst_68 = arith.constant dense<0.000000e+00> : vector<8x128xf32>
    %141 = tpu.matmul %138, %140, %cst_68 {dimension_numbers = #tpu.dot_dimension_numbers<[1], [0], [0], [1], [0, 0, 1, 1], [], []>} : vector<8x128xf32>, vector<128x128xf32>, vector<8x128xf32> -> vector<8x128xf32>
    %142 = arith.addf %136, %141 : vector<8x128xf32>
    %143 = vector.extract_strided_slice %21 {offsets = [0, 20, 0], sizes = [8, 1, 128], strides = [1, 1, 1]} : vector<8x32x128xf32> to vector<8x1x128xf32>
    %144 = vector.shape_cast %143 : vector<8x1x128xf32> to vector<8x128xf32>
    %c20 = arith.constant 20 : index
    %c0_69 = arith.constant 0 : index
    %c0_70 = arith.constant 0 : index
    %145 = vector.load %arg4[%c20, %c0_69, %c0_70] : memref<25x128x128xf32, #tpu.memory_space<vmem>>, vector<1x128x128xf32>
    %146 = vector.shape_cast %145 : vector<1x128x128xf32> to vector<128x128xf32>
    %cst_71 = arith.constant dense<0.000000e+00> : vector<8x128xf32>
    %147 = tpu.matmul %144, %146, %cst_71 {dimension_numbers = #tpu.dot_dimension_numbers<[1], [0], [0], [1], [0, 0, 1, 1], [], []>} : vector<8x128xf32>, vector<128x128xf32>, vector<8x128xf32> -> vector<8x128xf32>
    %148 = arith.addf %142, %147 : vector<8x128xf32>
    %149 = vector.extract_strided_slice %21 {offsets = [0, 21, 0], sizes = [8, 1, 128], strides = [1, 1, 1]} : vector<8x32x128xf32> to vector<8x1x128xf32>
    %150 = vector.shape_cast %149 : vector<8x1x128xf32> to vector<8x128xf32>
    %c21 = arith.constant 21 : index
    %c0_72 = arith.constant 0 : index
    %c0_73 = arith.constant 0 : index
    %151 = vector.load %arg4[%c21, %c0_72, %c0_73] : memref<25x128x128xf32, #tpu.memory_space<vmem>>, vector<1x128x128xf32>
    %152 = vector.shape_cast %151 : vector<1x128x128xf32> to vector<128x128xf32>
    %cst_74 = arith.constant dense<0.000000e+00> : vector<8x128xf32>
    %153 = tpu.matmul %150, %152, %cst_74 {dimension_numbers = #tpu.dot_dimension_numbers<[1], [0], [0], [1], [0, 0, 1, 1], [], []>} : vector<8x128xf32>, vector<128x128xf32>, vector<8x128xf32> -> vector<8x128xf32>
    %154 = arith.addf %148, %153 : vector<8x128xf32>
    %155 = vector.extract_strided_slice %21 {offsets = [0, 22, 0], sizes = [8, 1, 128], strides = [1, 1, 1]} : vector<8x32x128xf32> to vector<8x1x128xf32>
    %156 = vector.shape_cast %155 : vector<8x1x128xf32> to vector<8x128xf32>
    %c22 = arith.constant 22 : index
    %c0_75 = arith.constant 0 : index
    %c0_76 = arith.constant 0 : index
    %157 = vector.load %arg4[%c22, %c0_75, %c0_76] : memref<25x128x128xf32, #tpu.memory_space<vmem>>, vector<1x128x128xf32>
    %158 = vector.shape_cast %157 : vector<1x128x128xf32> to vector<128x128xf32>
    %cst_77 = arith.constant dense<0.000000e+00> : vector<8x128xf32>
    %159 = tpu.matmul %156, %158, %cst_77 {dimension_numbers = #tpu.dot_dimension_numbers<[1], [0], [0], [1], [0, 0, 1, 1], [], []>} : vector<8x128xf32>, vector<128x128xf32>, vector<8x128xf32> -> vector<8x128xf32>
    %160 = arith.addf %154, %159 : vector<8x128xf32>
    %161 = vector.extract_strided_slice %21 {offsets = [0, 23, 0], sizes = [8, 1, 128], strides = [1, 1, 1]} : vector<8x32x128xf32> to vector<8x1x128xf32>
    %162 = vector.shape_cast %161 : vector<8x1x128xf32> to vector<8x128xf32>
    %c23 = arith.constant 23 : index
    %c0_78 = arith.constant 0 : index
    %c0_79 = arith.constant 0 : index
    %163 = vector.load %arg4[%c23, %c0_78, %c0_79] : memref<25x128x128xf32, #tpu.memory_space<vmem>>, vector<1x128x128xf32>
    %164 = vector.shape_cast %163 : vector<1x128x128xf32> to vector<128x128xf32>
    %cst_80 = arith.constant dense<0.000000e+00> : vector<8x128xf32>
    %165 = tpu.matmul %162, %164, %cst_80 {dimension_numbers = #tpu.dot_dimension_numbers<[1], [0], [0], [1], [0, 0, 1, 1], [], []>} : vector<8x128xf32>, vector<128x128xf32>, vector<8x128xf32> -> vector<8x128xf32>
    %166 = arith.addf %160, %165 : vector<8x128xf32>
    %167 = vector.extract_strided_slice %21 {offsets = [0, 24, 0], sizes = [8, 1, 128], strides = [1, 1, 1]} : vector<8x32x128xf32> to vector<8x1x128xf32>
    %168 = vector.shape_cast %167 : vector<8x1x128xf32> to vector<8x128xf32>
    %c24 = arith.constant 24 : index
    %c0_81 = arith.constant 0 : index
    %c0_82 = arith.constant 0 : index
    %169 = vector.load %arg4[%c24, %c0_81, %c0_82] : memref<25x128x128xf32, #tpu.memory_space<vmem>>, vector<1x128x128xf32>
    %170 = vector.shape_cast %169 : vector<1x128x128xf32> to vector<128x128xf32>
    %cst_83 = arith.constant dense<0.000000e+00> : vector<8x128xf32>
    %171 = tpu.matmul %168, %170, %cst_83 {dimension_numbers = #tpu.dot_dimension_numbers<[1], [0], [0], [1], [0, 0, 1, 1], [], []>} : vector<8x128xf32>, vector<128x128xf32>, vector<8x128xf32> -> vector<8x128xf32>
    %172 = arith.addf %166, %171 : vector<8x128xf32>
    %c0_84 = arith.constant 0 : index
    %c0_85 = arith.constant 0 : index
    %173 = vector.load %arg5[%c0_84, %c0_85] : memref<1x128xf32, #tpu.memory_space<vmem>>, vector<1x128xf32>
    %174 = vector.broadcast %173 : vector<1x128xf32> to vector<8x128xf32>
    %175 = arith.addf %172, %174 : vector<8x128xf32>
    %cst_86 = arith.constant 0.000000e+00 : f32
    %176 = vector.broadcast %cst_86 : f32 to vector<8x128xf32>
    %177 = arith.maximumf %175, %176 : vector<8x128xf32>
    %c0_87 = arith.constant 0 : index
    %c0_88 = arith.constant 0 : index
    %178 = vector.load %arg6[%c0_87, %c0_88] : memref<128x128xf32, #tpu.memory_space<vmem>>, vector<128x128xf32>
    %cst_89 = arith.constant dense<0.000000e+00> : vector<8x128xf32>
    %179 = tpu.matmul %177, %178, %cst_89 {dimension_numbers = #tpu.dot_dimension_numbers<[1], [0], [0], [1], [0, 0, 1, 1], [], []>} : vector<8x128xf32>, vector<128x128xf32>, vector<8x128xf32> -> vector<8x128xf32>
    %c0_90 = arith.constant 0 : index
    %c0_91 = arith.constant 0 : index
    %180 = vector.load %arg7[%c0_90, %c0_91] : memref<1x128xf32, #tpu.memory_space<vmem>>, vector<1x128xf32>
    %181 = vector.broadcast %180 : vector<1x128xf32> to vector<8x128xf32>
    %182 = arith.addf %179, %181 : vector<8x128xf32>
    %cst_92 = arith.constant 0.000000e+00 : f32
    %183 = vector.broadcast %cst_92 : f32 to vector<8x128xf32>
    %184 = arith.maximumf %182, %183 : vector<8x128xf32>
    %c0_93 = arith.constant 0 : index
    %c0_94 = arith.constant 0 : index
    %185 = vector.load %arg8[%c0_93, %c0_94] : memref<128x128xf32, #tpu.memory_space<vmem>>, vector<128x128xf32>
    %cst_95 = arith.constant dense<0.000000e+00> : vector<8x128xf32>
    %186 = tpu.matmul %184, %185, %cst_95 {dimension_numbers = #tpu.dot_dimension_numbers<[1], [0], [0], [1], [0, 0, 1, 1], [], []>} : vector<8x128xf32>, vector<128x128xf32>, vector<8x128xf32> -> vector<8x128xf32>
    %c0_96 = arith.constant 0 : index
    %c0_97 = arith.constant 0 : index
    %187 = vector.load %arg9[%c0_96, %c0_97] : memref<1x128xf32, #tpu.memory_space<vmem>>, vector<1x128xf32>
    %188 = vector.broadcast %187 : vector<1x128xf32> to vector<8x128xf32>
    %189 = arith.addf %186, %188 : vector<8x128xf32>
    %c0_98 = arith.constant 0 : index
    %c0_99 = arith.constant 0 : index
    %190 = vector.load %arg10[%c0_98, %c0_99] : memref<8x128xf32, #tpu.memory_space<vmem>>, vector<8x128xf32>
    tpu.vector_store %arg10[%c0_98, %c0_99], %184 {strides = array<i32>} : memref<8x128xf32, #tpu.memory_space<vmem>>, vector<8x128xf32>,
    %c0_100 = arith.constant 0 : index
    %c0_101 = arith.constant 0 : index
    %191 = vector.load %arg11[%c0_100, %c0_101] : memref<8x128xf32, #tpu.memory_space<vmem>>, vector<8x128xf32>
    tpu.vector_store %arg11[%c0_100, %c0_101], %189 {strides = array<i32>} : memref<8x128xf32, #tpu.memory_space<vmem>>, vector<8x128xf32>,
    return
  }
  func.func @transform_0(%arg0: i32) -> (i32, i32, i32) {
    %c0_i32 = arith.constant 0 : i32
    %c0_i32_0 = arith.constant 0 : i32
    %c0_i32_1 = arith.constant 0 : i32
    return %arg0, %c0_i32, %c0_i32_0 : i32, i32, i32
  }
  func.func @transform_1(%arg0: i32) -> (i32, i32) {
    %c0_i32 = arith.constant 0 : i32
    %c0_i32_0 = arith.constant 0 : i32
    %c0_i32_1 = arith.constant 0 : i32
    return %c0_i32, %c0_i32_0 : i32, i32
  }
  func.func @transform_2(%arg0: i32) -> (i32, i32) {
    %c0_i32 = arith.constant 0 : i32
    %c0_i32_0 = arith.constant 0 : i32
    %c0_i32_1 = arith.constant 0 : i32
    return %c0_i32, %c0_i32_0 : i32, i32
  }
  func.func @transform_3(%arg0: i32) -> (i32, i32, i32) {
    %c0_i32 = arith.constant 0 : i32
    %c0_i32_0 = arith.constant 0 : i32
    %c0_i32_1 = arith.constant 0 : i32
    %c0_i32_2 = arith.constant 0 : i32
    return %c0_i32, %c0_i32_0, %c0_i32_1 : i32, i32, i32
  }
  func.func @transform_4(%arg0: i32) -> (i32, i32) {
    %c0_i32 = arith.constant 0 : i32
    %c0_i32_0 = arith.constant 0 : i32
    %c0_i32_1 = arith.constant 0 : i32
    return %c0_i32, %c0_i32_0 : i32, i32
  }
  func.func @transform_5(%arg0: i32) -> (i32, i32) {
    %c0_i32 = arith.constant 0 : i32
    %c0_i32_0 = arith.constant 0 : i32
    %c0_i32_1 = arith.constant 0 : i32
    return %c0_i32, %c0_i32_0 : i32, i32
  }
  func.func @transform_6(%arg0: i32) -> (i32, i32) {
    %c0_i32 = arith.constant 0 : i32
    %c0_i32_0 = arith.constant 0 : i32
    %c0_i32_1 = arith.constant 0 : i32
    return %c0_i32, %c0_i32_0 : i32, i32
  }
  func.func @transform_7(%arg0: i32) -> (i32, i32) {
    %c0_i32 = arith.constant 0 : i32
    %c0_i32_0 = arith.constant 0 : i32
    %c0_i32_1 = arith.constant 0 : i32
    return %c0_i32, %c0_i32_0 : i32, i32
  }
  func.func @transform_8(%arg0: i32) -> (i32, i32) {
    %c0_i32 = arith.constant 0 : i32
    %c0_i32_0 = arith.constant 0 : i32
    %c0_i32_1 = arith.constant 0 : i32
    return %c0_i32, %c0_i32_0 : i32, i32
  }
  func.func @transform_9(%arg0: i32) -> (i32, i32) {
    %c0_i32 = arith.constant 0 : i32
    %c0_i32_0 = arith.constant 0 : i32
    return %arg0, %c0_i32 : i32, i32
  }
  func.func @transform_10(%arg0: i32) -> (i32, i32) {
    %c0_i32 = arith.constant 0 : i32
    %c0_i32_0 = arith.constant 0 : i32
    return %arg0, %c0_i32 : i32, i32
  }
}

</mosaic_0001>

<bundles_post_ra>
// kernel: modelfedcon_forward.2
= control target key start
LH: loop header
LB: loop body
LE: loop exit
PB: predicated region body
PF: predicated region fallthrough
CT: control target
= control target key end

     0   :  { %s9998_s12 = smov 0   ;;  %s12667_s0 = inlined_call_operand.vmem [shape: bf16[16,832,128], index: 0, kind: input, shape index: {}]   ;;  %s12668_s1 = inlined_call_operand.vmem [shape: bf16[128,128], index: 1, kind: input, shape index: {}]   ;;  %s12669_s2 = inlined_call_operand.vmem [shape: f32[1,128], index: 2, kind: input, shape index: {}]   ;;  %s12670_s3 = inlined_call_operand.vmem [shape: bf16[16,208,128], index: 3, kind: output, shape index: {}]  }
   0x1 LB: > { %s7178_s13 = sadd.s32 4294967295, %s9976_s12   ;;  %p7182_p0 = scmp.ge.s32.totalorder %s9976_s12, 1  ;;  %s9976_s12 = sphi %s9998_s12, %s13_s12  }
   0x2   : > { %p139_p1 = scmp.lt.s32.totalorder %s9976_s12, 3 }
   0x4   : > { %p140_p2 = pnand %p7182_p0, %p139_p1 }
   0x6   : > { %143 = sbr.rel (%p140_p2) target bundleno = 1844 (0x734), region = 32 }
   0xb   : > { %v9308_v0 = vld [vmem:[%s12668_s1 + $0x38] sm:$0xff]  ;;  %v9307_v1 = vld [vmem:[%s12668_s1 + $0x30] sm:$0xff]  ;;  %v9306_v2 = vld [vmem:[%s12668_s1 + $0x28] sm:$0xff]  ;;  %s7183_s22 = sshll.u32 %s7178_s13, 3 }
   0xc   : > { %3571 = vmatpush.bf16.msra.mxu0 %v9308_v0  ;;  %9932 = vmatpush.bf16.msra.mxu1 %v9308_v0  ;;  %v9305_v3 = vld [vmem:[%s12668_s1 + $0x20] sm:$0xff]  ;;  %v9304_v4 = vld [vmem:[%s12668_s1 + $0x18] sm:$0xff]  ;;  %p166_p3 = scmp.lt.s32.totalorder %s7183_s22, 15  ;;  %v9303_v5 = vld [vmem:[%s12668_s1 + $0x10] sm:$0xff] }
   0xd   : > { %9933 = vmatpush.bf16.msra.mxu2 %v9308_v0  ;;  %9934 = vmatpush.bf16.msra.mxu3 %v9308_v0  ;;  %v9302_v6 = vld [vmem:[%s12668_s1 + $0x8] sm:$0xff]  ;;  %v9301_v7 = vld [vmem:[%s12668_s1] sm:$0xff] }
   0xe   : > { %s13722_s22 = smov (!%p166_p3, %s7183_s22), 15 }
   0xf   : > { %s9956_s29 = smul.u32 416, %s13722_s22 }
  0x10   : > { %3572 = vmatpush.bf16.msra.mxu0 %v9307_v1  ;;  %9935 = vmatpush.bf16.msra.mxu1 %v9307_v1  ;;  %s9957_s10 = smul.u32 104, %s13722_s22 }
  0x11   : > { %9936 = vmatpush.bf16.msra.mxu2 %v9307_v1  ;;  %9937 = vmatpush.bf16.msra.mxu3 %v9307_v1  ;;  %s10036_s7 = scalar_lea.vmem %s12667_s0, %s9956_s29 }
  0x12   : > { %v8885_v8 = vld [vmem:[%s10036_s7] sm:$0xff]  ;;  %v8886_v12 = vld [vmem:[%s10036_s7 + $0x8] sm:$0xff]  ;;  %v8887_v16 = vld [vmem:[%s10036_s7 + $0x10] sm:$0xff]  ;;  %s10891_s14 = scalar_lea.vmem %s12670_s3, %s9957_s10 }
  0x13   : > { %v8989_v9 = vld [vmem:[%s10036_s7 + $0x340] sm:$0xff]  ;;  %v8990_v13 = vld [vmem:[%s10036_s7 + $0x348] sm:$0xff]  ;;  %v8991_v17 = vld [vmem:[%s10036_s7 + $0x350] sm:$0xff] }
  0x14   : > { %3573 = vmatpush.bf16.msra.mxu0 %v9306_v2  ;;  %9938 = vmatpush.bf16.msra.mxu1 %v9306_v2  ;;  %v9093_v10 = vld [vmem:[%s10036_s7 + $0x680] sm:$0xff]  ;;  %v9094_v14 = vld [vmem:[%s10036_s7 + $0x688] sm:$0xff]  ;;  %v9095_v18 = vld [vmem:[%s10036_s7 + $0x690] sm:$0xff] }
  0x15   : > { %9939 = vmatpush.bf16.msra.mxu2 %v9306_v2  ;;  %9940 = vmatpush.bf16.msra.mxu3 %v9306_v2  ;;  %v9197_v11 = vld [vmem:[%s10036_s7 + $0x9c0] sm:$0xff]  ;;  %v9198_v15 = vld [vmem:[%s10036_s7 + $0x9c8] sm:$0xff]  ;;  %v9199_v19 = vld [vmem:[%s10036_s7 + $0x9d0] sm:$0xff] }
  0x16   : > { %v8888_v20 = vld [vmem:[%s10036_s7 + $0x18] sm:$0xff]  ;;  %v8889_v24 = vld [vmem:[%s10036_s7 + $0x20] sm:$0xff]  ;;  %v8890_v28 = vld [vmem:[%s10036_s7 + $0x28] sm:$0xff] }
  0x17   : > { %v8992_v21 = vld [vmem:[%s10036_s7 + $0x358] sm:$0xff]  ;;  %v8993_v25 = vld [vmem:[%s10036_s7 + $0x360] sm:$0xff]  ;;  %v8994_v29 = vld [vmem:[%s10036_s7 + $0x368] sm:$0xff] }
  0x18   : > { %3574 = vmatpush.bf16.msra.mxu0 %v9305_v3  ;;  %9941 = vmatpush.bf16.msra.mxu1 %v9305_v3  ;;  %v9096_v22 = vld [vmem:[%s10036_s7 + $0x698] sm:$0xff]  ;;  %v9097_v26 = vld [vmem:[%s10036_s7 + $0x6a0] sm:$0xff]  ;;  %v9098_v30 = vld [vmem:[%s10036_s7 + $0x6a8] sm:$0xff] }
  0x19   : > { %9942 = vmatpush.bf16.msra.mxu2 %v9305_v3  ;;  %9943 = vmatpush.bf16.msra.mxu3 %v9305_v3  ;;  %v9200_v23 = vld [vmem:[%s10036_s7 + $0x9d8] sm:$0xff]  ;;  %v9201_v27 = vld [vmem:[%s10036_s7 + $0x9e0] sm:$0xff]  ;;  %v9202_v31 = vld [vmem:[%s10036_s7 + $0x9e8] sm:$0xff] }
  0x1a   : > { %v8891_v32 = vld [vmem:[%s10036_s7 + $0x30] sm:$0xff]  ;;  %v8892_v36 = vld [vmem:[%s10036_s7 + $0x38] sm:$0xff]  ;;  %v8893_v40 = vld [vmem:[%s10036_s7 + $0x40] sm:$0xff] }
  0x1b   : > { %v8995_v33 = vld [vmem:[%s10036_s7 + $0x370] sm:$0xff]  ;;  %v8996_v37 = vld [vmem:[%s10036_s7 + $0x378] sm:$0xff]  ;;  %v8997_v41 = vld [vmem:[%s10036_s7 + $0x380] sm:$0xff] }
  0x1c   : > { %3575 = vmatpush.bf16.msra.mxu0 %v9304_v4  ;;  %9944 = vmatpush.bf16.msra.mxu1 %v9304_v4  ;;  %v9099_v34 = vld [vmem:[%s10036_s7 + $0x6b0] sm:$0xff]  ;;  %v9100_v38 = vld [vmem:[%s10036_s7 + $0x6b8] sm:$0xff]  ;;  %v9101_v44 = vld [vmem:[%s10036_s7 + $0x6c0] sm:$0xff] }
  0x1d   : > { %9945 = vmatpush.bf16.msra.mxu2 %v9304_v4  ;;  %9946 = vmatpush.bf16.msra.mxu3 %v9304_v4  ;;  %v9203_v35 = vld [vmem:[%s10036_s7 + $0x9f0] sm:$0xff]  ;;  %v9204_v39 = vld [vmem:[%s10036_s7 + $0x9f8] sm:$0xff]  ;;  %v9205_v45 = vld [vmem:[%s10036_s7 + $0xa00] sm:$0xff] }
  0x1e   : > { %v8894_v52 = vld [vmem:[%s10036_s7 + $0x48] sm:$0xff]  ;;  %v8895_v0 = vld [vmem:[%s10036_s7 + $0x50] sm:$0xff] }
  0x1f   : > { %v8998_v53 = vld [vmem:[%s10036_s7 + $0x388] sm:$0xff]  ;;  %v8999_v1 = vld [vmem:[%s10036_s7 + $0x390] sm:$0xff] }
  0x20   : > { %3576 = vmatpush.bf16.msra.mxu0 %v9303_v5  ;;  %9947 = vmatpush.bf16.msra.mxu1 %v9303_v5  ;;  %v9102_v56 = vld [vmem:[%s10036_s7 + $0x6c8] sm:$0xff]  ;;  %v9103_v4 = vld [vmem:[%s10036_s7 + $0x6d0] sm:$0xff] }
  0x21   : > { %9948 = vmatpush.bf16.msra.mxu2 %v9303_v5  ;;  %9949 = vmatpush.bf16.msra.mxu3 %v9303_v5  ;;  %v9206_v57 = vld [vmem:[%s10036_s7 + $0xa08] sm:$0xff]  ;;  %v9207_v5 = vld [vmem:[%s10036_s7 + $0xa10] sm:$0xff] }
  0x24   : > { %3577 = vmatpush.bf16.msra.mxu0 %v9302_v6  ;;  %9950 = vmatpush.bf16.msra.mxu1 %v9302_v6 }
  0x25   : > { %9951 = vmatpush.bf16.msra.mxu2 %v9302_v6  ;;  %9952 = vmatpush.bf16.msra.mxu3 %v9302_v6 }
  0x28   : > { %3578 = vmatpush.bf16.msra.mxu0 %v9301_v7  ;;  %9953 = vmatpush.bf16.msra.mxu1 %v9301_v7 }
  0x29   : > { %9954 = vmatpush.bf16.msra.mxu2 %v9301_v7  ;;  %9955 = vmatpush.bf16.msra.mxu3 %v9301_v7 }
  0x2b   : > { %3579 = vmatmul.bf16.vlgmr.msra.gmra.mxu0 %v8885_v8  ;;  %4099 = vmatmul.bf16.vlgmr.msra.gmra.mxu1 %v8989_v9 }
  0x2c   : > { %4619 = vmatmul.bf16.vlgmr.msra.gmra.mxu2 %v9093_v10  ;;  %5139 = vmatmul.bf16.vlgmr.msra.gmra.mxu3 %v9197_v11 }
  0x3b   : > { %3584 = vmatmul.bf16.gmra.mxu0 %v8886_v12  ;;  %4104 = vmatmul.bf16.gmra.mxu1 %v8990_v13  ;;  %v8896_v12 = vld [vmem:[%s10036_s7 + $0x58] sm:$0xff] }
  0x3c   : > { %4624 = vmatmul.bf16.gmra.mxu2 %v9094_v14  ;;  %5144 = vmatmul.bf16.gmra.mxu3 %v9198_v15  ;;  %v9000_v13 = vld [vmem:[%s10036_s7 + $0x398] sm:$0xff] }
  0x4b   : > { %3589 = vmatmul.bf16.gmra.mxu0 %v8887_v16  ;;  %4109 = vmatmul.bf16.gmra.mxu1 %v8991_v17  ;;  %v9104_v16 = vld [vmem:[%s10036_s7 + $0x6d8] sm:$0xff] }
  0x4c   : > { %4629 = vmatmul.bf16.gmra.mxu2 %v9095_v18  ;;  %5149 = vmatmul.bf16.gmra.mxu3 %v9199_v19  ;;  %v9208_v17 = vld [vmem:[%s10036_s7 + $0xa18] sm:$0xff] }
  0x5b   : > { %3594 = vmatmul.bf16.gmra.mxu0 %v8888_v20  ;;  %4114 = vmatmul.bf16.gmra.mxu1 %v8992_v21 }
  0x5c   : > { %4634 = vmatmul.bf16.gmra.mxu2 %v9096_v22  ;;  %5154 = vmatmul.bf16.gmra.mxu3 %v9200_v23 }
  0x6b   : > { %3599 = vmatmul.bf16.gmra.mxu0 %v8889_v24  ;;  %4119 = vmatmul.bf16.gmra.mxu1 %v8993_v25  ;;  %v8897_v24 = vld [vmem:[%s10036_s7 + $0x60] sm:$0xff] }
  0x6c   : > { %4639 = vmatmul.bf16.gmra.mxu2 %v9097_v26  ;;  %5159 = vmatmul.bf16.gmra.mxu3 %v9201_v27  ;;  %v9001_v25 = vld [vmem:[%s10036_s7 + $0x3a0] sm:$0xff] }
  0x7b   : > { %3604 = vmatmul.bf16.gmra.mxu0 %v8890_v28  ;;  %4124 = vmatmul.bf16.gmra.mxu1 %v8994_v29  ;;  %v9105_v28 = vld [vmem:[%s10036_s7 + $0x6e0] sm:$0xff] }
  0x7c   : > { %4644 = vmatmul.bf16.gmra.mxu2 %v9098_v30  ;;  %5164 = vmatmul.bf16.gmra.mxu3 %v9202_v31  ;;  %v9209_v29 = vld [vmem:[%s10036_s7 + $0xa20] sm:$0xff] }
  0x8b   : > { %3609 = vmatmul.bf16.gmra.mxu0 %v8891_v32  ;;  %4129 = vmatmul.bf16.gmra.mxu1 %v8995_v33 }
  0x8c   : > { %4649 = vmatmul.bf16.gmra.mxu2 %v9099_v34  ;;  %5169 = vmatmul.bf16.gmra.mxu3 %v9203_v35 }
  0x9b   : > { %3614 = vmatmul.bf16.gmra.mxu0 %v8892_v36  ;;  %4134 = vmatmul.bf16.gmra.mxu1 %v8996_v37  ;;  %v8898_v36 = vld [vmem:[%s10036_s7 + $0x68] sm:$0xff] }
  0x9c   : > { %4654 = vmatmul.bf16.gmra.mxu2 %v9100_v38  ;;  %5174 = vmatmul.bf16.gmra.mxu3 %v9204_v39  ;;  %v9002_v37 = vld [vmem:[%s10036_s7 + $0x3a8] sm:$0xff] }
  0xa8   : > { %v10072_v42 = vpop.f32.mrf.mxu0  ;;  %v10074_v43 = vpop.f32.mrf.mxu1 }
  0xab   : > { %3619 = vmatmul.bf16.gmra.mxu0 %v8893_v40  ;;  %4139 = vmatmul.bf16.gmra.mxu1 %v8997_v41  ;;  %v9106_v40 = vld [vmem:[%s10036_s7 + $0x6e8] sm:$0xff] }
  0xac   : > { %4659 = vmatmul.bf16.gmra.mxu2 %v9101_v44  ;;  %5179 = vmatmul.bf16.gmra.mxu3 %v9205_v45  ;;  %v9210_v41 = vld [vmem:[%s10036_s7 + $0xa28] sm:$0xff] }
  0xaf   : > { %v10078_v46 = vpop.f32.mrf.mxu2  ;;  %v10080_v47 = vpop.f32.mrf.mxu3 }
  0xb0   : > { %v10082_v48 = vpop.f32.mrf.mxu0  ;;  %v10084_v49 = vpop.f32.mrf.mxu1 }
  0xb7   : > { %v10086_v50 = vpop.f32.mrf.mxu2  ;;  %v10088_v51 = vpop.f32.mrf.mxu3 }
  0xb8   : > { %v10092_v54 = vpop.f32.mrf.mxu0  ;;  %v10094_v55 = vpop.f32.mrf.mxu1 }
  0xbb   : > { %3624 = vmatmul.bf16.gmra.mxu0 %v8894_v52  ;;  %4144 = vmatmul.bf16.gmra.mxu1 %v8998_v53 }
  0xbc   : > { %4664 = vmatmul.bf16.gmra.mxu2 %v9102_v56  ;;  %5184 = vmatmul.bf16.gmra.mxu3 %v9206_v57 }
  0xbf   : > { %v10098_v58 = vpop.f32.mrf.mxu2  ;;  %v10100_v59 = vpop.f32.mrf.mxu3 }
  0xc0   : > { %v10102_v60 = vpop.f32.mrf.mxu0  ;;  %v10104_v61 = vpop.f32.mrf.mxu1 }
  0xc7   : > { %v10106_v62 = vpop.f32.mrf.mxu2  ;;  %v10108_v63 = vpop.f32.mrf.mxu3 }
  0xc8   : > { %v10112_v2 = vpop.f32.mrf.mxu0  ;;  %v10114_v3 = vpop.f32.mrf.mxu1 }
  0xc9   : > { %12671 = vst [vmem:[#allocation2_spill] sm:$0xff] %v10112_v2 }
  0xca   : > { %12672 = vst [vmem:[#allocation3_spill] sm:$0xff] %v10114_v3  ;;  %v8922_v3 = vld [vmem:[%s10036_s7 + $0x128] sm:$0xff] }
  0xcb   : > { %3629 = vmatmul.bf16.gmra.mxu0 %v8895_v0  ;;  %4149 = vmatmul.bf16.gmra.mxu1 %v8999_v1  ;;  %v8899_v0 = vld [vmem:[%s10036_s7 + $0x70] sm:$0xff] }
  0xcc   : > { %4669 = vmatmul.bf16.gmra.mxu2 %v9103_v4  ;;  %5189 = vmatmul.bf16.gmra.mxu3 %v9207_v5  ;;  %v9003_v1 = vld [vmem:[%s10036_s7 + $0x3b0] sm:$0xff] }
  0xcf   : > { %v10118_v6 = vpop.f32.mrf.mxu2  ;;  %v10120_v7 = vpop.f32.mrf.mxu3 }
  0xd0   : > { %12673 = vst [vmem:[#allocation4_spill] sm:$0xff] %v10118_v6  ;;  %v10122_v8 = vpop.f32.mrf.mxu0  ;;  %v10124_v9 = vpop.f32.mrf.mxu1 }
  0xd1   : > { %12674 = vst [vmem:[#allocation5_spill] sm:$0xff] %v10120_v7  ;;  %v8921_v7 = vld [vmem:[%s10036_s7 + $0x120] sm:$0xff] }
  0xd2   : > { %12675 = vst [vmem:[#allocation6_spill] sm:$0xff] %v10122_v8 }
  0xd3   : > { %12676 = vst [vmem:[#allocation7_spill] sm:$0xff] %v10124_v9 }
  0xd7   : > { %v10126_v10 = vpop.f32.mrf.mxu2  ;;  %v10128_v11 = vpop.f32.mrf.mxu3 }
  0xd8   : > { %12677 = vst [vmem:[#allocation8_spill] sm:$0xff] %v10126_v10  ;;  %v10132_v14 = vpop.f32.mrf.mxu0  ;;  %v10134_v15 = vpop.f32.mrf.mxu1 }
  0xd9   : > { %12678 = vst [vmem:[#allocation9_spill] sm:$0xff] %v10128_v11 }
  0xda   : > { %12679 = vst [vmem:[#allocation10_spill] sm:$0xff] %v10132_v14 }
  0xdb   : > { %12680 = vst [vmem:[#allocation11_spill] sm:$0xff] %v10134_v15  ;;  %3634 = vmatmul.bf16.gmra.mxu0 %v8896_v12  ;;  %4154 = vmatmul.bf16.gmra.mxu1 %v9000_v13  ;;  %v9107_v12 = vld [vmem:[%s10036_s7 + $0x6f0] sm:$0xff]  ;;  %v8920_v15 = vld [vmem:[%s10036_s7 + $0x118] sm:$0xff] }
  0xdc   : > { %4674 = vmatmul.bf16.gmra.mxu2 %v9104_v16  ;;  %5194 = vmatmul.bf16.gmra.mxu3 %v9208_v17  ;;  %v9211_v13 = vld [vmem:[%s10036_s7 + $0xa30] sm:$0xff] }
  0xdf   : > { %v10138_v18 = vpop.f32.mrf.mxu2  ;;  %v10140_v19 = vpop.f32.mrf.mxu3 }
  0xe0   : > { %12681 = vst [vmem:[#allocation12_spill] sm:$0xff] %v10138_v18  ;;  %v10142_v20 = vpop.f32.mrf.mxu0  ;;  %v10144_v21 = vpop.f32.mrf.mxu1 }
  0xe1   : > { %12682 = vst [vmem:[#allocation13_spill] sm:$0xff] %v10140_v19 }
  0xe2   : > { %12683 = vst [vmem:[#allocation14_spill] sm:$0xff] %v10142_v20  ;;  %v9014_v20 = vld [vmem:[%s10036_s7 + $0x408] sm:$0xff] }
  0xe3   : > { %12684 = vst [vmem:[#allocation15_spill] sm:$0xff] %v10144_v21  ;;  %v8910_v21 = vld [vmem:[%s10036_s7 + $0xc8] sm:$0xff] }
  0xe7   : > { %v10146_v22 = vpop.f32.mrf.mxu2  ;;  %v10148_v23 = vpop.f32.mrf.mxu3 }
  0xe8   : > { %12685 = vst [vmem:[#allocation16_spill] sm:$0xff] %v10146_v22  ;;  %v10152_v26 = vpop.f32.mrf.mxu0  ;;  %v10154_v27 = vpop.f32.mrf.mxu1 }
  0xe9   : > { %12686 = vst [vmem:[#allocation17_spill] sm:$0xff] %v10148_v23 }
  0xea   : > { %12687 = vst [vmem:[#allocation18_spill] sm:$0xff] %v10152_v26 }
  0xeb   : > { %12688 = vst [vmem:[#allocation19_spill] sm:$0xff] %v10154_v27  ;;  %3639 = vmatmul.bf16.gmra.mxu0 %v8897_v24  ;;  %4159 = vmatmul.bf16.gmra.mxu1 %v9001_v25 }
  0xec   : > { %4679 = vmatmul.bf16.gmra.mxu2 %v9105_v28  ;;  %5199 = vmatmul.bf16.gmra.mxu3 %v9209_v29 }
  0xef   : > { %v10158_v30 = vpop.f32.mrf.mxu2  ;;  %v10160_v31 = vpop.f32.mrf.mxu3 }
  0xf0   : > { %12689 = vst [vmem:[#allocation20_spill] sm:$0xff] %v10158_v30  ;;  %v10162_v32 = vpop.f32.mrf.mxu0  ;;  %v10164_v33 = vpop.f32.mrf.mxu1 }
  0xf1   : > { %12690 = vst [vmem:[#allocation21_spill] sm:$0xff] %v10160_v31 }
  0xf2   : > { %12691 = vst [vmem:[#allocation22_spill] sm:$0xff] %v10162_v32  ;;  %v9013_v32 = vld [vmem:[%s10036_s7 + $0x400] sm:$0xff] }
  0xf3   : > { %12692 = vst [vmem:[#allocation23_spill] sm:$0xff] %v10164_v33  ;;  %v8909_v33 = vld [vmem:[%s10036_s7 + $0xc0] sm:$0xff] }
  0xf7   : > { %v10166_v34 = vpop.f32.mrf.mxu2  ;;  %v10168_v35 = vpop.f32.mrf.mxu3 }
  0xf8   : > { %12693 = vst [vmem:[#allocation24_spill] sm:$0xff] %v10166_v34  ;;  %v10172_v38 = vpop.f32.mrf.mxu0  ;;  %v10174_v39 = vpop.f32.mrf.mxu1 }
  0xf9   : > { %12694 = vst [vmem:[#allocation25_spill] sm:$0xff] %v10168_v35 }
  0xfa   : > { %12695 = vst [vmem:[#allocation26_spill] sm:$0xff] %v10172_v38 }
  0xfb   : > { %12696 = vst [vmem:[#allocation27_spill] sm:$0xff] %v10174_v39  ;;  %3644 = vmatmul.bf16.gmra.mxu0 %v8898_v36  ;;  %4164 = vmatmul.bf16.gmra.mxu1 %v9002_v37  ;;  %v8900_v36 = vld [vmem:[%s10036_s7 + $0x78] sm:$0xff] }
  0xfc   : > { %4684 = vmatmul.bf16.gmra.mxu2 %v9106_v40  ;;  %5204 = vmatmul.bf16.gmra.mxu3 %v9210_v41  ;;  %v9004_v37 = vld [vmem:[%s10036_s7 + $0x3b8] sm:$0xff] }
  0xff   : > { %v10178_v44 = vpop.f32.mrf.mxu2  ;;  %v10180_v45 = vpop.f32.mrf.mxu3 }
 0x100   : > { %12697 = vst [vmem:[#allocation28_spill] sm:$0xff] %v10178_v44  ;;  %v10182_v52 = vpop.f32.mrf.mxu0  ;;  %v10184_v53 = vpop.f32.mrf.mxu1 }
 0x101   : > { %12698 = vst [vmem:[#allocation29_spill] sm:$0xff] %v10180_v45 }
 0x102   : > { %12699 = vst [vmem:[#allocation30_spill] sm:$0xff] %v10182_v52  ;;  %v9012_v52 = vld [vmem:[%s10036_s7 + $0x3f8] sm:$0xff] }
 0x103   : > { %12700 = vst [vmem:[#allocation31_spill] sm:$0xff] %v10184_v53  ;;  %v8908_v53 = vld [vmem:[%s10036_s7 + $0xb8] sm:$0xff] }
 0x107   : > { %v10186_v56 = vpop.f32.mrf.mxu2  ;;  %v10188_v57 = vpop.f32.mrf.mxu3 }
 0x108   : > { %12701 = vst [vmem:[#allocation32_spill] sm:$0xff] %v10186_v56  ;;  %v10192_v4 = vpop.f32.mrf.mxu0  ;;  %v10194_v5 = vpop.f32.mrf.mxu1 }
 0x109   : > { %12702 = vst [vmem:[#allocation33_spill] sm:$0xff] %v10188_v57 }
 0x10a   : > { %12703 = vst [vmem:[#allocation34_spill] sm:$0xff] %v10192_v4 }
 0x10b   : > { %12704 = vst [vmem:[#allocation35_spill] sm:$0xff] %v10194_v5  ;;  %3649 = vmatmul.bf16.gmra.mxu0 %v8899_v0  ;;  %4169 = vmatmul.bf16.gmra.mxu1 %v9003_v1  ;;  %v9108_v0 = vld [vmem:[%s10036_s7 + $0x6f8] sm:$0xff] }
 0x10c   : > { %4689 = vmatmul.bf16.gmra.mxu2 %v9107_v12  ;;  %5209 = vmatmul.bf16.gmra.mxu3 %v9211_v13  ;;  %v9212_v1 = vld [vmem:[%s10036_s7 + $0xa38] sm:$0xff] }
 0x10f   : > { %v10198_v16 = vpop.f32.mrf.mxu2  ;;  %v10200_v17 = vpop.f32.mrf.mxu3 }
 0x110   : > { %12705 = vst [vmem:[#allocation36_spill] sm:$0xff] %v10198_v16  ;;  %v10202_v24 = vpop.f32.mrf.mxu0  ;;  %v10204_v25 = vpop.f32.mrf.mxu1  ;;  %v9005_v16 = vld [vmem:[%s10036_s7 + $0x3c0] sm:$0xff] }
 0x111   : > { %12706 = vst [vmem:[#allocation37_spill] sm:$0xff] %v10200_v17 }
 0x112   : > { %12707 = vst [vmem:[#allocation38_spill] sm:$0xff] %v10202_v24  ;;  %v9011_v24 = vld [vmem:[%s10036_s7 + $0x3f0] sm:$0xff] }
 0x113   : > { %12708 = vst [vmem:[#allocation39_spill] sm:$0xff] %v10204_v25  ;;  %v8907_v25 = vld [vmem:[%s10036_s7 + $0xb0] sm:$0xff] }
 0x117   : > { %v10206_v28 = vpop.f32.mrf.mxu2  ;;  %v10208_v29 = vpop.f32.mrf.mxu3 }
 0x118   : > { %12709 = vst [vmem:[#allocation40_spill] sm:$0xff] %v10206_v28  ;;  %v10212_v40 = vpop.f32.mrf.mxu0  ;;  %v10214_v41 = vpop.f32.mrf.mxu1 }
 0x119   : > { %12710 = vst [vmem:[#allocation41_spill] sm:$0xff] %v10208_v29 }
 0x11a   : > { %12711 = vst [vmem:[#allocation42_spill] sm:$0xff] %v10212_v40 }
 0x11b   : > { %12712 = vst [vmem:[#allocation43_spill] sm:$0xff] %v10214_v41  ;;  %3654 = vmatmul.bf16.gmra.mxu0 %v8900_v36  ;;  %4174 = vmatmul.bf16.gmra.mxu1 %v9004_v37  ;;  %v8901_v41 = vld [vmem:[%s10036_s7 + $0x80] sm:$0xff] }
 0x11c   : > { %4694 = vmatmul.bf16.gmra.mxu2 %v9108_v0  ;;  %5214 = vmatmul.bf16.gmra.mxu3 %v9212_v1  ;;  %v9109_v0 = vld [vmem:[%s10036_s7 + $0x700] sm:$0xff] }
 0x11d   : > { %v9213_v1 = vld [vmem:[%s10036_s7 + $0xa40] sm:$0xff] }
 0x11f   : > { %v10218_v12 = vpop.f32.mrf.mxu2  ;;  %v10220_v13 = vpop.f32.mrf.mxu3 }
 0x120   : > { %12713 = vst [vmem:[#allocation44_spill] sm:$0xff] %v10218_v12  ;;  %v10222_v29 = vpop.f32.mrf.mxu0  ;;  %v10224_v28 = vpop.f32.mrf.mxu1 }
 0x121   : > { %12714 = vst [vmem:[#allocation45_spill] sm:$0xff] %v10220_v13 }
 0x122   : > { %12715 = vst [vmem:[#allocation46_spill] sm:$0xff] %v10222_v29  ;;  %v9006_v29 = vld [vmem:[%s10036_s7 + $0x3c8] sm:$0xff] }
 0x123   : > { %12716 = vst [vmem:[#allocation47_spill] sm:$0xff] %v10224_v28 }
 0x127   : > { %v10226_v17 = vpop.f32.mrf.mxu2  ;;  %v10228_v40 = vpop.f32.mrf.mxu3 }
 0x128   : > { %12717 = vst [vmem:[#allocation48_spill] sm:$0xff] %v10226_v17  ;;  %v10232_v36 = vpop.f32.mrf.mxu0  ;;  %v10234_v37 = vpop.f32.mrf.mxu1 }
 0x129   : > { %12718 = vst [vmem:[#allocation49_spill] sm:$0xff] %v10228_v40 }
 0x12a   : > { %12719 = vst [vmem:[#allocation50_spill] sm:$0xff] %v10232_v36 }
 0x12b   : > { %12720 = vst [vmem:[#allocation51_spill] sm:$0xff] %v10234_v37  ;;  %3659 = vmatmul.bf16.gmra.mxu0 %v8901_v41  ;;  %4179 = vmatmul.bf16.gmra.mxu1 %v9005_v16  ;;  %v8902_v37 = vld [vmem:[%s10036_s7 + $0x88] sm:$0xff] }
 0x12c   : > { %4699 = vmatmul.bf16.gmra.mxu2 %v9109_v0  ;;  %5219 = vmatmul.bf16.gmra.mxu3 %v9213_v1  ;;  %v9110_v0 = vld [vmem:[%s10036_s7 + $0x708] sm:$0xff] }
 0x12d   : > { %v9214_v1 = vld [vmem:[%s10036_s7 + $0xa48] sm:$0xff] }
 0x12f   : > { %v10238_v13 = vpop.f32.mrf.mxu2  ;;  %v10240_v17 = vpop.f32.mrf.mxu3 }
 0x130   : > { %12721 = vst [vmem:[#allocation52_spill] sm:$0xff] %v10238_v13  ;;  %v10242_v40 = vpop.f32.mrf.mxu0  ;;  %v10244_v12 = vpop.f32.mrf.mxu1 }
 0x131   : > { %12722 = vst [vmem:[#allocation53_spill] sm:$0xff] %v10240_v17 }
 0x132   : > { %12723 = vst [vmem:[#allocation54_spill] sm:$0xff] %v10242_v40  ;;  %v9007_v40 = vld [vmem:[%s10036_s7 + $0x3d0] sm:$0xff] }
 0x133   : > { %12724 = vst [vmem:[#allocation55_spill] sm:$0xff] %v10244_v12 }
 0x137   : > { %v10246_v28 = vpop.f32.mrf.mxu2  ;;  %v10248_v36 = vpop.f32.mrf.mxu3 }
 0x138   : > { %12725 = vst [vmem:[#allocation56_spill] sm:$0xff] %v10246_v28  ;;  %v10252_v41 = vpop.f32.mrf.mxu0  ;;  %v10254_v16 = vpop.f32.mrf.mxu1 }
 0x139   : > { %12726 = vst [vmem:[#allocation57_spill] sm:$0xff] %v10248_v36 }
 0x13a   : > { %12727 = vst [vmem:[#allocation58_spill] sm:$0xff] %v10252_v41 }
 0x13b   : > { %12728 = vst [vmem:[#allocation59_spill] sm:$0xff] %v10254_v16  ;;  %3664 = vmatmul.bf16.gmra.mxu0 %v8902_v37  ;;  %4184 = vmatmul.bf16.gmra.mxu1 %v9006_v29  ;;  %v8903_v16 = vld [vmem:[%s10036_s7 + $0x90] sm:$0xff] }
 0x13c   : > { %4704 = vmatmul.bf16.gmra.mxu2 %v9110_v0  ;;  %5224 = vmatmul.bf16.gmra.mxu3 %v9214_v1  ;;  %v9111_v0 = vld [vmem:[%s10036_s7 + $0x710] sm:$0xff] }
 0x13d   : > { %v9215_v1 = vld [vmem:[%s10036_s7 + $0xa50] sm:$0xff] }
 0x13f   : > { %v10258_v17 = vpop.f32.mrf.mxu2  ;;  %v10260_v28 = vpop.f32.mrf.mxu3 }
 0x140   : > { %12729 = vst [vmem:[#allocation60_spill] sm:$0xff] %v10258_v17  ;;  %v10262_v36 = vpop.f32.mrf.mxu0  ;;  %v10264_v13 = vpop.f32.mrf.mxu1 }
 0x141   : > { %12730 = vst [vmem:[#allocation61_spill] sm:$0xff] %v10260_v28 }
 0x142   : > { %12731 = vst [vmem:[#allocation62_spill] sm:$0xff] %v10262_v36  ;;  %v9008_v36 = vld [vmem:[%s10036_s7 + $0x3d8] sm:$0xff] }
 0x143   : > { %12732 = vst [vmem:[#allocation63_spill] sm:$0xff] %v10264_v13 }
 0x147   : > { %v10266_v12 = vpop.f32.mrf.mxu2  ;;  %v10268_v41 = vpop.f32.mrf.mxu3 }
 0x148   : > { %12733 = vst [vmem:[#allocation64_spill] sm:$0xff] %v10266_v12  ;;  %v10272_v37 = vpop.f32.mrf.mxu0  ;;  %v10274_v29 = vpop.f32.mrf.mxu1 }
 0x149   : > { %12734 = vst [vmem:[#allocation65_spill] sm:$0xff] %v10268_v41 }
 0x14a   : > { %12735 = vst [vmem:[#allocation66_spill] sm:$0xff] %v10272_v37 }
 0x14b   : > { %12736 = vst [vmem:[#allocation67_spill] sm:$0xff] %v10274_v29  ;;  %3669 = vmatmul.bf16.gmra.mxu0 %v8903_v16  ;;  %4189 = vmatmul.bf16.gmra.mxu1 %v9007_v40  ;;  %v8904_v29 = vld [vmem:[%s10036_s7 + $0x98] sm:$0xff] }
 0x14c   : > { %4709 = vmatmul.bf16.gmra.mxu2 %v9111_v0  ;;  %5229 = vmatmul.bf16.gmra.mxu3 %v9215_v1  ;;  %v9112_v0 = vld [vmem:[%s10036_s7 + $0x718] sm:$0xff] }
 0x14d   : > { %v9216_v1 = vld [vmem:[%s10036_s7 + $0xa58] sm:$0xff] }
 0x14f   : > { %v10278_v28 = vpop.f32.mrf.mxu2  ;;  %v10280_v12 = vpop.f32.mrf.mxu3 }
 0x150   : > { %12737 = vst [vmem:[#allocation68_spill] sm:$0xff] %v10278_v28  ;;  %v10282_v41 = vpop.f32.mrf.mxu0  ;;  %v10284_v17 = vpop.f32.mrf.mxu1 }
 0x151   : > { %12738 = vst [vmem:[#allocation69_spill] sm:$0xff] %v10280_v12 }
 0x152   : > { %12739 = vst [vmem:[#allocation70_spill] sm:$0xff] %v10282_v41  ;;  %v9009_v41 = vld [vmem:[%s10036_s7 + $0x3e0] sm:$0xff] }
 0x153   : > { %12740 = vst [vmem:[#allocation71_spill] sm:$0xff] %v10284_v17 }
 0x157   : > { %v10286_v13 = vpop.f32.mrf.mxu2  ;;  %v10288_v37 = vpop.f32.mrf.mxu3 }
 0x158   : > { %12741 = vst [vmem:[#allocation72_spill] sm:$0xff] %v10286_v13  ;;  %v10292_v16 = vpop.f32.mrf.mxu0  ;;  %v10294_v40 = vpop.f32.mrf.mxu1 }
 0x159   : > { %12742 = vst [vmem:[#allocation73_spill] sm:$0xff] %v10288_v37 }
 0x15a   : > { %12743 = vst [vmem:[#allocation74_spill] sm:$0xff] %v10292_v16 }
 0x15b   : > { %12744 = vst [vmem:[#allocation75_spill] sm:$0xff] %v10294_v40  ;;  %3674 = vmatmul.bf16.gmra.mxu0 %v8904_v29  ;;  %4194 = vmatmul.bf16.gmra.mxu1 %v9008_v36  ;;  %v8905_v40 = vld [vmem:[%s10036_s7 + $0xa0] sm:$0xff] }
 0x15c   : > { %4714 = vmatmul.bf16.gmra.mxu2 %v9112_v0  ;;  %5234 = vmatmul.bf16.gmra.mxu3 %v9216_v1  ;;  %v9113_v0 = vld [vmem:[%s10036_s7 + $0x720] sm:$0xff] }
 0x15d   : > { %v9217_v1 = vld [vmem:[%s10036_s7 + $0xa60] sm:$0xff] }
 0x15f   : > { %v10298_v12 = vpop.f32.mrf.mxu2  ;;  %v10300_v13 = vpop.f32.mrf.mxu3 }
 0x160   : > { %12745 = vst [vmem:[#allocation76_spill] sm:$0xff] %v10298_v12  ;;  %v10302_v37 = vpop.f32.mrf.mxu0  ;;  %v10304_v28 = vpop.f32.mrf.mxu1 }
 0x161   : > { %12746 = vst [vmem:[#allocation77_spill] sm:$0xff] %v10300_v13 }
 0x162   : > { %12747 = vst [vmem:[#allocation78_spill] sm:$0xff] %v10302_v37  ;;  %v9010_v37 = vld [vmem:[%s10036_s7 + $0x3e8] sm:$0xff] }
 0x163   : > { %12748 = vst [vmem:[#allocation79_spill] sm:$0xff] %v10304_v28 }
 0x167   : > { %v10306_v17 = vpop.f32.mrf.mxu2  ;;  %v10308_v16 = vpop.f32.mrf.mxu3 }
 0x168   : > { %12749 = vst [vmem:[#allocation80_spill] sm:$0xff] %v10306_v17  ;;  %v10312_v29 = vpop.f32.mrf.mxu0  ;;  %v10314_v36 = vpop.f32.mrf.mxu1 }
 0x169   : > { %12750 = vst [vmem:[#allocation81_spill] sm:$0xff] %v10308_v16 }
 0x16a   : > { %12751 = vst [vmem:[#allocation82_spill] sm:$0xff] %v10312_v29 }
 0x16b   : > { %12752 = vst [vmem:[#allocation83_spill] sm:$0xff] %v10314_v36  ;;  %3679 = vmatmul.bf16.gmra.mxu0 %v8905_v40  ;;  %4199 = vmatmul.bf16.gmra.mxu1 %v9009_v41  ;;  %v8906_v36 = vld [vmem:[%s10036_s7 + $0xa8] sm:$0xff] }
 0x16c   : > { %4719 = vmatmul.bf16.gmra.mxu2 %v9113_v0  ;;  %5239 = vmatmul.bf16.gmra.mxu3 %v9217_v1  ;;  %v9114_v0 = vld [vmem:[%s10036_s7 + $0x728] sm:$0xff] }
 0x16d   : > { %v9218_v1 = vld [vmem:[%s10036_s7 + $0xa68] sm:$0xff] }
 0x16f   : > { %v10318_v13 = vpop.f32.mrf.mxu2  ;;  %v10320_v17 = vpop.f32.mrf.mxu3 }
 0x170   : > { %12753 = vst [vmem:[#allocation84_spill] sm:$0xff] %v10318_v13  ;;  %v10322_v16 = vpop.f32.mrf.mxu0  ;;  %v10324_v12 = vpop.f32.mrf.mxu1 }
 0x171   : > { %12754 = vst [vmem:[#allocation85_spill] sm:$0xff] %v10320_v17 }
 0x172   : > { %12755 = vst [vmem:[#allocation86_spill] sm:$0xff] %v10322_v16 }
 0x173   : > { %12756 = vst [vmem:[#allocation87_spill] sm:$0xff] %v10324_v12 }
 0x177   : > { %v10326_v28 = vpop.f32.mrf.mxu2  ;;  %v10328_v29 = vpop.f32.mrf.mxu3 }
 0x178   : > { %12757 = vst [vmem:[#allocation88_spill] sm:$0xff] %v10326_v28  ;;  %v10332_v40 = vpop.f32.mrf.mxu0  ;;  %v10334_v41 = vpop.f32.mrf.mxu1 }
 0x179   : > { %12758 = vst [vmem:[#allocation89_spill] sm:$0xff] %v10328_v29 }
 0x17b   : > { %3684 = vmatmul.bf16.gmra.mxu0 %v8906_v36  ;;  %4204 = vmatmul.bf16.gmra.mxu1 %v9010_v37 }
 0x17c   : > { %4724 = vmatmul.bf16.gmra.mxu2 %v9114_v0  ;;  %5244 = vmatmul.bf16.gmra.mxu3 %v9218_v1  ;;  %v9115_v0 = vld [vmem:[%s10036_s7 + $0x730] sm:$0xff] }
 0x17d   : > { %v9219_v1 = vld [vmem:[%s10036_s7 + $0xa70] sm:$0xff] }
 0x17f   : > { %v10338_v17 = vpop.f32.mrf.mxu2  ;;  %v10340_v28 = vpop.f32.mrf.mxu3 }
 0x180   : > { %v10342_v29 = vpop.f32.mrf.mxu0  ;;  %v10344_v13 = vpop.f32.mrf.mxu1 }
 0x187   : > { %v10346_v12 = vpop.f32.mrf.mxu2  ;;  %v10348_v16 = vpop.f32.mrf.mxu3 }
 0x188   : > { %v10352_v36 = vpop.f32.mrf.mxu0  ;;  %v10354_v37 = vpop.f32.mrf.mxu1 }
 0x18b   : > { %3689 = vmatmul.bf16.gmra.mxu0 %v8907_v25  ;;  %4209 = vmatmul.bf16.gmra.mxu1 %v9011_v24 }
 0x18c   : > { %4729 = vmatmul.bf16.gmra.mxu2 %v9115_v0  ;;  %5249 = vmatmul.bf16.gmra.mxu3 %v9219_v1  ;;  %v9116_v0 = vld [vmem:[%s10036_s7 + $0x738] sm:$0xff] }
 0x18d   : > { %v9220_v1 = vld [vmem:[%s10036_s7 + $0xa78] sm:$0xff] }
 0x18f   : > { %v10358_v5 = vpop.f32.mrf.mxu2  ;;  %v10360_v4 = vpop.f32.mrf.mxu3 }
 0x190   : > { %v10362_v57 = vpop.f32.mrf.mxu0  ;;  %v10364_v56 = vpop.f32.mrf.mxu1 }
 0x197   : > { %v10366_v45 = vpop.f32.mrf.mxu2  ;;  %v10368_v44 = vpop.f32.mrf.mxu3 }
 0x198   : > { %v10372_v25 = vpop.f32.mrf.mxu0  ;;  %v10374_v24 = vpop.f32.mrf.mxu1 }
 0x199   : > { %12759 = vst [vmem:[#allocation90_spill] sm:$0xff] %v10372_v25 }
 0x19a   : > { %12760 = vst [vmem:[#allocation91_spill] sm:$0xff] %v10374_v24  ;;  %v9026_v24 = vld [vmem:[%s10036_s7 + $0x468] sm:$0xff] }
 0x19b   : > { %3694 = vmatmul.bf16.gmra.mxu0 %v8908_v53  ;;  %4214 = vmatmul.bf16.gmra.mxu1 %v9012_v52 }
 0x19c   : > { %4734 = vmatmul.bf16.gmra.mxu2 %v9116_v0  ;;  %5254 = vmatmul.bf16.gmra.mxu3 %v9220_v1  ;;  %v9117_v0 = vld [vmem:[%s10036_s7 + $0x740] sm:$0xff] }
 0x19d   : > { %v9221_v1 = vld [vmem:[%s10036_s7 + $0xa80] sm:$0xff] }
 0x19f   : > { %v10378_v39 = vpop.f32.mrf.mxu2  ;;  %v10380_v38 = vpop.f32.mrf.mxu3 }
 0x1a0   : > { %12761 = vst [vmem:[#allocation92_spill] sm:$0xff] %v10378_v39  ;;  %v10382_v35 = vpop.f32.mrf.mxu0  ;;  %v10384_v34 = vpop.f32.mrf.mxu1 }
 0x1a1   : > { %12762 = vst [vmem:[#allocation93_spill] sm:$0xff] %v10380_v38  ;;  %v9025_v38 = vld [vmem:[%s10036_s7 + $0x460] sm:$0xff] }
 0x1a2   : > { %12763 = vst [vmem:[#allocation94_spill] sm:$0xff] %v10382_v35 }
 0x1a3   : > { %12764 = vst [vmem:[#allocation95_spill] sm:$0xff] %v10384_v34 }
 0x1a7   : > { %v10386_v31 = vpop.f32.mrf.mxu2  ;;  %v10388_v30 = vpop.f32.mrf.mxu3 }
 0x1a8   : > { %12765 = vst [vmem:[#allocation96_spill] sm:$0xff] %v10386_v31  ;;  %v10392_v53 = vpop.f32.mrf.mxu0  ;;  %v10394_v52 = vpop.f32.mrf.mxu1 }
 0x1a9   : > { %12766 = vst [vmem:[#allocation97_spill] sm:$0xff] %v10388_v30 }
 0x1aa   : > { %12767 = vst [vmem:[#allocation98_spill] sm:$0xff] %v10392_v53 }
 0x1ab   : > { %12768 = vst [vmem:[#allocation99_spill] sm:$0xff] %v10394_v52  ;;  %3699 = vmatmul.bf16.gmra.mxu0 %v8909_v33  ;;  %4219 = vmatmul.bf16.gmra.mxu1 %v9013_v32  ;;  %v9024_v52 = vld [vmem:[%s10036_s7 + $0x458] sm:$0xff] }
 0x1ac   : > { %4739 = vmatmul.bf16.gmra.mxu2 %v9117_v0  ;;  %5259 = vmatmul.bf16.gmra.mxu3 %v9221_v1  ;;  %v9118_v0 = vld [vmem:[%s10036_s7 + $0x748] sm:$0xff] }
 0x1ad   : > { %v9222_v1 = vld [vmem:[%s10036_s7 + $0xa88] sm:$0xff] }
 0x1af   : > { %v10398_v27 = vpop.f32.mrf.mxu2  ;;  %v10400_v26 = vpop.f32.mrf.mxu3 }
 0x1b0   : > { %12769 = vst [vmem:[#allocation100_spill] sm:$0xff] %v10398_v27  ;;  %v10402_v23 = vpop.f32.mrf.mxu0  ;;  %v10404_v22 = vpop.f32.mrf.mxu1 }
 0x1b1   : > { %12770 = vst [vmem:[#allocation101_spill] sm:$0xff] %v10400_v26 }
 0x1b2   : > { %12771 = vst [vmem:[#allocation102_spill] sm:$0xff] %v10402_v23  ;;  %v9015_v23 = vld [vmem:[%s10036_s7 + $0x410] sm:$0xff] }
 0x1b3   : > { %12772 = vst [vmem:[#allocation103_spill] sm:$0xff] %v10404_v22 }
 0x1b7   : > { %v10406_v19 = vpop.f32.mrf.mxu2  ;;  %v10408_v18 = vpop.f32.mrf.mxu3 }
 0x1b8   : > { %12773 = vst [vmem:[#allocation104_spill] sm:$0xff] %v10406_v19  ;;  %v10412_v33 = vpop.f32.mrf.mxu0  ;;  %v10414_v32 = vpop.f32.mrf.mxu1 }
 0x1b9   : > { %12774 = vst [vmem:[#allocation105_spill] sm:$0xff] %v10408_v18 }
 0x1ba   : > { %12775 = vst [vmem:[#allocation106_spill] sm:$0xff] %v10412_v33 }
 0x1bb   : > { %12776 = vst [vmem:[#allocation107_spill] sm:$0xff] %v10414_v32  ;;  %3704 = vmatmul.bf16.gmra.mxu0 %v8910_v21  ;;  %4224 = vmatmul.bf16.gmra.mxu1 %v9014_v20  ;;  %v8911_v32 = vld [vmem:[%s10036_s7 + $0xd0] sm:$0xff] }
 0x1bc   : > { %4744 = vmatmul.bf16.gmra.mxu2 %v9118_v0  ;;  %5264 = vmatmul.bf16.gmra.mxu3 %v9222_v1  ;;  %v9119_v0 = vld [vmem:[%s10036_s7 + $0x750] sm:$0xff] }
 0x1bd   : > { %v9223_v1 = vld [vmem:[%s10036_s7 + $0xa90] sm:$0xff] }
 0x1bf   : > { %v10418_v26 = vpop.f32.mrf.mxu2  ;;  %v10420_v19 = vpop.f32.mrf.mxu3 }
 0x1c0   : > { %12777 = vst [vmem:[#allocation108_spill] sm:$0xff] %v10418_v26  ;;  %v10422_v18 = vpop.f32.mrf.mxu0  ;;  %v10424_v27 = vpop.f32.mrf.mxu1 }
 0x1c1   : > { %12778 = vst [vmem:[#allocation109_spill] sm:$0xff] %v10420_v19 }
 0x1c2   : > { %12779 = vst [vmem:[#allocation110_spill] sm:$0xff] %v10422_v18  ;;  %v9016_v18 = vld [vmem:[%s10036_s7 + $0x418] sm:$0xff] }
 0x1c3   : > { %12780 = vst [vmem:[#allocation111_spill] sm:$0xff] %v10424_v27 }
 0x1c7   : > { %v10426_v22 = vpop.f32.mrf.mxu2  ;;  %v10428_v33 = vpop.f32.mrf.mxu3 }
 0x1c8   : > { %12781 = vst [vmem:[#allocation112_spill] sm:$0xff] %v10426_v22  ;;  %v10432_v21 = vpop.f32.mrf.mxu0  ;;  %v10434_v20 = vpop.f32.mrf.mxu1 }
 0x1c9   : > { %12782 = vst [vmem:[#allocation113_spill] sm:$0xff] %v10428_v33 }
 0x1ca   : > { %12783 = vst [vmem:[#allocation114_spill] sm:$0xff] %v10432_v21 }
 0x1cb   : > { %12784 = vst [vmem:[#allocation115_spill] sm:$0xff] %v10434_v20  ;;  %3709 = vmatmul.bf16.gmra.mxu0 %v8911_v32  ;;  %4229 = vmatmul.bf16.gmra.mxu1 %v9015_v23  ;;  %v8912_v20 = vld [vmem:[%s10036_s7 + $0xd8] sm:$0xff] }
 0x1cc   : > { %4749 = vmatmul.bf16.gmra.mxu2 %v9119_v0  ;;  %5269 = vmatmul.bf16.gmra.mxu3 %v9223_v1  ;;  %v9120_v0 = vld [vmem:[%s10036_s7 + $0x758] sm:$0xff] }
 0x1cd   : > { %v9224_v1 = vld [vmem:[%s10036_s7 + $0xa98] sm:$0xff] }
 0x1cf   : > { %v10438_v19 = vpop.f32.mrf.mxu2  ;;  %v10440_v22 = vpop.f32.mrf.mxu3 }
 0x1d0   : > { %12785 = vst [vmem:[#allocation116_spill] sm:$0xff] %v10438_v19  ;;  %v10442_v33 = vpop.f32.mrf.mxu0  ;;  %v10444_v26 = vpop.f32.mrf.mxu1 }
 0x1d1   : > { %12786 = vst [vmem:[#allocation117_spill] sm:$0xff] %v10440_v22 }
 0x1d2   : > { %12787 = vst [vmem:[#allocation118_spill] sm:$0xff] %v10442_v33  ;;  %v9017_v33 = vld [vmem:[%s10036_s7 + $0x420] sm:$0xff] }
 0x1d3   : > { %12788 = vst [vmem:[#allocation119_spill] sm:$0xff] %v10444_v26 }
 0x1d7   : > { %v10446_v27 = vpop.f32.mrf.mxu2  ;;  %v10448_v21 = vpop.f32.mrf.mxu3 }
 0x1d8   : > { %12789 = vst [vmem:[#allocation120_spill] sm:$0xff] %v10446_v27  ;;  %v10452_v32 = vpop.f32.mrf.mxu0  ;;  %v10454_v23 = vpop.f32.mrf.mxu1 }
 0x1d9   : > { %12790 = vst [vmem:[#allocation121_spill] sm:$0xff] %v10448_v21 }
 0x1da   : > { %12791 = vst [vmem:[#allocation122_spill] sm:$0xff] %v10452_v32 }
 0x1db   : > { %12792 = vst [vmem:[#allocation123_spill] sm:$0xff] %v10454_v23  ;;  %3714 = vmatmul.bf16.gmra.mxu0 %v8912_v20  ;;  %4234 = vmatmul.bf16.gmra.mxu1 %v9016_v18  ;;  %v8913_v23 = vld [vmem:[%s10036_s7 + $0xe0] sm:$0xff] }
 0x1dc   : > { %4754 = vmatmul.bf16.gmra.mxu2 %v9120_v0  ;;  %5274 = vmatmul.bf16.gmra.mxu3 %v9224_v1  ;;  %v9121_v0 = vld [vmem:[%s10036_s7 + $0x760] sm:$0xff] }
 0x1dd   : > { %v9225_v1 = vld [vmem:[%s10036_s7 + $0xaa0] sm:$0xff] }
 0x1df   : > { %v10458_v22 = vpop.f32.mrf.mxu2  ;;  %v10460_v27 = vpop.f32.mrf.mxu3 }
 0x1e0   : > { %12793 = vst [vmem:[#allocation124_spill] sm:$0xff] %v10458_v22  ;;  %v10462_v21 = vpop.f32.mrf.mxu0  ;;  %v10464_v19 = vpop.f32.mrf.mxu1 }
 0x1e1   : > { %12794 = vst [vmem:[#allocation125_spill] sm:$0xff] %v10460_v27 }
 0x1e2   : > { %12795 = vst [vmem:[#allocation126_spill] sm:$0xff] %v10462_v21  ;;  %v9018_v21 = vld [vmem:[%s10036_s7 + $0x428] sm:$0xff] }
 0x1e3   : > { %12796 = vst [vmem:[#allocation127_spill] sm:$0xff] %v10464_v19 }
 0x1e7   : > { %v10466_v26 = vpop.f32.mrf.mxu2  ;;  %v10468_v32 = vpop.f32.mrf.mxu3 }
 0x1e8   : > { %12797 = vst [vmem:[#allocation128_spill] sm:$0xff] %v10466_v26  ;;  %v10472_v20 = vpop.f32.mrf.mxu0  ;;  %v10474_v18 = vpop.f32.mrf.mxu1 }
 0x1e9   : > { %12798 = vst [vmem:[#allocation129_spill] sm:$0xff] %v10468_v32 }
 0x1ea   : > { %12799 = vst [vmem:[#allocation130_spill] sm:$0xff] %v10472_v20 }
 0x1eb   : > { %12800 = vst [vmem:[#allocation131_spill] sm:$0xff] %v10474_v18  ;;  %3719 = vmatmul.bf16.gmra.mxu0 %v8913_v23  ;;  %4239 = vmatmul.bf16.gmra.mxu1 %v9017_v33  ;;  %v8914_v18 = vld [vmem:[%s10036_s7 + $0xe8] sm:$0xff] }
 0x1ec   : > { %4759 = vmatmul.bf16.gmra.mxu2 %v9121_v0  ;;  %5279 = vmatmul.bf16.gmra.mxu3 %v9225_v1  ;;  %v9122_v0 = vld [vmem:[%s10036_s7 + $0x768] sm:$0xff] }
 0x1ed   : > { %v9226_v1 = vld [vmem:[%s10036_s7 + $0xaa8] sm:$0xff] }
 0x1ef   : > { %v10478_v27 = vpop.f32.mrf.mxu2  ;;  %v10480_v26 = vpop.f32.mrf.mxu3 }
 0x1f0   : > { %12801 = vst [vmem:[#allocation132_spill] sm:$0xff] %v10478_v27  ;;  %v10482_v32 = vpop.f32.mrf.mxu0  ;;  %v10484_v22 = vpop.f32.mrf.mxu1 }
 0x1f1   : > { %12802 = vst [vmem:[#allocation133_spill] sm:$0xff] %v10480_v26 }
 0x1f2   : > { %12803 = vst [vmem:[#allocation134_spill] sm:$0xff] %v10482_v32  ;;  %v9019_v32 = vld [vmem:[%s10036_s7 + $0x430] sm:$0xff] }
 0x1f3   : > { %12804 = vst [vmem:[#allocation135_spill] sm:$0xff] %v10484_v22 }
 0x1f7   : > { %v10486_v19 = vpop.f32.mrf.mxu2  ;;  %v10488_v20 = vpop.f32.mrf.mxu3 }
 0x1f8   : > { %12805 = vst [vmem:[#allocation136_spill] sm:$0xff] %v10486_v19  ;;  %v10492_v23 = vpop.f32.mrf.mxu0  ;;  %v10494_v33 = vpop.f32.mrf.mxu1 }
 0x1f9   : > { %12806 = vst [vmem:[#allocation137_spill] sm:$0xff] %v10488_v20 }
 0x1fa   : > { %12807 = vst [vmem:[#allocation138_spill] sm:$0xff] %v10492_v23 }
 0x1fb   : > { %12808 = vst [vmem:[#allocation139_spill] sm:$0xff] %v10494_v33  ;;  %3724 = vmatmul.bf16.gmra.mxu0 %v8914_v18  ;;  %4244 = vmatmul.bf16.gmra.mxu1 %v9018_v21  ;;  %v8915_v33 = vld [vmem:[%s10036_s7 + $0xf0] sm:$0xff] }
 0x1fc   : > { %4764 = vmatmul.bf16.gmra.mxu2 %v9122_v0  ;;  %5284 = vmatmul.bf16.gmra.mxu3 %v9226_v1  ;;  %v9123_v0 = vld [vmem:[%s10036_s7 + $0x770] sm:$0xff] }
 0x1fd   : > { %v9227_v1 = vld [vmem:[%s10036_s7 + $0xab0] sm:$0xff] }
 0x1ff   : > { %v10498_v26 = vpop.f32.mrf.mxu2  ;;  %v10500_v19 = vpop.f32.mrf.mxu3 }
 0x200   : > { %12809 = vst [vmem:[#allocation140_spill] sm:$0xff] %v10498_v26  ;;  %v10502_v20 = vpop.f32.mrf.mxu0  ;;  %v10504_v27 = vpop.f32.mrf.mxu1 }
 0x201   : > { %12810 = vst [vmem:[#allocation141_spill] sm:$0xff] %v10500_v19 }
 0x202   : > { %12811 = vst [vmem:[#allocation142_spill] sm:$0xff] %v10502_v20  ;;  %v9020_v20 = vld [vmem:[%s10036_s7 + $0x438] sm:$0xff] }
 0x203   : > { %12812 = vst [vmem:[#allocation143_spill] sm:$0xff] %v10504_v27 }
 0x207   : > { %v10506_v22 = vpop.f32.mrf.mxu2  ;;  %v10508_v23 = vpop.f32.mrf.mxu3 }
 0x208   : > { %12813 = vst [vmem:[#allocation144_spill] sm:$0xff] %v10506_v22  ;;  %v10512_v18 = vpop.f32.mrf.mxu0  ;;  %v10514_v21 = vpop.f32.mrf.mxu1 }
 0x209   : > { %12814 = vst [vmem:[#allocation145_spill] sm:$0xff] %v10508_v23 }
 0x20a   : > { %12815 = vst [vmem:[#allocation146_spill] sm:$0xff] %v10512_v18 }
 0x20b   : > { %12816 = vst [vmem:[#allocation147_spill] sm:$0xff] %v10514_v21  ;;  %3729 = vmatmul.bf16.gmra.mxu0 %v8915_v33  ;;  %4249 = vmatmul.bf16.gmra.mxu1 %v9019_v32  ;;  %v8916_v21 = vld [vmem:[%s10036_s7 + $0xf8] sm:$0xff] }
 0x20c   : > { %4769 = vmatmul.bf16.gmra.mxu2 %v9123_v0  ;;  %5289 = vmatmul.bf16.gmra.mxu3 %v9227_v1  ;;  %v9124_v0 = vld [vmem:[%s10036_s7 + $0x778] sm:$0xff] }
 0x20d   : > { %v9228_v1 = vld [vmem:[%s10036_s7 + $0xab8] sm:$0xff] }
 0x20f   : > { %v10518_v19 = vpop.f32.mrf.mxu2  ;;  %v10520_v22 = vpop.f32.mrf.mxu3 }
 0x210   : > { %12817 = vst [vmem:[#allocation148_spill] sm:$0xff] %v10518_v19  ;;  %v10522_v23 = vpop.f32.mrf.mxu0  ;;  %v10524_v26 = vpop.f32.mrf.mxu1 }
 0x211   : > { %12818 = vst [vmem:[#allocation149_spill] sm:$0xff] %v10520_v22 }
 0x212   : > { %12819 = vst [vmem:[#allocation150_spill] sm:$0xff] %v10522_v23  ;;  %v9021_v23 = vld [vmem:[%s10036_s7 + $0x440] sm:$0xff] }
 0x213   : > { %12820 = vst [vmem:[#allocation151_spill] sm:$0xff] %v10524_v26 }
 0x217   : > { %v10526_v27 = vpop.f32.mrf.mxu2  ;;  %v10528_v18 = vpop.f32.mrf.mxu3 }
 0x218   : > { %12821 = vst [vmem:[#allocation152_spill] sm:$0xff] %v10526_v27  ;;  %v10532_v33 = vpop.f32.mrf.mxu0  ;;  %v10534_v32 = vpop.f32.mrf.mxu1 }
 0x219   : > { %12822 = vst [vmem:[#allocation153_spill] sm:$0xff] %v10528_v18 }
 0x21a   : > { %12823 = vst [vmem:[#allocation154_spill] sm:$0xff] %v10532_v33 }
 0x21b   : > { %12824 = vst [vmem:[#allocation155_spill] sm:$0xff] %v10534_v32  ;;  %3734 = vmatmul.bf16.gmra.mxu0 %v8916_v21  ;;  %4254 = vmatmul.bf16.gmra.mxu1 %v9020_v20  ;;  %v8917_v32 = vld [vmem:[%s10036_s7 + $0x100] sm:$0xff] }
 0x21c   : > { %4774 = vmatmul.bf16.gmra.mxu2 %v9124_v0  ;;  %5294 = vmatmul.bf16.gmra.mxu3 %v9228_v1  ;;  %v9125_v0 = vld [vmem:[%s10036_s7 + $0x780] sm:$0xff] }
 0x21d   : > { %v9229_v1 = vld [vmem:[%s10036_s7 + $0xac0] sm:$0xff] }
 0x21f   : > { %v10538_v22 = vpop.f32.mrf.mxu2  ;;  %v10540_v27 = vpop.f32.mrf.mxu3 }
 0x220   : > { %12825 = vst [vmem:[#allocation156_spill] sm:$0xff] %v10538_v22  ;;  %v10542_v18 = vpop.f32.mrf.mxu0  ;;  %v10544_v19 = vpop.f32.mrf.mxu1 }
 0x221   : > { %12826 = vst [vmem:[#allocation157_spill] sm:$0xff] %v10540_v27 }
 0x222   : > { %12827 = vst [vmem:[#allocation158_spill] sm:$0xff] %v10542_v18  ;;  %v9022_v18 = vld [vmem:[%s10036_s7 + $0x448] sm:$0xff] }
 0x223   : > { %12828 = vst [vmem:[#allocation159_spill] sm:$0xff] %v10544_v19 }
 0x227   : > { %v10546_v26 = vpop.f32.mrf.mxu2  ;;  %v10548_v33 = vpop.f32.mrf.mxu3 }
 0x228   : > { %12829 = vst [vmem:[#allocation160_spill] sm:$0xff] %v10546_v26  ;;  %v10552_v21 = vpop.f32.mrf.mxu0  ;;  %v10554_v20 = vpop.f32.mrf.mxu1 }
 0x229   : > { %12830 = vst [vmem:[#allocation161_spill] sm:$0xff] %v10548_v33 }
 0x22a   : > { %12831 = vst [vmem:[#allocation162_spill] sm:$0xff] %v10552_v21 }
 0x22b   : > { %12832 = vst [vmem:[#allocation163_spill] sm:$0xff] %v10554_v20  ;;  %3739 = vmatmul.bf16.gmra.mxu0 %v8917_v32  ;;  %4259 = vmatmul.bf16.gmra.mxu1 %v9021_v23  ;;  %v8918_v20 = vld [vmem:[%s10036_s7 + $0x108] sm:$0xff] }
 0x22c   : > { %4779 = vmatmul.bf16.gmra.mxu2 %v9125_v0  ;;  %5299 = vmatmul.bf16.gmra.mxu3 %v9229_v1  ;;  %v9126_v0 = vld [vmem:[%s10036_s7 + $0x788] sm:$0xff] }
 0x22d   : > { %v9230_v1 = vld [vmem:[%s10036_s7 + $0xac8] sm:$0xff] }
 0x22f   : > { %v10558_v27 = vpop.f32.mrf.mxu2  ;;  %v10560_v26 = vpop.f32.mrf.mxu3 }
 0x230   : > { %12833 = vst [vmem:[#allocation164_spill] sm:$0xff] %v10558_v27  ;;  %v10562_v33 = vpop.f32.mrf.mxu0  ;;  %v10564_v22 = vpop.f32.mrf.mxu1 }
 0x231   : > { %12834 = vst [vmem:[#allocation165_spill] sm:$0xff] %v10560_v26 }
 0x232   : > { %12835 = vst [vmem:[#allocation166_spill] sm:$0xff] %v10562_v33  ;;  %v9023_v33 = vld [vmem:[%s10036_s7 + $0x450] sm:$0xff] }
 0x233   : > { %12836 = vst [vmem:[#allocation167_spill] sm:$0xff] %v10564_v22 }
 0x237   : > { %v10566_v19 = vpop.f32.mrf.mxu2  ;;  %v10568_v21 = vpop.f32.mrf.mxu3 }
 0x238   : > { %12837 = vst [vmem:[#allocation168_spill] sm:$0xff] %v10566_v19  ;;  %v10572_v32 = vpop.f32.mrf.mxu0  ;;  %v10574_v23 = vpop.f32.mrf.mxu1 }
 0x239   : > { %12838 = vst [vmem:[#allocation169_spill] sm:$0xff] %v10568_v21 }
 0x23a   : > { %12839 = vst [vmem:[#allocation170_spill] sm:$0xff] %v10572_v32 }
 0x23b   : > { %12840 = vst [vmem:[#allocation171_spill] sm:$0xff] %v10574_v23  ;;  %3744 = vmatmul.bf16.gmra.mxu0 %v8918_v20  ;;  %4264 = vmatmul.bf16.gmra.mxu1 %v9022_v18  ;;  %v8919_v23 = vld [vmem:[%s10036_s7 + $0x110] sm:$0xff] }
 0x23c   : > { %4784 = vmatmul.bf16.gmra.mxu2 %v9126_v0  ;;  %5304 = vmatmul.bf16.gmra.mxu3 %v9230_v1  ;;  %v9127_v0 = vld [vmem:[%s10036_s7 + $0x790] sm:$0xff] }
 0x23d   : > { %v9231_v1 = vld [vmem:[%s10036_s7 + $0xad0] sm:$0xff] }
 0x23f   : > { %v10578_v26 = vpop.f32.mrf.mxu2  ;;  %v10580_v19 = vpop.f32.mrf.mxu3 }
 0x240   : > { %12841 = vst [vmem:[#allocation172_spill] sm:$0xff] %v10578_v26  ;;  %v10582_v21 = vpop.f32.mrf.mxu0  ;;  %v10584_v27 = vpop.f32.mrf.mxu1 }
 0x241   : > { %12842 = vst [vmem:[#allocation173_spill] sm:$0xff] %v10580_v19 }
 0x242   : > { %12843 = vst [vmem:[#allocation174_spill] sm:$0xff] %v10582_v21 }
 0x243   : > { %12844 = vst [vmem:[#allocation175_spill] sm:$0xff] %v10584_v27 }
 0x247   : > { %v10586_v22 = vpop.f32.mrf.mxu2  ;;  %v10588_v32 = vpop.f32.mrf.mxu3 }
 0x248   : > { %12845 = vst [vmem:[#allocation176_spill] sm:$0xff] %v10586_v22  ;;  %v10592_v20 = vpop.f32.mrf.mxu0  ;;  %v10594_v18 = vpop.f32.mrf.mxu1 }
 0x249   : > { %12846 = vst [vmem:[#allocation177_spill] sm:$0xff] %v10588_v32 }
 0x24b   : > { %3749 = vmatmul.bf16.gmra.mxu0 %v8919_v23  ;;  %4269 = vmatmul.bf16.gmra.mxu1 %v9023_v33 }
 0x24c   : > { %4789 = vmatmul.bf16.gmra.mxu2 %v9127_v0  ;;  %5309 = vmatmul.bf16.gmra.mxu3 %v9231_v1  ;;  %v9128_v0 = vld [vmem:[%s10036_s7 + $0x798] sm:$0xff] }
 0x24d   : > { %v9232_v1 = vld [vmem:[%s10036_s7 + $0xad8] sm:$0xff] }
 0x24f   : > { %v10598_v19 = vpop.f32.mrf.mxu2  ;;  %v10600_v22 = vpop.f32.mrf.mxu3 }
 0x250   : > { %v10602_v32 = vpop.f32.mrf.mxu0  ;;  %v10604_v26 = vpop.f32.mrf.mxu1 }
 0x257   : > { %v10606_v27 = vpop.f32.mrf.mxu2  ;;  %v10608_v21 = vpop.f32.mrf.mxu3 }
 0x258   : > { %v10612_v23 = vpop.f32.mrf.mxu0  ;;  %v10614_v33 = vpop.f32.mrf.mxu1 }
 0x25b   : > { %3754 = vmatmul.bf16.gmra.mxu0 %v8920_v15  ;;  %4274 = vmatmul.bf16.gmra.mxu1 %v9024_v52 }
 0x25c   : > { %4794 = vmatmul.bf16.gmra.mxu2 %v9128_v0  ;;  %5314 = vmatmul.bf16.gmra.mxu3 %v9232_v1  ;;  %v9129_v0 = vld [vmem:[%s10036_s7 + $0x7a0] sm:$0xff] }
 0x25d   : > { %v9233_v1 = vld [vmem:[%s10036_s7 + $0xae0] sm:$0xff] }
 0x25f   : > { %v10618_v14 = vpop.f32.mrf.mxu2  ;;  %v10620_v53 = vpop.f32.mrf.mxu3 }
 0x260   : > { %v10622_v11 = vpop.f32.mrf.mxu0  ;;  %v10624_v30 = vpop.f32.mrf.mxu1 }
 0x267   : > { %v10626_v10 = vpop.f32.mrf.mxu2  ;;  %v10628_v31 = vpop.f32.mrf.mxu3 }
 0x268   : > { %v10632_v15 = vpop.f32.mrf.mxu0  ;;  %v10634_v52 = vpop.f32.mrf.mxu1 }
 0x26b   : > { %3759 = vmatmul.bf16.gmra.mxu0 %v8921_v7  ;;  %4279 = vmatmul.bf16.gmra.mxu1 %v9025_v38 }
 0x26c   : > { %4799 = vmatmul.bf16.gmra.mxu2 %v9129_v0  ;;  %5319 = vmatmul.bf16.gmra.mxu3 %v9233_v1  ;;  %v9130_v0 = vld [vmem:[%s10036_s7 + $0x7a8] sm:$0xff] }
 0x26d   : > { %v9234_v1 = vld [vmem:[%s10036_s7 + $0xae8] sm:$0xff] }
 0x26f   : > { %v10638_v6 = vpop.f32.mrf.mxu2  ;;  %v10640_v39 = vpop.f32.mrf.mxu3 }
 0x270   : > { %12847 = vst [vmem:[#allocation178_spill] sm:$0xff] %v10638_v6  ;;  %v10642_v9 = vpop.f32.mrf.mxu0  ;;  %v10644_v34 = vpop.f32.mrf.mxu1 }
 0x271   : > { %12848 = vst [vmem:[#allocation179_spill] sm:$0xff] %v10640_v39 }
 0x272   : > { %12849 = vst [vmem:[#allocation180_spill] sm:$0xff] %v10642_v9  ;;  %v9027_v9 = vld [vmem:[%s10036_s7 + $0x470] sm:$0xff] }
 0x273   : > { %12850 = vst [vmem:[#allocation181_spill] sm:$0xff] %v10644_v34 }
 0x277   : > { %v10646_v8 = vpop.f32.mrf.mxu2  ;;  %v10648_v35 = vpop.f32.mrf.mxu3 }
 0x278   : > { %12851 = vst [vmem:[#allocation182_spill] sm:$0xff] %v10646_v8  ;;  %v10652_v7 = vpop.f32.mrf.mxu0  ;;  %v10654_v38 = vpop.f32.mrf.mxu1 }
 0x279   : > { %12852 = vst [vmem:[#allocation183_spill] sm:$0xff] %v10648_v35 }
 0x27a   : > { %12853 = vst [vmem:[#allocation184_spill] sm:$0xff] %v10652_v7 }
 0x27b   : > { %12854 = vst [vmem:[#allocation185_spill] sm:$0xff] %v10654_v38  ;;  %3764 = vmatmul.bf16.gmra.mxu0 %v8922_v3  ;;  %4284 = vmatmul.bf16.gmra.mxu1 %v9026_v24  ;;  %v8923_v38 = vld [vmem:[%s10036_s7 + $0x130] sm:$0xff] }
 0x27c   : > { %4804 = vmatmul.bf16.gmra.mxu2 %v9130_v0  ;;  %5324 = vmatmul.bf16.gmra.mxu3 %v9234_v1  ;;  %v9131_v0 = vld [vmem:[%s10036_s7 + $0x7b0] sm:$0xff] }
 0x27d   : > { %v9235_v1 = vld [vmem:[%s10036_s7 + $0xaf0] sm:$0xff] }
 0x27f   : > { %v10658_v39 = vpop.f32.mrf.mxu2  ;;  %v10660_v8 = vpop.f32.mrf.mxu3 }
 0x280   : > { %12855 = vst [vmem:[#allocation186_spill] sm:$0xff] %v10658_v39  ;;  %v10662_v35 = vpop.f32.mrf.mxu0  ;;  %v10664_v6 = vpop.f32.mrf.mxu1 }
 0x281   : > { %12856 = vst [vmem:[#allocation187_spill] sm:$0xff] %v10660_v8 }
 0x282   : > { %12857 = vst [vmem:[#allocation188_spill] sm:$0xff] %v10662_v35  ;;  %v9028_v35 = vld [vmem:[%s10036_s7 + $0x478] sm:$0xff] }
 0x283   : > { %12858 = vst [vmem:[#allocation189_spill] sm:$0xff] %v10664_v6 }
 0x287   : > { %v10666_v34 = vpop.f32.mrf.mxu2  ;;  %v10668_v7 = vpop.f32.mrf.mxu3 }
 0x288   : > { %12859 = vst [vmem:[#allocation190_spill] sm:$0xff] %v10666_v34  ;;  %v10672_v3 = vpop.f32.mrf.mxu0  ;;  %v10674_v24 = vpop.f32.mrf.mxu1 }
 0x289   : > { %12860 = vst [vmem:[#allocation191_spill] sm:$0xff] %v10668_v7 }
 0x28a   : > { %12861 = vst [vmem:[#allocation192_spill] sm:$0xff] %v10672_v3 }
 0x28b   : > { %12862 = vst [vmem:[#allocation193_spill] sm:$0xff] %v10674_v24  ;;  %3769 = vmatmul.bf16.gmra.mxu0 %v8923_v38  ;;  %4289 = vmatmul.bf16.gmra.mxu1 %v9027_v9  ;;  %v8924_v24 = vld [vmem:[%s10036_s7 + $0x138] sm:$0xff] }
 0x28c   : > { %4809 = vmatmul.bf16.gmra.mxu2 %v9131_v0  ;;  %5329 = vmatmul.bf16.gmra.mxu3 %v9235_v1  ;;  %v9132_v0 = vld [vmem:[%s10036_s7 + $0x7b8] sm:$0xff] }
 0x28d   : > { %v9236_v1 = vld [vmem:[%s10036_s7 + $0xaf8] sm:$0xff] }
 0x28f   : > { %v10678_v8 = vpop.f32.mrf.mxu2  ;;  %v10680_v34 = vpop.f32.mrf.mxu3 }
 0x290   : > { %12863 = vst [vmem:[#allocation194_spill] sm:$0xff] %v10678_v8  ;;  %v10682_v7 = vpop.f32.mrf.mxu0  ;;  %v10684_v39 = vpop.f32.mrf.mxu1 }
 0x291   : > { %12864 = vst [vmem:[#allocation195_spill] sm:$0xff] %v10680_v34 }
 0x292   : > { %12865 = vst [vmem:[#allocation196_spill] sm:$0xff] %v10682_v7  ;;  %v9029_v7 = vld [vmem:[%s10036_s7 + $0x480] sm:$0xff] }
 0x293   : > { %12866 = vst [vmem:[#allocation197_spill] sm:$0xff] %v10684_v39 }
 0x297   : > { %v10686_v6 = vpop.f32.mrf.mxu2  ;;  %v10688_v3 = vpop.f32.mrf.mxu3 }
 0x298   : > { %12867 = vst [vmem:[#allocation198_spill] sm:$0xff] %v10686_v6  ;;  %v10692_v38 = vpop.f32.mrf.mxu0  ;;  %v10694_v9 = vpop.f32.mrf.mxu1 }
 0x299   : > { %12868 = vst [vmem:[#allocation199_spill] sm:$0xff] %v10688_v3 }
 0x29a   : > { %12869 = vst [vmem:[#allocation200_spill] sm:$0xff] %v10692_v38 }
 0x29b   : > { %12870 = vst [vmem:[#allocation201_spill] sm:$0xff] %v10694_v9  ;;  %3774 = vmatmul.bf16.gmra.mxu0 %v8924_v24  ;;  %4294 = vmatmul.bf16.gmra.mxu1 %v9028_v35  ;;  %v8925_v9 = vld [vmem:[%s10036_s7 + $0x140] sm:$0xff] }
 0x29c   : > { %4814 = vmatmul.bf16.gmra.mxu2 %v9132_v0  ;;  %5334 = vmatmul.bf16.gmra.mxu3 %v9236_v1  ;;  %v9133_v0 = vld [vmem:[%s10036_s7 + $0x7c0] sm:$0xff] }
 0x29d   : > { %v9237_v1 = vld [vmem:[%s10036_s7 + $0xb00] sm:$0xff] }
 0x29f   : > { %v10698_v34 = vpop.f32.mrf.mxu2  ;;  %v10700_v6 = vpop.f32.mrf.mxu3 }
 0x2a0   : > { %12871 = vst [vmem:[#allocation202_spill] sm:$0xff] %v10698_v34  ;;  %v10702_v3 = vpop.f32.mrf.mxu0  ;;  %v10704_v8 = vpop.f32.mrf.mxu1 }
 0x2a1   : > { %12872 = vst [vmem:[#allocation203_spill] sm:$0xff] %v10700_v6 }
 0x2a2   : > { %12873 = vst [vmem:[#allocation204_spill] sm:$0xff] %v10702_v3  ;;  %v9030_v3 = vld [vmem:[%s10036_s7 + $0x488] sm:$0xff] }
 0x2a3   : > { %12874 = vst [vmem:[#allocation205_spill] sm:$0xff] %v10704_v8 }
 0x2a7   : > { %v10706_v39 = vpop.f32.mrf.mxu2  ;;  %v10708_v38 = vpop.f32.mrf.mxu3 }
 0x2a8   : > { %12875 = vst [vmem:[#allocation206_spill] sm:$0xff] %v10706_v39  ;;  %v10712_v24 = vpop.f32.mrf.mxu0  ;;  %v10714_v35 = vpop.f32.mrf.mxu1 }
 0x2a9   : > { %12876 = vst [vmem:[#allocation207_spill] sm:$0xff] %v10708_v38 }
 0x2aa   : > { %12877 = vst [vmem:[#allocation208_spill] sm:$0xff] %v10712_v24 }
 0x2ab   : > { %12878 = vst [vmem:[#allocation209_spill] sm:$0xff] %v10714_v35  ;;  %3779 = vmatmul.bf16.gmra.mxu0 %v8925_v9  ;;  %4299 = vmatmul.bf16.gmra.mxu1 %v9029_v7  ;;  %v8926_v35 = vld [vmem:[%s10036_s7 + $0x148] sm:$0xff] }
 0x2ac   : > { %4819 = vmatmul.bf16.gmra.mxu2 %v9133_v0  ;;  %5339 = vmatmul.bf16.gmra.mxu3 %v9237_v1  ;;  %v9134_v0 = vld [vmem:[%s10036_s7 + $0x7c8] sm:$0xff] }
 0x2ad   : > { %v9238_v1 = vld [vmem:[%s10036_s7 + $0xb08] sm:$0xff] }
 0x2af   : > { %v10718_v6 = vpop.f32.mrf.mxu2  ;;  %v10720_v39 = vpop.f32.mrf.mxu3 }
 0x2b0   : > { %12879 = vst [vmem:[#allocation210_spill] sm:$0xff] %v10718_v6  ;;  %v10722_v38 = vpop.f32.mrf.mxu0  ;;  %v10724_v34 = vpop.f32.mrf.mxu1 }
 0x2b1   : > { %12880 = vst [vmem:[#allocation211_spill] sm:$0xff] %v10720_v39 }
 0x2b2   : > { %12881 = vst [vmem:[#allocation212_spill] sm:$0xff] %v10722_v38  ;;  %v9031_v38 = vld [vmem:[%s10036_s7 + $0x490] sm:$0xff] }
 0x2b3   : > { %12882 = vst [vmem:[#allocation213_spill] sm:$0xff] %v10724_v34 }
 0x2b7   : > { %v10726_v8 = vpop.f32.mrf.mxu2  ;;  %v10728_v24 = vpop.f32.mrf.mxu3 }
 0x2b8   : > { %12883 = vst [vmem:[#allocation214_spill] sm:$0xff] %v10726_v8  ;;  %v10732_v9 = vpop.f32.mrf.mxu0  ;;  %v10734_v7 = vpop.f32.mrf.mxu1 }
 0x2b9   : > { %12884 = vst [vmem:[#allocation215_spill] sm:$0xff] %v10728_v24 }
 0x2ba   : > { %12885 = vst [vmem:[#allocation216_spill] sm:$0xff] %v10732_v9 }
 0x2bb   : > { %12886 = vst [vmem:[#allocation217_spill] sm:$0xff] %v10734_v7  ;;  %3784 = vmatmul.bf16.gmra.mxu0 %v8926_v35  ;;  %4304 = vmatmul.bf16.gmra.mxu1 %v9030_v3  ;;  %v8927_v7 = vld [vmem:[%s10036_s7 + $0x150] sm:$0xff] }
 0x2bc   : > { %4824 = vmatmul.bf16.gmra.mxu2 %v9134_v0  ;;  %5344 = vmatmul.bf16.gmra.mxu3 %v9238_v1  ;;  %v9135_v0 = vld [vmem:[%s10036_s7 + $0x7d0] sm:$0xff] }
 0x2bd   : > { %v9239_v1 = vld [vmem:[%s10036_s7 + $0xb10] sm:$0xff] }
 0x2bf   : > { %v10738_v39 = vpop.f32.mrf.mxu2  ;;  %v10740_v8 = vpop.f32.mrf.mxu3 }
 0x2c0   : > { %12887 = vst [vmem:[#allocation218_spill] sm:$0xff] %v10738_v39  ;;  %v10742_v24 = vpop.f32.mrf.mxu0  ;;  %v10744_v6 = vpop.f32.mrf.mxu1 }
 0x2c1   : > { %12888 = vst [vmem:[#allocation219_spill] sm:$0xff] %v10740_v8 }
 0x2c2   : > { %12889 = vst [vmem:[#allocation220_spill] sm:$0xff] %v10742_v24  ;;  %v9032_v24 = vld [vmem:[%s10036_s7 + $0x498] sm:$0xff] }
 0x2c3   : > { %12890 = vst [vmem:[#allocation221_spill] sm:$0xff] %v10744_v6 }
 0x2c7   : > { %v10746_v34 = vpop.f32.mrf.mxu2  ;;  %v10748_v9 = vpop.f32.mrf.mxu3 }
 0x2c8   : > { %12891 = vst [vmem:[#allocation222_spill] sm:$0xff] %v10746_v34  ;;  %v10752_v35 = vpop.f32.mrf.mxu0  ;;  %v10754_v3 = vpop.f32.mrf.mxu1 }
 0x2c9   : > { %12892 = vst [vmem:[#allocation223_spill] sm:$0xff] %v10748_v9 }
 0x2ca   : > { %12893 = vst [vmem:[#allocation224_spill] sm:$0xff] %v10752_v35 }
 0x2cb   : > { %12894 = vst [vmem:[#allocation225_spill] sm:$0xff] %v10754_v3  ;;  %3789 = vmatmul.bf16.gmra.mxu0 %v8927_v7  ;;  %4309 = vmatmul.bf16.gmra.mxu1 %v9031_v38  ;;  %v8928_v3 = vld [vmem:[%s10036_s7 + $0x158] sm:$0xff] }
 0x2cc   : > { %4829 = vmatmul.bf16.gmra.mxu2 %v9135_v0  ;;  %5349 = vmatmul.bf16.gmra.mxu3 %v9239_v1  ;;  %v9136_v0 = vld [vmem:[%s10036_s7 + $0x7d8] sm:$0xff] }
 0x2cd   : > { %v9240_v1 = vld [vmem:[%s10036_s7 + $0xb18] sm:$0xff] }
 0x2cf   : > { %v10758_v8 = vpop.f32.mrf.mxu2  ;;  %v10760_v34 = vpop.f32.mrf.mxu3 }
 0x2d0   : > { %12895 = vst [vmem:[#allocation226_spill] sm:$0xff] %v10758_v8  ;;  %v10762_v9 = vpop.f32.mrf.mxu0  ;;  %v10764_v39 = vpop.f32.mrf.mxu1 }
 0x2d1   : > { %12896 = vst [vmem:[#allocation227_spill] sm:$0xff] %v10760_v34 }
 0x2d2   : > { %12897 = vst [vmem:[#allocation228_spill] sm:$0xff] %v10762_v9  ;;  %v9033_v9 = vld [vmem:[%s10036_s7 + $0x4a0] sm:$0xff] }
 0x2d3   : > { %12898 = vst [vmem:[#allocation229_spill] sm:$0xff] %v10764_v39 }
 0x2d7   : > { %v10766_v6 = vpop.f32.mrf.mxu2  ;;  %v10768_v35 = vpop.f32.mrf.mxu3 }
 0x2d8   : > { %12899 = vst [vmem:[#allocation230_spill] sm:$0xff] %v10766_v6  ;;  %v10772_v7 = vpop.f32.mrf.mxu0  ;;  %v10774_v38 = vpop.f32.mrf.mxu1 }
 0x2d9   : > { %12900 = vst [vmem:[#allocation231_spill] sm:$0xff] %v10768_v35 }
 0x2da   : > { %12901 = vst [vmem:[#allocation232_spill] sm:$0xff] %v10772_v7 }
 0x2db   : > { %12902 = vst [vmem:[#allocation233_spill] sm:$0xff] %v10774_v38  ;;  %3794 = vmatmul.bf16.gmra.mxu0 %v8928_v3  ;;  %4314 = vmatmul.bf16.gmra.mxu1 %v9032_v24  ;;  %v8929_v38 = vld [vmem:[%s10036_s7 + $0x160] sm:$0xff] }
 0x2dc   : > { %4834 = vmatmul.bf16.gmra.mxu2 %v9136_v0  ;;  %5354 = vmatmul.bf16.gmra.mxu3 %v9240_v1  ;;  %v9137_v0 = vld [vmem:[%s10036_s7 + $0x7e0] sm:$0xff] }
 0x2dd   : > { %v9241_v1 = vld [vmem:[%s10036_s7 + $0xb20] sm:$0xff] }
 0x2df   : > { %v10778_v34 = vpop.f32.mrf.mxu2  ;;  %v10780_v6 = vpop.f32.mrf.mxu3 }
 0x2e0   : > { %12903 = vst [vmem:[#allocation234_spill] sm:$0xff] %v10778_v34  ;;  %v10782_v35 = vpop.f32.mrf.mxu0  ;;  %v10784_v8 = vpop.f32.mrf.mxu1 }
 0x2e1   : > { %12904 = vst [vmem:[#allocation235_spill] sm:$0xff] %v10780_v6 }
 0x2e2   : > { %12905 = vst [vmem:[#allocation236_spill] sm:$0xff] %v10782_v35  ;;  %v9034_v35 = vld [vmem:[%s10036_s7 + $0x4a8] sm:$0xff] }
 0x2e3   : > { %12906 = vst [vmem:[#allocation237_spill] sm:$0xff] %v10784_v8 }
 0x2e7   : > { %v10786_v39 = vpop.f32.mrf.mxu2  ;;  %v10788_v7 = vpop.f32.mrf.mxu3 }
 0x2e8   : > { %12907 = vst [vmem:[#allocation238_spill] sm:$0xff] %v10786_v39  ;;  %v10792_v3 = vpop.f32.mrf.mxu0  ;;  %v10794_v24 = vpop.f32.mrf.mxu1 }
 0x2e9   : > { %12908 = vst [vmem:[#allocation239_spill] sm:$0xff] %v10788_v7 }
 0x2ea   : > { %12909 = vst [vmem:[#allocation240_spill] sm:$0xff] %v10792_v3 }
 0x2eb   : > { %12910 = vst [vmem:[#allocation241_spill] sm:$0xff] %v10794_v24  ;;  %3799 = vmatmul.bf16.gmra.mxu0 %v8929_v38  ;;  %4319 = vmatmul.bf16.gmra.mxu1 %v9033_v9  ;;  %v8930_v24 = vld [vmem:[%s10036_s7 + $0x168] sm:$0xff] }
 0x2ec   : > { %4839 = vmatmul.bf16.gmra.mxu2 %v9137_v0  ;;  %5359 = vmatmul.bf16.gmra.mxu3 %v9241_v1  ;;  %v9138_v0 = vld [vmem:[%s10036_s7 + $0x7e8] sm:$0xff] }
 0x2ed   : > { %v9242_v1 = vld [vmem:[%s10036_s7 + $0xb28] sm:$0xff] }
 0x2ef   : > { %v10798_v6 = vpop.f32.mrf.mxu2  ;;  %v10800_v39 = vpop.f32.mrf.mxu3 }
 0x2f0   : > { %12911 = vst [vmem:[#allocation242_spill] sm:$0xff] %v10798_v6  ;;  %v10802_v7 = vpop.f32.mrf.mxu0  ;;  %v10804_v34 = vpop.f32.mrf.mxu1 }
 0x2f1   : > { %12912 = vst [vmem:[#allocation243_spill] sm:$0xff] %v10800_v39 }
 0x2f2   : > { %12913 = vst [vmem:[#allocation244_spill] sm:$0xff] %v10802_v7  ;;  %v9035_v7 = vld [vmem:[%s10036_s7 + $0x4b0] sm:$0xff] }
 0x2f3   : > { %12914 = vst [vmem:[#allocation245_spill] sm:$0xff] %v10804_v34 }
 0x2f7   : > { %v10806_v8 = vpop.f32.mrf.mxu2  ;;  %v10808_v3 = vpop.f32.mrf.mxu3 }
 0x2f8   : > { %12915 = vst [vmem:[#allocation246_spill] sm:$0xff] %v10806_v8  ;;  %v10812_v38 = vpop.f32.mrf.mxu0  ;;  %v10814_v9 = vpop.f32.mrf.mxu1 }
 0x2f9   : > { %12916 = vst [vmem:[#allocation247_spill] sm:$0xff] %v10808_v3 }
 0x2fa   : > { %12917 = vst [vmem:[#allocation248_spill] sm:$0xff] %v10812_v38 }
 0x2fb   : > { %12918 = vst [vmem:[#allocation249_spill] sm:$0xff] %v10814_v9  ;;  %3804 = vmatmul.bf16.gmra.mxu0 %v8930_v24  ;;  %4324 = vmatmul.bf16.gmra.mxu1 %v9034_v35  ;;  %v8931_v9 = vld [vmem:[%s10036_s7 + $0x170] sm:$0xff] }
 0x2fc   : > { %4844 = vmatmul.bf16.gmra.mxu2 %v9138_v0  ;;  %5364 = vmatmul.bf16.gmra.mxu3 %v9242_v1  ;;  %v9139_v0 = vld [vmem:[%s10036_s7 + $0x7f0] sm:$0xff] }
 0x2fd   : > { %v9243_v1 = vld [vmem:[%s10036_s7 + $0xb30] sm:$0xff] }
 0x2ff   : > { %v10818_v39 = vpop.f32.mrf.mxu2  ;;  %v10820_v8 = vpop.f32.mrf.mxu3 }
 0x300   : > { %12919 = vst [vmem:[#allocation250_spill] sm:$0xff] %v10818_v39  ;;  %v10822_v3 = vpop.f32.mrf.mxu0  ;;  %v10824_v6 = vpop.f32.mrf.mxu1 }
 0x301   : > { %12920 = vst [vmem:[#allocation251_spill] sm:$0xff] %v10820_v8 }
 0x302   : > { %12921 = vst [vmem:[#allocation252_spill] sm:$0xff] %v10822_v3  ;;  %v9036_v3 = vld [vmem:[%s10036_s7 + $0x4b8] sm:$0xff] }
 0x303   : > { %12922 = vst [vmem:[#allocation253_spill] sm:$0xff] %v10824_v6 }
 0x307   : > { %v10826_v34 = vpop.f32.mrf.mxu2  ;;  %v10828_v38 = vpop.f32.mrf.mxu3 }
 0x308   : > { %12923 = vst [vmem:[#allocation254_spill] sm:$0xff] %v10826_v34  ;;  %v10832_v24 = vpop.f32.mrf.mxu0  ;;  %v10834_v35 = vpop.f32.mrf.mxu1 }
 0x309   : > { %12924 = vst [vmem:[#allocation255_spill] sm:$0xff] %v10828_v38 }
 0x30a   : > { %12925 = vst [vmem:[#allocation256_spill] sm:$0xff] %v10832_v24 }
 0x30b   : > { %12926 = vst [vmem:[#allocation257_spill] sm:$0xff] %v10834_v35  ;;  %3809 = vmatmul.bf16.gmra.mxu0 %v8931_v9  ;;  %4329 = vmatmul.bf16.gmra.mxu1 %v9035_v7  ;;  %v8932_v35 = vld [vmem:[%s10036_s7 + $0x178] sm:$0xff] }
 0x30c   : > { %4849 = vmatmul.bf16.gmra.mxu2 %v9139_v0  ;;  %5369 = vmatmul.bf16.gmra.mxu3 %v9243_v1  ;;  %v9140_v9 = vld [vmem:[%s10036_s7 + $0x7f8] sm:$0xff] }
 0x30d   : > { %v9244_v7 = vld [vmem:[%s10036_s7 + $0xb38] sm:$0xff] }
 0x30f   : > { %v10838_v8 = vpop.f32.mrf.mxu2  ;;  %v10840_v34 = vpop.f32.mrf.mxu3 }
 0x310   : > { %12927 = vst [vmem:[#allocation258_spill] sm:$0xff] %v10838_v8  ;;  %v10842_v38 = vpop.f32.mrf.mxu0  ;;  %v10844_v39 = vpop.f32.mrf.mxu1  ;;  %v10863_v8 = vld [vmem:[%s12669_s2] ss:$0 sm:$0xff] }
 0x311   : > { %12928 = vst [vmem:[#allocation259_spill] sm:$0xff] %v10840_v34  ;;  %v5660_v34 = vmax.f32 %v10072_v42, %v10332_v40  ;;  %v5713_v42 = vmax.f32 %v10084_v49, %v10344_v13  ;;  %v5816_v49 = vmax.f32 %v10080_v47, %v10340_v28  ;;  %v5765_v47 = vmax.f32 %v10086_v50, %v10346_v12 }
 0x312   : > { %12929 = vst [vmem:[#allocation260_spill] sm:$0xff] %v10844_v39 }
 0x317   : > { %v10846_v6 = vpop.f32.mrf.mxu2  ;;  %v10848_v24 = vpop.f32.mrf.mxu3 }
 0x318   : > { %12930 = vst [vmem:[#allocation261_spill] sm:$0xff] %v10846_v6  ;;  %v3775_v2 = vpop.f32.mrf.mxu0  ;;  %v4295_v25 = vpop.f32.mrf.mxu1 }
 0x319   : > { %12931 = vst [vmem:[#allocation262_spill] sm:$0xff] %v10848_v24  ;;  %v5868_v0 = vmax.f32 %v10592_v20, %v3775_v2  ;;  %v5920_v1 = vmax.f32 %v10594_v18, %v4295_v25  ;;  %v5712_v24 = vmax.f32 %v10074_v43, %v10334_v41 }
 0x31b   : > { %3814 = vmatmul.bf16.gmra.mxu0 %v8932_v35  ;;  %4334 = vmatmul.bf16.gmra.mxu1 %v9036_v3  ;;  %v6076_v6 = vmax.f32 %v5660_v34, %v5868_v0  ;;  %v6128_v39 = vmax.f32 %v5712_v24, %v5920_v1  ;;  %v5661_v3 = vmax.f32 %v10082_v48, %v10342_v29 }
 0x31c   : > { %4854 = vmatmul.bf16.gmra.mxu2 %v9140_v9  ;;  %5374 = vmatmul.bf16.gmra.mxu3 %v9244_v7  ;;  %v5764_v48 = vmax.f32 %v10078_v46, %v10338_v17  ;;  %v9037_v46 = vld [vmem:[%s10036_s7 + $0x4c0] sm:$0xff]  ;;  %v5817_v17 = vmax.f32 %v10088_v51, %v10348_v16 }
 0x31d   : > { %v6288_v24 = vadd.f32 %v10863_v8, %v6076_v6  ;;  %v6340_v35 = vadd.f32 %v10863_v8, %v6128_v39 }
 0x31f   : > { %v4815_v2 = vpop.f32.mrf.mxu2  ;;  %v5335_v25 = vpop.f32.mrf.mxu3  ;;  %v6496_v6 = vmax.f32 %v6288_v24, 0.0  ;;  %v6548_v39 = vmax.f32 %v6340_v35, 0.0  ;;  %v5662_v24 = vmax.f32 %v10092_v54, %v10352_v36  ;;  %v5714_v35 = vmax.f32 %v10094_v55, %v10354_v37 }
 0x320   : > { %v3777_v20 = vpop.f32.mrf.mxu0  ;;  %v4297_v18 = vpop.f32.mrf.mxu1  ;;  %v5972_v40 = vmax.f32 %v10598_v19, %v4815_v2  ;;  %v6024_v41 = vmax.f32 %v10600_v22, %v5335_v25  ;;  %v8933_v2 = vld [vmem:[%s10036_s7 + $0x180] sm:$0xff]  ;;  %v5663_v54 = vmax.f32 %v10102_v60, %v10362_v57  ;;  %v5715_v55 = vmax.f32 %v10104_v61, %v10364_v56 }
 0x321   : > { %v5869_v43 = vmax.f32 %v10602_v32, %v3777_v20  ;;  %v5921_v34 = vmax.f32 %v10604_v26, %v4297_v18  ;;  %v5766_v61 = vmax.f32 %v10098_v58, %v10358_v5  ;;  %v9038_v58 = vld [vmem:[%s10036_s7 + $0x4c8] sm:$0xff] }
 0x322   : > { %v6180_v22 = vmax.f32 %v5764_v48, %v5972_v40  ;;  %v6232_v13 = vmax.f32 %v5816_v49, %v6024_v41 }
 0x323   : > { %v6077_v9 = vmax.f32 %v5661_v3, %v5869_v43  ;;  %v6129_v7 = vmax.f32 %v5713_v42, %v5921_v34  ;;  %v9141_v3 = vld [vmem:[%s10036_s7 + $0x800] sm:$0xff] }
 0x324   : > { %v9245_v42 = vld [vmem:[%s10036_s7 + $0xb40] sm:$0xff]  ;;  %v6392_v12 = vadd.f32 %v10863_v8, %v6180_v22  ;;  %v6444_v51 = vadd.f32 %v10863_v8, %v6232_v13 }
 0x325   : > { %v6289_v26 = vadd.f32 %v10863_v8, %v6077_v9  ;;  %v6341_v19 = vadd.f32 %v10863_v8, %v6129_v7 }
 0x326   : > { %v6600_v9 = vmax.f32 %v6392_v12, 0.0 }
 0x327   : > { %v6497_v29 = vmax.f32 %v6289_v26, 0.0  ;;  %v6549_v32 = vmax.f32 %v6341_v19, 0.0  ;;  %v4817_v0 = vpop.f32.mrf.mxu2  ;;  %v5337_v1 = vpop.f32.mrf.mxu3 }
 0x328   : > { %v5973_v28 = vmax.f32 %v10606_v27, %v4817_v0  ;;  %v6025_v25 = vmax.f32 %v10608_v21, %v5337_v1  ;;  %v3780_v20 = vpop.f32.mrf.mxu0  ;;  %v4300_v18 = vpop.f32.mrf.mxu1 }
 0x329   : > { %v9312_v43 = vpack.c.bf16 %v6497_v29, %v6496_v6  ;;  %v9442_v50 = vpack.c.bf16 %v6549_v32, %v6548_v39  ;;  %v5870_v40 = vmax.f32 %v10612_v23, %v3780_v20  ;;  %v5922_v27 = vmax.f32 %v10614_v33, %v4300_v18  ;;  %v8934_v20 = vld [vmem:[%s10036_s7 + $0x188] sm:$0xff] }
 0x32a   : > { %v6181_v16 = vmax.f32 %v5765_v47, %v5973_v28  ;;  %v6233_v34 = vmax.f32 %v5817_v17, %v6025_v25  ;;  %v6652_v23 = vmax.f32 %v6444_v51, 0.0 }
 0x32b   : > { %9313 = vst [vmem:[%s10891_s14] sm:$0xff] %v9312_v43   ;;  %3819 = vmatmul.bf16.gmra.mxu0 %v8933_v2  ;;  %4339 = vmatmul.bf16.gmra.mxu1 %v9037_v46  ;;  %v6078_v48 = vmax.f32 %v5662_v24, %v5870_v40  ;;  %v6130_v49 = vmax.f32 %v5714_v35, %v5922_v27  ;;  %v9142_v43 = vld [vmem:[%s10036_s7 + $0x808] sm:$0xff]  ;;  %v12933_v27 = vld [vmem:[#allocation2_spill] sm:$0xff] }
 0x32c   : > { %9854 = vst [vmem:[%s10891_s14 + $0xd0] sm:$0xff] %v9442_v50   ;;  %v6393_v21 = vadd.f32 %v10863_v8, %v6181_v16  ;;  %v6445_v41 = vadd.f32 %v10863_v8, %v6233_v34  ;;  %4859 = vmatmul.bf16.gmra.mxu2 %v9141_v3  ;;  %5379 = vmatmul.bf16.gmra.mxu3 %v9245_v42  ;;  %v9246_v50 = vld [vmem:[%s10036_s7 + $0xb48] sm:$0xff] }
 0x32d   : > { %v6290_v0 = vadd.f32 %v10863_v8, %v6078_v48  ;;  %v6342_v1 = vadd.f32 %v10863_v8, %v6130_v49  ;;  %v12935_v24 = vld [vmem:[#allocation3_spill] sm:$0xff] }
 0x32e   : > { %v6601_v7 = vmax.f32 %v6393_v21, 0.0  ;;  %v6653_v33 = vmax.f32 %v6445_v41, 0.0  ;;  %v12934_v41 = vld [vmem:[#allocation91_spill] sm:$0xff] }
 0x32f   : > { %v4820_v26 = vpop.f32.mrf.mxu2  ;;  %v5340_v19 = vpop.f32.mrf.mxu3  ;;  %v6498_v2 = vmax.f32 %v6290_v0, 0.0  ;;  %v6550_v46 = vmax.f32 %v6342_v1, 0.0  ;;  %v5716_v35 = vmax.f32 %v12935_v24, %v12934_v41  ;;  %v12941_v0 = vld [vmem:[#allocation181_spill] sm:$0xff]  ;;  %v9143_v24 = vld [vmem:[%s10036_s7 + $0x810] sm:$0xff] }
 0x330   : > { %v9572_v22 = vpack.c.bf16 %v6601_v7, %v6600_v9  ;;  %v9702_v13 = vpack.c.bf16 %v6653_v33, %v6652_v23  ;;  %v3782_v6 = vpop.f32.mrf.mxu0  ;;  %v4302_v39 = vpop.f32.mrf.mxu1  ;;  %v5974_v29 = vmax.f32 %v10618_v14, %v4820_v26  ;;  %v6026_v32 = vmax.f32 %v10620_v53, %v5340_v19 }
 0x331   : > { %v5871_v36 = vmax.f32 %v10622_v11, %v3782_v6  ;;  %v5923_v37 = vmax.f32 %v10624_v30, %v4302_v39  ;;  %v5818_v11 = vmax.f32 %v10100_v59, %v10360_v4  ;;  %v5767_v59 = vmax.f32 %v10106_v62, %v10366_v45  ;;  %v12932_v45 = vld [vmem:[#allocation90_spill] sm:$0xff] }
 0x332   : > { %9880 = vst [vmem:[%s10891_s14 + $0x1a0] sm:$0xff] %v9572_v22   ;;  %v6182_v56 = vmax.f32 %v5766_v61, %v5974_v29  ;;  %v5819_v4 = vmax.f32 %v10108_v63, %v10368_v44  ;;  %v5664_v21 = vmax.f32 %v12933_v27, %v12932_v45  ;;  %v12936_v6 = vld [vmem:[#allocation94_spill] sm:$0xff]  ;;  %v12940_v29 = vld [vmem:[#allocation180_spill] sm:$0xff]  ;;  %v12943_v61 = vld [vmem:[#allocation179_spill] sm:$0xff] }
 0x333   : > { %9906 = vst [vmem:[%s10891_s14 + $0x270] sm:$0xff] %v9702_v13   ;;  %v6079_v60 = vmax.f32 %v5663_v54, %v5871_v36  ;;  %v6131_v57 = vmax.f32 %v5715_v55, %v5923_v37  ;;  %v6234_v53 = vmax.f32 %v5818_v11, %v6026_v32  ;;  %v12937_v39 = vld [vmem:[#allocation6_spill] sm:$0xff]  ;;  %v12938_v55 = vld [vmem:[#allocation95_spill] sm:$0xff] }
 0x334   : > { %v6394_v16 = vadd.f32 %v10863_v8, %v6182_v56  ;;  %v5665_v54 = vmax.f32 %v12937_v39, %v12936_v6  ;;  %v12939_v36 = vld [vmem:[#allocation7_spill] sm:$0xff]  ;;  %v12956_v6 = vld [vmem:[#allocation98_spill] sm:$0xff] }
 0x335   : > { %v6291_v30 = vadd.f32 %v10863_v8, %v6079_v60  ;;  %v6343_v14 = vadd.f32 %v10863_v8, %v6131_v57  ;;  %v6446_v34 = vadd.f32 %v10863_v8, %v6234_v53  ;;  %v5717_v37 = vmax.f32 %v12939_v36, %v12938_v55  ;;  %v12942_v60 = vld [vmem:[#allocation178_spill] sm:$0xff]  ;;  %v12953_v45 = vld [vmem:[#allocation183_spill] sm:$0xff] }
 0x336   : > { %v6602_v9 = vmax.f32 %v6394_v16, 0.0  ;;  %v12948_v16 = vld [vmem:[#allocation96_spill] sm:$0xff]  ;;  %v12957_v39 = vld [vmem:[#allocation10_spill] sm:$0xff]  ;;  %v12958_v55 = vld [vmem:[#allocation99_spill] sm:$0xff] }
 0x337   : > { %v6499_v47 = vmax.f32 %v6291_v30, 0.0  ;;  %v6551_v17 = vmax.f32 %v6343_v14, 0.0  ;;  %v4822_v28 = vpop.f32.mrf.mxu2  ;;  %v5342_v25 = vpop.f32.mrf.mxu3  ;;  %v12959_v36 = vld [vmem:[#allocation11_spill] sm:$0xff] }
 0x338   : > { %v5975_v5 = vmax.f32 %v10626_v10, %v4822_v28  ;;  %v6027_v18 = vmax.f32 %v10628_v31, %v5342_v25  ;;  %v3785_v3 = vpop.f32.mrf.mxu0  ;;  %v4305_v42 = vpop.f32.mrf.mxu1  ;;  %v12947_v28 = vld [vmem:[#allocation5_spill] sm:$0xff] }
 0x339   : > { %v9317_v12 = vpack.c.bf16 %v6499_v47, %v6498_v2  ;;  %v9447_v51 = vpack.c.bf16 %v6551_v17, %v6550_v46  ;;  %v5872_v63 = vmax.f32 %v10632_v15, %v3785_v3  ;;  %v5924_v10 = vmax.f32 %v10634_v52, %v4305_v42  ;;  %v12944_v2 = vld [vmem:[#allocation92_spill] sm:$0xff]  ;;  %v12946_v17 = vld [vmem:[#allocation93_spill] sm:$0xff] }
 0x33a   : > { %v6183_v40 = vmax.f32 %v5767_v59, %v5975_v5  ;;  %v6235_v62 = vmax.f32 %v5819_v4, %v6027_v18  ;;  %v6654_v15 = vmax.f32 %v6446_v34, 0.0  ;;  %v12945_v46 = vld [vmem:[#allocation4_spill] sm:$0xff]  ;;  %v5820_v25 = vmax.f32 %v12947_v28, %v12946_v17  ;;  %v12962_v17 = vld [vmem:[#allocation103_spill] sm:$0xff] }
 0x33b   : > { %9829 = vst [vmem:[%s10891_s14 + $0x8] sm:$0xff] %v9317_v12   ;;  %3824 = vmatmul.bf16.gmra.mxu0 %v8934_v20  ;;  %4344 = vmatmul.bf16.gmra.mxu1 %v9038_v58  ;;  %v6080_v7 = vmax.f32 %v5664_v21, %v5872_v63  ;;  %v6132_v33 = vmax.f32 %v5716_v35, %v5924_v10  ;;  %v8935_v12 = vld [vmem:[%s10036_s7 + $0x190] sm:$0xff]  ;;  %v12951_v63 = vld [vmem:[#allocation9_spill] sm:$0xff]  ;;  %v12963_v28 = vld [vmem:[#allocation15_spill] sm:$0xff] }
 0x33c   : > { %9855 = vst [vmem:[%s10891_s14 + $0xd8] sm:$0xff] %v9447_v51   ;;  %v6395_v31 = vadd.f32 %v10863_v8, %v6183_v40  ;;  %v6447_v44 = vadd.f32 %v10863_v8, %v6235_v62  ;;  %4864 = vmatmul.bf16.gmra.mxu2 %v9142_v43  ;;  %5384 = vmatmul.bf16.gmra.mxu3 %v9246_v50  ;;  %v9039_v51 = vld [vmem:[%s10036_s7 + $0x4d0] sm:$0xff]  ;;  %v12950_v62 = vld [vmem:[#allocation97_spill] sm:$0xff] }
 0x33d   : > { %v6292_v30 = vadd.f32 %v10863_v8, %v6080_v7  ;;  %v6344_v14 = vadd.f32 %v10863_v8, %v6132_v33  ;;  %v5768_v47 = vmax.f32 %v12945_v46, %v12944_v2  ;;  %v12949_v34 = vld [vmem:[#allocation8_spill] sm:$0xff]  ;;  %v5821_v10 = vmax.f32 %v12951_v63, %v12950_v62  ;;  %v12960_v2 = vld [vmem:[#allocation102_spill] sm:$0xff]  ;;  %v12970_v62 = vld [vmem:[#allocation101_spill] sm:$0xff] }
 0x33e   : > { %v6603_v23 = vmax.f32 %v6395_v31, 0.0  ;;  %v6655_v52 = vmax.f32 %v6447_v44, 0.0  ;;  %v5769_v40 = vmax.f32 %v12949_v34, %v12948_v16  ;;  %v12952_v31 = vld [vmem:[#allocation182_spill] sm:$0xff]  ;;  %v9247_v35 = vld [vmem:[%s10036_s7 + $0xb50] sm:$0xff]  ;;  %v12971_v63 = vld [vmem:[#allocation13_spill] sm:$0xff] }
 0x33f   : > { %v4825_v48 = vpop.f32.mrf.mxu2  ;;  %v5345_v49 = vpop.f32.mrf.mxu3  ;;  %v6500_v5 = vmax.f32 %v6292_v30, 0.0  ;;  %v6552_v18 = vmax.f32 %v6344_v14, 0.0  ;;  %v12961_v46 = vld [vmem:[#allocation14_spill] sm:$0xff]  ;;  %v12968_v16 = vld [vmem:[#allocation100_spill] sm:$0xff] }
 0x340   : > { %v9577_v26 = vpack.c.bf16 %v6603_v23, %v6602_v9  ;;  %v9707_v19 = vpack.c.bf16 %v6655_v52, %v6654_v15  ;;  %v3787_v22 = vpop.f32.mrf.mxu0  ;;  %v4307_v13 = vpop.f32.mrf.mxu1  ;;  %v5976_v57 = vmax.f32 %v12942_v60, %v4825_v48  ;;  %v6028_v11 = vmax.f32 %v12943_v61, %v5345_v49  ;;  %v12954_v48 = vld [vmem:[#allocation184_spill] sm:$0xff] }
 0x341   : > { %v5873_v32 = vmax.f32 %v12940_v29, %v3787_v22  ;;  %v5925_v1 = vmax.f32 %v12941_v0, %v4307_v13  ;;  %v12969_v34 = vld [vmem:[#allocation12_spill] sm:$0xff] }
 0x342   : > { %9881 = vst [vmem:[%s10891_s14 + $0x1a8] sm:$0xff] %v9577_v26   ;;  %v6184_v59 = vmax.f32 %v5768_v47, %v5976_v57  ;;  %v6236_v4 = vmax.f32 %v5820_v25, %v6028_v11  ;;  %v12955_v26 = vld [vmem:[#allocation185_spill] sm:$0xff]  ;;  %v5667_v47 = vmax.f32 %v12961_v46, %v12960_v2  ;;  %v5719_v25 = vmax.f32 %v12963_v28, %v12962_v17  ;;  %v12980_v2 = vld [vmem:[#allocation106_spill] sm:$0xff]  ;;  %v12982_v17 = vld [vmem:[#allocation107_spill] sm:$0xff] }
 0x343   : > { %9907 = vst [vmem:[%s10891_s14 + $0x278] sm:$0xff] %v9707_v19   ;;  %v6081_v56 = vmax.f32 %v5665_v54, %v5873_v32  ;;  %v6133_v53 = vmax.f32 %v5717_v37, %v5925_v1  ;;  %v5666_v54 = vmax.f32 %v12957_v39, %v12956_v6  ;;  %v5718_v37 = vmax.f32 %v12959_v36, %v12958_v55  ;;  %v12977_v6 = vld [vmem:[#allocation191_spill] sm:$0xff]  ;;  %v9144_v36 = vld [vmem:[%s10036_s7 + $0x818] sm:$0xff]  ;;  %v12981_v46 = vld [vmem:[#allocation18_spill] sm:$0xff] }
 0x344   : > { %v6396_v23 = vadd.f32 %v10863_v8, %v6184_v59  ;;  %v6448_v52 = vadd.f32 %v10863_v8, %v6236_v4  ;;  %v12965_v59 = vld [vmem:[#allocation189_spill] sm:$0xff]  ;;  %v12983_v28 = vld [vmem:[#allocation19_spill] sm:$0xff] }
 0x345   : > { %v6293_v20 = vadd.f32 %v10863_v8, %v6081_v56  ;;  %v6345_v58 = vadd.f32 %v10863_v8, %v6133_v53 }
 0x346   : > { %v6604_v29 = vmax.f32 %v6396_v23, 0.0  ;;  %v6656_v32 = vmax.f32 %v6448_v52, 0.0  ;;  %v8936_v23 = vld [vmem:[%s10036_s7 + $0x198] sm:$0xff] }
 0x347   : > { %v6501_v3 = vmax.f32 %v6293_v20, 0.0  ;;  %v6553_v42 = vmax.f32 %v6345_v58, 0.0  ;;  %v4827_v43 = vpop.f32.mrf.mxu2  ;;  %v5347_v50 = vpop.f32.mrf.mxu3  ;;  %v12964_v20 = vld [vmem:[#allocation188_spill] sm:$0xff]  ;;  %v9040_v52 = vld [vmem:[%s10036_s7 + $0x4d8] sm:$0xff] }
 0x348   : > { %v5977_v44 = vmax.f32 %v12952_v31, %v4827_v43  ;;  %v6029_v27 = vmax.f32 %v12953_v45, %v5347_v50  ;;  %v3790_v21 = vpop.f32.mrf.mxu0  ;;  %v4310_v41 = vpop.f32.mrf.mxu1 }
 0x349   : > { %v9322_v9 = vpack.c.bf16 %v6501_v3, %v6500_v5  ;;  %v9452_v15 = vpack.c.bf16 %v6553_v42, %v6552_v18  ;;  %v5874_v49 = vmax.f32 %v12954_v48, %v3790_v21  ;;  %v5926_v19 = vmax.f32 %v12955_v26, %v4310_v41  ;;  %v12966_v5 = vld [vmem:[#allocation186_spill] sm:$0xff]  ;;  %v12967_v3 = vld [vmem:[#allocation187_spill] sm:$0xff]  ;;  %v12975_v26 = vld [vmem:[#allocation17_spill] sm:$0xff] }
 0x34a   : > { %v6185_v7 = vmax.f32 %v5769_v40, %v5977_v44  ;;  %v6237_v33 = vmax.f32 %v5821_v10, %v6029_v27  ;;  %v5770_v40 = vmax.f32 %v12969_v34, %v12968_v16  ;;  %v5822_v10 = vmax.f32 %v12971_v63, %v12970_v62  ;;  %v12984_v16 = vld [vmem:[#allocation110_spill] sm:$0xff]  ;;  %v12986_v62 = vld [vmem:[#allocation111_spill] sm:$0xff] }
 0x34b   : > { %9830 = vst [vmem:[%s10891_s14 + $0x10] sm:$0xff] %v9322_v9   ;;  %3829 = vmatmul.bf16.gmra.mxu0 %v8935_v12  ;;  %4349 = vmatmul.bf16.gmra.mxu1 %v9039_v51  ;;  %v6082_v60 = vmax.f32 %v5666_v54, %v5874_v49  ;;  %v6134_v57 = vmax.f32 %v5718_v37, %v5926_v19  ;;  %v12974_v49 = vld [vmem:[#allocation105_spill] sm:$0xff]  ;;  %v12985_v34 = vld [vmem:[#allocation22_spill] sm:$0xff]  ;;  %v12987_v63 = vld [vmem:[#allocation23_spill] sm:$0xff] }
 0x34c   : > { %9856 = vst [vmem:[%s10891_s14 + $0xe0] sm:$0xff] %v9452_v15   ;;  %v6397_v22 = vadd.f32 %v10863_v8, %v6185_v7  ;;  %v6449_v13 = vadd.f32 %v10863_v8, %v6237_v33  ;;  %4869 = vmatmul.bf16.gmra.mxu2 %v9143_v24  ;;  %5389 = vmatmul.bf16.gmra.mxu3 %v9247_v35  ;;  %v12972_v7 = vld [vmem:[#allocation104_spill] sm:$0xff]  ;;  %v9248_v37 = vld [vmem:[%s10036_s7 + $0xb58] sm:$0xff] }
 0x34d   : > { %v6294_v43 = vadd.f32 %v10863_v8, %v6082_v60  ;;  %v6346_v50 = vadd.f32 %v10863_v8, %v6134_v57  ;;  %v12973_v33 = vld [vmem:[#allocation16_spill] sm:$0xff]  ;;  %v5823_v19 = vmax.f32 %v12975_v26, %v12974_v49  ;;  %v12994_v49 = vld [vmem:[#allocation109_spill] sm:$0xff] }
 0x34e   : > { %v6605_v0 = vmax.f32 %v6397_v22, 0.0  ;;  %v6657_v1 = vmax.f32 %v6449_v13, 0.0  ;;  %v5771_v48 = vmax.f32 %v12973_v33, %v12972_v7  ;;  %v12976_v22 = vld [vmem:[#allocation190_spill] sm:$0xff]  ;;  %v12992_v7 = vld [vmem:[#allocation108_spill] sm:$0xff]  ;;  %v12995_v26 = vld [vmem:[#allocation21_spill] sm:$0xff] }
 0x34f   : > { %v4830_v61 = vpop.f32.mrf.mxu2  ;;  %v5350_v11 = vpop.f32.mrf.mxu3  ;;  %v6502_v21 = vmax.f32 %v6294_v43, 0.0  ;;  %v6554_v41 = vmax.f32 %v6346_v50, 0.0  ;;  %v12993_v33 = vld [vmem:[#allocation20_spill] sm:$0xff] }
 0x350   : > { %v9582_v30 = vpack.c.bf16 %v6605_v0, %v6604_v29  ;;  %v9712_v14 = vpack.c.bf16 %v6657_v1, %v6656_v32  ;;  %v3792_v56 = vpop.f32.mrf.mxu0  ;;  %v4312_v53 = vpop.f32.mrf.mxu1  ;;  %v5978_v18 = vmax.f32 %v12966_v5, %v4830_v61  ;;  %v6030_v42 = vmax.f32 %v12967_v3, %v5350_v11  ;;  %v12978_v61 = vld [vmem:[#allocation192_spill] sm:$0xff] }
 0x351   : > { %v5875_v58 = vmax.f32 %v12964_v20, %v3792_v56  ;;  %v5927_v4 = vmax.f32 %v12965_v59, %v4312_v53 }
 0x352   : > { %9882 = vst [vmem:[%s10891_s14 + $0x1b0] sm:$0xff] %v9582_v30   ;;  %v6186_v45 = vmax.f32 %v5770_v40, %v5978_v18  ;;  %v6238_v27 = vmax.f32 %v5822_v10, %v6030_v42  ;;  %v12979_v30 = vld [vmem:[#allocation193_spill] sm:$0xff]  ;;  %v5669_v40 = vmax.f32 %v12985_v34, %v12984_v16  ;;  %v5721_v10 = vmax.f32 %v12987_v63, %v12986_v62  ;;  %v13004_v16 = vld [vmem:[#allocation114_spill] sm:$0xff]  ;;  %v13006_v62 = vld [vmem:[#allocation115_spill] sm:$0xff] }
 0x353   : > { %9908 = vst [vmem:[%s10891_s14 + $0x280] sm:$0xff] %v9712_v14   ;;  %v6083_v12 = vmax.f32 %v5667_v47, %v5875_v58  ;;  %v6135_v51 = vmax.f32 %v5719_v25, %v5927_v4  ;;  %v5668_v47 = vmax.f32 %v12981_v46, %v12980_v2  ;;  %v5720_v25 = vmax.f32 %v12983_v28, %v12982_v17  ;;  %v13001_v2 = vld [vmem:[#allocation199_spill] sm:$0xff]  ;;  %v9145_v28 = vld [vmem:[%s10036_s7 + $0x820] sm:$0xff] }
 0x354   : > { %v6398_v0 = vadd.f32 %v10863_v8, %v6186_v45  ;;  %v6450_v1 = vadd.f32 %v10863_v8, %v6238_v27  ;;  %v12989_v45 = vld [vmem:[#allocation197_spill] sm:$0xff]  ;;  %v13005_v34 = vld [vmem:[#allocation26_spill] sm:$0xff]  ;;  %v13007_v63 = vld [vmem:[#allocation27_spill] sm:$0xff] }
 0x355   : > { %v6295_v31 = vadd.f32 %v10863_v8, %v6083_v12  ;;  %v6347_v44 = vadd.f32 %v10863_v8, %v6135_v51 }
 0x356   : > { %v6606_v20 = vmax.f32 %v6398_v0, 0.0  ;;  %v6658_v58 = vmax.f32 %v6450_v1, 0.0  ;;  %v8937_v0 = vld [vmem:[%s10036_s7 + $0x1a0] sm:$0xff] }
 0x357   : > { %v6503_v24 = vmax.f32 %v6295_v31, 0.0  ;;  %v6555_v35 = vmax.f32 %v6347_v44, 0.0  ;;  %v4832_v9 = vpop.f32.mrf.mxu2  ;;  %v5352_v15 = vpop.f32.mrf.mxu3  ;;  %v12988_v31 = vld [vmem:[#allocation196_spill] sm:$0xff]  ;;  %v9041_v1 = vld [vmem:[%s10036_s7 + $0x4e0] sm:$0xff] }
 0x358   : > { %v5979_v13 = vmax.f32 %v12976_v22, %v4832_v9  ;;  %v6031_v39 = vmax.f32 %v12977_v6, %v5352_v15  ;;  %v3795_v54 = vpop.f32.mrf.mxu0  ;;  %v4315_v55 = vpop.f32.mrf.mxu1 }
 0x359   : > { %v9327_v29 = vpack.c.bf16 %v6503_v24, %v6502_v21  ;;  %v9457_v32 = vpack.c.bf16 %v6555_v35, %v6554_v41  ;;  %v5876_v11 = vmax.f32 %v12978_v61, %v3795_v54  ;;  %v5928_v14 = vmax.f32 %v12979_v30, %v4315_v55  ;;  %v12990_v21 = vld [vmem:[#allocation194_spill] sm:$0xff]  ;;  %v12991_v24 = vld [vmem:[#allocation195_spill] sm:$0xff]  ;;  %v12999_v30 = vld [vmem:[#allocation25_spill] sm:$0xff] }
 0x35a   : > { %v6187_v60 = vmax.f32 %v5771_v48, %v5979_v13  ;;  %v6239_v57 = vmax.f32 %v5823_v19, %v6031_v39  ;;  %v5772_v48 = vmax.f32 %v12993_v33, %v12992_v7  ;;  %v5824_v19 = vmax.f32 %v12995_v26, %v12994_v49  ;;  %v13008_v7 = vld [vmem:[#allocation118_spill] sm:$0xff]  ;;  %v13010_v49 = vld [vmem:[#allocation119_spill] sm:$0xff] }
 0x35b   : > { %9831 = vst [vmem:[%s10891_s14 + $0x18] sm:$0xff] %v9327_v29   ;;  %3834 = vmatmul.bf16.gmra.mxu0 %v8936_v23  ;;  %4354 = vmatmul.bf16.gmra.mxu1 %v9040_v52  ;;  %v6084_v5 = vmax.f32 %v5668_v47, %v5876_v11  ;;  %v6136_v18 = vmax.f32 %v5720_v25, %v5928_v14  ;;  %v12998_v11 = vld [vmem:[#allocation113_spill] sm:$0xff]  ;;  %v9249_v25 = vld [vmem:[%s10036_s7 + $0xb60] sm:$0xff]  ;;  %v13011_v26 = vld [vmem:[#allocation31_spill] sm:$0xff] }
 0x35c   : > { %9857 = vst [vmem:[%s10891_s14 + $0xe8] sm:$0xff] %v9457_v32   ;;  %v6399_v56 = vadd.f32 %v10863_v8, %v6187_v60  ;;  %v6451_v53 = vadd.f32 %v10863_v8, %v6239_v57  ;;  %4874 = vmatmul.bf16.gmra.mxu2 %v9144_v36  ;;  %5394 = vmatmul.bf16.gmra.mxu3 %v9248_v37  ;;  %v12996_v60 = vld [vmem:[#allocation112_spill] sm:$0xff]  ;;  %v13009_v33 = vld [vmem:[#allocation30_spill] sm:$0xff] }
 0x35d   : > { %v6296_v9 = vadd.f32 %v10863_v8, %v6084_v5  ;;  %v6348_v15 = vadd.f32 %v10863_v8, %v6136_v18  ;;  %v12997_v57 = vld [vmem:[#allocation24_spill] sm:$0xff]  ;;  %v5825_v14 = vmax.f32 %v12999_v30, %v12998_v11  ;;  %v13018_v11 = vld [vmem:[#allocation117_spill] sm:$0xff] }
 0x35e   : > { %v6607_v59 = vmax.f32 %v6399_v56, 0.0  ;;  %v6659_v4 = vmax.f32 %v6451_v53, 0.0  ;;  %v5773_v61 = vmax.f32 %v12997_v57, %v12996_v60  ;;  %v13000_v56 = vld [vmem:[#allocation198_spill] sm:$0xff]  ;;  %v13016_v60 = vld [vmem:[#allocation116_spill] sm:$0xff]  ;;  %v13019_v30 = vld [vmem:[#allocation29_spill] sm:$0xff] }
 0x35f   : > { %v4835_v3 = vpop.f32.mrf.mxu2  ;;  %v5355_v42 = vpop.f32.mrf.mxu3  ;;  %v6504_v54 = vmax.f32 %v6296_v9, 0.0  ;;  %v6556_v55 = vmax.f32 %v6348_v15, 0.0  ;;  %v13017_v57 = vld [vmem:[#allocation28_spill] sm:$0xff] }
 0x360   : > { %v9587_v43 = vpack.c.bf16 %v6607_v59, %v6606_v20  ;;  %v9717_v50 = vpack.c.bf16 %v6659_v4, %v6658_v58  ;;  %v3797_v12 = vpop.f32.mrf.mxu0  ;;  %v4317_v51 = vpop.f32.mrf.mxu1  ;;  %v5980_v41 = vmax.f32 %v12990_v21, %v4835_v3  ;;  %v6032_v35 = vmax.f32 %v12991_v24, %v5355_v42  ;;  %v13002_v3 = vld [vmem:[#allocation200_spill] sm:$0xff] }
 0x361   : > { %v5877_v44 = vmax.f32 %v12988_v31, %v3797_v12  ;;  %v5929_v27 = vmax.f32 %v12989_v45, %v4317_v51 }
 0x362   : > { %9883 = vst [vmem:[%s10891_s14 + $0x1b8] sm:$0xff] %v9587_v43   ;;  %v6188_v6 = vmax.f32 %v5772_v48, %v5980_v41  ;;  %v6240_v39 = vmax.f32 %v5824_v19, %v6032_v35  ;;  %v13003_v43 = vld [vmem:[#allocation201_spill] sm:$0xff]  ;;  %v5671_v48 = vmax.f32 %v13009_v33, %v13008_v7  ;;  %v5723_v19 = vmax.f32 %v13011_v26, %v13010_v49  ;;  %v13028_v7 = vld [vmem:[#allocation122_spill] sm:$0xff]  ;;  %v13030_v49 = vld [vmem:[#allocation123_spill] sm:$0xff] }
 0x363   : > { %9909 = vst [vmem:[%s10891_s14 + $0x288] sm:$0xff] %v9717_v50   ;;  %v6085_v23 = vmax.f32 %v5669_v40, %v5877_v44  ;;  %v6137_v52 = vmax.f32 %v5721_v10, %v5929_v27  ;;  %v5670_v40 = vmax.f32 %v13005_v34, %v13004_v16  ;;  %v5722_v10 = vmax.f32 %v13007_v63, %v13006_v62  ;;  %v13025_v16 = vld [vmem:[#allocation207_spill] sm:$0xff]  ;;  %v13029_v33 = vld [vmem:[#allocation34_spill] sm:$0xff] }
 0x364   : > { %v6400_v59 = vadd.f32 %v10863_v8, %v6188_v6  ;;  %v6452_v4 = vadd.f32 %v10863_v8, %v6240_v39  ;;  %v13013_v6 = vld [vmem:[#allocation205_spill] sm:$0xff]  ;;  %v9146_v63 = vld [vmem:[%s10036_s7 + $0x828] sm:$0xff] }
 0x365   : > { %v6297_v22 = vadd.f32 %v10863_v8, %v6085_v23  ;;  %v6349_v13 = vadd.f32 %v10863_v8, %v6137_v52  ;;  %v13031_v26 = vld [vmem:[#allocation35_spill] sm:$0xff] }
 0x366   : > { %v6608_v31 = vmax.f32 %v6400_v59, 0.0  ;;  %v6660_v44 = vmax.f32 %v6452_v4, 0.0  ;;  %v8938_v59 = vld [vmem:[%s10036_s7 + $0x1a8] sm:$0xff] }
 0x367   : > { %v6505_v36 = vmax.f32 %v6297_v22, 0.0  ;;  %v6557_v37 = vmax.f32 %v6349_v13, 0.0  ;;  %v4837_v29 = vpop.f32.mrf.mxu2  ;;  %v5357_v32 = vpop.f32.mrf.mxu3  ;;  %v13012_v22 = vld [vmem:[#allocation204_spill] sm:$0xff]  ;;  %v9042_v4 = vld [vmem:[%s10036_s7 + $0x4e8] sm:$0xff] }
 0x368   : > { %v5981_v53 = vmax.f32 %v13000_v56, %v4837_v29  ;;  %v6033_v46 = vmax.f32 %v13001_v2, %v5357_v32  ;;  %v3800_v47 = vpop.f32.mrf.mxu0  ;;  %v4320_v17 = vpop.f32.mrf.mxu1 }
 0x369   : > { %v9332_v20 = vpack.c.bf16 %v6505_v36, %v6504_v54  ;;  %v9462_v58 = vpack.c.bf16 %v6557_v37, %v6556_v55  ;;  %v5878_v42 = vmax.f32 %v13002_v3, %v3800_v47  ;;  %v5930_v50 = vmax.f32 %v13003_v43, %v4320_v17  ;;  %v13014_v54 = vld [vmem:[#allocation202_spill] sm:$0xff]  ;;  %v13015_v36 = vld [vmem:[#allocation203_spill] sm:$0xff]  ;;  %v13023_v43 = vld [vmem:[#allocation33_spill] sm:$0xff] }
 0x36a   : > { %v6189_v5 = vmax.f32 %v5773_v61, %v5981_v53  ;;  %v6241_v18 = vmax.f32 %v5825_v14, %v6033_v46  ;;  %v5774_v61 = vmax.f32 %v13017_v57, %v13016_v60  ;;  %v5826_v14 = vmax.f32 %v13019_v30, %v13018_v11  ;;  %v13032_v60 = vld [vmem:[#allocation126_spill] sm:$0xff]  ;;  %v13034_v11 = vld [vmem:[#allocation127_spill] sm:$0xff] }
 0x36b   : > { %9832 = vst [vmem:[%s10891_s14 + $0x20] sm:$0xff] %v9332_v20   ;;  %3839 = vmatmul.bf16.gmra.mxu0 %v8937_v0  ;;  %4359 = vmatmul.bf16.gmra.mxu1 %v9041_v1  ;;  %v6086_v21 = vmax.f32 %v5670_v40, %v5878_v42  ;;  %v6138_v41 = vmax.f32 %v5722_v10, %v5930_v50  ;;  %v13022_v42 = vld [vmem:[#allocation121_spill] sm:$0xff]  ;;  %v9250_v10 = vld [vmem:[%s10036_s7 + $0xb68] sm:$0xff]  ;;  %v13033_v57 = vld [vmem:[#allocation38_spill] sm:$0xff] }
 0x36c   : > { %9858 = vst [vmem:[%s10891_s14 + $0xf0] sm:$0xff] %v9462_v58   ;;  %v6401_v12 = vadd.f32 %v10863_v8, %v6189_v5  ;;  %v6453_v51 = vadd.f32 %v10863_v8, %v6241_v18  ;;  %4879 = vmatmul.bf16.gmra.mxu2 %v9145_v28  ;;  %5399 = vmatmul.bf16.gmra.mxu3 %v9249_v25  ;;  %v13020_v5 = vld [vmem:[#allocation120_spill] sm:$0xff]  ;;  %v13035_v30 = vld [vmem:[#allocation39_spill] sm:$0xff] }
 0x36d   : > { %v6298_v29 = vadd.f32 %v10863_v8, %v6086_v21  ;;  %v6350_v32 = vadd.f32 %v10863_v8, %v6138_v41  ;;  %v13021_v18 = vld [vmem:[#allocation32_spill] sm:$0xff]  ;;  %v5827_v50 = vmax.f32 %v13023_v43, %v13022_v42  ;;  %v13042_v42 = vld [vmem:[#allocation125_spill] sm:$0xff] }
 0x36e   : > { %v6609_v45 = vmax.f32 %v6401_v12, 0.0  ;;  %v6661_v27 = vmax.f32 %v6453_v51, 0.0  ;;  %v5775_v3 = vmax.f32 %v13021_v18, %v13020_v5  ;;  %v13024_v12 = vld [vmem:[#allocation206_spill] sm:$0xff]  ;;  %v13040_v5 = vld [vmem:[#allocation124_spill] sm:$0xff]  ;;  %v13043_v43 = vld [vmem:[#allocation37_spill] sm:$0xff] }
 0x36f   : > { %v4840_v24 = vpop.f32.mrf.mxu2  ;;  %v5360_v35 = vpop.f32.mrf.mxu3  ;;  %v6506_v47 = vmax.f32 %v6298_v29, 0.0  ;;  %v6558_v17 = vmax.f32 %v6350_v32, 0.0  ;;  %v13041_v18 = vld [vmem:[#allocation36_spill] sm:$0xff] }
 0x370   : > { %v9592_v9 = vpack.c.bf16 %v6609_v45, %v6608_v31  ;;  %v9722_v15 = vpack.c.bf16 %v6661_v27, %v6660_v44  ;;  %v3802_v23 = vpop.f32.mrf.mxu0  ;;  %v4322_v52 = vpop.f32.mrf.mxu1  ;;  %v5982_v55 = vmax.f32 %v13014_v54, %v4840_v24  ;;  %v6034_v37 = vmax.f32 %v13015_v36, %v5360_v35  ;;  %v13026_v24 = vld [vmem:[#allocation208_spill] sm:$0xff] }
 0x371   : > { %v5879_v13 = vmax.f32 %v13012_v22, %v3802_v23  ;;  %v5931_v39 = vmax.f32 %v13013_v6, %v4322_v52 }
 0x372   : > { %9884 = vst [vmem:[%s10891_s14 + $0x1c0] sm:$0xff] %v9592_v9   ;;  %v6190_v2 = vmax.f32 %v5774_v61, %v5982_v55  ;;  %v6242_v46 = vmax.f32 %v5826_v14, %v6034_v37  ;;  %v13027_v9 = vld [vmem:[#allocation209_spill] sm:$0xff]  ;;  %v5673_v61 = vmax.f32 %v13033_v57, %v13032_v60  ;;  %v5725_v14 = vmax.f32 %v13035_v30, %v13034_v11  ;;  %v13052_v60 = vld [vmem:[#allocation130_spill] sm:$0xff]  ;;  %v13054_v11 = vld [vmem:[#allocation131_spill] sm:$0xff] }
 0x373   : > { %9910 = vst [vmem:[%s10891_s14 + $0x290] sm:$0xff] %v9722_v15   ;;  %v6087_v0 = vmax.f32 %v5671_v48, %v5879_v13  ;;  %v6139_v1 = vmax.f32 %v5723_v19, %v5931_v39  ;;  %v5672_v48 = vmax.f32 %v13029_v33, %v13028_v7  ;;  %v5724_v19 = vmax.f32 %v13031_v26, %v13030_v49  ;;  %v13049_v7 = vld [vmem:[#allocation215_spill] sm:$0xff]  ;;  %v9147_v26 = vld [vmem:[%s10036_s7 + $0x830] sm:$0xff]  ;;  %v13053_v57 = vld [vmem:[#allocation42_spill] sm:$0xff] }
 0x374   : > { %v6402_v45 = vadd.f32 %v10863_v8, %v6190_v2  ;;  %v6454_v27 = vadd.f32 %v10863_v8, %v6242_v46  ;;  %v13037_v2 = vld [vmem:[#allocation213_spill] sm:$0xff]  ;;  %v13055_v30 = vld [vmem:[#allocation43_spill] sm:$0xff] }
 0x375   : > { %v6299_v56 = vadd.f32 %v10863_v8, %v6087_v0  ;;  %v6351_v53 = vadd.f32 %v10863_v8, %v6139_v1 }
 0x376   : > { %v6610_v22 = vmax.f32 %v6402_v45, 0.0  ;;  %v6662_v13 = vmax.f32 %v6454_v27, 0.0  ;;  %v8939_v45 = vld [vmem:[%s10036_s7 + $0x1b0] sm:$0xff] }
 0x377   : > { %v6507_v28 = vmax.f32 %v6299_v56, 0.0  ;;  %v6559_v25 = vmax.f32 %v6351_v53, 0.0  ;;  %v4842_v20 = vpop.f32.mrf.mxu2  ;;  %v5362_v58 = vpop.f32.mrf.mxu3  ;;  %v13036_v56 = vld [vmem:[#allocation212_spill] sm:$0xff] }
 0x378   : > { %v5983_v51 = vmax.f32 %v13024_v12, %v4842_v20  ;;  %v6035_v34 = vmax.f32 %v13025_v16, %v5362_v58  ;;  %v3805_v40 = vpop.f32.mrf.mxu0  ;;  %v4325_v62 = vpop.f32.mrf.mxu1  ;;  %v9043_v27 = vld [vmem:[%s10036_s7 + $0x4f0] sm:$0xff] }
 0x379   : > { %v9337_v31 = vpack.c.bf16 %v6507_v28, %v6506_v47  ;;  %v9467_v44 = vpack.c.bf16 %v6559_v25, %v6558_v17  ;;  %v5880_v35 = vmax.f32 %v13026_v24, %v3805_v40  ;;  %v5932_v15 = vmax.f32 %v13027_v9, %v4325_v62  ;;  %v13038_v47 = vld [vmem:[#allocation210_spill] sm:$0xff]  ;;  %v13039_v28 = vld [vmem:[#allocation211_spill] sm:$0xff]  ;;  %v13047_v9 = vld [vmem:[#allocation41_spill] sm:$0xff] }
 0x37a   : > { %v6191_v21 = vmax.f32 %v5775_v3, %v5983_v51  ;;  %v6243_v41 = vmax.f32 %v5827_v50, %v6035_v34  ;;  %v5776_v3 = vmax.f32 %v13041_v18, %v13040_v5  ;;  %v5828_v50 = vmax.f32 %v13043_v43, %v13042_v42  ;;  %v13056_v5 = vld [vmem:[#allocation134_spill] sm:$0xff]  ;;  %v13058_v42 = vld [vmem:[#allocation135_spill] sm:$0xff] }
 0x37b   : > { %9833 = vst [vmem:[%s10891_s14 + $0x28] sm:$0xff] %v9337_v31   ;;  %3844 = vmatmul.bf16.gmra.mxu0 %v8938_v59  ;;  %4364 = vmatmul.bf16.gmra.mxu1 %v9042_v4  ;;  %v6088_v54 = vmax.f32 %v5672_v48, %v5880_v35  ;;  %v6140_v55 = vmax.f32 %v5724_v19, %v5932_v15  ;;  %v13046_v35 = vld [vmem:[#allocation129_spill] sm:$0xff]  ;;  %v9251_v19 = vld [vmem:[%s10036_s7 + $0xb70] sm:$0xff]  ;;  %v13057_v18 = vld [vmem:[#allocation46_spill] sm:$0xff] }
 0x37c   : > { %9859 = vst [vmem:[%s10891_s14 + $0xf8] sm:$0xff] %v9467_v44   ;;  %v6403_v23 = vadd.f32 %v10863_v8, %v6191_v21  ;;  %v6455_v52 = vadd.f32 %v10863_v8, %v6243_v41  ;;  %4884 = vmatmul.bf16.gmra.mxu2 %v9146_v63  ;;  %5404 = vmatmul.bf16.gmra.mxu3 %v9250_v10  ;;  %v13044_v21 = vld [vmem:[#allocation128_spill] sm:$0xff]  ;;  %v13059_v43 = vld [vmem:[#allocation47_spill] sm:$0xff] }
 0x37d   : > { %v6300_v20 = vadd.f32 %v10863_v8, %v6088_v54  ;;  %v6352_v58 = vadd.f32 %v10863_v8, %v6140_v55  ;;  %v13045_v41 = vld [vmem:[#allocation40_spill] sm:$0xff]  ;;  %v5829_v15 = vmax.f32 %v13047_v9, %v13046_v35  ;;  %v13066_v35 = vld [vmem:[#allocation133_spill] sm:$0xff] }
 0x37e   : > { %v6611_v6 = vmax.f32 %v6403_v23, 0.0  ;;  %v6663_v39 = vmax.f32 %v6455_v52, 0.0  ;;  %v5777_v24 = vmax.f32 %v13045_v41, %v13044_v21  ;;  %v13048_v23 = vld [vmem:[#allocation214_spill] sm:$0xff]  ;;  %v13064_v21 = vld [vmem:[#allocation132_spill] sm:$0xff]  ;;  %v13067_v9 = vld [vmem:[#allocation45_spill] sm:$0xff] }
 0x37f   : > { %v4845_v36 = vpop.f32.mrf.mxu2  ;;  %v5365_v37 = vpop.f32.mrf.mxu3  ;;  %v6508_v40 = vmax.f32 %v6300_v20, 0.0  ;;  %v6560_v62 = vmax.f32 %v6352_v58, 0.0  ;;  %v13065_v41 = vld [vmem:[#allocation44_spill] sm:$0xff] }
 0x380   : > { %v9597_v29 = vpack.c.bf16 %v6611_v6, %v6610_v22  ;;  %v9727_v32 = vpack.c.bf16 %v6663_v39, %v6662_v13  ;;  %v3807_v0 = vpop.f32.mrf.mxu0  ;;  %v4327_v1 = vpop.f32.mrf.mxu1  ;;  %v5984_v17 = vmax.f32 %v13038_v47, %v4845_v36  ;;  %v6036_v25 = vmax.f32 %v13039_v28, %v5365_v37  ;;  %v13050_v36 = vld [vmem:[#allocation216_spill] sm:$0xff] }
 0x381   : > { %v5881_v53 = vmax.f32 %v13036_v56, %v3807_v0  ;;  %v5933_v46 = vmax.f32 %v13037_v2, %v4327_v1 }
 0x382   : > { %9885 = vst [vmem:[%s10891_s14 + $0x1c8] sm:$0xff] %v9597_v29   ;;  %v6192_v16 = vmax.f32 %v5776_v3, %v5984_v17  ;;  %v6244_v34 = vmax.f32 %v5828_v50, %v6036_v25  ;;  %v13051_v29 = vld [vmem:[#allocation217_spill] sm:$0xff]  ;;  %v5675_v3 = vmax.f32 %v13057_v18, %v13056_v5  ;;  %v5727_v50 = vmax.f32 %v13059_v43, %v13058_v42  ;;  %v13076_v5 = vld [vmem:[#allocation138_spill] sm:$0xff]  ;;  %v13078_v42 = vld [vmem:[#allocation139_spill] sm:$0xff] }
 0x383   : > { %9911 = vst [vmem:[%s10891_s14 + $0x298] sm:$0xff] %v9727_v32   ;;  %v6089_v59 = vmax.f32 %v5673_v61, %v5881_v53  ;;  %v6141_v4 = vmax.f32 %v5725_v14, %v5933_v46  ;;  %v5674_v61 = vmax.f32 %v13053_v57, %v13052_v60  ;;  %v5726_v14 = vmax.f32 %v13055_v30, %v13054_v11  ;;  %v13073_v60 = vld [vmem:[#allocation223_spill] sm:$0xff]  ;;  %v9148_v30 = vld [vmem:[%s10036_s7 + $0x838] sm:$0xff]  ;;  %v13077_v18 = vld [vmem:[#allocation50_spill] sm:$0xff] }
 0x384   : > { %v6404_v6 = vadd.f32 %v10863_v8, %v6192_v16  ;;  %v6456_v39 = vadd.f32 %v10863_v8, %v6244_v34  ;;  %v13061_v16 = vld [vmem:[#allocation221_spill] sm:$0xff]  ;;  %v13079_v43 = vld [vmem:[#allocation51_spill] sm:$0xff] }
 0x385   : > { %v6301_v12 = vadd.f32 %v10863_v8, %v6089_v59  ;;  %v6353_v51 = vadd.f32 %v10863_v8, %v6141_v4 }
 0x386   : > { %v6612_v56 = vmax.f32 %v6404_v6, 0.0  ;;  %v6664_v53 = vmax.f32 %v6456_v39, 0.0  ;;  %v8940_v6 = vld [vmem:[%s10036_s7 + $0x1b8] sm:$0xff] }
 0x387   : > { %v6509_v63 = vmax.f32 %v6301_v12, 0.0  ;;  %v6561_v10 = vmax.f32 %v6353_v51, 0.0  ;;  %v4847_v31 = vpop.f32.mrf.mxu2  ;;  %v5367_v44 = vpop.f32.mrf.mxu3  ;;  %v13060_v12 = vld [vmem:[#allocation220_spill] sm:$0xff]  ;;  %v9044_v39 = vld [vmem:[%s10036_s7 + $0x4f8] sm:$0xff] }
 0x388   : > { %v5985_v52 = vmax.f32 %v13048_v23, %v4847_v31  ;;  %v6037_v33 = vmax.f32 %v13049_v7, %v5367_v44  ;;  %v3810_v48 = vpop.f32.mrf.mxu0  ;;  %v4330_v49 = vpop.f32.mrf.mxu1 }
 0x389   : > { %v9342_v22 = vpack.c.bf16 %v6509_v63, %v6508_v40  ;;  %v9472_v13 = vpack.c.bf16 %v6561_v10, %v6560_v62  ;;  %v5882_v37 = vmax.f32 %v13050_v36, %v3810_v48  ;;  %v5934_v32 = vmax.f32 %v13051_v29, %v4330_v49  ;;  %v13062_v40 = vld [vmem:[#allocation218_spill] sm:$0xff]  ;;  %v13063_v63 = vld [vmem:[#allocation219_spill] sm:$0xff]  ;;  %v13071_v29 = vld [vmem:[#allocation49_spill] sm:$0xff] }
 0x38a   : > { %v6193_v54 = vmax.f32 %v5777_v24, %v5985_v52  ;;  %v6245_v55 = vmax.f32 %v5829_v15, %v6037_v33  ;;  %v5778_v24 = vmax.f32 %v13065_v41, %v13064_v21  ;;  %v5830_v15 = vmax.f32 %v13067_v9, %v13066_v35  ;;  %v13081_v21 = vld [vmem:[#allocation54_spill] sm:$0xff]  ;;  %v13083_v35 = vld [vmem:[#allocation55_spill] sm:$0xff] }
 0x38b   : > { %9834 = vst [vmem:[%s10891_s14 + $0x30] sm:$0xff] %v9342_v22   ;;  %3849 = vmatmul.bf16.gmra.mxu0 %v8939_v45  ;;  %4369 = vmatmul.bf16.gmra.mxu1 %v9043_v27  ;;  %v6090_v47 = vmax.f32 %v5674_v61, %v5882_v37  ;;  %v6142_v17 = vmax.f32 %v5726_v14, %v5934_v32  ;;  %v13070_v37 = vld [vmem:[#allocation137_spill] sm:$0xff] }
 0x38c   : > { %9860 = vst [vmem:[%s10891_s14 + $0x100] sm:$0xff] %v9472_v13   ;;  %v6405_v0 = vadd.f32 %v10863_v8, %v6193_v54  ;;  %v6457_v1 = vadd.f32 %v10863_v8, %v6245_v55  ;;  %4889 = vmatmul.bf16.gmra.mxu2 %v9147_v26  ;;  %5409 = vmatmul.bf16.gmra.mxu3 %v9251_v19  ;;  %v13068_v54 = vld [vmem:[#allocation136_spill] sm:$0xff]  ;;  %v9252_v14 = vld [vmem:[%s10036_s7 + $0xb78] sm:$0xff] }
 0x38d   : > { %v6302_v31 = vadd.f32 %v10863_v8, %v6090_v47  ;;  %v6354_v44 = vadd.f32 %v10863_v8, %v6142_v17  ;;  %v13069_v55 = vld [vmem:[#allocation48_spill] sm:$0xff]  ;;  %v5831_v32 = vmax.f32 %v13071_v29, %v13070_v37  ;;  %v13090_v37 = vld [vmem:[#allocation141_spill] sm:$0xff] }
 0x38e   : > { %v6613_v2 = vmax.f32 %v6405_v0, 0.0  ;;  %v6665_v46 = vmax.f32 %v6457_v1, 0.0  ;;  %v5779_v36 = vmax.f32 %v13069_v55, %v13068_v54  ;;  %v13072_v0 = vld [vmem:[#allocation222_spill] sm:$0xff]  ;;  %v13088_v54 = vld [vmem:[#allocation140_spill] sm:$0xff]  ;;  %v13091_v29 = vld [vmem:[#allocation53_spill] sm:$0xff] }
 0x38f   : > { %v4850_v28 = vpop.f32.mrf.mxu2  ;;  %v5370_v25 = vpop.f32.mrf.mxu3  ;;  %v6510_v48 = vmax.f32 %v6302_v31, 0.0  ;;  %v6562_v49 = vmax.f32 %v6354_v44, 0.0  ;;  %v13089_v55 = vld [vmem:[#allocation52_spill] sm:$0xff] }
 0x390   : > { %v9602_v20 = vpack.c.bf16 %v6613_v2, %v6612_v56  ;;  %v9732_v58 = vpack.c.bf16 %v6665_v46, %v6664_v53  ;;  %v3812_v59 = vpop.f32.mrf.mxu0  ;;  %v4332_v4 = vpop.f32.mrf.mxu1  ;;  %v5986_v62 = vmax.f32 %v13062_v40, %v4850_v28  ;;  %v6038_v10 = vmax.f32 %v13063_v63, %v5370_v25  ;;  %v13074_v28 = vld [vmem:[#allocation224_spill] sm:$0xff] }
 0x391   : > { %v5883_v51 = vmax.f32 %v13060_v12, %v3812_v59  ;;  %v5935_v34 = vmax.f32 %v13061_v16, %v4332_v4 }
 0x392   : > { %9886 = vst [vmem:[%s10891_s14 + $0x1d0] sm:$0xff] %v9602_v20   ;;  %v6194_v7 = vmax.f32 %v5778_v24, %v5986_v62  ;;  %v6246_v33 = vmax.f32 %v5830_v15, %v6038_v10  ;;  %v13075_v20 = vld [vmem:[#allocation225_spill] sm:$0xff]  ;;  %v13082_v24 = vld [vmem:[#allocation143_spill] sm:$0xff]  ;;  %v13084_v15 = vld [vmem:[#allocation228_spill] sm:$0xff] }
 0x393   : > { %9912 = vst [vmem:[%s10891_s14 + $0x2a0] sm:$0xff] %v9732_v58   ;;  %v6091_v45 = vmax.f32 %v5675_v3, %v5883_v51  ;;  %v6143_v27 = vmax.f32 %v5727_v50, %v5935_v34  ;;  %v5676_v3 = vmax.f32 %v13077_v18, %v13076_v5  ;;  %v5728_v50 = vmax.f32 %v13079_v43, %v13078_v42  ;;  %v13097_v5 = vld [vmem:[#allocation231_spill] sm:$0xff]  ;;  %v9149_v43 = vld [vmem:[%s10036_s7 + $0x840] sm:$0xff] }
 0x394   : > { %v6406_v2 = vadd.f32 %v10863_v8, %v6194_v7  ;;  %v6458_v46 = vadd.f32 %v10863_v8, %v6246_v33  ;;  %v5729_v9 = vmax.f32 %v13083_v35, %v13082_v24  ;;  %v13086_v33 = vld [vmem:[#allocation226_spill] sm:$0xff]  ;;  %v13102_v24 = vld [vmem:[#allocation147_spill] sm:$0xff] }
 0x395   : > { %v6303_v23 = vadd.f32 %v10863_v8, %v6091_v45  ;;  %v6355_v52 = vadd.f32 %v10863_v8, %v6143_v27  ;;  %v13080_v27 = vld [vmem:[#allocation142_spill] sm:$0xff]  ;;  %v13103_v35 = vld [vmem:[#allocation59_spill] sm:$0xff] }
 0x396   : > { %v6614_v12 = vmax.f32 %v6406_v2, 0.0  ;;  %v6666_v51 = vmax.f32 %v6458_v46, 0.0  ;;  %v5677_v41 = vmax.f32 %v13081_v21, %v13080_v27  ;;  %v8941_v2 = vld [vmem:[%s10036_s7 + $0x1c0] sm:$0xff] }
 0x397   : > { %v6511_v26 = vmax.f32 %v6303_v23, 0.0  ;;  %v6563_v19 = vmax.f32 %v6355_v52, 0.0  ;;  %v4852_v22 = vpop.f32.mrf.mxu2  ;;  %v5372_v13 = vpop.f32.mrf.mxu3  ;;  %v13085_v52 = vld [vmem:[#allocation229_spill] sm:$0xff]  ;;  %v9045_v46 = vld [vmem:[%s10036_s7 + $0x500] sm:$0xff] }
 0x398   : > { %v5987_v1 = vmax.f32 %v13072_v0, %v4852_v22  ;;  %v6039_v57 = vmax.f32 %v13073_v60, %v5372_v13  ;;  %v3815_v61 = vpop.f32.mrf.mxu0  ;;  %v4335_v11 = vpop.f32.mrf.mxu1  ;;  %v13100_v27 = vld [vmem:[#allocation146_spill] sm:$0xff] }
 0x399   : > { %v9347_v56 = vpack.c.bf16 %v6511_v26, %v6510_v48  ;;  %v9477_v53 = vpack.c.bf16 %v6563_v19, %v6562_v49  ;;  %v5884_v25 = vmax.f32 %v13074_v28, %v3815_v61  ;;  %v5936_v58 = vmax.f32 %v13075_v20, %v4335_v11  ;;  %v13087_v49 = vld [vmem:[#allocation227_spill] sm:$0xff]  ;;  %v11202_v19 = vld [vmem:[%s12669_s2] ss:$0 sm:$0xff]  ;;  %v13095_v20 = vld [vmem:[#allocation57_spill] sm:$0xff] }
 0x39a   : > { %v6195_v47 = vmax.f32 %v5779_v36, %v5987_v1  ;;  %v6247_v17 = vmax.f32 %v5831_v32, %v6039_v57  ;;  %v5780_v36 = vmax.f32 %v13089_v55, %v13088_v54  ;;  %v5832_v32 = vmax.f32 %v13091_v29, %v13090_v37  ;;  %v13101_v21 = vld [vmem:[#allocation58_spill] sm:$0xff]  ;;  %v13106_v37 = vld [vmem:[#allocation151_spill] sm:$0xff] }
 0x39b   : > { %9835 = vst [vmem:[%s10891_s14 + $0x38] sm:$0xff] %v9347_v56   ;;  %3854 = vmatmul.bf16.gmra.mxu0 %v8940_v6  ;;  %4374 = vmatmul.bf16.gmra.mxu1 %v9044_v39  ;;  %v6092_v40 = vmax.f32 %v5676_v3, %v5884_v25  ;;  %v6144_v62 = vmax.f32 %v5728_v50, %v5936_v58  ;;  %v13094_v25 = vld [vmem:[#allocation145_spill] sm:$0xff]  ;;  %v9253_v50 = vld [vmem:[%s10036_s7 + $0xb80] sm:$0xff]  ;;  %v13107_v29 = vld [vmem:[#allocation63_spill] sm:$0xff] }
 0x39c   : > { %9861 = vst [vmem:[%s10891_s14 + $0x108] sm:$0xff] %v9477_v53   ;;  %v6407_v59 = vadd.f32 %v10863_v8, %v6195_v47  ;;  %v6459_v4 = vadd.f32 %v10863_v8, %v6247_v17  ;;  %4894 = vmatmul.bf16.gmra.mxu2 %v9148_v30  ;;  %5414 = vmatmul.bf16.gmra.mxu3 %v9252_v14  ;;  %v13092_v47 = vld [vmem:[#allocation144_spill] sm:$0xff]  ;;  %v13104_v54 = vld [vmem:[#allocation150_spill] sm:$0xff] }
 0x39d   : > { %v6304_v22 = vadd.f32 %v11202_v19, %v6092_v40  ;;  %v6356_v13 = vadd.f32 %v11202_v19, %v6144_v62  ;;  %v13093_v17 = vld [vmem:[#allocation56_spill] sm:$0xff]  ;;  %v5833_v58 = vmax.f32 %v13095_v20, %v13094_v25  ;;  %v13105_v55 = vld [vmem:[#allocation62_spill] sm:$0xff]  ;;  %v13114_v25 = vld [vmem:[#allocation149_spill] sm:$0xff] }
 0x39e   : > { %v6615_v16 = vmax.f32 %v6407_v59, 0.0  ;;  %v6667_v34 = vmax.f32 %v6459_v4, 0.0  ;;  %v5781_v28 = vmax.f32 %v13093_v17, %v13092_v47  ;;  %v13096_v59 = vld [vmem:[#allocation230_spill] sm:$0xff]  ;;  %v13112_v47 = vld [vmem:[#allocation148_spill] sm:$0xff]  ;;  %v13115_v20 = vld [vmem:[#allocation61_spill] sm:$0xff] }
 0x39f   : > { %v4855_v63 = vpop.f32.mrf.mxu2  ;;  %v5375_v10 = vpop.f32.mrf.mxu3  ;;  %v6512_v61 = vmax.f32 %v6304_v22, 0.0  ;;  %v6564_v11 = vmax.f32 %v6356_v13, 0.0  ;;  %v13113_v17 = vld [vmem:[#allocation60_spill] sm:$0xff] }
 0x3a0   : > { %v9607_v31 = vpack.c.bf16 %v6615_v16, %v6614_v12  ;;  %v9737_v8 = vpack.c.bf16 %v6667_v34, %v6666_v51  ;;  %v3817_v44 = vpop.f32.mrf.mxu0  ;;  %v4337_v45 = vpop.f32.mrf.mxu1  ;;  %v5988_v48 = vmax.f32 %v13086_v33, %v4855_v63  ;;  %v6040_v26 = vmax.f32 %v13087_v49, %v5375_v10  ;;  %v13098_v63 = vld [vmem:[#allocation232_spill] sm:$0xff] }
 0x3a1   : > { %v5885_v23 = vmax.f32 %v13084_v15, %v3817_v44  ;;  %v5937_v7 = vmax.f32 %v13085_v52, %v4337_v45 }
 0x3a2   : > { %9887 = vst [vmem:[%s10891_s14 + $0x1d8] sm:$0xff] %v9607_v31   ;;  %v6196_v60 = vmax.f32 %v5780_v36, %v5988_v48  ;;  %v6248_v57 = vmax.f32 %v5832_v32, %v6040_v26  ;;  %v13099_v31 = vld [vmem:[#allocation233_spill] sm:$0xff]  ;;  %v5679_v36 = vmax.f32 %v13105_v55, %v13104_v54  ;;  %v5731_v32 = vmax.f32 %v13107_v29, %v13106_v37  ;;  %v13124_v54 = vld [vmem:[#allocation154_spill] sm:$0xff]  ;;  %v13126_v37 = vld [vmem:[#allocation155_spill] sm:$0xff] }
 0x3a3   : > { %9913 = vst [vmem:[%s10891_s14 + $0x2a8] sm:$0xff] %v9737_v8   ;;  %v6093_v6 = vmax.f32 %v5677_v41, %v5885_v23  ;;  %v6145_v39 = vmax.f32 %v5729_v9, %v5937_v7  ;;  %v5678_v41 = vmax.f32 %v13101_v21, %v13100_v27  ;;  %v5730_v9 = vmax.f32 %v13103_v35, %v13102_v24  ;;  %v13121_v27 = vld [vmem:[#allocation239_spill] sm:$0xff]  ;;  %v13125_v55 = vld [vmem:[#allocation66_spill] sm:$0xff] }
 0x3a4   : > { %v6408_v16 = vadd.f32 %v11202_v19, %v6196_v60  ;;  %v6460_v34 = vadd.f32 %v11202_v19, %v6248_v57  ;;  %v13109_v60 = vld [vmem:[#allocation237_spill] sm:$0xff]  ;;  %v9150_v35 = vld [vmem:[%s10036_s7 + $0x848] sm:$0xff] }
 0x3a5   : > { %v6305_v0 = vadd.f32 %v11202_v19, %v6093_v6  ;;  %v6357_v1 = vadd.f32 %v11202_v19, %v6145_v39  ;;  %v13127_v29 = vld [vmem:[#allocation67_spill] sm:$0xff] }
 0x3a6   : > { %v6616_v15 = vmax.f32 %v6408_v16, 0.0  ;;  %v6668_v23 = vmax.f32 %v6460_v34, 0.0  ;;  %v8942_v16 = vld [vmem:[%s10036_s7 + $0x1c8] sm:$0xff] }
 0x3a7   : > { %v6513_v30 = vmax.f32 %v6305_v0, 0.0  ;;  %v6565_v14 = vmax.f32 %v6357_v1, 0.0  ;;  %v4857_v56 = vpop.f32.mrf.mxu2  ;;  %v5377_v53 = vpop.f32.mrf.mxu3  ;;  %v13108_v0 = vld [vmem:[#allocation236_spill] sm:$0xff]  ;;  %v9046_v34 = vld [vmem:[%s10036_s7 + $0x508] sm:$0xff] }
 0x3a8   : > { %v5989_v4 = vmax.f32 %v13096_v59, %v4857_v56  ;;  %v6041_v18 = vmax.f32 %v13097_v5, %v5377_v53  ;;  %v3820_v3 = vpop.f32.mrf.mxu0  ;;  %v4340_v42 = vpop.f32.mrf.mxu1 }
 0x3a9   : > { %v9352_v12 = vpack.c.bf16 %v6513_v30, %v6512_v61  ;;  %v9482_v51 = vpack.c.bf16 %v6565_v14, %v6564_v11  ;;  %v5886_v10 = vmax.f32 %v13098_v63, %v3820_v3  ;;  %v5938_v8 = vmax.f32 %v13099_v31, %v4340_v42  ;;  %v13110_v61 = vld [vmem:[#allocation234_spill] sm:$0xff]  ;;  %v13111_v30 = vld [vmem:[#allocation235_spill] sm:$0xff]  ;;  %v13119_v31 = vld [vmem:[#allocation65_spill] sm:$0xff] }
 0x3aa   : > { %v6197_v40 = vmax.f32 %v5781_v28, %v5989_v4  ;;  %v6249_v62 = vmax.f32 %v5833_v58, %v6041_v18  ;;  %v5782_v28 = vmax.f32 %v13113_v17, %v13112_v47  ;;  %v5834_v58 = vmax.f32 %v13115_v20, %v13114_v25  ;;  %v13128_v47 = vld [vmem:[#allocation158_spill] sm:$0xff]  ;;  %v13130_v25 = vld [vmem:[#allocation159_spill] sm:$0xff] }
 0x3ab   : > { %9836 = vst [vmem:[%s10891_s14 + $0x40] sm:$0xff] %v9352_v12   ;;  %3859 = vmatmul.bf16.gmra.mxu0 %v8941_v2  ;;  %4379 = vmatmul.bf16.gmra.mxu1 %v9045_v46  ;;  %v6094_v33 = vmax.f32 %v5678_v41, %v5886_v10  ;;  %v6146_v48 = vmax.f32 %v5730_v9, %v5938_v8  ;;  %v13118_v10 = vld [vmem:[#allocation153_spill] sm:$0xff]  ;;  %v9254_v9 = vld [vmem:[%s10036_s7 + $0xb88] sm:$0xff]  ;;  %v13129_v17 = vld [vmem:[#allocation70_spill] sm:$0xff] }
 0x3ac   : > { %9862 = vst [vmem:[%s10891_s14 + $0x110] sm:$0xff] %v9482_v51   ;;  %v6409_v44 = vadd.f32 %v11202_v19, %v6197_v40  ;;  %v6461_v45 = vadd.f32 %v11202_v19, %v6249_v62  ;;  %4899 = vmatmul.bf16.gmra.mxu2 %v9149_v43  ;;  %5419 = vmatmul.bf16.gmra.mxu3 %v9253_v50  ;;  %v13116_v40 = vld [vmem:[#allocation152_spill] sm:$0xff]  ;;  %v13131_v20 = vld [vmem:[#allocation71_spill] sm:$0xff] }
 0x3ad   : > { %v6306_v56 = vadd.f32 %v11202_v19, %v6094_v33  ;;  %v6358_v53 = vadd.f32 %v11202_v19, %v6146_v48  ;;  %v13117_v62 = vld [vmem:[#allocation64_spill] sm:$0xff]  ;;  %v5835_v8 = vmax.f32 %v13119_v31, %v13118_v10  ;;  %v13138_v10 = vld [vmem:[#allocation157_spill] sm:$0xff] }
 0x3ae   : > { %v6617_v52 = vmax.f32 %v6409_v44, 0.0  ;;  %v6669_v7 = vmax.f32 %v6461_v45, 0.0  ;;  %v5783_v63 = vmax.f32 %v13117_v62, %v13116_v40  ;;  %v13120_v44 = vld [vmem:[#allocation238_spill] sm:$0xff]  ;;  %v13136_v40 = vld [vmem:[#allocation156_spill] sm:$0xff]  ;;  %v13139_v31 = vld [vmem:[#allocation69_spill] sm:$0xff] }
 0x3af   : > { %v4860_v49 = vpop.f32.mrf.mxu2  ;;  %v5380_v26 = vpop.f32.mrf.mxu3  ;;  %v6514_v3 = vmax.f32 %v6306_v56, 0.0  ;;  %v6566_v42 = vmax.f32 %v6358_v53, 0.0  ;;  %v13137_v62 = vld [vmem:[#allocation68_spill] sm:$0xff] }
 0x3b0   : > { %v9612_v22 = vpack.c.bf16 %v6617_v52, %v6616_v15  ;;  %v9742_v13 = vpack.c.bf16 %v6669_v7, %v6668_v23  ;;  %v3822_v6 = vpop.f32.mrf.mxu0  ;;  %v4342_v39 = vpop.f32.mrf.mxu1  ;;  %v5990_v11 = vmax.f32 %v13110_v61, %v4860_v49  ;;  %v6042_v14 = vmax.f32 %v13111_v30, %v5380_v26  ;;  %v13122_v49 = vld [vmem:[#allocation240_spill] sm:$0xff] }
 0x3b1   : > { %v5887_v1 = vmax.f32 %v13108_v0, %v3822_v6  ;;  %v5939_v57 = vmax.f32 %v13109_v60, %v4342_v39 }
 0x3b2   : > { %9888 = vst [vmem:[%s10891_s14 + $0x1e0] sm:$0xff] %v9612_v22   ;;  %v6198_v5 = vmax.f32 %v5782_v28, %v5990_v11  ;;  %v6250_v18 = vmax.f32 %v5834_v58, %v6042_v14  ;;  %v13123_v22 = vld [vmem:[#allocation241_spill] sm:$0xff]  ;;  %v5681_v28 = vmax.f32 %v13129_v17, %v13128_v47  ;;  %v5733_v58 = vmax.f32 %v13131_v20, %v13130_v25  ;;  %v13148_v47 = vld [vmem:[#allocation162_spill] sm:$0xff]  ;;  %v13150_v25 = vld [vmem:[#allocation163_spill] sm:$0xff] }
 0x3b3   : > { %9914 = vst [vmem:[%s10891_s14 + $0x2b0] sm:$0xff] %v9742_v13   ;;  %v6095_v2 = vmax.f32 %v5679_v36, %v5887_v1  ;;  %v6147_v46 = vmax.f32 %v5731_v32, %v5939_v57  ;;  %v5680_v36 = vmax.f32 %v13125_v55, %v13124_v54  ;;  %v5732_v32 = vmax.f32 %v13127_v29, %v13126_v37  ;;  %v13145_v54 = vld [vmem:[#allocation247_spill] sm:$0xff]  ;;  %v9151_v29 = vld [vmem:[%s10036_s7 + $0x850] sm:$0xff]  ;;  %v13149_v17 = vld [vmem:[#allocation74_spill] sm:$0xff] }
 0x3b4   : > { %v6410_v52 = vadd.f32 %v11202_v19, %v6198_v5  ;;  %v6462_v7 = vadd.f32 %v11202_v19, %v6250_v18  ;;  %v13133_v5 = vld [vmem:[#allocation245_spill] sm:$0xff]  ;;  %v13151_v20 = vld [vmem:[#allocation75_spill] sm:$0xff] }
 0x3b5   : > { %v6307_v59 = vadd.f32 %v11202_v19, %v6095_v2  ;;  %v6359_v4 = vadd.f32 %v11202_v19, %v6147_v46 }
 0x3b6   : > { %v6618_v0 = vmax.f32 %v6410_v52, 0.0  ;;  %v6670_v1 = vmax.f32 %v6462_v7, 0.0  ;;  %v8943_v52 = vld [vmem:[%s10036_s7 + $0x1d0] sm:$0xff] }
 0x3b7   : > { %v6515_v43 = vmax.f32 %v6307_v59, 0.0  ;;  %v6567_v50 = vmax.f32 %v6359_v4, 0.0  ;;  %v4862_v12 = vpop.f32.mrf.mxu2  ;;  %v5382_v51 = vpop.f32.mrf.mxu3  ;;  %v13132_v59 = vld [vmem:[#allocation244_spill] sm:$0xff] }
 0x3b8   : > { %v5991_v45 = vmax.f32 %v13120_v44, %v4862_v12  ;;  %v6043_v21 = vmax.f32 %v13121_v27, %v5382_v51  ;;  %v3825_v41 = vpop.f32.mrf.mxu0  ;;  %v4345_v24 = vpop.f32.mrf.mxu1  ;;  %v9047_v7 = vld [vmem:[%s10036_s7 + $0x510] sm:$0xff] }
 0x3b9   : > { %v9357_v15 = vpack.c.bf16 %v6515_v43, %v6514_v3  ;;  %v9487_v23 = vpack.c.bf16 %v6567_v50, %v6566_v42  ;;  %v5888_v26 = vmax.f32 %v13122_v49, %v3825_v41  ;;  %v5940_v13 = vmax.f32 %v13123_v22, %v4345_v24  ;;  %v13134_v3 = vld [vmem:[#allocation242_spill] sm:$0xff]  ;;  %v13135_v43 = vld [vmem:[#allocation243_spill] sm:$0xff]  ;;  %v13143_v22 = vld [vmem:[#allocation73_spill] sm:$0xff] }
 0x3ba   : > { %v6199_v33 = vmax.f32 %v5783_v63, %v5991_v45  ;;  %v6251_v48 = vmax.f32 %v5835_v8, %v6043_v21  ;;  %v5784_v63 = vmax.f32 %v13137_v62, %v13136_v40  ;;  %v5836_v8 = vmax.f32 %v13139_v31, %v13138_v10  ;;  %v13152_v40 = vld [vmem:[#allocation166_spill] sm:$0xff]  ;;  %v13154_v10 = vld [vmem:[#allocation167_spill] sm:$0xff] }
 0x3bb   : > { %9837 = vst [vmem:[%s10891_s14 + $0x48] sm:$0xff] %v9357_v15   ;;  %3864 = vmatmul.bf16.gmra.mxu0 %v8942_v16  ;;  %4384 = vmatmul.bf16.gmra.mxu1 %v9046_v34  ;;  %v6096_v61 = vmax.f32 %v5680_v36, %v5888_v26  ;;  %v6148_v11 = vmax.f32 %v5732_v32, %v5940_v13  ;;  %v13142_v26 = vld [vmem:[#allocation161_spill] sm:$0xff]  ;;  %v9255_v32 = vld [vmem:[%s10036_s7 + $0xb90] sm:$0xff]  ;;  %v13153_v62 = vld [vmem:[#allocation78_spill] sm:$0xff] }
 0x3bc   : > { %9863 = vst [vmem:[%s10891_s14 + $0x118] sm:$0xff] %v9487_v23   ;;  %v6411_v6 = vadd.f32 %v11202_v19, %v6199_v33  ;;  %v6463_v39 = vadd.f32 %v11202_v19, %v6251_v48  ;;  %4904 = vmatmul.bf16.gmra.mxu2 %v9150_v35  ;;  %5424 = vmatmul.bf16.gmra.mxu3 %v9254_v9  ;;  %v13140_v33 = vld [vmem:[#allocation160_spill] sm:$0xff]  ;;  %v13155_v31 = vld [vmem:[#allocation79_spill] sm:$0xff] }
 0x3bd   : > { %v6308_v12 = vadd.f32 %v11202_v19, %v6096_v61  ;;  %v6360_v51 = vadd.f32 %v11202_v19, %v6148_v11  ;;  %v13141_v48 = vld [vmem:[#allocation72_spill] sm:$0xff]  ;;  %v5837_v13 = vmax.f32 %v13143_v22, %v13142_v26  ;;  %v13162_v26 = vld [vmem:[#allocation165_spill] sm:$0xff] }
 0x3be   : > { %v6619_v60 = vmax.f32 %v6411_v6, 0.0  ;;  %v6671_v57 = vmax.f32 %v6463_v39, 0.0  ;;  %v5785_v49 = vmax.f32 %v13141_v48, %v13140_v33  ;;  %v13144_v6 = vld [vmem:[#allocation246_spill] sm:$0xff]  ;;  %v13160_v33 = vld [vmem:[#allocation164_spill] sm:$0xff]  ;;  %v13163_v22 = vld [vmem:[#allocation77_spill] sm:$0xff] }
 0x3bf   : > { %v4865_v30 = vpop.f32.mrf.mxu2  ;;  %v5385_v14 = vpop.f32.mrf.mxu3  ;;  %v6516_v41 = vmax.f32 %v6308_v12, 0.0  ;;  %v6568_v24 = vmax.f32 %v6360_v51, 0.0  ;;  %v13161_v48 = vld [vmem:[#allocation76_spill] sm:$0xff] }
 0x3c0   : > { %v9617_v56 = vpack.c.bf16 %v6619_v60, %v6618_v0  ;;  %v9747_v53 = vpack.c.bf16 %v6671_v57, %v6670_v1  ;;  %v3827_v2 = vpop.f32.mrf.mxu0  ;;  %v4347_v46 = vpop.f32.mrf.mxu1  ;;  %v5992_v42 = vmax.f32 %v13134_v3, %v4865_v30  ;;  %v6044_v50 = vmax.f32 %v13135_v43, %v5385_v14  ;;  %v13146_v30 = vld [vmem:[#allocation248_spill] sm:$0xff] }
 0x3c1   : > { %v5889_v4 = vmax.f32 %v13132_v59, %v3827_v2  ;;  %v5941_v18 = vmax.f32 %v13133_v5, %v4347_v46 }
 0x3c2   : > { %9889 = vst [vmem:[%s10891_s14 + $0x1e8] sm:$0xff] %v9617_v56   ;;  %v6200_v27 = vmax.f32 %v5784_v63, %v5992_v42  ;;  %v6252_v21 = vmax.f32 %v5836_v8, %v6044_v50  ;;  %v13147_v56 = vld [vmem:[#allocation249_spill] sm:$0xff]  ;;  %v5683_v63 = vmax.f32 %v13153_v62, %v13152_v40  ;;  %v5735_v8 = vmax.f32 %v13155_v31, %v13154_v10  ;;  %v13172_v40 = vld [vmem:[#allocation170_spill] sm:$0xff]  ;;  %v13174_v10 = vld [vmem:[#allocation171_spill] sm:$0xff] }
 0x3c3   : > { %9915 = vst [vmem:[%s10891_s14 + $0x2b8] sm:$0xff] %v9747_v53   ;;  %v6097_v16 = vmax.f32 %v5681_v28, %v5889_v4  ;;  %v6149_v34 = vmax.f32 %v5733_v58, %v5941_v18  ;;  %v5682_v28 = vmax.f32 %v13149_v17, %v13148_v47  ;;  %v5734_v58 = vmax.f32 %v13151_v20, %v13150_v25  ;;  %v13169_v47 = vld [vmem:[#allocation255_spill] sm:$0xff]  ;;  %v9152_v20 = vld [vmem:[%s10036_s7 + $0x858] sm:$0xff]  ;;  %v13173_v62 = vld [vmem:[#allocation82_spill] sm:$0xff] }
 0x3c4   : > { %v6412_v60 = vadd.f32 %v11202_v19, %v6200_v27  ;;  %v6464_v57 = vadd.f32 %v11202_v19, %v6252_v21  ;;  %v13157_v27 = vld [vmem:[#allocation253_spill] sm:$0xff]  ;;  %v13175_v31 = vld [vmem:[#allocation83_spill] sm:$0xff] }
 0x3c5   : > { %v6309_v44 = vadd.f32 %v11202_v19, %v6097_v16  ;;  %v6361_v45 = vadd.f32 %v11202_v19, %v6149_v34 }
 0x3c6   : > { %v6620_v59 = vmax.f32 %v6412_v60, 0.0  ;;  %v6672_v4 = vmax.f32 %v6464_v57, 0.0  ;;  %v8944_v60 = vld [vmem:[%s10036_s7 + $0x1d8] sm:$0xff] }
 0x3c7   : > { %v6517_v35 = vmax.f32 %v6309_v44, 0.0  ;;  %v6569_v9 = vmax.f32 %v6361_v45, 0.0  ;;  %v4867_v15 = vpop.f32.mrf.mxu2  ;;  %v5387_v23 = vpop.f32.mrf.mxu3  ;;  %v13156_v44 = vld [vmem:[#allocation252_spill] sm:$0xff]  ;;  %v9048_v57 = vld [vmem:[%s10036_s7 + $0x518] sm:$0xff] }
 0x3c8   : > { %v5993_v39 = vmax.f32 %v13144_v6, %v4867_v15  ;;  %v6045_v55 = vmax.f32 %v13145_v54, %v5387_v23  ;;  %v3830_v36 = vpop.f32.mrf.mxu0  ;;  %v4350_v37 = vpop.f32.mrf.mxu1 }
 0x3c9   : > { %v9362_v0 = vpack.c.bf16 %v6517_v35, %v6516_v41  ;;  %v9492_v1 = vpack.c.bf16 %v6569_v9, %v6568_v24  ;;  %v5890_v14 = vmax.f32 %v13146_v30, %v3830_v36  ;;  %v5942_v53 = vmax.f32 %v13147_v56, %v4350_v37  ;;  %v13158_v41 = vld [vmem:[#allocation250_spill] sm:$0xff]  ;;  %v13159_v35 = vld [vmem:[#allocation251_spill] sm:$0xff]  ;;  %v13167_v56 = vld [vmem:[#allocation81_spill] sm:$0xff] }
 0x3ca   : > { %v6201_v61 = vmax.f32 %v5785_v49, %v5993_v39  ;;  %v6253_v11 = vmax.f32 %v5837_v13, %v6045_v55  ;;  %v5786_v49 = vmax.f32 %v13161_v48, %v13160_v33  ;;  %v5838_v13 = vmax.f32 %v13163_v22, %v13162_v26  ;;  %v13176_v33 = vld [vmem:[#allocation174_spill] sm:$0xff]  ;;  %v13178_v26 = vld [vmem:[#allocation175_spill] sm:$0xff] }
 0x3cb   : > { %9838 = vst [vmem:[%s10891_s14 + $0x50] sm:$0xff] %v9362_v0   ;;  %3869 = vmatmul.bf16.gmra.mxu0 %v8943_v52  ;;  %4389 = vmatmul.bf16.gmra.mxu1 %v9047_v7  ;;  %v6098_v3 = vmax.f32 %v5682_v28, %v5890_v14  ;;  %v6150_v42 = vmax.f32 %v5734_v58, %v5942_v53  ;;  %v13166_v14 = vld [vmem:[#allocation169_spill] sm:$0xff]  ;;  %v13177_v48 = vld [vmem:[#allocation86_spill] sm:$0xff]  ;;  %v13179_v22 = vld [vmem:[#allocation87_spill] sm:$0xff] }
 0x3cc   : > { %9864 = vst [vmem:[%s10891_s14 + $0x120] sm:$0xff] %v9492_v1   ;;  %v6413_v2 = vadd.f32 %v11202_v19, %v6201_v61  ;;  %v6465_v46 = vadd.f32 %v11202_v19, %v6253_v11  ;;  %4909 = vmatmul.bf16.gmra.mxu2 %v9151_v29  ;;  %5429 = vmatmul.bf16.gmra.mxu3 %v9255_v32  ;;  %v13164_v61 = vld [vmem:[#allocation168_spill] sm:$0xff]  ;;  %v9256_v58 = vld [vmem:[%s10036_s7 + $0xb98] sm:$0xff] }
 0x3cd   : > { %v6310_v15 = vadd.f32 %v11202_v19, %v6098_v3  ;;  %v6362_v23 = vadd.f32 %v11202_v19, %v6150_v42  ;;  %v13165_v11 = vld [vmem:[#allocation80_spill] sm:$0xff]  ;;  %v5839_v53 = vmax.f32 %v13167_v56, %v13166_v14 }
 0x3ce   : > { %v6621_v5 = vmax.f32 %v6413_v2, 0.0  ;;  %v6673_v18 = vmax.f32 %v6465_v46, 0.0  ;;  %v5787_v30 = vmax.f32 %v13165_v11, %v13164_v61  ;;  %v13168_v2 = vld [vmem:[#allocation254_spill] sm:$0xff]  ;;  %v13184_v61 = vld [vmem:[#allocation84_spill] sm:$0xff] }
 0x3cf   : > { %v4870_v43 = vpop.f32.mrf.mxu2  ;;  %v5390_v50 = vpop.f32.mrf.mxu3  ;;  %v6518_v36 = vmax.f32 %v6310_v15, 0.0  ;;  %v6570_v37 = vmax.f32 %v6362_v23, 0.0 }
 0x3d0   : > { %v9622_v12 = vpack.c.bf16 %v6621_v5, %v6620_v59  ;;  %v9752_v51 = vpack.c.bf16 %v6673_v18, %v6672_v4  ;;  %v3832_v16 = vpop.f32.mrf.mxu0  ;;  %v4352_v34 = vpop.f32.mrf.mxu1  ;;  %v5994_v24 = vmax.f32 %v13158_v41, %v4870_v43  ;;  %v6046_v9 = vmax.f32 %v13159_v35, %v5390_v50  ;;  %v13170_v43 = vld [vmem:[#allocation256_spill] sm:$0xff] }
 0x3d1   : > { %v5891_v45 = vmax.f32 %v13156_v44, %v3832_v16  ;;  %v5943_v21 = vmax.f32 %v13157_v27, %v4352_v34 }
 0x3d2   : > { %9890 = vst [vmem:[%s10891_s14 + $0x1f0] sm:$0xff] %v9622_v12   ;;  %v6202_v54 = vmax.f32 %v5786_v49, %v5994_v24  ;;  %v6254_v55 = vmax.f32 %v5838_v13, %v6046_v9  ;;  %v13171_v12 = vld [vmem:[#allocation257_spill] sm:$0xff]  ;;  %v5685_v49 = vmax.f32 %v13177_v48, %v13176_v33  ;;  %v5737_v13 = vmax.f32 %v13179_v22, %v13178_v26 }
 0x3d3   : > { %9916 = vst [vmem:[%s10891_s14 + $0x2c0] sm:$0xff] %v9752_v51   ;;  %v6099_v52 = vmax.f32 %v5683_v63, %v5891_v45  ;;  %v6151_v7 = vmax.f32 %v5735_v8, %v5943_v21  ;;  %v5684_v63 = vmax.f32 %v13173_v62, %v13172_v40  ;;  %v5736_v8 = vmax.f32 %v13175_v31, %v13174_v10  ;;  %v9257_v10 = vld [vmem:[%s10036_s7 + $0xba0] sm:$0xff] }
 0x3d4   : > { %v6414_v5 = vadd.f32 %v11202_v19, %v6202_v54  ;;  %v6466_v18 = vadd.f32 %v11202_v19, %v6254_v55  ;;  %v13181_v55 = vld [vmem:[#allocation258_spill] sm:$0xff] }
 0x3d5   : > { %v6311_v6 = vadd.f32 %v11202_v19, %v6099_v52  ;;  %v6363_v39 = vadd.f32 %v11202_v19, %v6151_v7 }
 0x3d6   : > { %v6622_v44 = vmax.f32 %v6414_v5, 0.0  ;;  %v6674_v45 = vmax.f32 %v6466_v18, 0.0  ;;  %v13187_v5 = vld [vmem:[#allocation176_spill] sm:$0xff] }
 0x3d7   : > { %v6519_v29 = vmax.f32 %v6311_v6, 0.0  ;;  %v6571_v32 = vmax.f32 %v6363_v39, 0.0  ;;  %v4872_v0 = vpop.f32.mrf.mxu2  ;;  %v5392_v1 = vpop.f32.mrf.mxu3  ;;  %v13180_v39 = vld [vmem:[#allocation260_spill] sm:$0xff] }
 0x3d8   : > { %v5995_v46 = vmax.f32 %v13168_v2, %v4872_v0  ;;  %v6047_v17 = vmax.f32 %v13169_v47, %v5392_v1  ;;  %v3835_v28 = vpop.f32.mrf.mxu0  ;;  %v4355_v25 = vpop.f32.mrf.mxu1  ;;  %v13188_v18 = vld [vmem:[#allocation88_spill] sm:$0xff] }
 0x3d9   : > { %v9367_v59 = vpack.c.bf16 %v6519_v29, %v6518_v36  ;;  %v9497_v4 = vpack.c.bf16 %v6571_v32, %v6570_v37  ;;  %v5892_v50 = vmax.f32 %v13170_v43, %v3835_v28  ;;  %v5944_v51 = vmax.f32 %v13171_v12, %v4355_v25  ;;  %v13182_v37 = vld [vmem:[#allocation259_spill] sm:$0xff]  ;;  %v13190_v43 = vld [vmem:[#allocation89_spill] sm:$0xff] }
 0x3da   : > { %v6203_v3 = vmax.f32 %v5787_v30, %v5995_v46  ;;  %v6255_v42 = vmax.f32 %v5839_v53, %v6047_v17  ;;  %v13186_v30 = vld [vmem:[#allocation85_spill] sm:$0xff] }
 0x3db   : > { %9839 = vst [vmem:[%s10891_s14 + $0x58] sm:$0xff] %v9367_v59   ;;  %3874 = vmatmul.bf16.gmra.mxu0 %v8944_v60  ;;  %4394 = vmatmul.bf16.gmra.mxu1 %v9048_v57  ;;  %v6100_v41 = vmax.f32 %v5684_v63, %v5892_v50  ;;  %v6152_v24 = vmax.f32 %v5736_v8, %v5944_v51  ;;  %v13183_v57 = vld [vmem:[#allocation172_spill] sm:$0xff]  ;;  %v8945_v59 = vld [vmem:[%s10036_s7 + $0x1e0] sm:$0xff]  ;;  %v13191_v12 = vld [vmem:[#allocation261_spill] sm:$0xff] }
 0x3dc   : > { %9865 = vst [vmem:[%s10891_s14 + $0x128] sm:$0xff] %v9497_v4   ;;  %v6415_v16 = vadd.f32 %v11202_v19, %v6203_v3  ;;  %v6467_v34 = vadd.f32 %v11202_v19, %v6255_v42  ;;  %4914 = vmatmul.bf16.gmra.mxu2 %v9152_v20  ;;  %5434 = vmatmul.bf16.gmra.mxu3 %v9256_v58  ;;  %v9049_v4 = vld [vmem:[%s10036_s7 + $0x520] sm:$0xff]  ;;  %v13189_v42 = vld [vmem:[#allocation177_spill] sm:$0xff] }
 0x3dd   : > { %v6312_v32 = vadd.f32 %v11202_v19, %v6100_v41  ;;  %v6364_v0 = vadd.f32 %v11202_v19, %v6152_v24  ;;  %v5788_v11 = vmax.f32 %v13184_v61, %v13183_v57  ;;  %v5789_v3 = vmax.f32 %v13188_v18, %v13187_v5  ;;  %v9153_v63 = vld [vmem:[%s10036_s7 + $0x860] sm:$0xff]  ;;  %v8947_v57 = vld [vmem:[%s10036_s7 + $0x1f0] sm:$0xff] }
 0x3de   : > { %v6623_v27 = vmax.f32 %v6415_v16, 0.0  ;;  %v6675_v21 = vmax.f32 %v6467_v34, 0.0  ;;  %v5841_v50 = vmax.f32 %v13190_v43, %v13189_v42  ;;  %v13192_v16 = vld [vmem:[#allocation262_spill] sm:$0xff]  ;;  %v9051_v61 = vld [vmem:[%s10036_s7 + $0x530] sm:$0xff] }
 0x3df   : > { %v4875_v35 = vpop.f32.mrf.mxu2  ;;  %v5395_v9 = vpop.f32.mrf.mxu3  ;;  %v6520_v47 = vmax.f32 %v6312_v32, 0.0  ;;  %v6572_v17 = vmax.f32 %v6364_v0, 0.0 }
 0x3e0   : > { %v9627_v15 = vpack.c.bf16 %v6623_v27, %v6622_v44  ;;  %v9757_v23 = vpack.c.bf16 %v6675_v21, %v6674_v45  ;;  %v3837_v52 = vpop.f32.mrf.mxu0  ;;  %v4357_v7 = vpop.f32.mrf.mxu1  ;;  %v5996_v36 = vmax.f32 %v13181_v55, %v4875_v35  ;;  %v6048_v29 = vmax.f32 %v13182_v37, %v5395_v9  ;;  %v9154_v55 = vld [vmem:[%s10036_s7 + $0x868] sm:$0xff] }
 0x3e1   : > { %v5893_v6 = vmax.f32 %v10842_v38, %v3837_v52  ;;  %v5945_v54 = vmax.f32 %v13180_v39, %v4357_v7  ;;  %v13185_v38 = vld [vmem:[#allocation173_spill] sm:$0xff] }
 0x3e2   : > { %9891 = vst [vmem:[%s10891_s14 + $0x1f8] sm:$0xff] %v9627_v15   ;;  %v5840_v14 = vmax.f32 %v13186_v30, %v13185_v38  ;;  %v6204_v2 = vmax.f32 %v5788_v11, %v5996_v36  ;;  %v9258_v36 = vld [vmem:[%s10036_s7 + $0xba8] sm:$0xff]  ;;  %v9155_v30 = vld [vmem:[%s10036_s7 + $0x870] sm:$0xff] }
 0x3e3   : > { %9917 = vst [vmem:[%s10891_s14 + $0x2c8] sm:$0xff] %v9757_v23   ;;  %v6101_v1 = vmax.f32 %v5685_v49, %v5893_v6  ;;  %v6153_v60 = vmax.f32 %v5737_v13, %v5945_v54  ;;  %v8946_v13 = vld [vmem:[%s10036_s7 + $0x1e8] sm:$0xff] }
 0x3e4   : > { %v6256_v46 = vmax.f32 %v5840_v14, %v6048_v29  ;;  %v6416_v44 = vadd.f32 %v11202_v19, %v6204_v2  ;;  %v9050_v6 = vld [vmem:[%s10036_s7 + $0x528] sm:$0xff]  ;;  %v9259_v14 = vld [vmem:[%s10036_s7 + $0xbb0] sm:$0xff] }
 0x3e5   : > { %v6313_v56 = vadd.f32 %v11202_v19, %v6101_v1  ;;  %v6365_v53 = vadd.f32 %v11202_v19, %v6153_v60 }
 0x3e6   : > { %v6468_v45 = vadd.f32 %v11202_v19, %v6256_v46  ;;  %v6624_v35 = vmax.f32 %v6416_v44, 0.0 }
 0x3e7   : > { %v6521_v28 = vmax.f32 %v6313_v56, 0.0  ;;  %v6573_v25 = vmax.f32 %v6365_v53, 0.0  ;;  %v4877_v20 = vpop.f32.mrf.mxu2  ;;  %v5397_v58 = vpop.f32.mrf.mxu3 }
 0x3e8   : > { %v5997_v51 = vmax.f32 %v13191_v12, %v4877_v20  ;;  %v6049_v34 = vmax.f32 %v13192_v16, %v5397_v58  ;;  %v11380_v40 = vpop.f32.mrf.mxu0  ;;  %v11382_v62 = vpop.f32.mrf.mxu1  ;;  %v6676_v9 = vmax.f32 %v6468_v45, 0.0  ;;  %v8949_v12 = vld [vmem:[%s10036_s7 + $0x200] sm:$0xff] }
 0x3e9   : > { %v9372_v31 = vpack.c.bf16 %v6521_v28, %v6520_v47  ;;  %v9502_v8 = vpack.c.bf16 %v6573_v25, %v6572_v17  ;;  %v8948_v28 = vld [vmem:[%s10036_s7 + $0x1f8] sm:$0xff] }
 0x3ea   : > { %v6205_v27 = vmax.f32 %v5789_v3, %v5997_v51  ;;  %v6257_v21 = vmax.f32 %v5841_v50, %v6049_v34  ;;  %v9052_v25 = vld [vmem:[%s10036_s7 + $0x538] sm:$0xff]  ;;  %v9053_v51 = vld [vmem:[%s10036_s7 + $0x540] sm:$0xff] }
 0x3eb   : > { %9840 = vst [vmem:[%s10891_s14 + $0x60] sm:$0xff] %v9372_v31   ;;  %3879 = vmatmul.bf16.gmra.mxu0 %v8945_v59  ;;  %4399 = vmatmul.bf16.gmra.mxu1 %v9049_v4  ;;  %v9156_v59 = vld [vmem:[%s10036_s7 + $0x878] sm:$0xff] }
 0x3ec   : > { %9866 = vst [vmem:[%s10891_s14 + $0x130] sm:$0xff] %v9502_v8   ;;  %v6417_v41 = vadd.f32 %v11202_v19, %v6205_v27  ;;  %v6469_v24 = vadd.f32 %v11202_v19, %v6257_v21  ;;  %4919 = vmatmul.bf16.gmra.mxu2 %v9153_v63  ;;  %5439 = vmatmul.bf16.gmra.mxu3 %v9257_v10  ;;  %v9260_v4 = vld [vmem:[%s10036_s7 + $0xbb8] sm:$0xff]  ;;  %v9157_v63 = vld [vmem:[%s10036_s7 + $0x880] sm:$0xff] }
 0x3ed   : > { %v9261_v10 = vld [vmem:[%s10036_s7 + $0xbc0] sm:$0xff] }
 0x3ee   : > { %v6625_v15 = vmax.f32 %v6417_v41, 0.0  ;;  %v6677_v23 = vmax.f32 %v6469_v24, 0.0  ;;  %v8950_v41 = vld [vmem:[%s10036_s7 + $0x208] sm:$0xff] }
 0x3ef   : > { %v11392_v52 = vpop.f32.mrf.mxu2  ;;  %v11394_v7 = vpop.f32.mrf.mxu3  ;;  %v9054_v24 = vld [vmem:[%s10036_s7 + $0x548] sm:$0xff] }
 0x3f0   : > { %v9632_v33 = vpack.c.bf16 %v6625_v15, %v6624_v35  ;;  %v9762_v48 = vpack.c.bf16 %v6677_v23, %v6676_v9  ;;  %v11396_v49 = vpop.f32.mrf.mxu0  ;;  %v11398_v26 = vpop.f32.mrf.mxu1  ;;  %v9158_v15 = vld [vmem:[%s10036_s7 + $0x888] sm:$0xff] }
 0x3f1   : > { %v9262_v23 = vld [vmem:[%s10036_s7 + $0xbc8] sm:$0xff] }
 0x3f2   : > { %9892 = vst [vmem:[%s10891_s14 + $0x200] sm:$0xff] %v9632_v33  }
 0x3f3   : > { %9918 = vst [vmem:[%s10891_s14 + $0x2d0] sm:$0xff] %v9762_v48  }
 0x3f7   : > { %v11402_v19 = vpop.f32.mrf.mxu2  ;;  %v11404_v22 = vpop.f32.mrf.mxu3 }
 0x3f8   : > { %v11408_v39 = vpop.f32.mrf.mxu0  ;;  %v11410_v54 = vpop.f32.mrf.mxu1 }
 0x3fb   : > { %3884 = vmatmul.bf16.gmra.mxu0 %v8946_v13  ;;  %4404 = vmatmul.bf16.gmra.mxu1 %v9050_v6 }
 0x3fc   : > { %4924 = vmatmul.bf16.gmra.mxu2 %v9154_v55  ;;  %5444 = vmatmul.bf16.gmra.mxu3 %v9258_v36 }
 0x3ff   : > { %v11414_v37 = vpop.f32.mrf.mxu2  ;;  %v11416_v29 = vpop.f32.mrf.mxu3 }
 0x400   : > { %v11418_v32 = vpop.f32.mrf.mxu0  ;;  %v11420_v0 = vpop.f32.mrf.mxu1 }
 0x407   : > { %v11422_v1 = vpop.f32.mrf.mxu2  ;;  %v11424_v60 = vpop.f32.mrf.mxu3 }
 0x408   : > { %v11428_v11 = vpop.f32.mrf.mxu0  ;;  %v11430_v38 = vpop.f32.mrf.mxu1 }
 0x409   : > { %13193 = vst [vmem:[#allocation90_spill] sm:$0xff] %v11428_v11 }
 0x40a   : > { %13194 = vst [vmem:[#allocation2_spill] sm:$0xff] %v11430_v38  ;;  %v8974_v38 = vld [vmem:[%s10036_s7 + $0x2c8] sm:$0xff] }
 0x40b   : > { %3889 = vmatmul.bf16.gmra.mxu0 %v8947_v57  ;;  %4409 = vmatmul.bf16.gmra.mxu1 %v9051_v61  ;;  %v8951_v57 = vld [vmem:[%s10036_s7 + $0x210] sm:$0xff] }
 0x40c   : > { %4929 = vmatmul.bf16.gmra.mxu2 %v9155_v30  ;;  %5449 = vmatmul.bf16.gmra.mxu3 %v9259_v14  ;;  %v9055_v61 = vld [vmem:[%s10036_s7 + $0x550] sm:$0xff] }
 0x40f   : > { %v11434_v56 = vpop.f32.mrf.mxu2  ;;  %v11436_v53 = vpop.f32.mrf.mxu3 }
 0x410   : > { %13195 = vst [vmem:[#allocation91_spill] sm:$0xff] %v11434_v56  ;;  %v11438_v2 = vpop.f32.mrf.mxu0  ;;  %v11440_v46 = vpop.f32.mrf.mxu1 }
 0x411   : > { %13196 = vst [vmem:[#allocation3_spill] sm:$0xff] %v11436_v53  ;;  %v8973_v53 = vld [vmem:[%s10036_s7 + $0x2c0] sm:$0xff] }
 0x412   : > { %13197 = vst [vmem:[#allocation94_spill] sm:$0xff] %v11438_v2 }
 0x413   : > { %13198 = vst [vmem:[#allocation6_spill] sm:$0xff] %v11440_v46 }
 0x417   : > { %v11442_v47 = vpop.f32.mrf.mxu2  ;;  %v11444_v17 = vpop.f32.mrf.mxu3 }
 0x418   : > { %13199 = vst [vmem:[#allocation95_spill] sm:$0xff] %v11442_v47  ;;  %v11448_v20 = vpop.f32.mrf.mxu0  ;;  %v11450_v58 = vpop.f32.mrf.mxu1 }
 0x419   : > { %13200 = vst [vmem:[#allocation7_spill] sm:$0xff] %v11444_v17 }
 0x41a   : > { %13201 = vst [vmem:[#allocation180_spill] sm:$0xff] %v11448_v20 }
 0x41b   : > { %13202 = vst [vmem:[#allocation181_spill] sm:$0xff] %v11450_v58  ;;  %3894 = vmatmul.bf16.gmra.mxu0 %v8948_v28  ;;  %4414 = vmatmul.bf16.gmra.mxu1 %v9052_v25  ;;  %v9159_v28 = vld [vmem:[%s10036_s7 + $0x890] sm:$0xff]  ;;  %v8972_v58 = vld [vmem:[%s10036_s7 + $0x2b8] sm:$0xff] }
 0x41c   : > { %4934 = vmatmul.bf16.gmra.mxu2 %v9156_v59  ;;  %5454 = vmatmul.bf16.gmra.mxu3 %v9260_v4  ;;  %v9263_v25 = vld [vmem:[%s10036_s7 + $0xbd0] sm:$0xff] }
 0x41f   : > { %v11454_v5 = vpop.f32.mrf.mxu2  ;;  %v11456_v18 = vpop.f32.mrf.mxu3 }
 0x420   : > { %13203 = vst [vmem:[#allocation178_spill] sm:$0xff] %v11454_v5  ;;  %v11458_v3 = vpop.f32.mrf.mxu0  ;;  %v11460_v42 = vpop.f32.mrf.mxu1 }
 0x421   : > { %13204 = vst [vmem:[#allocation179_spill] sm:$0xff] %v11456_v18 }
 0x422   : > { %13205 = vst [vmem:[#allocation92_spill] sm:$0xff] %v11458_v3  ;;  %v9066_v3 = vld [vmem:[%s10036_s7 + $0x5a8] sm:$0xff] }
 0x423   : > { %13206 = vst [vmem:[#allocation4_spill] sm:$0xff] %v11460_v42  ;;  %v8962_v42 = vld [vmem:[%s10036_s7 + $0x268] sm:$0xff] }
 0x427   : > { %v11462_v43 = vpop.f32.mrf.mxu2  ;;  %v11464_v50 = vpop.f32.mrf.mxu3 }
 0x428   : > { %13207 = vst [vmem:[#allocation93_spill] sm:$0xff] %v11462_v43  ;;  %v11468_v16 = vpop.f32.mrf.mxu0  ;;  %v11470_v34 = vpop.f32.mrf.mxu1 }
 0x429   : > { %13208 = vst [vmem:[#allocation5_spill] sm:$0xff] %v11464_v50 }
 0x42a   : > { %13209 = vst [vmem:[#allocation96_spill] sm:$0xff] %v11468_v16 }
 0x42b   : > { %13210 = vst [vmem:[#allocation8_spill] sm:$0xff] %v11470_v34  ;;  %3899 = vmatmul.bf16.gmra.mxu0 %v8949_v12  ;;  %4419 = vmatmul.bf16.gmra.mxu1 %v9053_v51 }
 0x42c   : > { %4939 = vmatmul.bf16.gmra.mxu2 %v9157_v63  ;;  %5459 = vmatmul.bf16.gmra.mxu3 %v9261_v10 }
 0x42f   : > { %v11474_v31 = vpop.f32.mrf.mxu2  ;;  %v11476_v8 = vpop.f32.mrf.mxu3 }
 0x430   : > { %13211 = vst [vmem:[#allocation97_spill] sm:$0xff] %v11474_v31  ;;  %v11478_v44 = vpop.f32.mrf.mxu0  ;;  %v11480_v45 = vpop.f32.mrf.mxu1 }
 0x431   : > { %13212 = vst [vmem:[#allocation9_spill] sm:$0xff] %v11476_v8 }
 0x432   : > { %13213 = vst [vmem:[#allocation182_spill] sm:$0xff] %v11478_v44  ;;  %v9065_v44 = vld [vmem:[%s10036_s7 + $0x5a0] sm:$0xff] }
 0x433   : > { %13214 = vst [vmem:[#allocation183_spill] sm:$0xff] %v11480_v45  ;;  %v8961_v45 = vld [vmem:[%s10036_s7 + $0x260] sm:$0xff] }
 0x437   : > { %v11482_v27 = vpop.f32.mrf.mxu2  ;;  %v11484_v21 = vpop.f32.mrf.mxu3 }
 0x438   : > { %13215 = vst [vmem:[#allocation184_spill] sm:$0xff] %v11482_v27  ;;  %v11488_v35 = vpop.f32.mrf.mxu0  ;;  %v11490_v9 = vpop.f32.mrf.mxu1 }
 0x439   : > { %13216 = vst [vmem:[#allocation185_spill] sm:$0xff] %v11484_v21 }
 0x43a   : > { %13217 = vst [vmem:[#allocation98_spill] sm:$0xff] %v11488_v35 }
 0x43b   : > { %13218 = vst [vmem:[#allocation10_spill] sm:$0xff] %v11490_v9  ;;  %3904 = vmatmul.bf16.gmra.mxu0 %v8950_v41  ;;  %4424 = vmatmul.bf16.gmra.mxu1 %v9054_v24  ;;  %v8952_v41 = vld [vmem:[%s10036_s7 + $0x218] sm:$0xff] }
 0x43c   : > { %4944 = vmatmul.bf16.gmra.mxu2 %v9158_v15  ;;  %5464 = vmatmul.bf16.gmra.mxu3 %v9262_v23  ;;  %v9056_v24 = vld [vmem:[%s10036_s7 + $0x558] sm:$0xff] }
 0x43f   : > { %v11494_v33 = vpop.f32.mrf.mxu2  ;;  %v11496_v48 = vpop.f32.mrf.mxu3 }
 0x440   : > { %13219 = vst [vmem:[#allocation99_spill] sm:$0xff] %v11494_v33  ;;  %v11498_v13 = vpop.f32.mrf.mxu0  ;;  %v11500_v6 = vpop.f32.mrf.mxu1 }
 0x441   : > { %13220 = vst [vmem:[#allocation11_spill] sm:$0xff] %v11496_v48 }
 0x442   : > { %13221 = vst [vmem:[#allocation102_spill] sm:$0xff] %v11498_v13  ;;  %v9064_v13 = vld [vmem:[%s10036_s7 + $0x598] sm:$0xff] }
 0x443   : > { %13222 = vst [vmem:[#allocation14_spill] sm:$0xff] %v11500_v6  ;;  %v8960_v6 = vld [vmem:[%s10036_s7 + $0x258] sm:$0xff] }
 0x447   : > { %v11502_v55 = vpop.f32.mrf.mxu2  ;;  %v11504_v36 = vpop.f32.mrf.mxu3 }
 0x448   : > { %13223 = vst [vmem:[#allocation103_spill] sm:$0xff] %v11502_v55  ;;  %v11508_v30 = vpop.f32.mrf.mxu0  ;;  %v11510_v14 = vpop.f32.mrf.mxu1 }
 0x449   : > { %13224 = vst [vmem:[#allocation15_spill] sm:$0xff] %v11504_v36 }
 0x44a   : > { %13225 = vst [vmem:[#allocation188_spill] sm:$0xff] %v11508_v30 }
 0x44b   : > { %13226 = vst [vmem:[#allocation189_spill] sm:$0xff] %v11510_v14  ;;  %3909 = vmatmul.bf16.gmra.mxu0 %v8951_v57  ;;  %4429 = vmatmul.bf16.gmra.mxu1 %v9055_v61  ;;  %v9160_v57 = vld [vmem:[%s10036_s7 + $0x898] sm:$0xff] }
 0x44c   : > { %4949 = vmatmul.bf16.gmra.mxu2 %v9159_v28  ;;  %5469 = vmatmul.bf16.gmra.mxu3 %v9263_v25  ;;  %v9264_v61 = vld [vmem:[%s10036_s7 + $0xbd8] sm:$0xff] }
 0x44f   : > { %v11514_v59 = vpop.f32.mrf.mxu2  ;;  %v11516_v4 = vpop.f32.mrf.mxu3 }
 0x450   : > { %13227 = vst [vmem:[#allocation186_spill] sm:$0xff] %v11514_v59  ;;  %v11518_v12 = vpop.f32.mrf.mxu0  ;;  %v11520_v51 = vpop.f32.mrf.mxu1  ;;  %v9057_v59 = vld [vmem:[%s10036_s7 + $0x560] sm:$0xff] }
 0x451   : > { %13228 = vst [vmem:[#allocation187_spill] sm:$0xff] %v11516_v4 }
 0x452   : > { %13229 = vst [vmem:[#allocation100_spill] sm:$0xff] %v11518_v12  ;;  %v9063_v12 = vld [vmem:[%s10036_s7 + $0x590] sm:$0xff] }
 0x453   : > { %13230 = vst [vmem:[#allocation12_spill] sm:$0xff] %v11520_v51  ;;  %v8959_v51 = vld [vmem:[%s10036_s7 + $0x250] sm:$0xff] }
 0x457   : > { %v11522_v63 = vpop.f32.mrf.mxu2  ;;  %v11524_v10 = vpop.f32.mrf.mxu3 }
 0x458   : > { %13231 = vst [vmem:[#allocation101_spill] sm:$0xff] %v11522_v63  ;;  %v11528_v15 = vpop.f32.mrf.mxu0  ;;  %v11530_v23 = vpop.f32.mrf.mxu1 }
 0x459   : > { %13232 = vst [vmem:[#allocation13_spill] sm:$0xff] %v11524_v10 }
 0x45a   : > { %13233 = vst [vmem:[#allocation104_spill] sm:$0xff] %v11528_v15 }
 0x45b   : > { %13234 = vst [vmem:[#allocation16_spill] sm:$0xff] %v11530_v23  ;;  %3914 = vmatmul.bf16.gmra.mxu0 %v8952_v41  ;;  %4434 = vmatmul.bf16.gmra.mxu1 %v9056_v24  ;;  %v8953_v23 = vld [vmem:[%s10036_s7 + $0x220] sm:$0xff] }
 0x45c   : > { %4954 = vmatmul.bf16.gmra.mxu2 %v9160_v57  ;;  %5474 = vmatmul.bf16.gmra.mxu3 %v9264_v61  ;;  %v9161_v57 = vld [vmem:[%s10036_s7 + $0x8a0] sm:$0xff] }
 0x45d   : > { %v9265_v61 = vld [vmem:[%s10036_s7 + $0xbe0] sm:$0xff] }
 0x45f   : > { %v11534_v28 = vpop.f32.mrf.mxu2  ;;  %v11536_v25 = vpop.f32.mrf.mxu3 }
 0x460   : > { %13235 = vst [vmem:[#allocation105_spill] sm:$0xff] %v11534_v28  ;;  %v11538_v10 = vpop.f32.mrf.mxu0  ;;  %v11540_v63 = vpop.f32.mrf.mxu1 }
 0x461   : > { %13236 = vst [vmem:[#allocation17_spill] sm:$0xff] %v11536_v25 }
 0x462   : > { %13237 = vst [vmem:[#allocation190_spill] sm:$0xff] %v11538_v10  ;;  %v9058_v10 = vld [vmem:[%s10036_s7 + $0x568] sm:$0xff] }
 0x463   : > { %13238 = vst [vmem:[#allocation191_spill] sm:$0xff] %v11540_v63 }
 0x467   : > { %v11542_v4 = vpop.f32.mrf.mxu2  ;;  %v11544_v15 = vpop.f32.mrf.mxu3 }
 0x468   : > { %13239 = vst [vmem:[#allocation192_spill] sm:$0xff] %v11542_v4  ;;  %v11548_v41 = vpop.f32.mrf.mxu0  ;;  %v11550_v24 = vpop.f32.mrf.mxu1 }
 0x469   : > { %13240 = vst [vmem:[#allocation193_spill] sm:$0xff] %v11544_v15 }
 0x46a   : > { %13241 = vst [vmem:[#allocation106_spill] sm:$0xff] %v11548_v41 }
 0x46b   : > { %13242 = vst [vmem:[#allocation18_spill] sm:$0xff] %v11550_v24  ;;  %3919 = vmatmul.bf16.gmra.mxu0 %v8953_v23  ;;  %4439 = vmatmul.bf16.gmra.mxu1 %v9057_v59  ;;  %v8954_v24 = vld [vmem:[%s10036_s7 + $0x228] sm:$0xff] }
 0x46c   : > { %4959 = vmatmul.bf16.gmra.mxu2 %v9161_v57  ;;  %5479 = vmatmul.bf16.gmra.mxu3 %v9265_v61  ;;  %v9162_v57 = vld [vmem:[%s10036_s7 + $0x8a8] sm:$0xff] }
 0x46d   : > { %v9266_v61 = vld [vmem:[%s10036_s7 + $0xbe8] sm:$0xff] }
 0x46f   : > { %v11554_v25 = vpop.f32.mrf.mxu2  ;;  %v11556_v4 = vpop.f32.mrf.mxu3 }
 0x470   : > { %13243 = vst [vmem:[#allocation107_spill] sm:$0xff] %v11554_v25  ;;  %v11558_v15 = vpop.f32.mrf.mxu0  ;;  %v11560_v28 = vpop.f32.mrf.mxu1 }
 0x471   : > { %13244 = vst [vmem:[#allocation19_spill] sm:$0xff] %v11556_v4 }
 0x472   : > { %13245 = vst [vmem:[#allocation110_spill] sm:$0xff] %v11558_v15  ;;  %v9059_v15 = vld [vmem:[%s10036_s7 + $0x570] sm:$0xff] }
 0x473   : > { %13246 = vst [vmem:[#allocation22_spill] sm:$0xff] %v11560_v28 }
 0x477   : > { %v11562_v63 = vpop.f32.mrf.mxu2  ;;  %v11564_v41 = vpop.f32.mrf.mxu3 }
 0x478   : > { %13247 = vst [vmem:[#allocation111_spill] sm:$0xff] %v11562_v63  ;;  %v11568_v23 = vpop.f32.mrf.mxu0  ;;  %v11570_v59 = vpop.f32.mrf.mxu1 }
 0x479   : > { %13248 = vst [vmem:[#allocation23_spill] sm:$0xff] %v11564_v41 }
 0x47a   : > { %13249 = vst [vmem:[#allocation196_spill] sm:$0xff] %v11568_v23 }
 0x47b   : > { %13250 = vst [vmem:[#allocation197_spill] sm:$0xff] %v11570_v59  ;;  %3924 = vmatmul.bf16.gmra.mxu0 %v8954_v24  ;;  %4444 = vmatmul.bf16.gmra.mxu1 %v9058_v10  ;;  %v8955_v59 = vld [vmem:[%s10036_s7 + $0x230] sm:$0xff] }
 0x47c   : > { %4964 = vmatmul.bf16.gmra.mxu2 %v9162_v57  ;;  %5484 = vmatmul.bf16.gmra.mxu3 %v9266_v61  ;;  %v9163_v57 = vld [vmem:[%s10036_s7 + $0x8b0] sm:$0xff] }
 0x47d   : > { %v9267_v61 = vld [vmem:[%s10036_s7 + $0xbf0] sm:$0xff] }
 0x47f   : > { %v11574_v4 = vpop.f32.mrf.mxu2  ;;  %v11576_v63 = vpop.f32.mrf.mxu3 }
 0x480   : > { %13251 = vst [vmem:[#allocation194_spill] sm:$0xff] %v11574_v4  ;;  %v11578_v41 = vpop.f32.mrf.mxu0  ;;  %v11580_v25 = vpop.f32.mrf.mxu1 }
 0x481   : > { %13252 = vst [vmem:[#allocation195_spill] sm:$0xff] %v11576_v63 }
 0x482   : > { %13253 = vst [vmem:[#allocation108_spill] sm:$0xff] %v11578_v41  ;;  %v9060_v41 = vld [vmem:[%s10036_s7 + $0x578] sm:$0xff] }
 0x483   : > { %13254 = vst [vmem:[#allocation20_spill] sm:$0xff] %v11580_v25 }
 0x487   : > { %v11582_v28 = vpop.f32.mrf.mxu2  ;;  %v11584_v23 = vpop.f32.mrf.mxu3 }
 0x488   : > { %13255 = vst [vmem:[#allocation109_spill] sm:$0xff] %v11582_v28  ;;  %v11588_v24 = vpop.f32.mrf.mxu0  ;;  %v11590_v10 = vpop.f32.mrf.mxu1 }
 0x489   : > { %13256 = vst [vmem:[#allocation21_spill] sm:$0xff] %v11584_v23 }
 0x48a   : > { %13257 = vst [vmem:[#allocation112_spill] sm:$0xff] %v11588_v24 }
 0x48b   : > { %13258 = vst [vmem:[#allocation24_spill] sm:$0xff] %v11590_v10  ;;  %3929 = vmatmul.bf16.gmra.mxu0 %v8955_v59  ;;  %4449 = vmatmul.bf16.gmra.mxu1 %v9059_v15  ;;  %v8956_v10 = vld [vmem:[%s10036_s7 + $0x238] sm:$0xff] }
 0x48c   : > { %4969 = vmatmul.bf16.gmra.mxu2 %v9163_v57  ;;  %5489 = vmatmul.bf16.gmra.mxu3 %v9267_v61  ;;  %v9164_v57 = vld [vmem:[%s10036_s7 + $0x8b8] sm:$0xff] }
 0x48d   : > { %v9268_v61 = vld [vmem:[%s10036_s7 + $0xbf8] sm:$0xff] }
 0x48f   : > { %v11594_v63 = vpop.f32.mrf.mxu2  ;;  %v11596_v28 = vpop.f32.mrf.mxu3 }
 0x490   : > { %13259 = vst [vmem:[#allocation113_spill] sm:$0xff] %v11594_v63  ;;  %v11598_v23 = vpop.f32.mrf.mxu0  ;;  %v11600_v4 = vpop.f32.mrf.mxu1 }
 0x491   : > { %13260 = vst [vmem:[#allocation25_spill] sm:$0xff] %v11596_v28 }
 0x492   : > { %13261 = vst [vmem:[#allocation198_spill] sm:$0xff] %v11598_v23  ;;  %v9061_v23 = vld [vmem:[%s10036_s7 + $0x580] sm:$0xff] }
 0x493   : > { %13262 = vst [vmem:[#allocation199_spill] sm:$0xff] %v11600_v4 }
 0x497   : > { %v11602_v25 = vpop.f32.mrf.mxu2  ;;  %v11604_v24 = vpop.f32.mrf.mxu3 }
 0x498   : > { %13263 = vst [vmem:[#allocation200_spill] sm:$0xff] %v11602_v25  ;;  %v11608_v59 = vpop.f32.mrf.mxu0  ;;  %v11610_v15 = vpop.f32.mrf.mxu1 }
 0x499   : > { %13264 = vst [vmem:[#allocation201_spill] sm:$0xff] %v11604_v24 }
 0x49a   : > { %13265 = vst [vmem:[#allocation114_spill] sm:$0xff] %v11608_v59 }
 0x49b   : > { %13266 = vst [vmem:[#allocation26_spill] sm:$0xff] %v11610_v15  ;;  %3934 = vmatmul.bf16.gmra.mxu0 %v8956_v10  ;;  %4454 = vmatmul.bf16.gmra.mxu1 %v9060_v41  ;;  %v8957_v15 = vld [vmem:[%s10036_s7 + $0x240] sm:$0xff] }
 0x49c   : > { %4974 = vmatmul.bf16.gmra.mxu2 %v9164_v57  ;;  %5494 = vmatmul.bf16.gmra.mxu3 %v9268_v61  ;;  %v9165_v57 = vld [vmem:[%s10036_s7 + $0x8c0] sm:$0xff] }
 0x49d   : > { %v9269_v61 = vld [vmem:[%s10036_s7 + $0xc00] sm:$0xff] }
 0x49f   : > { %v11614_v28 = vpop.f32.mrf.mxu2  ;;  %v11616_v25 = vpop.f32.mrf.mxu3 }
 0x4a0   : > { %13267 = vst [vmem:[#allocation115_spill] sm:$0xff] %v11614_v28  ;;  %v11618_v24 = vpop.f32.mrf.mxu0  ;;  %v11620_v63 = vpop.f32.mrf.mxu1 }
 0x4a1   : > { %13268 = vst [vmem:[#allocation27_spill] sm:$0xff] %v11616_v25 }
 0x4a2   : > { %13269 = vst [vmem:[#allocation118_spill] sm:$0xff] %v11618_v24  ;;  %v9062_v24 = vld [vmem:[%s10036_s7 + $0x588] sm:$0xff] }
 0x4a3   : > { %13270 = vst [vmem:[#allocation30_spill] sm:$0xff] %v11620_v63 }
 0x4a7   : > { %v11622_v4 = vpop.f32.mrf.mxu2  ;;  %v11624_v59 = vpop.f32.mrf.mxu3 }
 0x4a8   : > { %13271 = vst [vmem:[#allocation119_spill] sm:$0xff] %v11622_v4  ;;  %v11628_v10 = vpop.f32.mrf.mxu0  ;;  %v11630_v41 = vpop.f32.mrf.mxu1 }
 0x4a9   : > { %13272 = vst [vmem:[#allocation31_spill] sm:$0xff] %v11624_v59 }
 0x4aa   : > { %13273 = vst [vmem:[#allocation204_spill] sm:$0xff] %v11628_v10 }
 0x4ab   : > { %13274 = vst [vmem:[#allocation205_spill] sm:$0xff] %v11630_v41  ;;  %3939 = vmatmul.bf16.gmra.mxu0 %v8957_v15  ;;  %4459 = vmatmul.bf16.gmra.mxu1 %v9061_v23  ;;  %v8958_v41 = vld [vmem:[%s10036_s7 + $0x248] sm:$0xff] }
 0x4ac   : > { %4979 = vmatmul.bf16.gmra.mxu2 %v9165_v57  ;;  %5499 = vmatmul.bf16.gmra.mxu3 %v9269_v61  ;;  %v9166_v57 = vld [vmem:[%s10036_s7 + $0x8c8] sm:$0xff] }
 0x4ad   : > { %v9270_v61 = vld [vmem:[%s10036_s7 + $0xc08] sm:$0xff] }
 0x4af   : > { %v11634_v25 = vpop.f32.mrf.mxu2  ;;  %v11636_v4 = vpop.f32.mrf.mxu3 }
 0x4b0   : > { %13275 = vst [vmem:[#allocation202_spill] sm:$0xff] %v11634_v25  ;;  %v11638_v59 = vpop.f32.mrf.mxu0  ;;  %v11640_v28 = vpop.f32.mrf.mxu1 }
 0x4b1   : > { %13276 = vst [vmem:[#allocation203_spill] sm:$0xff] %v11636_v4 }
 0x4b2   : > { %13277 = vst [vmem:[#allocation116_spill] sm:$0xff] %v11638_v59 }
 0x4b3   : > { %13278 = vst [vmem:[#allocation28_spill] sm:$0xff] %v11640_v28 }
 0x4b7   : > { %v11642_v63 = vpop.f32.mrf.mxu2  ;;  %v11644_v10 = vpop.f32.mrf.mxu3 }
 0x4b8   : > { %13279 = vst [vmem:[#allocation117_spill] sm:$0xff] %v11642_v63  ;;  %v11648_v15 = vpop.f32.mrf.mxu0  ;;  %v11650_v23 = vpop.f32.mrf.mxu1 }
 0x4b9   : > { %13280 = vst [vmem:[#allocation29_spill] sm:$0xff] %v11644_v10 }
 0x4bb   : > { %3944 = vmatmul.bf16.gmra.mxu0 %v8958_v41  ;;  %4464 = vmatmul.bf16.gmra.mxu1 %v9062_v24 }
 0x4bc   : > { %4984 = vmatmul.bf16.gmra.mxu2 %v9166_v57  ;;  %5504 = vmatmul.bf16.gmra.mxu3 %v9270_v61  ;;  %v9167_v57 = vld [vmem:[%s10036_s7 + $0x8d0] sm:$0xff] }
 0x4bd   : > { %v9271_v61 = vld [vmem:[%s10036_s7 + $0xc10] sm:$0xff] }
 0x4bf   : > { %v11654_v4 = vpop.f32.mrf.mxu2  ;;  %v11656_v63 = vpop.f32.mrf.mxu3 }
 0x4c0   : > { %v11658_v10 = vpop.f32.mrf.mxu0  ;;  %v11660_v25 = vpop.f32.mrf.mxu1 }
 0x4c7   : > { %v11662_v28 = vpop.f32.mrf.mxu2  ;;  %v11664_v59 = vpop.f32.mrf.mxu3 }
 0x4c8   : > { %v11668_v41 = vpop.f32.mrf.mxu0  ;;  %v11670_v24 = vpop.f32.mrf.mxu1 }
 0x4cb   : > { %3949 = vmatmul.bf16.gmra.mxu0 %v8959_v51  ;;  %4469 = vmatmul.bf16.gmra.mxu1 %v9063_v12 }
 0x4cc   : > { %4989 = vmatmul.bf16.gmra.mxu2 %v9167_v57  ;;  %5509 = vmatmul.bf16.gmra.mxu3 %v9271_v61  ;;  %v9168_v57 = vld [vmem:[%s10036_s7 + $0x8d8] sm:$0xff] }
 0x4cd   : > { %v9272_v61 = vld [vmem:[%s10036_s7 + $0xc18] sm:$0xff] }
 0x4cf   : > { %v11674_v14 = vpop.f32.mrf.mxu2  ;;  %v11676_v30 = vpop.f32.mrf.mxu3 }
 0x4d0   : > { %v11678_v36 = vpop.f32.mrf.mxu0  ;;  %v11680_v55 = vpop.f32.mrf.mxu1 }
 0x4d7   : > { %v11682_v48 = vpop.f32.mrf.mxu2  ;;  %v11684_v33 = vpop.f32.mrf.mxu3 }
 0x4d8   : > { %v11688_v51 = vpop.f32.mrf.mxu0  ;;  %v11690_v12 = vpop.f32.mrf.mxu1 }
 0x4d9   : > { %13281 = vst [vmem:[#allocation120_spill] sm:$0xff] %v11688_v51 }
 0x4da   : > { %13282 = vst [vmem:[#allocation32_spill] sm:$0xff] %v11690_v12  ;;  %v9078_v12 = vld [vmem:[%s10036_s7 + $0x608] sm:$0xff] }
 0x4db   : > { %3954 = vmatmul.bf16.gmra.mxu0 %v8960_v6  ;;  %4474 = vmatmul.bf16.gmra.mxu1 %v9064_v13 }
 0x4dc   : > { %4994 = vmatmul.bf16.gmra.mxu2 %v9168_v57  ;;  %5514 = vmatmul.bf16.gmra.mxu3 %v9272_v61  ;;  %v9169_v57 = vld [vmem:[%s10036_s7 + $0x8e0] sm:$0xff] }
 0x4dd   : > { %v9273_v61 = vld [vmem:[%s10036_s7 + $0xc20] sm:$0xff] }
 0x4df   : > { %v11694_v9 = vpop.f32.mrf.mxu2  ;;  %v11696_v35 = vpop.f32.mrf.mxu3 }
 0x4e0   : > { %13283 = vst [vmem:[#allocation121_spill] sm:$0xff] %v11694_v9  ;;  %v11698_v21 = vpop.f32.mrf.mxu0  ;;  %v11700_v27 = vpop.f32.mrf.mxu1 }
 0x4e1   : > { %13284 = vst [vmem:[#allocation33_spill] sm:$0xff] %v11696_v35  ;;  %v9077_v35 = vld [vmem:[%s10036_s7 + $0x600] sm:$0xff] }
 0x4e2   : > { %13285 = vst [vmem:[#allocation206_spill] sm:$0xff] %v11698_v21 }
 0x4e3   : > { %13286 = vst [vmem:[#allocation207_spill] sm:$0xff] %v11700_v27 }
 0x4e7   : > { %v11702_v8 = vpop.f32.mrf.mxu2  ;;  %v11704_v31 = vpop.f32.mrf.mxu3 }
 0x4e8   : > { %13287 = vst [vmem:[#allocation208_spill] sm:$0xff] %v11702_v8  ;;  %v11708_v6 = vpop.f32.mrf.mxu0  ;;  %v11710_v13 = vpop.f32.mrf.mxu1 }
 0x4e9   : > { %13288 = vst [vmem:[#allocation209_spill] sm:$0xff] %v11704_v31 }
 0x4ea   : > { %13289 = vst [vmem:[#allocation122_spill] sm:$0xff] %v11708_v6 }
 0x4eb   : > { %13290 = vst [vmem:[#allocation34_spill] sm:$0xff] %v11710_v13  ;;  %3959 = vmatmul.bf16.gmra.mxu0 %v8961_v45  ;;  %4479 = vmatmul.bf16.gmra.mxu1 %v9065_v44  ;;  %v9076_v13 = vld [vmem:[%s10036_s7 + $0x5f8] sm:$0xff] }
 0x4ec   : > { %4999 = vmatmul.bf16.gmra.mxu2 %v9169_v57  ;;  %5519 = vmatmul.bf16.gmra.mxu3 %v9273_v61  ;;  %v9170_v57 = vld [vmem:[%s10036_s7 + $0x8e8] sm:$0xff] }
 0x4ed   : > { %v9274_v61 = vld [vmem:[%s10036_s7 + $0xc28] sm:$0xff] }
 0x4ef   : > { %v11714_v34 = vpop.f32.mrf.mxu2  ;;  %v11716_v16 = vpop.f32.mrf.mxu3 }
 0x4f0   : > { %13291 = vst [vmem:[#allocation123_spill] sm:$0xff] %v11714_v34  ;;  %v11718_v50 = vpop.f32.mrf.mxu0  ;;  %v11720_v43 = vpop.f32.mrf.mxu1 }
 0x4f1   : > { %13292 = vst [vmem:[#allocation35_spill] sm:$0xff] %v11716_v16 }
 0x4f2   : > { %13293 = vst [vmem:[#allocation126_spill] sm:$0xff] %v11718_v50  ;;  %v9067_v50 = vld [vmem:[%s10036_s7 + $0x5b0] sm:$0xff] }
 0x4f3   : > { %13294 = vst [vmem:[#allocation38_spill] sm:$0xff] %v11720_v43 }
 0x4f7   : > { %v11722_v18 = vpop.f32.mrf.mxu2  ;;  %v11724_v5 = vpop.f32.mrf.mxu3 }
 0x4f8   : > { %13295 = vst [vmem:[#allocation127_spill] sm:$0xff] %v11722_v18  ;;  %v11728_v45 = vpop.f32.mrf.mxu0  ;;  %v11730_v44 = vpop.f32.mrf.mxu1 }
 0x4f9   : > { %13296 = vst [vmem:[#allocation39_spill] sm:$0xff] %v11724_v5 }
 0x4fa   : > { %13297 = vst [vmem:[#allocation212_spill] sm:$0xff] %v11728_v45 }
 0x4fb   : > { %13298 = vst [vmem:[#allocation213_spill] sm:$0xff] %v11730_v44  ;;  %3964 = vmatmul.bf16.gmra.mxu0 %v8962_v42  ;;  %4484 = vmatmul.bf16.gmra.mxu1 %v9066_v3  ;;  %v8963_v44 = vld [vmem:[%s10036_s7 + $0x270] sm:$0xff] }
 0x4fc   : > { %5004 = vmatmul.bf16.gmra.mxu2 %v9170_v57  ;;  %5524 = vmatmul.bf16.gmra.mxu3 %v9274_v61  ;;  %v9171_v57 = vld [vmem:[%s10036_s7 + $0x8f0] sm:$0xff] }
 0x4fd   : > { %v9275_v61 = vld [vmem:[%s10036_s7 + $0xc30] sm:$0xff] }
 0x4ff   : > { %v11734_v16 = vpop.f32.mrf.mxu2  ;;  %v11736_v18 = vpop.f32.mrf.mxu3 }
 0x500   : > { %13299 = vst [vmem:[#allocation210_spill] sm:$0xff] %v11734_v16  ;;  %v11738_v5 = vpop.f32.mrf.mxu0  ;;  %v11740_v34 = vpop.f32.mrf.mxu1 }
 0x501   : > { %13300 = vst [vmem:[#allocation211_spill] sm:$0xff] %v11736_v18 }
 0x502   : > { %13301 = vst [vmem:[#allocation124_spill] sm:$0xff] %v11738_v5  ;;  %v9068_v5 = vld [vmem:[%s10036_s7 + $0x5b8] sm:$0xff] }
 0x503   : > { %13302 = vst [vmem:[#allocation36_spill] sm:$0xff] %v11740_v34 }
 0x507   : > { %v11742_v43 = vpop.f32.mrf.mxu2  ;;  %v11744_v45 = vpop.f32.mrf.mxu3 }
 0x508   : > { %13303 = vst [vmem:[#allocation125_spill] sm:$0xff] %v11742_v43  ;;  %v11748_v42 = vpop.f32.mrf.mxu0  ;;  %v11750_v3 = vpop.f32.mrf.mxu1 }
 0x509   : > { %13304 = vst [vmem:[#allocation37_spill] sm:$0xff] %v11744_v45 }
 0x50a   : > { %13305 = vst [vmem:[#allocation128_spill] sm:$0xff] %v11748_v42 }
 0x50b   : > { %13306 = vst [vmem:[#allocation40_spill] sm:$0xff] %v11750_v3  ;;  %3969 = vmatmul.bf16.gmra.mxu0 %v8963_v44  ;;  %4489 = vmatmul.bf16.gmra.mxu1 %v9067_v50  ;;  %v8964_v3 = vld [vmem:[%s10036_s7 + $0x278] sm:$0xff] }
 0x50c   : > { %5009 = vmatmul.bf16.gmra.mxu2 %v9171_v57  ;;  %5529 = vmatmul.bf16.gmra.mxu3 %v9275_v61  ;;  %v9172_v57 = vld [vmem:[%s10036_s7 + $0x8f8] sm:$0xff] }
 0x50d   : > { %v9276_v61 = vld [vmem:[%s10036_s7 + $0xc38] sm:$0xff] }
 0x50f   : > { %v11754_v18 = vpop.f32.mrf.mxu2  ;;  %v11756_v43 = vpop.f32.mrf.mxu3 }
 0x510   : > { %13307 = vst [vmem:[#allocation129_spill] sm:$0xff] %v11754_v18  ;;  %v11758_v45 = vpop.f32.mrf.mxu0  ;;  %v11760_v16 = vpop.f32.mrf.mxu1 }
 0x511   : > { %13308 = vst [vmem:[#allocation41_spill] sm:$0xff] %v11756_v43 }
 0x512   : > { %13309 = vst [vmem:[#allocation214_spill] sm:$0xff] %v11758_v45  ;;  %v9069_v45 = vld [vmem:[%s10036_s7 + $0x5c0] sm:$0xff] }
 0x513   : > { %13310 = vst [vmem:[#allocation215_spill] sm:$0xff] %v11760_v16 }
 0x517   : > { %v11762_v34 = vpop.f32.mrf.mxu2  ;;  %v11764_v42 = vpop.f32.mrf.mxu3 }
 0x518   : > { %13311 = vst [vmem:[#allocation216_spill] sm:$0xff] %v11762_v34  ;;  %v11768_v44 = vpop.f32.mrf.mxu0  ;;  %v11770_v50 = vpop.f32.mrf.mxu1 }
 0x519   : > { %13312 = vst [vmem:[#allocation217_spill] sm:$0xff] %v11764_v42 }
 0x51a   : > { %13313 = vst [vmem:[#allocation130_spill] sm:$0xff] %v11768_v44 }
 0x51b   : > { %13314 = vst [vmem:[#allocation42_spill] sm:$0xff] %v11770_v50  ;;  %3974 = vmatmul.bf16.gmra.mxu0 %v8964_v3  ;;  %4494 = vmatmul.bf16.gmra.mxu1 %v9068_v5  ;;  %v8965_v50 = vld [vmem:[%s10036_s7 + $0x280] sm:$0xff] }
 0x51c   : > { %5014 = vmatmul.bf16.gmra.mxu2 %v9172_v57  ;;  %5534 = vmatmul.bf16.gmra.mxu3 %v9276_v61  ;;  %v9173_v57 = vld [vmem:[%s10036_s7 + $0x900] sm:$0xff] }
 0x51d   : > { %v9277_v61 = vld [vmem:[%s10036_s7 + $0xc40] sm:$0xff] }
 0x51f   : > { %v11774_v43 = vpop.f32.mrf.mxu2  ;;  %v11776_v34 = vpop.f32.mrf.mxu3 }
 0x520   : > { %13315 = vst [vmem:[#allocation131_spill] sm:$0xff] %v11774_v43  ;;  %v11778_v42 = vpop.f32.mrf.mxu0  ;;  %v11780_v18 = vpop.f32.mrf.mxu1 }
 0x521   : > { %13316 = vst [vmem:[#allocation43_spill] sm:$0xff] %v11776_v34 }
 0x522   : > { %13317 = vst [vmem:[#allocation134_spill] sm:$0xff] %v11778_v42  ;;  %v9070_v42 = vld [vmem:[%s10036_s7 + $0x5c8] sm:$0xff] }
 0x523   : > { %13318 = vst [vmem:[#allocation46_spill] sm:$0xff] %v11780_v18 }
 0x527   : > { %v11782_v16 = vpop.f32.mrf.mxu2  ;;  %v11784_v44 = vpop.f32.mrf.mxu3 }
 0x528   : > { %13319 = vst [vmem:[#allocation135_spill] sm:$0xff] %v11782_v16  ;;  %v11788_v3 = vpop.f32.mrf.mxu0  ;;  %v11790_v5 = vpop.f32.mrf.mxu1 }
 0x529   : > { %13320 = vst [vmem:[#allocation47_spill] sm:$0xff] %v11784_v44 }
 0x52a   : > { %13321 = vst [vmem:[#allocation220_spill] sm:$0xff] %v11788_v3 }
 0x52b   : > { %13322 = vst [vmem:[#allocation221_spill] sm:$0xff] %v11790_v5  ;;  %3979 = vmatmul.bf16.gmra.mxu0 %v8965_v50  ;;  %4499 = vmatmul.bf16.gmra.mxu1 %v9069_v45  ;;  %v8966_v5 = vld [vmem:[%s10036_s7 + $0x288] sm:$0xff] }
 0x52c   : > { %5019 = vmatmul.bf16.gmra.mxu2 %v9173_v57  ;;  %5539 = vmatmul.bf16.gmra.mxu3 %v9277_v61  ;;  %v9174_v57 = vld [vmem:[%s10036_s7 + $0x908] sm:$0xff] }
 0x52d   : > { %v9278_v61 = vld [vmem:[%s10036_s7 + $0xc48] sm:$0xff] }
 0x52f   : > { %v11794_v34 = vpop.f32.mrf.mxu2  ;;  %v11796_v16 = vpop.f32.mrf.mxu3 }
 0x530   : > { %13323 = vst [vmem:[#allocation218_spill] sm:$0xff] %v11794_v34  ;;  %v11798_v44 = vpop.f32.mrf.mxu0  ;;  %v11800_v43 = vpop.f32.mrf.mxu1 }
 0x531   : > { %13324 = vst [vmem:[#allocation219_spill] sm:$0xff] %v11796_v16 }
 0x532   : > { %13325 = vst [vmem:[#allocation132_spill] sm:$0xff] %v11798_v44  ;;  %v9071_v44 = vld [vmem:[%s10036_s7 + $0x5d0] sm:$0xff] }
 0x533   : > { %13326 = vst [vmem:[#allocation44_spill] sm:$0xff] %v11800_v43 }
 0x537   : > { %v11802_v18 = vpop.f32.mrf.mxu2  ;;  %v11804_v3 = vpop.f32.mrf.mxu3 }
 0x538   : > { %13327 = vst [vmem:[#allocation133_spill] sm:$0xff] %v11802_v18  ;;  %v11808_v50 = vpop.f32.mrf.mxu0  ;;  %v11810_v45 = vpop.f32.mrf.mxu1 }
 0x539   : > { %13328 = vst [vmem:[#allocation45_spill] sm:$0xff] %v11804_v3 }
 0x53a   : > { %13329 = vst [vmem:[#allocation136_spill] sm:$0xff] %v11808_v50 }
 0x53b   : > { %13330 = vst [vmem:[#allocation48_spill] sm:$0xff] %v11810_v45  ;;  %3984 = vmatmul.bf16.gmra.mxu0 %v8966_v5  ;;  %4504 = vmatmul.bf16.gmra.mxu1 %v9070_v42  ;;  %v8967_v45 = vld [vmem:[%s10036_s7 + $0x290] sm:$0xff] }
 0x53c   : > { %5024 = vmatmul.bf16.gmra.mxu2 %v9174_v57  ;;  %5544 = vmatmul.bf16.gmra.mxu3 %v9278_v61  ;;  %v9175_v57 = vld [vmem:[%s10036_s7 + $0x910] sm:$0xff] }
 0x53d   : > { %v9279_v61 = vld [vmem:[%s10036_s7 + $0xc50] sm:$0xff] }
 0x53f   : > { %v11814_v16 = vpop.f32.mrf.mxu2  ;;  %v11816_v18 = vpop.f32.mrf.mxu3 }
 0x540   : > { %13331 = vst [vmem:[#allocation137_spill] sm:$0xff] %v11814_v16  ;;  %v11818_v3 = vpop.f32.mrf.mxu0  ;;  %v11820_v34 = vpop.f32.mrf.mxu1 }
 0x541   : > { %13332 = vst [vmem:[#allocation49_spill] sm:$0xff] %v11816_v18 }
 0x542   : > { %13333 = vst [vmem:[#allocation222_spill] sm:$0xff] %v11818_v3  ;;  %v9072_v3 = vld [vmem:[%s10036_s7 + $0x5d8] sm:$0xff] }
 0x543   : > { %13334 = vst [vmem:[#allocation223_spill] sm:$0xff] %v11820_v34 }
 0x547   : > { %v11822_v43 = vpop.f32.mrf.mxu2  ;;  %v11824_v50 = vpop.f32.mrf.mxu3 }
 0x548   : > { %13335 = vst [vmem:[#allocation224_spill] sm:$0xff] %v11822_v43  ;;  %v11828_v5 = vpop.f32.mrf.mxu0  ;;  %v11830_v42 = vpop.f32.mrf.mxu1 }
 0x549   : > { %13336 = vst [vmem:[#allocation225_spill] sm:$0xff] %v11824_v50 }
 0x54a   : > { %13337 = vst [vmem:[#allocation138_spill] sm:$0xff] %v11828_v5 }
 0x54b   : > { %13338 = vst [vmem:[#allocation50_spill] sm:$0xff] %v11830_v42  ;;  %3989 = vmatmul.bf16.gmra.mxu0 %v8967_v45  ;;  %4509 = vmatmul.bf16.gmra.mxu1 %v9071_v44  ;;  %v8968_v42 = vld [vmem:[%s10036_s7 + $0x298] sm:$0xff] }
 0x54c   : > { %5029 = vmatmul.bf16.gmra.mxu2 %v9175_v57  ;;  %5549 = vmatmul.bf16.gmra.mxu3 %v9279_v61  ;;  %v9176_v57 = vld [vmem:[%s10036_s7 + $0x918] sm:$0xff] }
 0x54d   : > { %v9280_v61 = vld [vmem:[%s10036_s7 + $0xc58] sm:$0xff] }
 0x54f   : > { %v11834_v18 = vpop.f32.mrf.mxu2  ;;  %v11836_v43 = vpop.f32.mrf.mxu3 }
 0x550   : > { %13339 = vst [vmem:[#allocation139_spill] sm:$0xff] %v11834_v18  ;;  %v11838_v50 = vpop.f32.mrf.mxu0  ;;  %v11840_v16 = vpop.f32.mrf.mxu1 }
 0x551   : > { %13340 = vst [vmem:[#allocation51_spill] sm:$0xff] %v11836_v43 }
 0x552   : > { %13341 = vst [vmem:[#allocation142_spill] sm:$0xff] %v11838_v50  ;;  %v9073_v50 = vld [vmem:[%s10036_s7 + $0x5e0] sm:$0xff] }
 0x553   : > { %13342 = vst [vmem:[#allocation54_spill] sm:$0xff] %v11840_v16 }
 0x557   : > { %v11842_v34 = vpop.f32.mrf.mxu2  ;;  %v11844_v5 = vpop.f32.mrf.mxu3 }
 0x558   : > { %13343 = vst [vmem:[#allocation143_spill] sm:$0xff] %v11842_v34  ;;  %v11848_v45 = vpop.f32.mrf.mxu0  ;;  %v11850_v44 = vpop.f32.mrf.mxu1 }
 0x559   : > { %13344 = vst [vmem:[#allocation55_spill] sm:$0xff] %v11844_v5 }
 0x55a   : > { %13345 = vst [vmem:[#allocation228_spill] sm:$0xff] %v11848_v45 }
 0x55b   : > { %13346 = vst [vmem:[#allocation229_spill] sm:$0xff] %v11850_v44  ;;  %3994 = vmatmul.bf16.gmra.mxu0 %v8968_v42  ;;  %4514 = vmatmul.bf16.gmra.mxu1 %v9072_v3  ;;  %v8969_v44 = vld [vmem:[%s10036_s7 + $0x2a0] sm:$0xff] }
 0x55c   : > { %5034 = vmatmul.bf16.gmra.mxu2 %v9176_v57  ;;  %5554 = vmatmul.bf16.gmra.mxu3 %v9280_v61  ;;  %v9177_v57 = vld [vmem:[%s10036_s7 + $0x920] sm:$0xff] }
 0x55d   : > { %v9281_v61 = vld [vmem:[%s10036_s7 + $0xc60] sm:$0xff] }
 0x55f   : > { %v11854_v43 = vpop.f32.mrf.mxu2  ;;  %v11856_v34 = vpop.f32.mrf.mxu3 }
 0x560   : > { %13347 = vst [vmem:[#allocation226_spill] sm:$0xff] %v11854_v43  ;;  %v11858_v5 = vpop.f32.mrf.mxu0  ;;  %v11860_v18 = vpop.f32.mrf.mxu1 }
 0x561   : > { %13348 = vst [vmem:[#allocation227_spill] sm:$0xff] %v11856_v34 }
 0x562   : > { %13349 = vst [vmem:[#allocation140_spill] sm:$0xff] %v11858_v5  ;;  %v9074_v5 = vld [vmem:[%s10036_s7 + $0x5e8] sm:$0xff] }
 0x563   : > { %13350 = vst [vmem:[#allocation52_spill] sm:$0xff] %v11860_v18 }
 0x567   : > { %v11862_v16 = vpop.f32.mrf.mxu2  ;;  %v11864_v45 = vpop.f32.mrf.mxu3 }
 0x568   : > { %13351 = vst [vmem:[#allocation141_spill] sm:$0xff] %v11862_v16  ;;  %v11868_v42 = vpop.f32.mrf.mxu0  ;;  %v11870_v3 = vpop.f32.mrf.mxu1 }
 0x569   : > { %13352 = vst [vmem:[#allocation53_spill] sm:$0xff] %v11864_v45 }
 0x56a   : > { %13353 = vst [vmem:[#allocation144_spill] sm:$0xff] %v11868_v42 }
 0x56b   : > { %13354 = vst [vmem:[#allocation56_spill] sm:$0xff] %v11870_v3  ;;  %3999 = vmatmul.bf16.gmra.mxu0 %v8969_v44  ;;  %4519 = vmatmul.bf16.gmra.mxu1 %v9073_v50  ;;  %v8970_v3 = vld [vmem:[%s10036_s7 + $0x2a8] sm:$0xff] }
 0x56c   : > { %5039 = vmatmul.bf16.gmra.mxu2 %v9177_v57  ;;  %5559 = vmatmul.bf16.gmra.mxu3 %v9281_v61  ;;  %v9178_v57 = vld [vmem:[%s10036_s7 + $0x928] sm:$0xff] }
 0x56d   : > { %v9282_v61 = vld [vmem:[%s10036_s7 + $0xc68] sm:$0xff] }
 0x56f   : > { %v11874_v34 = vpop.f32.mrf.mxu2  ;;  %v11876_v16 = vpop.f32.mrf.mxu3 }
 0x570   : > { %13355 = vst [vmem:[#allocation145_spill] sm:$0xff] %v11874_v34  ;;  %v11878_v45 = vpop.f32.mrf.mxu0  ;;  %v11880_v43 = vpop.f32.mrf.mxu1 }
 0x571   : > { %13356 = vst [vmem:[#allocation57_spill] sm:$0xff] %v11876_v16 }
 0x572   : > { %13357 = vst [vmem:[#allocation230_spill] sm:$0xff] %v11878_v45  ;;  %v9075_v45 = vld [vmem:[%s10036_s7 + $0x5f0] sm:$0xff] }
 0x573   : > { %13358 = vst [vmem:[#allocation231_spill] sm:$0xff] %v11880_v43 }
 0x577   : > { %v11882_v18 = vpop.f32.mrf.mxu2  ;;  %v11884_v42 = vpop.f32.mrf.mxu3 }
 0x578   : > { %13359 = vst [vmem:[#allocation232_spill] sm:$0xff] %v11882_v18  ;;  %v11888_v44 = vpop.f32.mrf.mxu0  ;;  %v11890_v50 = vpop.f32.mrf.mxu1 }
 0x579   : > { %13360 = vst [vmem:[#allocation233_spill] sm:$0xff] %v11884_v42 }
 0x57a   : > { %13361 = vst [vmem:[#allocation146_spill] sm:$0xff] %v11888_v44 }
 0x57b   : > { %13362 = vst [vmem:[#allocation58_spill] sm:$0xff] %v11890_v50  ;;  %4004 = vmatmul.bf16.gmra.mxu0 %v8970_v3  ;;  %4524 = vmatmul.bf16.gmra.mxu1 %v9074_v5  ;;  %v8971_v50 = vld [vmem:[%s10036_s7 + $0x2b0] sm:$0xff] }
 0x57c   : > { %5044 = vmatmul.bf16.gmra.mxu2 %v9178_v57  ;;  %5564 = vmatmul.bf16.gmra.mxu3 %v9282_v61  ;;  %v9179_v57 = vld [vmem:[%s10036_s7 + $0x930] sm:$0xff] }
 0x57d   : > { %v9283_v61 = vld [vmem:[%s10036_s7 + $0xc70] sm:$0xff] }
 0x57f   : > { %v11894_v16 = vpop.f32.mrf.mxu2  ;;  %v11896_v18 = vpop.f32.mrf.mxu3 }
 0x580   : > { %13363 = vst [vmem:[#allocation147_spill] sm:$0xff] %v11894_v16  ;;  %v11898_v42 = vpop.f32.mrf.mxu0  ;;  %v11900_v34 = vpop.f32.mrf.mxu1 }
 0x581   : > { %13364 = vst [vmem:[#allocation59_spill] sm:$0xff] %v11896_v18 }
 0x582   : > { %13365 = vst [vmem:[#allocation150_spill] sm:$0xff] %v11898_v42 }
 0x583   : > { %13366 = vst [vmem:[#allocation62_spill] sm:$0xff] %v11900_v34 }
 0x587   : > { %v11902_v43 = vpop.f32.mrf.mxu2  ;;  %v11904_v44 = vpop.f32.mrf.mxu3 }
 0x588   : > { %13367 = vst [vmem:[#allocation151_spill] sm:$0xff] %v11902_v43  ;;  %v11908_v3 = vpop.f32.mrf.mxu0  ;;  %v11910_v5 = vpop.f32.mrf.mxu1 }
 0x589   : > { %13368 = vst [vmem:[#allocation63_spill] sm:$0xff] %v11904_v44 }
 0x58b   : > { %4009 = vmatmul.bf16.gmra.mxu0 %v8971_v50  ;;  %4529 = vmatmul.bf16.gmra.mxu1 %v9075_v45 }
 0x58c   : > { %5049 = vmatmul.bf16.gmra.mxu2 %v9179_v57  ;;  %5569 = vmatmul.bf16.gmra.mxu3 %v9283_v61  ;;  %v9180_v57 = vld [vmem:[%s10036_s7 + $0x938] sm:$0xff] }
 0x58d   : > { %v9284_v61 = vld [vmem:[%s10036_s7 + $0xc78] sm:$0xff] }
 0x58f   : > { %v11914_v18 = vpop.f32.mrf.mxu2  ;;  %v11916_v43 = vpop.f32.mrf.mxu3 }
 0x590   : > { %v11918_v44 = vpop.f32.mrf.mxu0  ;;  %v11920_v16 = vpop.f32.mrf.mxu1 }
 0x597   : > { %v11922_v34 = vpop.f32.mrf.mxu2  ;;  %v11924_v42 = vpop.f32.mrf.mxu3 }
 0x598   : > { %v11928_v50 = vpop.f32.mrf.mxu0  ;;  %v11930_v45 = vpop.f32.mrf.mxu1 }
 0x59b   : > { %4014 = vmatmul.bf16.gmra.mxu0 %v8972_v58  ;;  %4534 = vmatmul.bf16.gmra.mxu1 %v9076_v13 }
 0x59c   : > { %5054 = vmatmul.bf16.gmra.mxu2 %v9180_v57  ;;  %5574 = vmatmul.bf16.gmra.mxu3 %v9284_v61  ;;  %v9181_v57 = vld [vmem:[%s10036_s7 + $0x940] sm:$0xff] }
 0x59d   : > { %v9285_v61 = vld [vmem:[%s10036_s7 + $0xc80] sm:$0xff] }
 0x59f   : > { %v11934_v20 = vpop.f32.mrf.mxu2  ;;  %v11936_v6 = vpop.f32.mrf.mxu3 }
 0x5a0   : > { %v11938_v17 = vpop.f32.mrf.mxu0  ;;  %v11940_v31 = vpop.f32.mrf.mxu1 }
 0x5a7   : > { %v11942_v47 = vpop.f32.mrf.mxu2  ;;  %v11944_v8 = vpop.f32.mrf.mxu3 }
 0x5a8   : > { %v11948_v58 = vpop.f32.mrf.mxu0  ;;  %v11950_v13 = vpop.f32.mrf.mxu1 }
 0x5a9   : > { %13369 = vst [vmem:[#allocation236_spill] sm:$0xff] %v11948_v58 }
 0x5aa   : > { %13370 = vst [vmem:[#allocation237_spill] sm:$0xff] %v11950_v13 }
 0x5ab   : > { %4019 = vmatmul.bf16.gmra.mxu0 %v8973_v53  ;;  %4539 = vmatmul.bf16.gmra.mxu1 %v9077_v35 }
 0x5ac   : > { %5059 = vmatmul.bf16.gmra.mxu2 %v9181_v57  ;;  %5579 = vmatmul.bf16.gmra.mxu3 %v9285_v61  ;;  %v9182_v57 = vld [vmem:[%s10036_s7 + $0x948] sm:$0xff] }
 0x5ad   : > { %v9286_v61 = vld [vmem:[%s10036_s7 + $0xc88] sm:$0xff] }
 0x5af   : > { %v11954_v56 = vpop.f32.mrf.mxu2  ;;  %v11956_v9 = vpop.f32.mrf.mxu3 }
 0x5b0   : > { %13371 = vst [vmem:[#allocation234_spill] sm:$0xff] %v11954_v56  ;;  %v11958_v46 = vpop.f32.mrf.mxu0  ;;  %v11960_v27 = vpop.f32.mrf.mxu1 }
 0x5b1   : > { %13372 = vst [vmem:[#allocation235_spill] sm:$0xff] %v11956_v9 }
 0x5b2   : > { %13373 = vst [vmem:[#allocation148_spill] sm:$0xff] %v11958_v46  ;;  %v9079_v46 = vld [vmem:[%s10036_s7 + $0x610] sm:$0xff] }
 0x5b3   : > { %13374 = vst [vmem:[#allocation60_spill] sm:$0xff] %v11960_v27 }
 0x5b7   : > { %v11962_v2 = vpop.f32.mrf.mxu2  ;;  %v11964_v21 = vpop.f32.mrf.mxu3 }
 0x5b8   : > { %13375 = vst [vmem:[#allocation149_spill] sm:$0xff] %v11962_v2  ;;  %v11968_v53 = vpop.f32.mrf.mxu0  ;;  %v11970_v35 = vpop.f32.mrf.mxu1 }
 0x5b9   : > { %13376 = vst [vmem:[#allocation61_spill] sm:$0xff] %v11964_v21 }
 0x5ba   : > { %13377 = vst [vmem:[#allocation152_spill] sm:$0xff] %v11968_v53 }
 0x5bb   : > { %13378 = vst [vmem:[#allocation64_spill] sm:$0xff] %v11970_v35  ;;  %4024 = vmatmul.bf16.gmra.mxu0 %v8974_v38  ;;  %4544 = vmatmul.bf16.gmra.mxu1 %v9078_v12  ;;  %v8975_v35 = vld [vmem:[%s10036_s7 + $0x2d0] sm:$0xff] }
 0x5bc   : > { %5064 = vmatmul.bf16.gmra.mxu2 %v9182_v57  ;;  %5584 = vmatmul.bf16.gmra.mxu3 %v9286_v61  ;;  %v9183_v57 = vld [vmem:[%s10036_s7 + $0x950] sm:$0xff] }
 0x5bd   : > { %v9287_v61 = vld [vmem:[%s10036_s7 + $0xc90] sm:$0xff] }
 0x5bf   : > { %v11974_v9 = vpop.f32.mrf.mxu2  ;;  %v11976_v2 = vpop.f32.mrf.mxu3 }
 0x5c0   : > { %13379 = vst [vmem:[#allocation153_spill] sm:$0xff] %v11974_v9  ;;  %v11978_v21 = vpop.f32.mrf.mxu0  ;;  %v11980_v56 = vpop.f32.mrf.mxu1 }
 0x5c1   : > { %13380 = vst [vmem:[#allocation65_spill] sm:$0xff] %v11976_v2 }
 0x5c2   : > { %13381 = vst [vmem:[#allocation238_spill] sm:$0xff] %v11978_v21  ;;  %v9080_v21 = vld [vmem:[%s10036_s7 + $0x618] sm:$0xff] }
 0x5c3   : > { %13382 = vst [vmem:[#allocation239_spill] sm:$0xff] %v11980_v56 }
 0x5c7   : > { %v11982_v27 = vpop.f32.mrf.mxu2  ;;  %v11984_v53 = vpop.f32.mrf.mxu3 }
 0x5c8   : > { %13383 = vst [vmem:[#allocation240_spill] sm:$0xff] %v11982_v27  ;;  %v11988_v38 = vpop.f32.mrf.mxu0  ;;  %v11990_v12 = vpop.f32.mrf.mxu1 }
 0x5c9   : > { %13384 = vst [vmem:[#allocation241_spill] sm:$0xff] %v11984_v53 }
 0x5ca   : > { %13385 = vst [vmem:[#allocation154_spill] sm:$0xff] %v11988_v38 }
 0x5cb   : > { %13386 = vst [vmem:[#allocation66_spill] sm:$0xff] %v11990_v12  ;;  %4029 = vmatmul.bf16.gmra.mxu0 %v8975_v35  ;;  %4549 = vmatmul.bf16.gmra.mxu1 %v9079_v46  ;;  %v8976_v12 = vld [vmem:[%s10036_s7 + $0x2d8] sm:$0xff] }
 0x5cc   : > { %5069 = vmatmul.bf16.gmra.mxu2 %v9183_v57  ;;  %5589 = vmatmul.bf16.gmra.mxu3 %v9287_v61  ;;  %v9184_v57 = vld [vmem:[%s10036_s7 + $0x958] sm:$0xff] }
 0x5cd   : > { %v9288_v61 = vld [vmem:[%s10036_s7 + $0xc98] sm:$0xff] }
 0x5cf   : > { %v11994_v2 = vpop.f32.mrf.mxu2  ;;  %v11996_v27 = vpop.f32.mrf.mxu3 }
 0x5d0   : > { %13387 = vst [vmem:[#allocation155_spill] sm:$0xff] %v11994_v2  ;;  %v11998_v53 = vpop.f32.mrf.mxu0  ;;  %v12000_v9 = vpop.f32.mrf.mxu1 }
 0x5d1   : > { %13388 = vst [vmem:[#allocation67_spill] sm:$0xff] %v11996_v27 }
 0x5d2   : > { %13389 = vst [vmem:[#allocation158_spill] sm:$0xff] %v11998_v53  ;;  %v9081_v53 = vld [vmem:[%s10036_s7 + $0x620] sm:$0xff] }
 0x5d3   : > { %13390 = vst [vmem:[#allocation70_spill] sm:$0xff] %v12000_v9 }
 0x5d7   : > { %v12002_v56 = vpop.f32.mrf.mxu2  ;;  %v12004_v38 = vpop.f32.mrf.mxu3 }
 0x5d8   : > { %13391 = vst [vmem:[#allocation159_spill] sm:$0xff] %v12002_v56  ;;  %v12008_v35 = vpop.f32.mrf.mxu0  ;;  %v12010_v46 = vpop.f32.mrf.mxu1 }
 0x5d9   : > { %13392 = vst [vmem:[#allocation71_spill] sm:$0xff] %v12004_v38 }
 0x5da   : > { %13393 = vst [vmem:[#allocation244_spill] sm:$0xff] %v12008_v35 }
 0x5db   : > { %13394 = vst [vmem:[#allocation245_spill] sm:$0xff] %v12010_v46  ;;  %4034 = vmatmul.bf16.gmra.mxu0 %v8976_v12  ;;  %4554 = vmatmul.bf16.gmra.mxu1 %v9080_v21  ;;  %v8977_v46 = vld [vmem:[%s10036_s7 + $0x2e0] sm:$0xff] }
 0x5dc   : > { %5074 = vmatmul.bf16.gmra.mxu2 %v9184_v57  ;;  %5594 = vmatmul.bf16.gmra.mxu3 %v9288_v61  ;;  %v9185_v57 = vld [vmem:[%s10036_s7 + $0x960] sm:$0xff] }
 0x5dd   : > { %v9289_v61 = vld [vmem:[%s10036_s7 + $0xca0] sm:$0xff] }
 0x5df   : > { %v12014_v27 = vpop.f32.mrf.mxu2  ;;  %v12016_v56 = vpop.f32.mrf.mxu3 }
 0x5e0   : > { %13395 = vst [vmem:[#allocation242_spill] sm:$0xff] %v12014_v27  ;;  %v12018_v38 = vpop.f32.mrf.mxu0  ;;  %v12020_v2 = vpop.f32.mrf.mxu1 }
 0x5e1   : > { %13396 = vst [vmem:[#allocation243_spill] sm:$0xff] %v12016_v56 }
 0x5e2   : > { %13397 = vst [vmem:[#allocation156_spill] sm:$0xff] %v12018_v38  ;;  %v9082_v38 = vld [vmem:[%s10036_s7 + $0x628] sm:$0xff] }
 0x5e3   : > { %13398 = vst [vmem:[#allocation68_spill] sm:$0xff] %v12020_v2 }
 0x5e7   : > { %v12022_v9 = vpop.f32.mrf.mxu2  ;;  %v12024_v35 = vpop.f32.mrf.mxu3 }
 0x5e8   : > { %13399 = vst [vmem:[#allocation157_spill] sm:$0xff] %v12022_v9  ;;  %v12028_v12 = vpop.f32.mrf.mxu0  ;;  %v12030_v21 = vpop.f32.mrf.mxu1 }
 0x5e9   : > { %13400 = vst [vmem:[#allocation69_spill] sm:$0xff] %v12024_v35 }
 0x5ea   : > { %13401 = vst [vmem:[#allocation160_spill] sm:$0xff] %v12028_v12 }
 0x5eb   : > { %13402 = vst [vmem:[#allocation72_spill] sm:$0xff] %v12030_v21  ;;  %4039 = vmatmul.bf16.gmra.mxu0 %v8977_v46  ;;  %4559 = vmatmul.bf16.gmra.mxu1 %v9081_v53  ;;  %v8978_v21 = vld [vmem:[%s10036_s7 + $0x2e8] sm:$0xff] }
 0x5ec   : > { %5079 = vmatmul.bf16.gmra.mxu2 %v9185_v57  ;;  %5599 = vmatmul.bf16.gmra.mxu3 %v9289_v61  ;;  %v9186_v57 = vld [vmem:[%s10036_s7 + $0x968] sm:$0xff] }
 0x5ed   : > { %v9290_v61 = vld [vmem:[%s10036_s7 + $0xca8] sm:$0xff] }
 0x5ef   : > { %v12034_v56 = vpop.f32.mrf.mxu2  ;;  %v12036_v9 = vpop.f32.mrf.mxu3 }
 0x5f0   : > { %13403 = vst [vmem:[#allocation161_spill] sm:$0xff] %v12034_v56  ;;  %v12038_v35 = vpop.f32.mrf.mxu0  ;;  %v12040_v27 = vpop.f32.mrf.mxu1 }
 0x5f1   : > { %13404 = vst [vmem:[#allocation73_spill] sm:$0xff] %v12036_v9 }
 0x5f2   : > { %13405 = vst [vmem:[#allocation246_spill] sm:$0xff] %v12038_v35  ;;  %v9083_v35 = vld [vmem:[%s10036_s7 + $0x630] sm:$0xff] }
 0x5f3   : > { %13406 = vst [vmem:[#allocation247_spill] sm:$0xff] %v12040_v27 }
 0x5f7   : > { %v12042_v2 = vpop.f32.mrf.mxu2  ;;  %v12044_v12 = vpop.f32.mrf.mxu3 }
 0x5f8   : > { %13407 = vst [vmem:[#allocation248_spill] sm:$0xff] %v12042_v2  ;;  %v12048_v46 = vpop.f32.mrf.mxu0  ;;  %v12050_v53 = vpop.f32.mrf.mxu1 }
 0x5f9   : > { %13408 = vst [vmem:[#allocation249_spill] sm:$0xff] %v12044_v12 }
 0x5fa   : > { %13409 = vst [vmem:[#allocation162_spill] sm:$0xff] %v12048_v46 }
 0x5fb   : > { %13410 = vst [vmem:[#allocation74_spill] sm:$0xff] %v12050_v53  ;;  %4044 = vmatmul.bf16.gmra.mxu0 %v8978_v21  ;;  %4564 = vmatmul.bf16.gmra.mxu1 %v9082_v38  ;;  %v8979_v53 = vld [vmem:[%s10036_s7 + $0x2f0] sm:$0xff] }
 0x5fc   : > { %5084 = vmatmul.bf16.gmra.mxu2 %v9186_v57  ;;  %5604 = vmatmul.bf16.gmra.mxu3 %v9290_v61  ;;  %v9187_v57 = vld [vmem:[%s10036_s7 + $0x970] sm:$0xff] }
 0x5fd   : > { %v9291_v61 = vld [vmem:[%s10036_s7 + $0xcb0] sm:$0xff] }
 0x5ff   : > { %v12054_v9 = vpop.f32.mrf.mxu2  ;;  %v12056_v2 = vpop.f32.mrf.mxu3 }
 0x600   : > { %13411 = vst [vmem:[#allocation163_spill] sm:$0xff] %v12054_v9  ;;  %v12058_v12 = vpop.f32.mrf.mxu0  ;;  %v12060_v56 = vpop.f32.mrf.mxu1 }
 0x601   : > { %13412 = vst [vmem:[#allocation75_spill] sm:$0xff] %v12056_v2 }
 0x602   : > { %13413 = vst [vmem:[#allocation166_spill] sm:$0xff] %v12058_v12  ;;  %v9084_v12 = vld [vmem:[%s10036_s7 + $0x638] sm:$0xff] }
 0x603   : > { %13414 = vst [vmem:[#allocation78_spill] sm:$0xff] %v12060_v56 }
 0x607   : > { %v12062_v27 = vpop.f32.mrf.mxu2  ;;  %v12064_v46 = vpop.f32.mrf.mxu3 }
 0x608   : > { %13415 = vst [vmem:[#allocation167_spill] sm:$0xff] %v12062_v27  ;;  %v12068_v21 = vpop.f32.mrf.mxu0  ;;  %v12070_v38 = vpop.f32.mrf.mxu1 }
 0x609   : > { %13416 = vst [vmem:[#allocation79_spill] sm:$0xff] %v12064_v46 }
 0x60a   : > { %13417 = vst [vmem:[#allocation252_spill] sm:$0xff] %v12068_v21 }
 0x60b   : > { %13418 = vst [vmem:[#allocation253_spill] sm:$0xff] %v12070_v38  ;;  %4049 = vmatmul.bf16.gmra.mxu0 %v8979_v53  ;;  %4569 = vmatmul.bf16.gmra.mxu1 %v9083_v35  ;;  %v8980_v38 = vld [vmem:[%s10036_s7 + $0x2f8] sm:$0xff] }
 0x60c   : > { %5089 = vmatmul.bf16.gmra.mxu2 %v9187_v57  ;;  %5609 = vmatmul.bf16.gmra.mxu3 %v9291_v61  ;;  %v9188_v57 = vld [vmem:[%s10036_s7 + $0x978] sm:$0xff] }
 0x60d   : > { %v9292_v61 = vld [vmem:[%s10036_s7 + $0xcb8] sm:$0xff] }
 0x60f   : > { %v12074_v2 = vpop.f32.mrf.mxu2  ;;  %v12076_v27 = vpop.f32.mrf.mxu3 }
 0x610   : > { %13419 = vst [vmem:[#allocation250_spill] sm:$0xff] %v12074_v2  ;;  %v12078_v46 = vpop.f32.mrf.mxu0  ;;  %v12080_v9 = vpop.f32.mrf.mxu1 }
 0x611   : > { %13420 = vst [vmem:[#allocation251_spill] sm:$0xff] %v12076_v27 }
 0x612   : > { %13421 = vst [vmem:[#allocation164_spill] sm:$0xff] %v12078_v46  ;;  %v9085_v46 = vld [vmem:[%s10036_s7 + $0x640] sm:$0xff] }
 0x613   : > { %13422 = vst [vmem:[#allocation76_spill] sm:$0xff] %v12080_v9 }
 0x617   : > { %v12082_v56 = vpop.f32.mrf.mxu2  ;;  %v12084_v21 = vpop.f32.mrf.mxu3 }
 0x618   : > { %13423 = vst [vmem:[#allocation165_spill] sm:$0xff] %v12082_v56  ;;  %v12088_v53 = vpop.f32.mrf.mxu0  ;;  %v12090_v35 = vpop.f32.mrf.mxu1 }
 0x619   : > { %13424 = vst [vmem:[#allocation77_spill] sm:$0xff] %v12084_v21 }
 0x61a   : > { %13425 = vst [vmem:[#allocation168_spill] sm:$0xff] %v12088_v53 }
 0x61b   : > { %13426 = vst [vmem:[#allocation80_spill] sm:$0xff] %v12090_v35  ;;  %4054 = vmatmul.bf16.gmra.mxu0 %v8980_v38  ;;  %4574 = vmatmul.bf16.gmra.mxu1 %v9084_v12  ;;  %v8981_v35 = vld [vmem:[%s10036_s7 + $0x300] sm:$0xff] }
 0x61c   : > { %5094 = vmatmul.bf16.gmra.mxu2 %v9188_v57  ;;  %5614 = vmatmul.bf16.gmra.mxu3 %v9292_v61  ;;  %v9189_v57 = vld [vmem:[%s10036_s7 + $0x980] sm:$0xff] }
 0x61d   : > { %v9293_v61 = vld [vmem:[%s10036_s7 + $0xcc0] sm:$0xff] }
 0x61f   : > { %v12094_v27 = vpop.f32.mrf.mxu2  ;;  %v12096_v56 = vpop.f32.mrf.mxu3 }
 0x620   : > { %13427 = vst [vmem:[#allocation169_spill] sm:$0xff] %v12094_v27  ;;  %v12098_v21 = vpop.f32.mrf.mxu0  ;;  %v12100_v2 = vpop.f32.mrf.mxu1 }
 0x621   : > { %13428 = vst [vmem:[#allocation81_spill] sm:$0xff] %v12096_v56 }
 0x622   : > { %13429 = vst [vmem:[#allocation254_spill] sm:$0xff] %v12098_v21  ;;  %v9086_v21 = vld [vmem:[%s10036_s7 + $0x648] sm:$0xff] }
 0x623   : > { %13430 = vst [vmem:[#allocation255_spill] sm:$0xff] %v12100_v2 }
 0x627   : > { %v12102_v9 = vpop.f32.mrf.mxu2  ;;  %v12104_v53 = vpop.f32.mrf.mxu3 }
 0x628   : > { %13431 = vst [vmem:[#allocation256_spill] sm:$0xff] %v12102_v9  ;;  %v12108_v38 = vpop.f32.mrf.mxu0  ;;  %v12110_v12 = vpop.f32.mrf.mxu1 }
 0x629   : > { %13432 = vst [vmem:[#allocation257_spill] sm:$0xff] %v12104_v53 }
 0x62a   : > { %13433 = vst [vmem:[#allocation170_spill] sm:$0xff] %v12108_v38 }
 0x62b   : > { %13434 = vst [vmem:[#allocation82_spill] sm:$0xff] %v12110_v12  ;;  %4059 = vmatmul.bf16.gmra.mxu0 %v8981_v35  ;;  %4579 = vmatmul.bf16.gmra.mxu1 %v9085_v46  ;;  %v8982_v12 = vld [vmem:[%s10036_s7 + $0x308] sm:$0xff] }
 0x62c   : > { %5099 = vmatmul.bf16.gmra.mxu2 %v9189_v57  ;;  %5619 = vmatmul.bf16.gmra.mxu3 %v9293_v61  ;;  %v9190_v57 = vld [vmem:[%s10036_s7 + $0x988] sm:$0xff] }
 0x62d   : > { %v9294_v61 = vld [vmem:[%s10036_s7 + $0xcc8] sm:$0xff] }
 0x62f   : > { %v12114_v56 = vpop.f32.mrf.mxu2  ;;  %v12116_v9 = vpop.f32.mrf.mxu3 }
 0x630   : > { %13435 = vst [vmem:[#allocation171_spill] sm:$0xff] %v12114_v56  ;;  %v12118_v53 = vpop.f32.mrf.mxu0  ;;  %v12120_v27 = vpop.f32.mrf.mxu1 }
 0x631   : > { %13436 = vst [vmem:[#allocation83_spill] sm:$0xff] %v12116_v9 }
 0x632   : > { %13437 = vst [vmem:[#allocation174_spill] sm:$0xff] %v12118_v53  ;;  %v9087_v53 = vld [vmem:[%s10036_s7 + $0x650] sm:$0xff] }
 0x633   : > { %13438 = vst [vmem:[#allocation86_spill] sm:$0xff] %v12120_v27 }
 0x637   : > { %v12122_v2 = vpop.f32.mrf.mxu2  ;;  %v12124_v38 = vpop.f32.mrf.mxu3 }
 0x638   : > { %13439 = vst [vmem:[#allocation175_spill] sm:$0xff] %v12122_v2  ;;  %v12128_v35 = vpop.f32.mrf.mxu0  ;;  %v12130_v46 = vpop.f32.mrf.mxu1 }
 0x639   : > { %13440 = vst [vmem:[#allocation87_spill] sm:$0xff] %v12124_v38 }
 0x63a   : > { %13441 = vst [vmem:[#allocation260_spill] sm:$0xff] %v12128_v35 }
 0x63b   : > { %13442 = vst [vmem:[#allocation258_spill] sm:$0xff] %v12130_v46  ;;  %4064 = vmatmul.bf16.gmra.mxu0 %v8982_v12  ;;  %4584 = vmatmul.bf16.gmra.mxu1 %v9086_v21  ;;  %v8983_v46 = vld [vmem:[%s10036_s7 + $0x310] sm:$0xff] }
 0x63c   : > { %5104 = vmatmul.bf16.gmra.mxu2 %v9190_v57  ;;  %5624 = vmatmul.bf16.gmra.mxu3 %v9294_v61  ;;  %v9191_v57 = vld [vmem:[%s10036_s7 + $0x990] sm:$0xff] }
 0x63d   : > { %v9295_v61 = vld [vmem:[%s10036_s7 + $0xcd0] sm:$0xff] }
 0x63f   : > { %v12134_v9 = vpop.f32.mrf.mxu2  ;;  %v12136_v2 = vpop.f32.mrf.mxu3 }
 0x640   : > { %13443 = vst [vmem:[#allocation259_spill] sm:$0xff] %v12134_v9  ;;  %v12138_v38 = vpop.f32.mrf.mxu0  ;;  %v12140_v56 = vpop.f32.mrf.mxu1 }
 0x641   : > { %13444 = vst [vmem:[#allocation172_spill] sm:$0xff] %v12136_v2 }
 0x642   : > { %13445 = vst [vmem:[#allocation84_spill] sm:$0xff] %v12138_v38  ;;  %v9088_v38 = vld [vmem:[%s10036_s7 + $0x658] sm:$0xff] }
 0x643   : > { %13446 = vst [vmem:[#allocation173_spill] sm:$0xff] %v12140_v56 }
 0x647   : > { %v12142_v27 = vpop.f32.mrf.mxu2  ;;  %v12144_v35 = vpop.f32.mrf.mxu3 }
 0x648   : > { %13447 = vst [vmem:[#allocation85_spill] sm:$0xff] %v12142_v27  ;;  %v12148_v12 = vpop.f32.mrf.mxu0  ;;  %v12150_v21 = vpop.f32.mrf.mxu1 }
 0x649   : > { %13448 = vst [vmem:[#allocation176_spill] sm:$0xff] %v12144_v35 }
 0x64a   : > { %13449 = vst [vmem:[#allocation88_spill] sm:$0xff] %v12148_v12 }
 0x64b   : > { %13450 = vst [vmem:[#allocation177_spill] sm:$0xff] %v12150_v21  ;;  %4069 = vmatmul.bf16.gmra.mxu0 %v8983_v46  ;;  %4589 = vmatmul.bf16.gmra.mxu1 %v9087_v53  ;;  %v8984_v21 = vld [vmem:[%s10036_s7 + $0x318] sm:$0xff] }
 0x64c   : > { %5109 = vmatmul.bf16.gmra.mxu2 %v9191_v57  ;;  %5629 = vmatmul.bf16.gmra.mxu3 %v9295_v61  ;;  %v9192_v46 = vld [vmem:[%s10036_s7 + $0x998] sm:$0xff] }
 0x64d   : > { %v9296_v53 = vld [vmem:[%s10036_s7 + $0xcd8] sm:$0xff] }
 0x64f   : > { %v12154_v2 = vpop.f32.mrf.mxu2  ;;  %v12156_v27 = vpop.f32.mrf.mxu3 }
 0x650   : > { %13451 = vst [vmem:[#allocation89_spill] sm:$0xff] %v12154_v2  ;;  %v12158_v35 = vpop.f32.mrf.mxu0  ;;  %v12160_v9 = vpop.f32.mrf.mxu1 }
 0x651   : > { %13452 = vst [vmem:[#allocation261_spill] sm:$0xff] %v12156_v27  ;;  %v5686_v27 = vmax.f32 %v11380_v40, %v11648_v15 }
 0x652   : > { %13453 = vst [vmem:[#allocation262_spill] sm:$0xff] %v12158_v35 }
 0x653   : > { %13454 = vst [vmem:[#allocation263_spill] sm:$0xff] %v12160_v9 }
 0x657   : > { %v12162_v56 = vpop.f32.mrf.mxu2  ;;  %v12164_v12 = vpop.f32.mrf.mxu3 }
 0x658   : > { %13455 = vst [vmem:[#allocation264_spill] sm:$0xff] %v12162_v56  ;;  %v4035_v11 = vpop.f32.mrf.mxu0  ;;  %v4555_v51 = vpop.f32.mrf.mxu1 }
 0x659   : > { %13456 = vst [vmem:[#allocation265_spill] sm:$0xff] %v12164_v12  ;;  %v5894_v57 = vmax.f32 %v11908_v3, %v4035_v11  ;;  %v5946_v61 = vmax.f32 %v11910_v5, %v4555_v51  ;;  %v5738_v12 = vmax.f32 %v11382_v62, %v11650_v23  ;;  %v5687_v11 = vmax.f32 %v11396_v49, %v11658_v10 }
 0x65a   : > { %v5739_v51 = vmax.f32 %v11398_v26, %v11660_v25 }
 0x65b   : > { %4074 = vmatmul.bf16.gmra.mxu0 %v8984_v21  ;;  %4594 = vmatmul.bf16.gmra.mxu1 %v9088_v38  ;;  %v6102_v56 = vmax.f32 %v5686_v27, %v5894_v57  ;;  %v6154_v2 = vmax.f32 %v5738_v12, %v5946_v61  ;;  %v12187_v27 = vld [vmem:[%s12669_s2] ss:$0 sm:$0xff] }
 0x65c   : > { %5114 = vmatmul.bf16.gmra.mxu2 %v9192_v46  ;;  %5634 = vmatmul.bf16.gmra.mxu3 %v9296_v53  ;;  %v9193_v53 = vld [vmem:[%s10036_s7 + $0x9a0] sm:$0xff] }
 0x65d   : > { %v6314_v15 = vadd.f32 %v12187_v27, %v6102_v56  ;;  %v6366_v49 = vadd.f32 %v12187_v27, %v6154_v2  ;;  %v9297_v57 = vld [vmem:[%s10036_s7 + $0xce0] sm:$0xff] }
 0x65f   : > { %v5075_v9 = vpop.f32.mrf.mxu2  ;;  %v5595_v35 = vpop.f32.mrf.mxu3  ;;  %v6522_v56 = vmax.f32 %v6314_v15, 0.0 }
 0x660   : > { %v4037_v13 = vpop.f32.mrf.mxu0  ;;  %v4557_v58 = vpop.f32.mrf.mxu1  ;;  %v5998_v40 = vmax.f32 %v11914_v18, %v5075_v9  ;;  %v6050_v62 = vmax.f32 %v11916_v43, %v5595_v35  ;;  %v5842_v18 = vmax.f32 %v11394_v7, %v11656_v63  ;;  %v8985_v35 = vld [vmem:[%s10036_s7 + $0x320] sm:$0xff]  ;;  %v5791_v7 = vmax.f32 %v11402_v19, %v11662_v28 }
 0x661   : > { %v5895_v3 = vmax.f32 %v11918_v44, %v4037_v13  ;;  %v5947_v5 = vmax.f32 %v11920_v16, %v4557_v58  ;;  %v5790_v16 = vmax.f32 %v11392_v52, %v11654_v4  ;;  %v6574_v44 = vmax.f32 %v6366_v49, 0.0  ;;  %v9089_v52 = vld [vmem:[%s10036_s7 + $0x660] sm:$0xff] }
 0x662   : > { %v6258_v23 = vmax.f32 %v5842_v18, %v6050_v62  ;;  %v5843_v4 = vmax.f32 %v11404_v22, %v11664_v59 }
 0x663   : > { %v6103_v26 = vmax.f32 %v5687_v11, %v5895_v3  ;;  %v6155_v25 = vmax.f32 %v5739_v51, %v5947_v5  ;;  %v6206_v10 = vmax.f32 %v5790_v16, %v5998_v40  ;;  %v5740_v40 = vmax.f32 %v11410_v54, %v11670_v24 }
 0x664   : > { %v6470_v3 = vadd.f32 %v12187_v27, %v6258_v23  ;;  %v5741_v54 = vmax.f32 %v11420_v0, %v11680_v55  ;;  %v5792_v0 = vmax.f32 %v11414_v37, %v11674_v14  ;;  %v9090_v37 = vld [vmem:[%s10036_s7 + $0x668] sm:$0xff] }
 0x665   : > { %v6315_v43 = vadd.f32 %v12187_v27, %v6103_v26  ;;  %v6367_v9 = vadd.f32 %v12187_v27, %v6155_v25  ;;  %v6418_v51 = vadd.f32 %v12187_v27, %v6206_v10 }
 0x667   : > { %v6523_v2 = vmax.f32 %v6315_v43, 0.0  ;;  %v6575_v58 = vmax.f32 %v6367_v9, 0.0  ;;  %v5077_v13 = vpop.f32.mrf.mxu2  ;;  %v5597_v38 = vpop.f32.mrf.mxu3  ;;  %v6626_v62 = vmax.f32 %v6418_v51, 0.0 }
 0x668   : > { %v5999_v63 = vmax.f32 %v11922_v34, %v5077_v13  ;;  %v6051_v12 = vmax.f32 %v11924_v42, %v5597_v38  ;;  %v4040_v21 = vpop.f32.mrf.mxu0  ;;  %v4560_v46 = vpop.f32.mrf.mxu1  ;;  %v5688_v42 = vmax.f32 %v11408_v39, %v11668_v41  ;;  %v5689_v39 = vmax.f32 %v11418_v32, %v11678_v36 }
 0x669   : > { %v9377_v61 = vpack.c.bf16 %v6523_v2, %v6522_v56  ;;  %v9507_v11 = vpack.c.bf16 %v6575_v58, %v6574_v44  ;;  %v5896_v22 = vmax.f32 %v11928_v50, %v4040_v21  ;;  %v5948_v34 = vmax.f32 %v11930_v45, %v4560_v46  ;;  %v9194_v46 = vld [vmem:[%s10036_s7 + $0x9a8] sm:$0xff] }
 0x66a   : > { %v6207_v5 = vmax.f32 %v5791_v7, %v5999_v63  ;;  %v6259_v19 = vmax.f32 %v5843_v4, %v6051_v12  ;;  %v6678_v50 = vmax.f32 %v6470_v3, 0.0  ;;  %v8986_v4 = vld [vmem:[%s10036_s7 + $0x328] sm:$0xff] }
 0x66b   : > { %9841 = vst [vmem:[%s10891_s14 + $0x68] sm:$0xff] %v9377_v61   ;;  %4079 = vmatmul.bf16.gmra.mxu0 %v8985_v35  ;;  %4599 = vmatmul.bf16.gmra.mxu1 %v9089_v52  ;;  %v6104_v49 = vmax.f32 %v5688_v42, %v5896_v22  ;;  %v6156_v26 = vmax.f32 %v5740_v40, %v5948_v34  ;;  %v13460_v22 = vld [vmem:[#allocation90_spill] sm:$0xff] }
 0x66c   : > { %9867 = vst [vmem:[%s10891_s14 + $0x138] sm:$0xff] %v9507_v11   ;;  %v6419_v28 = vadd.f32 %v12187_v27, %v6207_v5  ;;  %v6471_v59 = vadd.f32 %v12187_v27, %v6259_v19  ;;  %5119 = vmatmul.bf16.gmra.mxu2 %v9193_v53  ;;  %5639 = vmatmul.bf16.gmra.mxu3 %v9297_v57  ;;  %v9298_v53 = vld [vmem:[%s10036_s7 + $0xce8] sm:$0xff]  ;;  %v13459_v19 = vld [vmem:[#allocation120_spill] sm:$0xff] }
 0x66d   : > { %v6316_v44 = vadd.f32 %v12187_v27, %v6104_v49  ;;  %v6368_v2 = vadd.f32 %v12187_v27, %v6156_v26  ;;  %v5690_v34 = vmax.f32 %v13460_v22, %v13459_v19 }
 0x66e   : > { %v6627_v15 = vmax.f32 %v6419_v28, 0.0  ;;  %v6679_v45 = vmax.f32 %v6471_v59, 0.0  ;;  %v13461_v28 = vld [vmem:[#allocation32_spill] sm:$0xff]  ;;  %v13462_v59 = vld [vmem:[#allocation2_spill] sm:$0xff] }
 0x66f   : > { %v5080_v25 = vpop.f32.mrf.mxu2  ;;  %v5600_v16 = vpop.f32.mrf.mxu3  ;;  %v6524_v58 = vmax.f32 %v6316_v44, 0.0  ;;  %v6576_v13 = vmax.f32 %v6368_v2, 0.0  ;;  %v5742_v42 = vmax.f32 %v13462_v59, %v13461_v28  ;;  %v13468_v2 = vld [vmem:[#allocation60_spill] sm:$0xff] }
 0x670   : > { %v9637_v18 = vpack.c.bf16 %v6627_v15, %v6626_v62  ;;  %v9767_v43 = vpack.c.bf16 %v6679_v45, %v6678_v50  ;;  %v4042_v9 = vpop.f32.mrf.mxu0  ;;  %v4562_v10 = vpop.f32.mrf.mxu1  ;;  %v6000_v23 = vmax.f32 %v11934_v20, %v5080_v25  ;;  %v6052_v56 = vmax.f32 %v11936_v6, %v5600_v16  ;;  %v9195_v28 = vld [vmem:[%s10036_s7 + $0x9b0] sm:$0xff] }
 0x671   : > { %v5897_v41 = vmax.f32 %v11938_v17, %v4042_v9  ;;  %v5949_v24 = vmax.f32 %v11940_v31, %v4562_v10  ;;  %v5844_v17 = vmax.f32 %v11416_v29, %v11676_v30  ;;  %v5793_v29 = vmax.f32 %v11422_v1, %v11682_v48  ;;  %v13457_v48 = vld [vmem:[#allocation236_spill] sm:$0xff]  ;;  %v13463_v10 = vld [vmem:[#allocation206_spill] sm:$0xff] }
 0x672   : > { %9893 = vst [vmem:[%s10891_s14 + $0x208] sm:$0xff] %v9637_v18   ;;  %v6208_v55 = vmax.f32 %v5792_v0, %v6000_v23  ;;  %v5845_v30 = vmax.f32 %v11424_v60, %v11684_v33  ;;  %v13458_v33 = vld [vmem:[#allocation237_spill] sm:$0xff]  ;;  %v9299_v59 = vld [vmem:[%s10036_s7 + $0xcf0] sm:$0xff] }
 0x673   : > { %9919 = vst [vmem:[%s10891_s14 + $0x2d8] sm:$0xff] %v9767_v43   ;;  %v6105_v32 = vmax.f32 %v5689_v39, %v5897_v41  ;;  %v6157_v36 = vmax.f32 %v5741_v54, %v5949_v24  ;;  %v6260_v6 = vmax.f32 %v5844_v17, %v6052_v56  ;;  %v13464_v39 = vld [vmem:[#allocation94_spill] sm:$0xff]  ;;  %v13465_v41 = vld [vmem:[#allocation207_spill] sm:$0xff]  ;;  %v13467_v56 = vld [vmem:[#allocation148_spill] sm:$0xff] }
 0x674   : > { %v6420_v11 = vadd.f32 %v12187_v27, %v6208_v55  ;;  %v5691_v54 = vmax.f32 %v13464_v39, %v13463_v10  ;;  %v13466_v24 = vld [vmem:[#allocation6_spill] sm:$0xff]  ;;  %v13470_v17 = vld [vmem:[#allocation235_spill] sm:$0xff]  ;;  %v13484_v10 = vld [vmem:[#allocation180_spill] sm:$0xff] }
 0x675   : > { %v6317_v31 = vadd.f32 %v12187_v27, %v6105_v32  ;;  %v6369_v20 = vadd.f32 %v12187_v27, %v6157_v36  ;;  %v6472_v51 = vadd.f32 %v12187_v27, %v6260_v6  ;;  %v5743_v23 = vmax.f32 %v13466_v24, %v13465_v41  ;;  %v13469_v36 = vld [vmem:[#allocation234_spill] sm:$0xff]  ;;  %v13486_v41 = vld [vmem:[#allocation181_spill] sm:$0xff] }
 0x676   : > { %v6628_v40 = vmax.f32 %v6420_v11, 0.0  ;;  %v9091_v11 = vld [vmem:[%s10036_s7 + $0x670] sm:$0xff] }
 0x677   : > { %v6525_v38 = vmax.f32 %v6317_v31, 0.0  ;;  %v6577_v35 = vmax.f32 %v6369_v20, 0.0  ;;  %v5082_v52 = vpop.f32.mrf.mxu2  ;;  %v5602_v7 = vpop.f32.mrf.mxu3  ;;  %v6680_v62 = vmax.f32 %v6472_v51, 0.0  ;;  %v13475_v51 = vld [vmem:[#allocation208_spill] sm:$0xff] }
 0x678   : > { %v6001_v14 = vmax.f32 %v11942_v47, %v5082_v52  ;;  %v6053_v63 = vmax.f32 %v11944_v8, %v5602_v7  ;;  %v4045_v12 = vpop.f32.mrf.mxu0  ;;  %v4565_v21 = vpop.f32.mrf.mxu1  ;;  %v13473_v52 = vld [vmem:[#allocation33_spill] sm:$0xff]  ;;  %v13474_v7 = vld [vmem:[#allocation3_spill] sm:$0xff] }
 0x679   : > { %v9382_v57 = vpack.c.bf16 %v6525_v38, %v6524_v58  ;;  %v9512_v61 = vpack.c.bf16 %v6577_v35, %v6576_v13  ;;  %v5898_v60 = vmax.f32 %v13457_v48, %v4045_v12  ;;  %v5950_v47 = vmax.f32 %v13458_v33, %v4565_v21  ;;  %v13471_v13 = vld [vmem:[#allocation121_spill] sm:$0xff]  ;;  %v13472_v38 = vld [vmem:[#allocation91_spill] sm:$0xff] }
 0x67a   : > { %v6209_v3 = vmax.f32 %v5793_v29, %v6001_v14  ;;  %v6261_v1 = vmax.f32 %v5845_v30, %v6053_v63  ;;  %v5794_v35 = vmax.f32 %v13472_v38, %v13471_v13  ;;  %v13477_v48 = vld [vmem:[#allocation209_spill] sm:$0xff]  ;;  %v13488_v13 = vld [vmem:[#allocation92_spill] sm:$0xff] }
 0x67b   : > { %9842 = vst [vmem:[%s10891_s14 + $0x70] sm:$0xff] %v9382_v57   ;;  %4084 = vmatmul.bf16.gmra.mxu0 %v8986_v4  ;;  %4604 = vmatmul.bf16.gmra.mxu1 %v9090_v37  ;;  %v6106_v45 = vmax.f32 %v5690_v34, %v5898_v60  ;;  %v6158_v49 = vmax.f32 %v5742_v42, %v5950_v47  ;;  %v13478_v60 = vld [vmem:[#allocation7_spill] sm:$0xff]  ;;  %v13479_v47 = vld [vmem:[#allocation149_spill] sm:$0xff] }
 0x67c   : > { %9868 = vst [vmem:[%s10891_s14 + $0x140] sm:$0xff] %v9512_v61   ;;  %v6421_v8 = vadd.f32 %v12187_v27, %v6209_v3  ;;  %v6473_v5 = vadd.f32 %v12187_v27, %v6261_v1  ;;  %5124 = vmatmul.bf16.gmra.mxu2 %v9194_v46  ;;  %5644 = vmatmul.bf16.gmra.mxu3 %v9298_v53  ;;  %v8987_v61 = vld [vmem:[%s10036_s7 + $0x330] sm:$0xff]  ;;  %v13476_v3 = vld [vmem:[#allocation95_spill] sm:$0xff] }
 0x67d   : > { %v6318_v20 = vadd.f32 %v12187_v27, %v6106_v45  ;;  %v6370_v55 = vadd.f32 %v12187_v27, %v6158_v49  ;;  %v5846_v4 = vmax.f32 %v13474_v7, %v13473_v52  ;;  %v5795_v1 = vmax.f32 %v13476_v3, %v13475_v51  ;;  %v13481_v49 = vld [vmem:[#allocation152_spill] sm:$0xff]  ;;  %v13496_v51 = vld [vmem:[#allocation178_spill] sm:$0xff] }
 0x67e   : > { %v6629_v50 = vmax.f32 %v6421_v8, 0.0  ;;  %v6681_v15 = vmax.f32 %v6473_v5, 0.0  ;;  %v5847_v33 = vmax.f32 %v13478_v60, %v13477_v48  ;;  %v13480_v5 = vld [vmem:[#allocation61_spill] sm:$0xff]  ;;  %v13490_v52 = vld [vmem:[#allocation4_spill] sm:$0xff]  ;;  %v13498_v48 = vld [vmem:[#allocation179_spill] sm:$0xff] }
 0x67f   : > { %v5085_v26 = vpop.f32.mrf.mxu2  ;;  %v5605_v25 = vpop.f32.mrf.mxu3  ;;  %v6526_v63 = vmax.f32 %v6318_v20, 0.0  ;;  %v6578_v12 = vmax.f32 %v6370_v55, 0.0 }
 0x680   : > { %v9642_v16 = vpack.c.bf16 %v6629_v50, %v6628_v40  ;;  %v9772_v18 = vpack.c.bf16 %v6681_v15, %v6680_v62  ;;  %v4047_v43 = vpop.f32.mrf.mxu0  ;;  %v4567_v9 = vpop.f32.mrf.mxu1  ;;  %v6002_v0 = vmax.f32 %v13469_v36, %v5085_v26  ;;  %v6054_v31 = vmax.f32 %v13470_v17, %v5605_v25  ;;  %v13482_v25 = vld [vmem:[#allocation64_spill] sm:$0xff] }
 0x681   : > { %v5899_v44 = vmax.f32 %v13467_v56, %v4047_v43  ;;  %v5951_v32 = vmax.f32 %v13468_v2, %v4567_v9  ;;  %v13483_v9 = vld [vmem:[#allocation122_spill] sm:$0xff] }
 0x682   : > { %9894 = vst [vmem:[%s10891_s14 + $0x210] sm:$0xff] %v9642_v16   ;;  %v6210_v30 = vmax.f32 %v5794_v35, %v6002_v0  ;;  %v6262_v14 = vmax.f32 %v5846_v4, %v6054_v31  ;;  %v5692_v39 = vmax.f32 %v13484_v10, %v13483_v9  ;;  %v13489_v35 = vld [vmem:[#allocation38_spill] sm:$0xff] }
 0x683   : > { %9920 = vst [vmem:[%s10891_s14 + $0x2e0] sm:$0xff] %v9772_v18   ;;  %v6107_v6 = vmax.f32 %v5691_v54, %v5899_v44  ;;  %v6159_v58 = vmax.f32 %v5743_v23, %v5951_v32  ;;  %v13485_v54 = vld [vmem:[#allocation34_spill] sm:$0xff]  ;;  %v5745_v7 = vmax.f32 %v13490_v52, %v13489_v35  ;;  %v13510_v35 = vld [vmem:[#allocation8_spill] sm:$0xff] }
 0x684   : > { %v6422_v62 = vadd.f32 %v12187_v27, %v6210_v30  ;;  %v6474_v50 = vadd.f32 %v12187_v27, %v6262_v14  ;;  %v5744_v24 = vmax.f32 %v13486_v41, %v13485_v54  ;;  %v13491_v4 = vld [vmem:[#allocation238_spill] sm:$0xff]  ;;  %v13493_v14 = vld [vmem:[#allocation153_spill] sm:$0xff] }
 0x685   : > { %v6319_v37 = vadd.f32 %v12187_v27, %v6107_v6  ;;  %v6371_v29 = vadd.f32 %v12187_v27, %v6159_v58  ;;  %v13487_v58 = vld [vmem:[#allocation126_spill] sm:$0xff]  ;;  %v9196_v54 = vld [vmem:[%s10036_s7 + $0x9b8] sm:$0xff] }
 0x686   : > { %v6630_v23 = vmax.f32 %v6422_v62, 0.0  ;;  %v6682_v56 = vmax.f32 %v6474_v50, 0.0  ;;  %v5693_v38 = vmax.f32 %v13488_v13, %v13487_v58  ;;  %v9092_v62 = vld [vmem:[%s10036_s7 + $0x678] sm:$0xff]  ;;  %v13499_v50 = vld [vmem:[#allocation127_spill] sm:$0xff]  ;;  %v13508_v58 = vld [vmem:[#allocation96_spill] sm:$0xff] }
 0x687   : > { %v6527_v21 = vmax.f32 %v6319_v37, 0.0  ;;  %v6579_v46 = vmax.f32 %v6371_v29, 0.0  ;;  %v5087_v53 = vpop.f32.mrf.mxu2  ;;  %v5607_v57 = vpop.f32.mrf.mxu3  ;;  %v13492_v29 = vld [vmem:[#allocation239_spill] sm:$0xff]  ;;  %v9300_v41 = vld [vmem:[%s10036_s7 + $0xcf8] sm:$0xff] }
 0x688   : > { %v6003_v8 = vmax.f32 %v13479_v47, %v5087_v53  ;;  %v6055_v19 = vmax.f32 %v13480_v5, %v5607_v57  ;;  %v4050_v22 = vpop.f32.mrf.mxu0  ;;  %v4570_v34 = vpop.f32.mrf.mxu1 }
 0x689   : > { %v9387_v42 = vpack.c.bf16 %v6527_v21, %v6526_v63  ;;  %v9517_v40 = vpack.c.bf16 %v6579_v46, %v6578_v12  ;;  %v5900_v26 = vmax.f32 %v13481_v49, %v4050_v22  ;;  %v5952_v16 = vmax.f32 %v13482_v25, %v4570_v34  ;;  %v13494_v12 = vld [vmem:[#allocation65_spill] sm:$0xff]  ;;  %v13501_v49 = vld [vmem:[#allocation39_spill] sm:$0xff] }
 0x68a   : > { %v6211_v15 = vmax.f32 %v5795_v1, %v6003_v8  ;;  %v6263_v45 = vmax.f32 %v5847_v33, %v6055_v19  ;;  %v13497_v1 = vld [vmem:[#allocation35_spill] sm:$0xff] }
 0x68b   : > { %9843 = vst [vmem:[%s10891_s14 + $0x78] sm:$0xff] %v9387_v42   ;;  %4089 = vmatmul.bf16.gmra.mxu0 %v8987_v61  ;;  %4609 = vmatmul.bf16.gmra.mxu1 %v9091_v11  ;;  %v6108_v32 = vmax.f32 %v5692_v39, %v5900_v26  ;;  %v6160_v36 = vmax.f32 %v5744_v24, %v5952_v16  ;;  %v13495_v11 = vld [vmem:[#allocation123_spill] sm:$0xff]  ;;  %v13502_v26 = vld [vmem:[#allocation5_spill] sm:$0xff]  ;;  %v13503_v16 = vld [vmem:[#allocation240_spill] sm:$0xff] }
 0x68c   : > { %9869 = vst [vmem:[%s10891_s14 + $0x148] sm:$0xff] %v9517_v40   ;;  %v6423_v18 = vadd.f32 %v12187_v27, %v6211_v15  ;;  %v6475_v43 = vadd.f32 %v12187_v27, %v6263_v45  ;;  %5129 = vmatmul.bf16.gmra.mxu2 %v9195_v28  ;;  %5649 = vmatmul.bf16.gmra.mxu3 %v9299_v59  ;;  %v8988_v40 = vld [vmem:[%s10036_s7 + $0x338] sm:$0xff] }
 0x68d   : > { %v6320_v46 = vadd.f32 %v12187_v27, %v6108_v32  ;;  %v6372_v53 = vadd.f32 %v12187_v27, %v6160_v36  ;;  %v5796_v3 = vmax.f32 %v13496_v51, %v13495_v11  ;;  %v5848_v60 = vmax.f32 %v13498_v48, %v13497_v1  ;;  %v13500_v15 = vld [vmem:[#allocation93_spill] sm:$0xff]  ;;  %v13505_v36 = vld [vmem:[#allocation154_spill] sm:$0xff]  ;;  %v13514_v1 = vld [vmem:[#allocation183_spill] sm:$0xff] }
 0x68e   : > { %v6631_v44 = vmax.f32 %v6423_v18, 0.0  ;;  %v6683_v2 = vmax.f32 %v6475_v43, 0.0  ;;  %v5797_v45 = vmax.f32 %v13500_v15, %v13499_v50  ;;  %v5849_v25 = vmax.f32 %v13502_v26, %v13501_v49  ;;  %v13504_v43 = vld [vmem:[#allocation241_spill] sm:$0xff]  ;;  %v13512_v11 = vld [vmem:[#allocation182_spill] sm:$0xff] }
 0x68f   : > { %v5090_v0 = vpop.f32.mrf.mxu2  ;;  %v5610_v17 = vpop.f32.mrf.mxu3  ;;  %v6528_v19 = vmax.f32 %v6320_v46, 0.0  ;;  %v6580_v22 = vmax.f32 %v6372_v53, 0.0  ;;  %v13520_v50 = vld [vmem:[#allocation97_spill] sm:$0xff] }
 0x690   : > { %v9647_v31 = vpack.c.bf16 %v6631_v44, %v6630_v23  ;;  %v9777_v20 = vpack.c.bf16 %v6683_v2, %v6682_v56  ;;  %v4052_v55 = vpop.f32.mrf.mxu0  ;;  %v4572_v6 = vpop.f32.mrf.mxu1  ;;  %v6004_v63 = vmax.f32 %v13493_v14, %v5090_v0  ;;  %v6056_v21 = vmax.f32 %v13494_v12, %v5610_v17  ;;  %v13506_v17 = vld [vmem:[#allocation66_spill] sm:$0xff]  ;;  %v13522_v49 = vld [vmem:[#allocation9_spill] sm:$0xff] }
 0x691   : > { %v5901_v37 = vmax.f32 %v13491_v4, %v4052_v55  ;;  %v5953_v30 = vmax.f32 %v13492_v29, %v4572_v6  ;;  %v13507_v6 = vld [vmem:[#allocation212_spill] sm:$0xff] }
 0x692   : > { %9895 = vst [vmem:[%s10891_s14 + $0x218] sm:$0xff] %v9647_v31   ;;  %v6212_v8 = vmax.f32 %v5796_v3, %v6004_v63  ;;  %v6264_v5 = vmax.f32 %v5848_v60, %v6056_v21  ;;  %v5694_v13 = vmax.f32 %v13508_v58, %v13507_v6  ;;  %v13513_v3 = vld [vmem:[#allocation36_spill] sm:$0xff]  ;;  %v13515_v60 = vld [vmem:[#allocation158_spill] sm:$0xff] }
 0x693   : > { %9921 = vst [vmem:[%s10891_s14 + $0x2e8] sm:$0xff] %v9777_v20   ;;  %v6109_v57 = vmax.f32 %v5693_v38, %v5901_v37  ;;  %v6161_v61 = vmax.f32 %v5745_v7, %v5953_v30  ;;  %v13509_v38 = vld [vmem:[#allocation213_spill] sm:$0xff]  ;;  %v5747_v48 = vmax.f32 %v13514_v1, %v13513_v3 }
 0x694   : > { %v6424_v56 = vadd.f32 %v12187_v27, %v6212_v8  ;;  %v6476_v44 = vadd.f32 %v12187_v27, %v6264_v5  ;;  %v5746_v52 = vmax.f32 %v13510_v35, %v13509_v38  ;;  %v13517_v5 = vld [vmem:[#allocation155_spill] sm:$0xff] }
 0x695   : > { %v6321_v33 = vadd.f32 %v12187_v27, %v6109_v57  ;;  %v6373_v47 = vadd.f32 %v12187_v27, %v6161_v61  ;;  %v13511_v61 = vld [vmem:[#allocation124_spill] sm:$0xff] }
 0x696   : > { %v6632_v7 = vmax.f32 %v6424_v56, 0.0  ;;  %v6684_v4 = vmax.f32 %v6476_v44, 0.0  ;;  %v5695_v51 = vmax.f32 %v13512_v11, %v13511_v61  ;;  %v13524_v56 = vld [vmem:[#allocation184_spill] sm:$0xff] }
 0x697   : > { %v6529_v34 = vmax.f32 %v6321_v33, 0.0  ;;  %v6581_v28 = vmax.f32 %v6373_v47, 0.0  ;;  %v5092_v59 = vpop.f32.mrf.mxu2  ;;  %v5612_v42 = vpop.f32.mrf.mxu3  ;;  %v13516_v47 = vld [vmem:[#allocation70_spill] sm:$0xff] }
 0x698   : > { %v6005_v18 = vmax.f32 %v13503_v16, %v5092_v59  ;;  %v6057_v9 = vmax.f32 %v13504_v43, %v5612_v42  ;;  %v4055_v10 = vpop.f32.mrf.mxu0  ;;  %v4575_v39 = vpop.f32.mrf.mxu1 }
 0x699   : > { %v9392_v24 = vpack.c.bf16 %v6529_v34, %v6528_v19  ;;  %v9522_v23 = vpack.c.bf16 %v6581_v28, %v6580_v22  ;;  %v5902_v0 = vmax.f32 %v13505_v36, %v4055_v10  ;;  %v5954_v31 = vmax.f32 %v13506_v17, %v4575_v39  ;;  %v13518_v22 = vld [vmem:[#allocation67_spill] sm:$0xff] }
 0x69a   : > { %v6213_v2 = vmax.f32 %v5797_v45, %v6005_v18  ;;  %v6265_v32 = vmax.f32 %v5849_v25, %v6057_v9  ;;  %v13521_v45 = vld [vmem:[#allocation211_spill] sm:$0xff] }
 0x69b   : > { %9844 = vst [vmem:[%s10891_s14 + $0x80] sm:$0xff] %v9392_v24   ;;  %4094 = vmatmul.bf16.gmra.mxu0 %v8988_v40  ;;  %4614 = vmatmul.bf16.gmra.mxu1 %v9092_v62  ;;  %v6110_v30 = vmax.f32 %v5694_v13, %v5902_v0  ;;  %v6162_v14 = vmax.f32 %v5746_v52, %v5954_v31  ;;  %v13519_v62 = vld [vmem:[#allocation210_spill] sm:$0xff]  ;;  %v13527_v0 = vld [vmem:[#allocation159_spill] sm:$0xff] }
 0x69c   : > { %9870 = vst [vmem:[%s10891_s14 + $0x150] sm:$0xff] %v9522_v23   ;;  %v6425_v20 = vadd.f32 %v12187_v27, %v6213_v2  ;;  %v6477_v55 = vadd.f32 %v12187_v27, %v6265_v32  ;;  %5134 = vmatmul.bf16.gmra.mxu2 %v9196_v54  ;;  %5654 = vmatmul.bf16.gmra.mxu3 %v9300_v41  ;;  %v13523_v23 = vld [vmem:[#allocation125_spill] sm:$0xff]  ;;  %v13528_v31 = vld [vmem:[#allocation71_spill] sm:$0xff] }
 0x69d   : > { %v6322_v28 = vadd.f32 %v12187_v27, %v6110_v30  ;;  %v6374_v59 = vadd.f32 %v12187_v27, %v6162_v14  ;;  %v5798_v15 = vmax.f32 %v13520_v50, %v13519_v62  ;;  %v5850_v26 = vmax.f32 %v13522_v49, %v13521_v45  ;;  %v13525_v2 = vld [vmem:[#allocation37_spill] sm:$0xff]  ;;  %v13539_v50 = vld [vmem:[#allocation156_spill] sm:$0xff] }
 0x69e   : > { %v6633_v37 = vmax.f32 %v6425_v20, 0.0  ;;  %v6685_v29 = vmax.f32 %v6477_v55, 0.0  ;;  %v5799_v44 = vmax.f32 %v13524_v56, %v13523_v23  ;;  %v13526_v32 = vld [vmem:[#allocation185_spill] sm:$0xff]  ;;  %v13540_v45 = vld [vmem:[#allocation68_spill] sm:$0xff]  ;;  %v13546_v56 = vld [vmem:[#allocation11_spill] sm:$0xff] }
 0x69f   : > { %v5095_v63 = vpop.f32.mrf.mxu2  ;;  %v5615_v12 = vpop.f32.mrf.mxu3  ;;  %v6530_v9 = vmax.f32 %v6322_v28, 0.0  ;;  %v6582_v10 = vmax.f32 %v6374_v59, 0.0  ;;  %v5851_v36 = vmax.f32 %v13526_v32, %v13525_v2  ;;  %v13536_v28 = vld [vmem:[#allocation102_spill] sm:$0xff]  ;;  %v13545_v23 = vld [vmem:[#allocation41_spill] sm:$0xff] }
 0x6a0   : > { %v9652_v21 = vpack.c.bf16 %v6633_v37, %v6632_v7  ;;  %v9782_v46 = vpack.c.bf16 %v6685_v29, %v6684_v4  ;;  %v4057_v53 = vpop.f32.mrf.mxu0  ;;  %v4577_v57 = vpop.f32.mrf.mxu1  ;;  %v6006_v19 = vmax.f32 %v13517_v5, %v5095_v63  ;;  %v6058_v34 = vmax.f32 %v13518_v22, %v5615_v12  ;;  %v13529_v4 = vld [vmem:[#allocation244_spill] sm:$0xff]  ;;  %v13530_v29 = vld [vmem:[#allocation245_spill] sm:$0xff] }
 0x6a1   : > { %v5903_v33 = vmax.f32 %v13515_v60, %v4057_v53  ;;  %v5955_v8 = vmax.f32 %v13516_v47, %v4577_v57  ;;  %v13531_v12 = vld [vmem:[#allocation128_spill] sm:$0xff]  ;;  %v13534_v57 = vld [vmem:[#allocation10_spill] sm:$0xff] }
 0x6a2   : > { %9896 = vst [vmem:[%s10891_s14 + $0x220] sm:$0xff] %v9652_v21   ;;  %v6214_v18 = vmax.f32 %v5798_v15, %v6006_v19  ;;  %v6266_v43 = vmax.f32 %v5850_v26, %v6058_v34  ;;  %v13532_v21 = vld [vmem:[#allocation98_spill] sm:$0xff]  ;;  %v13533_v53 = vld [vmem:[#allocation40_spill] sm:$0xff] }
 0x6a3   : > { %9922 = vst [vmem:[%s10891_s14 + $0x2f0] sm:$0xff] %v9782_v46   ;;  %v6111_v42 = vmax.f32 %v5695_v51, %v5903_v33  ;;  %v6163_v40 = vmax.f32 %v5747_v48, %v5955_v8  ;;  %v5696_v46 = vmax.f32 %v13532_v21, %v13531_v12  ;;  %v5748_v61 = vmax.f32 %v13534_v57, %v13533_v53  ;;  %v13535_v34 = vld [vmem:[#allocation214_spill] sm:$0xff] }
 0x6a4   : > { %v6426_v38 = vadd.f32 %v12187_v27, %v6214_v18  ;;  %v6478_v35 = vadd.f32 %v12187_v27, %v6266_v43  ;;  %v5697_v59 = vmax.f32 %v13536_v28, %v13535_v34  ;;  %v13541_v26 = vld [vmem:[#allocation242_spill] sm:$0xff] }
 0x6a5   : > { %v6323_v25 = vadd.f32 %v12187_v27, %v6111_v42  ;;  %v6375_v16 = vadd.f32 %v12187_v27, %v6163_v40  ;;  %v13537_v42 = vld [vmem:[#allocation215_spill] sm:$0xff]  ;;  %v13538_v40 = vld [vmem:[#allocation14_spill] sm:$0xff] }
 0x6a6   : > { %v6634_v11 = vmax.f32 %v6426_v38, 0.0  ;;  %v6686_v51 = vmax.f32 %v6478_v35, 0.0  ;;  %v5749_v62 = vmax.f32 %v13538_v40, %v13537_v42  ;;  %v13548_v38 = vld [vmem:[#allocation103_spill] sm:$0xff] }
 0x6a7   : > { %v6531_v39 = vmax.f32 %v6323_v25, 0.0  ;;  %v6583_v54 = vmax.f32 %v6375_v16, 0.0  ;;  %v5097_v41 = vpop.f32.mrf.mxu2  ;;  %v5617_v24 = vpop.f32.mrf.mxu3  ;;  %v13542_v16 = vld [vmem:[#allocation243_spill] sm:$0xff] }
 0x6a8   : > { %v6007_v17 = vmax.f32 %v13527_v0, %v5097_v41  ;;  %v6059_v20 = vmax.f32 %v13528_v31, %v5617_v24  ;;  %v4060_v55 = vpop.f32.mrf.mxu0  ;;  %v4580_v6 = vpop.f32.mrf.mxu1  ;;  %v13544_v41 = vld [vmem:[#allocation99_spill] sm:$0xff] }
 0x6a9   : > { %v9397_v58 = vpack.c.bf16 %v6531_v39, %v6530_v9  ;;  %v9527_v13 = vpack.c.bf16 %v6583_v54, %v6582_v10  ;;  %v5904_v37 = vmax.f32 %v13529_v4, %v4060_v55  ;;  %v5956_v30 = vmax.f32 %v13530_v29, %v4580_v6  ;;  %v13543_v54 = vld [vmem:[#allocation129_spill] sm:$0xff] }
 0x6aa   : > { %v6215_v52 = vmax.f32 %v5799_v44, %v6007_v17  ;;  %v6267_v7 = vmax.f32 %v5851_v36, %v6059_v20  ;;  %v5800_v24 = vmax.f32 %v13544_v41, %v13543_v54  ;;  %v5852_v44 = vmax.f32 %v13546_v56, %v13545_v23  ;;  %v13563_v41 = vld [vmem:[#allocation246_spill] sm:$0xff]  ;;  %v13564_v23 = vld [vmem:[#allocation247_spill] sm:$0xff] }
 0x6ab   : > { %9845 = vst [vmem:[%s10891_s14 + $0x88] sm:$0xff] %v9397_v58   ;;  %v6112_v48 = vmax.f32 %v5696_v46, %v5904_v37  ;;  %v6164_v60 = vmax.f32 %v5748_v61, %v5956_v30  ;;  %v13551_v37 = vld [vmem:[#allocation157_spill] sm:$0xff] }
 0x6ac   : > { %9871 = vst [vmem:[%s10891_s14 + $0x158] sm:$0xff] %v9527_v13   ;;  %v6427_v14 = vadd.f32 %v12187_v27, %v6215_v52  ;;  %v6479_v63 = vadd.f32 %v12187_v27, %v6267_v7  ;;  %v13547_v13 = vld [vmem:[#allocation216_spill] sm:$0xff]  ;;  %v13549_v52 = vld [vmem:[#allocation217_spill] sm:$0xff]  ;;  %v13550_v7 = vld [vmem:[#allocation15_spill] sm:$0xff] }
 0x6ad   : > { %v6324_v43 = vadd.f32 %v12187_v27, %v6112_v48  ;;  %v6376_v9 = vadd.f32 %v12187_v27, %v6164_v60  ;;  %v5801_v35 = vmax.f32 %v13548_v38, %v13547_v13  ;;  %v5853_v4 = vmax.f32 %v13550_v7, %v13549_v52  ;;  %v13552_v30 = vld [vmem:[#allocation69_spill] sm:$0xff]  ;;  %v13569_v13 = vld [vmem:[#allocation43_spill] sm:$0xff] }
 0x6ae   : > { %v6635_v3 = vmax.f32 %v6427_v14, 0.0  ;;  %v6687_v1 = vmax.f32 %v6479_v63, 0.0  ;;  %v13570_v38 = vld [vmem:[#allocation187_spill] sm:$0xff] }
 0x6af   : > { %v5100_v33 = vpop.f32.mrf.mxu2  ;;  %v5620_v47 = vpop.f32.mrf.mxu3  ;;  %v6532_v17 = vmax.f32 %v6324_v43, 0.0  ;;  %v6584_v31 = vmax.f32 %v6376_v9, 0.0  ;;  %v13560_v43 = vld [vmem:[#allocation100_spill] sm:$0xff] }
 0x6b0   : > { %v9657_v8 = vpack.c.bf16 %v6635_v3, %v6634_v11  ;;  %v9787_v5 = vpack.c.bf16 %v6687_v1, %v6686_v51  ;;  %v4062_v19 = vpop.f32.mrf.mxu0  ;;  %v4582_v22 = vpop.f32.mrf.mxu1  ;;  %v6008_v25 = vmax.f32 %v13541_v26, %v5100_v33  ;;  %v6060_v18 = vmax.f32 %v13542_v16, %v5620_v47  ;;  %v13553_v51 = vld [vmem:[#allocation160_spill] sm:$0xff]  ;;  %v13555_v47 = vld [vmem:[#allocation130_spill] sm:$0xff] }
 0x6b1   : > { %v5905_v15 = vmax.f32 %v13539_v50, %v4062_v19  ;;  %v5957_v49 = vmax.f32 %v13540_v45, %v4582_v22  ;;  %v13554_v1 = vld [vmem:[#allocation72_spill] sm:$0xff]  ;;  %v13557_v19 = vld [vmem:[#allocation42_spill] sm:$0xff]  ;;  %v13558_v22 = vld [vmem:[#allocation189_spill] sm:$0xff] }
 0x6b2   : > { %9897 = vst [vmem:[%s10891_s14 + $0x228] sm:$0xff] %v9657_v8   ;;  %v6216_v36 = vmax.f32 %v5800_v24, %v6008_v25  ;;  %v6268_v0 = vmax.f32 %v5852_v44, %v6060_v18  ;;  %v13556_v8 = vld [vmem:[#allocation188_spill] sm:$0xff]  ;;  %v5750_v34 = vmax.f32 %v13558_v22, %v13557_v19  ;;  %v13559_v18 = vld [vmem:[#allocation134_spill] sm:$0xff]  ;;  %v13565_v44 = vld [vmem:[#allocation161_spill] sm:$0xff] }
 0x6b3   : > { %9923 = vst [vmem:[%s10891_s14 + $0x2f8] sm:$0xff] %v9787_v5   ;;  %v6113_v10 = vmax.f32 %v5697_v59, %v5905_v15  ;;  %v6165_v39 = vmax.f32 %v5749_v62, %v5957_v49  ;;  %v5698_v5 = vmax.f32 %v13556_v8, %v13555_v47  ;;  %v5699_v9 = vmax.f32 %v13560_v43, %v13559_v18 }
 0x6b4   : > { %v6428_v53 = vadd.f32 %v12187_v27, %v6216_v36  ;;  %v6480_v57 = vadd.f32 %v12187_v27, %v6268_v0 }
 0x6b5   : > { %v6325_v2 = vadd.f32 %v12187_v27, %v6113_v10  ;;  %v6377_v32 = vadd.f32 %v12187_v27, %v6165_v39  ;;  %v13561_v10 = vld [vmem:[#allocation46_spill] sm:$0xff]  ;;  %v13562_v39 = vld [vmem:[#allocation12_spill] sm:$0xff] }
 0x6b6   : > { %v6636_v28 = vmax.f32 %v6428_v53, 0.0  ;;  %v6688_v59 = vmax.f32 %v6480_v57, 0.0  ;;  %v5751_v54 = vmax.f32 %v13562_v39, %v13561_v10  ;;  %v13572_v53 = vld [vmem:[#allocation101_spill] sm:$0xff] }
 0x6b7   : > { %v6533_v20 = vmax.f32 %v6325_v2, 0.0  ;;  %v6585_v55 = vmax.f32 %v6377_v32, 0.0  ;;  %v5102_v6 = vpop.f32.mrf.mxu2  ;;  %v5622_v58 = vpop.f32.mrf.mxu3  ;;  %v13566_v32 = vld [vmem:[#allocation73_spill] sm:$0xff] }
 0x6b8   : > { %v6009_v29 = vmax.f32 %v13551_v37, %v5102_v6  ;;  %v6061_v14 = vmax.f32 %v13552_v30, %v5622_v58  ;;  %v4065_v63 = vpop.f32.mrf.mxu0  ;;  %v4585_v12 = vpop.f32.mrf.mxu1  ;;  %v13568_v6 = vld [vmem:[#allocation186_spill] sm:$0xff] }
 0x6b9   : > { %v9402_v21 = vpack.c.bf16 %v6533_v20, %v6532_v17  ;;  %v9532_v46 = vpack.c.bf16 %v6585_v55, %v6584_v31  ;;  %v5906_v3 = vmax.f32 %v13553_v51, %v4065_v63  ;;  %v5958_v48 = vmax.f32 %v13554_v1, %v4585_v12  ;;  %v13567_v55 = vld [vmem:[#allocation131_spill] sm:$0xff] }
 0x6ba   : > { %v6217_v61 = vmax.f32 %v5801_v35, %v6009_v29  ;;  %v6269_v11 = vmax.f32 %v5853_v4, %v6061_v14  ;;  %v5802_v58 = vmax.f32 %v13568_v6, %v13567_v55  ;;  %v5854_v35 = vmax.f32 %v13570_v38, %v13569_v13  ;;  %v13587_v6 = vld [vmem:[#allocation166_spill] sm:$0xff] }
 0x6bb   : > { %9846 = vst [vmem:[%s10891_s14 + $0x90] sm:$0xff] %v9402_v21   ;;  %v6114_v62 = vmax.f32 %v5698_v5, %v5906_v3  ;;  %v6166_v50 = vmax.f32 %v5750_v34, %v5958_v48  ;;  %v13575_v3 = vld [vmem:[#allocation248_spill] sm:$0xff]  ;;  %v13576_v48 = vld [vmem:[#allocation249_spill] sm:$0xff]  ;;  %v13588_v13 = vld [vmem:[#allocation78_spill] sm:$0xff] }
 0x6bc   : > { %9872 = vst [vmem:[%s10891_s14 + $0x160] sm:$0xff] %v9532_v46   ;;  %v6429_v60 = vadd.f32 %v12187_v27, %v6217_v61  ;;  %v6481_v33 = vadd.f32 %v12187_v27, %v6269_v11  ;;  %v13571_v46 = vld [vmem:[#allocation135_spill] sm:$0xff]  ;;  %v13574_v11 = vld [vmem:[#allocation13_spill] sm:$0xff] }
 0x6bd   : > { %v6326_v0 = vadd.f32 %v12187_v27, %v6114_v62  ;;  %v6378_v17 = vadd.f32 %v12187_v27, %v6166_v50  ;;  %v5803_v57 = vmax.f32 %v13572_v53, %v13571_v46  ;;  %v13573_v61 = vld [vmem:[#allocation47_spill] sm:$0xff]  ;;  %v13594_v53 = vld [vmem:[#allocation17_spill] sm:$0xff] }
 0x6be   : > { %v6637_v42 = vmax.f32 %v6429_v60, 0.0  ;;  %v6689_v40 = vmax.f32 %v6481_v33, 0.0  ;;  %v5855_v51 = vmax.f32 %v13574_v11, %v13573_v61  ;;  %v13593_v46 = vld [vmem:[#allocation219_spill] sm:$0xff] }
 0x6bf   : > { %v5105_v15 = vpop.f32.mrf.mxu2  ;;  %v5625_v45 = vpop.f32.mrf.mxu3  ;;  %v6534_v29 = vmax.f32 %v6326_v0, 0.0  ;;  %v6586_v30 = vmax.f32 %v6378_v17, 0.0  ;;  %v13584_v0 = vld [vmem:[#allocation190_spill] sm:$0xff] }
 0x6c0   : > { %v9662_v49 = vpack.c.bf16 %v6637_v42, %v6636_v28  ;;  %v9792_v26 = vpack.c.bf16 %v6689_v40, %v6688_v59  ;;  %v4067_v25 = vpop.f32.mrf.mxu0  ;;  %v4587_v16 = vpop.f32.mrf.mxu1  ;;  %v6010_v2 = vmax.f32 %v13565_v44, %v5105_v15  ;;  %v6062_v36 = vmax.f32 %v13566_v32, %v5625_v45  ;;  %v13577_v59 = vld [vmem:[#allocation162_spill] sm:$0xff]  ;;  %v13579_v45 = vld [vmem:[#allocation220_spill] sm:$0xff] }
 0x6c1   : > { %v5907_v24 = vmax.f32 %v13563_v41, %v4067_v25  ;;  %v5959_v56 = vmax.f32 %v13564_v23, %v4587_v16  ;;  %v13578_v40 = vld [vmem:[#allocation74_spill] sm:$0xff]  ;;  %v13581_v25 = vld [vmem:[#allocation221_spill] sm:$0xff]  ;;  %v13582_v16 = vld [vmem:[#allocation16_spill] sm:$0xff] }
 0x6c2   : > { %9898 = vst [vmem:[%s10891_s14 + $0x230] sm:$0xff] %v9662_v49   ;;  %v6218_v4 = vmax.f32 %v5802_v58, %v6010_v2  ;;  %v6270_v37 = vmax.f32 %v5854_v35, %v6062_v36  ;;  %v13580_v49 = vld [vmem:[#allocation104_spill] sm:$0xff]  ;;  %v5752_v18 = vmax.f32 %v13582_v16, %v13581_v25  ;;  %v13589_v35 = vld [vmem:[#allocation163_spill] sm:$0xff] }
 0x6c3   : > { %9924 = vst [vmem:[%s10891_s14 + $0x300] sm:$0xff] %v9792_v26   ;;  %v6115_v31 = vmax.f32 %v5699_v9, %v5907_v24  ;;  %v6167_v20 = vmax.f32 %v5751_v54, %v5959_v56  ;;  %v5700_v26 = vmax.f32 %v13580_v49, %v13579_v45  ;;  %v13583_v36 = vld [vmem:[#allocation132_spill] sm:$0xff] }
 0x6c4   : > { %v6430_v19 = vadd.f32 %v12187_v27, %v6218_v4  ;;  %v6482_v22 = vadd.f32 %v12187_v27, %v6270_v37  ;;  %v5701_v17 = vmax.f32 %v13584_v0, %v13583_v36 }
 0x6c5   : > { %v6327_v52 = vadd.f32 %v12187_v27, %v6115_v31  ;;  %v6379_v7 = vadd.f32 %v12187_v27, %v6167_v20  ;;  %v13585_v31 = vld [vmem:[#allocation44_spill] sm:$0xff]  ;;  %v13586_v20 = vld [vmem:[#allocation191_spill] sm:$0xff] }
 0x6c6   : > { %v6638_v43 = vmax.f32 %v6430_v19, 0.0  ;;  %v6690_v9 = vmax.f32 %v6482_v22, 0.0  ;;  %v5753_v55 = vmax.f32 %v13586_v20, %v13585_v31  ;;  %v13596_v19 = vld [vmem:[#allocation192_spill] sm:$0xff] }
 0x6c7   : > { %v6535_v14 = vmax.f32 %v6327_v52, 0.0  ;;  %v6587_v63 = vmax.f32 %v6379_v7, 0.0  ;;  %v5107_v12 = vpop.f32.mrf.mxu2  ;;  %v5627_v21 = vpop.f32.mrf.mxu3  ;;  %v13590_v7 = vld [vmem:[#allocation75_spill] sm:$0xff] }
 0x6c8   : > { %v6011_v1 = vmax.f32 %v13575_v3, %v5107_v12  ;;  %v6063_v60 = vmax.f32 %v13576_v48, %v5627_v21  ;;  %v4070_v33 = vpop.f32.mrf.mxu0  ;;  %v4590_v47 = vpop.f32.mrf.mxu1  ;;  %v13592_v12 = vld [vmem:[#allocation105_spill] sm:$0xff] }
 0x6c9   : > { %v9407_v8 = vpack.c.bf16 %v6535_v14, %v6534_v29  ;;  %v9537_v5 = vpack.c.bf16 %v6587_v63, %v6586_v30  ;;  %v5908_v42 = vmax.f32 %v13577_v59, %v4070_v33  ;;  %v5960_v62 = vmax.f32 %v13578_v40, %v4590_v47  ;;  %v13591_v63 = vld [vmem:[#allocation218_spill] sm:$0xff] }
 0x6ca   : > { %v6219_v34 = vmax.f32 %v5803_v57, %v6011_v1  ;;  %v6271_v28 = vmax.f32 %v5855_v51, %v6063_v60  ;;  %v5804_v21 = vmax.f32 %v13592_v12, %v13591_v63  ;;  %v5856_v57 = vmax.f32 %v13594_v53, %v13593_v46  ;;  %v13611_v12 = vld [vmem:[#allocation164_spill] sm:$0xff] }
 0x6cb   : > { %9847 = vst [vmem:[%s10891_s14 + $0x98] sm:$0xff] %v9407_v8   ;;  %v6116_v54 = vmax.f32 %v5700_v26, %v5908_v42  ;;  %v6168_v41 = vmax.f32 %v5752_v18, %v5960_v62  ;;  %v13599_v42 = vld [vmem:[#allocation167_spill] sm:$0xff]  ;;  %v13612_v46 = vld [vmem:[#allocation76_spill] sm:$0xff] }
 0x6cc   : > { %9873 = vst [vmem:[%s10891_s14 + $0x168] sm:$0xff] %v9537_v5   ;;  %v6431_v50 = vadd.f32 %v12187_v27, %v6219_v34  ;;  %v6483_v15 = vadd.f32 %v12187_v27, %v6271_v28  ;;  %v13595_v5 = vld [vmem:[#allocation133_spill] sm:$0xff]  ;;  %v13600_v62 = vld [vmem:[#allocation79_spill] sm:$0xff] }
 0x6cd   : > { %v6328_v37 = vadd.f32 %v12187_v27, %v6116_v54  ;;  %v6380_v29 = vadd.f32 %v12187_v27, %v6168_v41  ;;  %v5805_v22 = vmax.f32 %v13596_v19, %v13595_v5  ;;  %v13597_v34 = vld [vmem:[#allocation45_spill] sm:$0xff]  ;;  %v13618_v19 = vld [vmem:[#allocation19_spill] sm:$0xff] }
 0x6ce   : > { %v6639_v10 = vmax.f32 %v6431_v50, 0.0  ;;  %v6691_v39 = vmax.f32 %v6483_v15, 0.0  ;;  %v13598_v28 = vld [vmem:[#allocation193_spill] sm:$0xff] }
 0x6cf   : > { %v5110_v24 = vpop.f32.mrf.mxu2  ;;  %v5630_v23 = vpop.f32.mrf.mxu3  ;;  %v6536_v1 = vmax.f32 %v6328_v37, 0.0  ;;  %v6588_v48 = vmax.f32 %v6380_v29, 0.0  ;;  %v5857_v59 = vmax.f32 %v13598_v28, %v13597_v34  ;;  %v13608_v37 = vld [vmem:[#allocation110_spill] sm:$0xff]  ;;  %v13617_v5 = vld [vmem:[#allocation49_spill] sm:$0xff] }
 0x6d0   : > { %v9667_v56 = vpack.c.bf16 %v6639_v10, %v6638_v43  ;;  %v9797_v44 = vpack.c.bf16 %v6691_v39, %v6690_v9  ;;  %v4072_v2 = vpop.f32.mrf.mxu0  ;;  %v4592_v32 = vpop.f32.mrf.mxu1  ;;  %v6012_v52 = vmax.f32 %v13589_v35, %v5110_v24  ;;  %v6064_v4 = vmax.f32 %v13590_v7, %v5630_v23  ;;  %v13601_v9 = vld [vmem:[#allocation252_spill] sm:$0xff]  ;;  %v13602_v39 = vld [vmem:[#allocation253_spill] sm:$0xff] }
 0x6d1   : > { %v5909_v58 = vmax.f32 %v13587_v6, %v4072_v2  ;;  %v5961_v38 = vmax.f32 %v13588_v13, %v4592_v32  ;;  %v13603_v23 = vld [vmem:[#allocation136_spill] sm:$0xff]  ;;  %v13606_v32 = vld [vmem:[#allocation18_spill] sm:$0xff] }
 0x6d2   : > { %9899 = vst [vmem:[%s10891_s14 + $0x238] sm:$0xff] %v9667_v56   ;;  %v6220_v51 = vmax.f32 %v5804_v21, %v6012_v52  ;;  %v6272_v3 = vmax.f32 %v5856_v57, %v6064_v4  ;;  %v13604_v56 = vld [vmem:[#allocation106_spill] sm:$0xff]  ;;  %v13605_v2 = vld [vmem:[#allocation48_spill] sm:$0xff] }
 0x6d3   : > { %9925 = vst [vmem:[%s10891_s14 + $0x308] sm:$0xff] %v9797_v44   ;;  %v6117_v30 = vmax.f32 %v5701_v17, %v5909_v58  ;;  %v6169_v14 = vmax.f32 %v5753_v55, %v5961_v38  ;;  %v5702_v44 = vmax.f32 %v13604_v56, %v13603_v23  ;;  %v5754_v36 = vmax.f32 %v13606_v32, %v13605_v2  ;;  %v13607_v4 = vld [vmem:[#allocation222_spill] sm:$0xff] }
 0x6d4   : > { %v6432_v25 = vadd.f32 %v12187_v27, %v6220_v51  ;;  %v6484_v16 = vadd.f32 %v12187_v27, %v6272_v3  ;;  %v5703_v29 = vmax.f32 %v13608_v37, %v13607_v4  ;;  %v13613_v57 = vld [vmem:[#allocation250_spill] sm:$0xff] }
 0x6d5   : > { %v6329_v61 = vadd.f32 %v12187_v27, %v6117_v30  ;;  %v6381_v11 = vadd.f32 %v12187_v27, %v6169_v14  ;;  %v13609_v30 = vld [vmem:[#allocation223_spill] sm:$0xff]  ;;  %v13610_v14 = vld [vmem:[#allocation22_spill] sm:$0xff] }
 0x6d6   : > { %v6640_v0 = vmax.f32 %v6432_v25, 0.0  ;;  %v6692_v17 = vmax.f32 %v6484_v16, 0.0  ;;  %v5755_v63 = vmax.f32 %v13610_v14, %v13609_v30  ;;  %v13620_v25 = vld [vmem:[#allocation111_spill] sm:$0xff] }
 0x6d7   : > { %v6537_v60 = vmax.f32 %v6329_v61, 0.0  ;;  %v6589_v33 = vmax.f32 %v6381_v11, 0.0  ;;  %v5112_v47 = vpop.f32.mrf.mxu2  ;;  %v5632_v8 = vpop.f32.mrf.mxu3  ;;  %v13614_v11 = vld [vmem:[#allocation251_spill] sm:$0xff] }
 0x6d8   : > { %v6013_v40 = vmax.f32 %v13599_v42, %v5112_v47  ;;  %v6065_v50 = vmax.f32 %v13600_v62, %v5632_v8  ;;  %v4075_v15 = vpop.f32.mrf.mxu0  ;;  %v4595_v45 = vpop.f32.mrf.mxu1  ;;  %v13616_v47 = vld [vmem:[#allocation107_spill] sm:$0xff] }
 0x6d9   : > { %v9412_v49 = vpack.c.bf16 %v6537_v60, %v6536_v1  ;;  %v9542_v26 = vpack.c.bf16 %v6589_v33, %v6588_v48  ;;  %v5910_v10 = vmax.f32 %v13601_v9, %v4075_v15  ;;  %v5962_v54 = vmax.f32 %v13602_v39, %v4595_v45  ;;  %v13615_v33 = vld [vmem:[#allocation137_spill] sm:$0xff] }
 0x6da   : > { %v6221_v18 = vmax.f32 %v5805_v22, %v6013_v40  ;;  %v6273_v43 = vmax.f32 %v5857_v59, %v6065_v50  ;;  %v5806_v8 = vmax.f32 %v13616_v47, %v13615_v33  ;;  %v5858_v22 = vmax.f32 %v13618_v19, %v13617_v5  ;;  %v13635_v47 = vld [vmem:[#allocation254_spill] sm:$0xff]  ;;  %v13636_v5 = vld [vmem:[#allocation255_spill] sm:$0xff] }
 0x6db   : > { %9848 = vst [vmem:[%s10891_s14 + $0xa0] sm:$0xff] %v9412_v49   ;;  %v6118_v55 = vmax.f32 %v5702_v44, %v5910_v10  ;;  %v6170_v6 = vmax.f32 %v5754_v36, %v5962_v54  ;;  %v13623_v10 = vld [vmem:[#allocation165_spill] sm:$0xff] }
 0x6dc   : > { %9874 = vst [vmem:[%s10891_s14 + $0x170] sm:$0xff] %v9542_v26   ;;  %v6433_v41 = vadd.f32 %v12187_v27, %v6221_v18  ;;  %v6485_v24 = vadd.f32 %v12187_v27, %v6273_v43  ;;  %v13619_v26 = vld [vmem:[#allocation224_spill] sm:$0xff]  ;;  %v13621_v18 = vld [vmem:[#allocation225_spill] sm:$0xff]  ;;  %v13622_v43 = vld [vmem:[#allocation23_spill] sm:$0xff] }
 0x6dd   : > { %v6330_v3 = vadd.f32 %v12187_v27, %v6118_v55  ;;  %v6382_v1 = vadd.f32 %v12187_v27, %v6170_v6  ;;  %v5807_v16 = vmax.f32 %v13620_v25, %v13619_v26  ;;  %v5859_v9 = vmax.f32 %v13622_v43, %v13621_v18  ;;  %v13624_v54 = vld [vmem:[#allocation77_spill] sm:$0xff]  ;;  %v12516_v6 = vld [vmem:[%s12669_s2] ss:$0 sm:$0xff]  ;;  %v13641_v26 = vld [vmem:[#allocation51_spill] sm:$0xff] }
 0x6de   : > { %v6641_v31 = vmax.f32 %v6433_v41, 0.0  ;;  %v6693_v20 = vmax.f32 %v6485_v24, 0.0  ;;  %v13642_v25 = vld [vmem:[#allocation195_spill] sm:$0xff] }
 0x6df   : > { %v5115_v58 = vpop.f32.mrf.mxu2  ;;  %v5635_v13 = vpop.f32.mrf.mxu3  ;;  %v6538_v40 = vmax.f32 %v6330_v3, 0.0  ;;  %v6590_v62 = vmax.f32 %v6382_v1, 0.0  ;;  %v13632_v3 = vld [vmem:[#allocation108_spill] sm:$0xff] }
 0x6e0   : > { %v9672_v38 = vpack.c.bf16 %v6641_v31, %v6640_v0  ;;  %v9802_v35 = vpack.c.bf16 %v6693_v20, %v6692_v17  ;;  %v4077_v52 = vpop.f32.mrf.mxu0  ;;  %v4597_v7 = vpop.f32.mrf.mxu1  ;;  %v6014_v61 = vmax.f32 %v13613_v57, %v5115_v58  ;;  %v6066_v51 = vmax.f32 %v13614_v11, %v5635_v13  ;;  %v13625_v17 = vld [vmem:[#allocation168_spill] sm:$0xff] }
 0x6e1   : > { %v5911_v21 = vmax.f32 %v13611_v12, %v4077_v52  ;;  %v5963_v53 = vmax.f32 %v13612_v46, %v4597_v7  ;;  %v13626_v20 = vld [vmem:[#allocation80_spill] sm:$0xff]  ;;  %v13629_v52 = vld [vmem:[#allocation50_spill] sm:$0xff]  ;;  %v13630_v7 = vld [vmem:[#allocation197_spill] sm:$0xff] }
 0x6e2   : > { %9900 = vst [vmem:[%s10891_s14 + $0x240] sm:$0xff] %v9672_v38   ;;  %v6222_v59 = vmax.f32 %v5806_v8, %v6014_v61  ;;  %v6274_v42 = vmax.f32 %v5858_v22, %v6066_v51  ;;  %v13627_v38 = vld [vmem:[#allocation138_spill] sm:$0xff]  ;;  %v5756_v4 = vmax.f32 %v13630_v7, %v13629_v52  ;;  %v13637_v22 = vld [vmem:[#allocation169_spill] sm:$0xff] }
 0x6e3   : > { %9926 = vst [vmem:[%s10891_s14 + $0x310] sm:$0xff] %v9802_v35   ;;  %v6119_v48 = vmax.f32 %v5703_v29, %v5911_v21  ;;  %v6171_v60 = vmax.f32 %v5755_v63, %v5963_v53  ;;  %v13628_v35 = vld [vmem:[#allocation196_spill] sm:$0xff]  ;;  %v13631_v51 = vld [vmem:[#allocation142_spill] sm:$0xff] }
 0x6e4   : > { %v6434_v2 = vadd.f32 %v12187_v27, %v6222_v59  ;;  %v6486_v32 = vadd.f32 %v12187_v27, %v6274_v42  ;;  %v5705_v1 = vmax.f32 %v13632_v3, %v13631_v51 }
 0x6e5   : > { %v6331_v34 = vadd.f32 %v12187_v27, %v6119_v48  ;;  %v6383_v28 = vadd.f32 %v12187_v27, %v6171_v60  ;;  %v5704_v27 = vmax.f32 %v13628_v35, %v13627_v38  ;;  %v13633_v48 = vld [vmem:[#allocation54_spill] sm:$0xff]  ;;  %v13634_v60 = vld [vmem:[#allocation20_spill] sm:$0xff] }
 0x6e6   : > { %v6642_v37 = vmax.f32 %v6434_v2, 0.0  ;;  %v6694_v29 = vmax.f32 %v6486_v32, 0.0  ;;  %v5757_v33 = vmax.f32 %v13634_v60, %v13633_v48  ;;  %v13644_v2 = vld [vmem:[#allocation109_spill] sm:$0xff] }
 0x6e7   : > { %v6539_v50 = vmax.f32 %v6331_v34, 0.0  ;;  %v6591_v15 = vmax.f32 %v6383_v28, 0.0  ;;  %v5117_v45 = vpop.f32.mrf.mxu2  ;;  %v5637_v49 = vpop.f32.mrf.mxu3  ;;  %v13638_v28 = vld [vmem:[#allocation81_spill] sm:$0xff] }
 0x6e8   : > { %v6015_v39 = vmax.f32 %v13623_v10, %v5117_v45  ;;  %v6067_v41 = vmax.f32 %v13624_v54, %v5637_v49  ;;  %v4080_v24 = vpop.f32.mrf.mxu0  ;;  %v4600_v23 = vpop.f32.mrf.mxu1  ;;  %v13640_v45 = vld [vmem:[#allocation194_spill] sm:$0xff] }
 0x6e9   : > { %v9417_v56 = vpack.c.bf16 %v6539_v50, %v6538_v40  ;;  %v9547_v44 = vpack.c.bf16 %v6591_v15, %v6590_v62  ;;  %v5912_v31 = vmax.f32 %v13625_v17, %v4080_v24  ;;  %v5964_v55 = vmax.f32 %v13626_v20, %v4600_v23  ;;  %v13639_v15 = vld [vmem:[#allocation139_spill] sm:$0xff] }
 0x6ea   : > { %v6223_v36 = vmax.f32 %v5807_v16, %v6015_v39  ;;  %v6275_v0 = vmax.f32 %v5859_v9, %v6067_v41  ;;  %v5808_v49 = vmax.f32 %v13640_v45, %v13639_v15  ;;  %v5860_v16 = vmax.f32 %v13642_v25, %v13641_v26  ;;  %v13659_v45 = vld [vmem:[#allocation174_spill] sm:$0xff] }
 0x6eb   : > { %9849 = vst [vmem:[%s10891_s14 + $0xa8] sm:$0xff] %v9417_v56   ;;  %v6120_v63 = vmax.f32 %v5704_v27, %v5912_v31  ;;  %v6172_v12 = vmax.f32 %v5756_v4, %v5964_v55  ;;  %v13647_v31 = vld [vmem:[#allocation256_spill] sm:$0xff]  ;;  %v13648_v55 = vld [vmem:[#allocation257_spill] sm:$0xff]  ;;  %v13660_v26 = vld [vmem:[#allocation86_spill] sm:$0xff] }
 0x6ec   : > { %9875 = vst [vmem:[%s10891_s14 + $0x178] sm:$0xff] %v9547_v44   ;;  %v6435_v58 = vadd.f32 %v12516_v6, %v6223_v36  ;;  %v6487_v13 = vadd.f32 %v12516_v6, %v6275_v0  ;;  %v13643_v44 = vld [vmem:[#allocation143_spill] sm:$0xff]  ;;  %v13646_v0 = vld [vmem:[#allocation21_spill] sm:$0xff] }
 0x6ed   : > { %v6332_v42 = vadd.f32 %v12516_v6, %v6120_v63  ;;  %v6384_v40 = vadd.f32 %v12516_v6, %v6172_v12  ;;  %v5809_v32 = vmax.f32 %v13644_v2, %v13643_v44  ;;  %v13645_v36 = vld [vmem:[#allocation55_spill] sm:$0xff]  ;;  %v13666_v2 = vld [vmem:[#allocation25_spill] sm:$0xff] }
 0x6ee   : > { %v6643_v30 = vmax.f32 %v6435_v58, 0.0  ;;  %v6695_v14 = vmax.f32 %v6487_v13, 0.0  ;;  %v5861_v17 = vmax.f32 %v13646_v0, %v13645_v36  ;;  %v13665_v44 = vld [vmem:[#allocation227_spill] sm:$0xff] }
 0x6ef   : > { %v5120_v21 = vpop.f32.mrf.mxu2  ;;  %v5640_v46 = vpop.f32.mrf.mxu3  ;;  %v6540_v39 = vmax.f32 %v6332_v42, 0.0  ;;  %v6592_v54 = vmax.f32 %v6384_v40, 0.0  ;;  %v13656_v42 = vld [vmem:[#allocation198_spill] sm:$0xff] }
 0x6f0   : > { %v9677_v53 = vpack.c.bf16 %v6643_v30, %v6642_v37  ;;  %v9807_v57 = vpack.c.bf16 %v6695_v14, %v6694_v29  ;;  %v4082_v61 = vpop.f32.mrf.mxu0  ;;  %v4602_v11 = vpop.f32.mrf.mxu1  ;;  %v6016_v34 = vmax.f32 %v13637_v22, %v5120_v21  ;;  %v6068_v59 = vmax.f32 %v13638_v28, %v5640_v46  ;;  %v13649_v29 = vld [vmem:[#allocation170_spill] sm:$0xff]  ;;  %v13651_v46 = vld [vmem:[#allocation228_spill] sm:$0xff] }
 0x6f1   : > { %v5913_v8 = vmax.f32 %v13635_v47, %v4082_v61  ;;  %v5965_v19 = vmax.f32 %v13636_v5, %v4602_v11  ;;  %v13650_v14 = vld [vmem:[#allocation82_spill] sm:$0xff]  ;;  %v13653_v61 = vld [vmem:[#allocation229_spill] sm:$0xff]  ;;  %v13654_v11 = vld [vmem:[#allocation24_spill] sm:$0xff] }
 0x6f2   : > { %9901 = vst [vmem:[%s10891_s14 + $0x248] sm:$0xff] %v9677_v53   ;;  %v6224_v9 = vmax.f32 %v5808_v49, %v6016_v34  ;;  %v6276_v10 = vmax.f32 %v5860_v16, %v6068_v59  ;;  %v13652_v53 = vld [vmem:[#allocation112_spill] sm:$0xff]  ;;  %v5758_v51 = vmax.f32 %v13654_v11, %v13653_v61  ;;  %v13661_v16 = vld [vmem:[#allocation171_spill] sm:$0xff] }
 0x6f3   : > { %9927 = vst [vmem:[%s10891_s14 + $0x318] sm:$0xff] %v9807_v57   ;;  %v6121_v62 = vmax.f32 %v5705_v1, %v5913_v8  ;;  %v6173_v50 = vmax.f32 %v5757_v33, %v5965_v19  ;;  %v5706_v57 = vmax.f32 %v13652_v53, %v13651_v46  ;;  %v13655_v59 = vld [vmem:[#allocation140_spill] sm:$0xff] }
 0x6f4   : > { %v6436_v52 = vadd.f32 %v12516_v6, %v6224_v9  ;;  %v6488_v7 = vadd.f32 %v12516_v6, %v6276_v10  ;;  %v5707_v40 = vmax.f32 %v13656_v42, %v13655_v59 }
 0x6f5   : > { %v6333_v18 = vadd.f32 %v12516_v6, %v6121_v62  ;;  %v6385_v43 = vadd.f32 %v12516_v6, %v6173_v50  ;;  %v13657_v62 = vld [vmem:[#allocation52_spill] sm:$0xff]  ;;  %v13658_v50 = vld [vmem:[#allocation199_spill] sm:$0xff] }
 0x6f6   : > { %v6644_v3 = vmax.f32 %v6436_v52, 0.0  ;;  %v6696_v1 = vmax.f32 %v6488_v7, 0.0  ;;  %v5759_v15 = vmax.f32 %v13658_v50, %v13657_v62  ;;  %v13668_v52 = vld [vmem:[#allocation200_spill] sm:$0xff] }
 0x6f7   : > { %v6541_v41 = vmax.f32 %v6333_v18, 0.0  ;;  %v6593_v24 = vmax.f32 %v6385_v43, 0.0  ;;  %v5122_v23 = vpop.f32.mrf.mxu2  ;;  %v5642_v56 = vpop.f32.mrf.mxu3  ;;  %v13662_v43 = vld [vmem:[#allocation83_spill] sm:$0xff] }
 0x6f8   : > { %v6017_v20 = vmax.f32 %v13647_v31, %v5122_v23  ;;  %v6069_v58 = vmax.f32 %v13648_v55, %v5642_v56  ;;  %v4085_v13 = vpop.f32.mrf.mxu0  ;;  %v4605_v38 = vpop.f32.mrf.mxu1  ;;  %v13664_v23 = vld [vmem:[#allocation113_spill] sm:$0xff] }
 0x6f9   : > { %v9422_v35 = vpack.c.bf16 %v6541_v41, %v6540_v39  ;;  %v9552_v27 = vpack.c.bf16 %v6593_v24, %v6592_v54  ;;  %v5914_v30 = vmax.f32 %v13649_v29, %v4085_v13  ;;  %v5966_v63 = vmax.f32 %v13650_v14, %v4605_v38  ;;  %v13663_v24 = vld [vmem:[#allocation226_spill] sm:$0xff] }
 0x6fa   : > { %v6225_v4 = vmax.f32 %v5809_v32, %v6017_v20  ;;  %v6277_v37 = vmax.f32 %v5861_v17, %v6069_v58  ;;  %v5810_v56 = vmax.f32 %v13664_v23, %v13663_v24  ;;  %v5862_v32 = vmax.f32 %v13666_v2, %v13665_v44  ;;  %v13683_v23 = vld [vmem:[#allocation84_spill] sm:$0xff]  ;;  %v13684_v44 = vld [vmem:[#allocation173_spill] sm:$0xff] }
 0x6fb   : > { %9850 = vst [vmem:[%s10891_s14 + $0xb0] sm:$0xff] %v9422_v35   ;;  %v6122_v33 = vmax.f32 %v5706_v57, %v5914_v30  ;;  %v6174_v47 = vmax.f32 %v5758_v51, %v5966_v63  ;;  %v13671_v30 = vld [vmem:[#allocation175_spill] sm:$0xff] }
 0x6fc   : > { %9876 = vst [vmem:[%s10891_s14 + $0x180] sm:$0xff] %v9552_v27   ;;  %v6437_v12 = vadd.f32 %v12516_v6, %v6225_v4  ;;  %v6489_v21 = vadd.f32 %v12516_v6, %v6277_v37  ;;  %v13667_v27 = vld [vmem:[#allocation141_spill] sm:$0xff]  ;;  %v13672_v63 = vld [vmem:[#allocation87_spill] sm:$0xff] }
 0x6fd   : > { %v6334_v10 = vadd.f32 %v12516_v6, %v6122_v33  ;;  %v6386_v39 = vadd.f32 %v12516_v6, %v6174_v47  ;;  %v5811_v7 = vmax.f32 %v13668_v52, %v13667_v27  ;;  %v13669_v4 = vld [vmem:[#allocation53_spill] sm:$0xff]  ;;  %v13690_v52 = vld [vmem:[#allocation27_spill] sm:$0xff] }
 0x6fe   : > { %v6645_v48 = vmax.f32 %v6437_v12, 0.0  ;;  %v6697_v60 = vmax.f32 %v6489_v21, 0.0  ;;  %v13670_v37 = vld [vmem:[#allocation201_spill] sm:$0xff] }
 0x6ff   : > { %v5125_v8 = vpop.f32.mrf.mxu2  ;;  %v5645_v5 = vpop.f32.mrf.mxu3  ;;  %v6542_v20 = vmax.f32 %v6334_v10, 0.0  ;;  %v6594_v55 = vmax.f32 %v6386_v39, 0.0  ;;  %v5863_v29 = vmax.f32 %v13670_v37, %v13669_v4  ;;  %v13680_v10 = vld [vmem:[#allocation118_spill] sm:$0xff]  ;;  %v13689_v27 = vld [vmem:[#allocation57_spill] sm:$0xff] }
 0x700   : > { %v9682_v19 = vpack.c.bf16 %v6645_v48, %v6644_v3  ;;  %v9812_v22 = vpack.c.bf16 %v6697_v60, %v6696_v1  ;;  %v4087_v34 = vpop.f32.mrf.mxu0  ;;  %v4607_v28 = vpop.f32.mrf.mxu1  ;;  %v6018_v18 = vmax.f32 %v13661_v16, %v5125_v8  ;;  %v6070_v9 = vmax.f32 %v13662_v43, %v5645_v5  ;;  %v13673_v1 = vld [vmem:[#allocation260_spill] sm:$0xff]  ;;  %v13674_v60 = vld [vmem:[#allocation258_spill] sm:$0xff] }
 0x701   : > { %v5915_v49 = vmax.f32 %v13659_v45, %v4087_v34  ;;  %v5967_v25 = vmax.f32 %v13660_v26, %v4607_v28  ;;  %v13675_v5 = vld [vmem:[#allocation144_spill] sm:$0xff]  ;;  %v13678_v28 = vld [vmem:[#allocation26_spill] sm:$0xff] }
 0x702   : > { %9902 = vst [vmem:[%s10891_s14 + $0x250] sm:$0xff] %v9682_v19   ;;  %v6226_v17 = vmax.f32 %v5810_v56, %v6018_v18  ;;  %v6278_v31 = vmax.f32 %v5862_v32, %v6070_v9  ;;  %v13676_v19 = vld [vmem:[#allocation114_spill] sm:$0xff]  ;;  %v13677_v34 = vld [vmem:[#allocation56_spill] sm:$0xff]  ;;  %v13685_v32 = vld [vmem:[#allocation259_spill] sm:$0xff] }
 0x703   : > { %9928 = vst [vmem:[%s10891_s14 + $0x320] sm:$0xff] %v9812_v22   ;;  %v6123_v54 = vmax.f32 %v5707_v40, %v5915_v49  ;;  %v6175_v41 = vmax.f32 %v5759_v15, %v5967_v25  ;;  %v5708_v22 = vmax.f32 %v13676_v19, %v13675_v5  ;;  %v5760_v59 = vmax.f32 %v13678_v28, %v13677_v34  ;;  %v13679_v9 = vld [vmem:[#allocation230_spill] sm:$0xff] }
 0x704   : > { %v6438_v61 = vadd.f32 %v12516_v6, %v6226_v17  ;;  %v6490_v11 = vadd.f32 %v12516_v6, %v6278_v31  ;;  %v5709_v39 = vmax.f32 %v13680_v10, %v13679_v9 }
 0x705   : > { %v6335_v36 = vadd.f32 %v12516_v6, %v6123_v54  ;;  %v6387_v0 = vadd.f32 %v12516_v6, %v6175_v41  ;;  %v13681_v54 = vld [vmem:[#allocation231_spill] sm:$0xff]  ;;  %v13682_v41 = vld [vmem:[#allocation30_spill] sm:$0xff] }
 0x706   : > { %v6646_v42 = vmax.f32 %v6438_v61, 0.0  ;;  %v6698_v40 = vmax.f32 %v6490_v11, 0.0  ;;  %v5761_v24 = vmax.f32 %v13682_v41, %v13681_v54  ;;  %v13692_v61 = vld [vmem:[#allocation119_spill] sm:$0xff] }
 0x707   : > { %v6543_v58 = vmax.f32 %v6335_v36, 0.0  ;;  %v6595_v13 = vmax.f32 %v6387_v0, 0.0  ;;  %v5127_v38 = vpop.f32.mrf.mxu2  ;;  %v5647_v35 = vpop.f32.mrf.mxu3  ;;  %v13686_v0 = vld [vmem:[#allocation172_spill] sm:$0xff] }
 0x708   : > { %v6019_v14 = vmax.f32 %v13671_v30, %v5127_v38  ;;  %v6071_v12 = vmax.f32 %v13672_v63, %v5647_v35  ;;  %v4090_v21 = vpop.f32.mrf.mxu0  ;;  %v4610_v46 = vpop.f32.mrf.mxu1  ;;  %v13688_v38 = vld [vmem:[#allocation115_spill] sm:$0xff] }
 0x709   : > { %v9427_v53 = vpack.c.bf16 %v6543_v58, %v6542_v20  ;;  %v9557_v57 = vpack.c.bf16 %v6595_v13, %v6594_v55  ;;  %v5916_v48 = vmax.f32 %v13673_v1, %v4090_v21  ;;  %v5968_v33 = vmax.f32 %v13674_v60, %v4610_v46  ;;  %v13687_v13 = vld [vmem:[#allocation145_spill] sm:$0xff] }
 0x70a   : > { %v6227_v51 = vmax.f32 %v5811_v7, %v6019_v14  ;;  %v6279_v3 = vmax.f32 %v5863_v29, %v6071_v12  ;;  %v5812_v35 = vmax.f32 %v13688_v38, %v13687_v13  ;;  %v5864_v7 = vmax.f32 %v13690_v52, %v13689_v27  ;;  %v13707_v38 = vld [vmem:[#allocation262_spill] sm:$0xff]  ;;  %v13708_v27 = vld [vmem:[#allocation263_spill] sm:$0xff] }
 0x70b   : > { %9851 = vst [vmem:[%s10891_s14 + $0xb8] sm:$0xff] %v9427_v53   ;;  %v6124_v15 = vmax.f32 %v5708_v22, %v5916_v48  ;;  %v6176_v45 = vmax.f32 %v5760_v59, %v5968_v33  ;;  %v13695_v48 = vld [vmem:[#allocation85_spill] sm:$0xff]  ;;  %v13696_v33 = vld [vmem:[#allocation176_spill] sm:$0xff] }
 0x70c   : > { %9877 = vst [vmem:[%s10891_s14 + $0x188] sm:$0xff] %v9557_v57   ;;  %v6439_v47 = vadd.f32 %v12516_v6, %v6227_v51  ;;  %v6491_v8 = vadd.f32 %v12516_v6, %v6279_v3  ;;  %v13691_v57 = vld [vmem:[#allocation232_spill] sm:$0xff]  ;;  %v13693_v51 = vld [vmem:[#allocation233_spill] sm:$0xff]  ;;  %v13694_v3 = vld [vmem:[#allocation31_spill] sm:$0xff] }
 0x70d   : > { %v6336_v31 = vadd.f32 %v12516_v6, %v6124_v15  ;;  %v6388_v20 = vadd.f32 %v12516_v6, %v6176_v45  ;;  %v5813_v11 = vmax.f32 %v13692_v61, %v13691_v57  ;;  %v5865_v1 = vmax.f32 %v13694_v3, %v13693_v51  ;;  %v13713_v57 = vld [vmem:[#allocation59_spill] sm:$0xff] }
 0x70e   : > { %v6647_v62 = vmax.f32 %v6439_v47, 0.0  ;;  %v6699_v50 = vmax.f32 %v6491_v8, 0.0  ;;  %v13714_v61 = vld [vmem:[#allocation203_spill] sm:$0xff] }
 0x70f   : > { %v5130_v49 = vpop.f32.mrf.mxu2  ;;  %v5650_v26 = vpop.f32.mrf.mxu3  ;;  %v6544_v14 = vmax.f32 %v6336_v31, 0.0  ;;  %v6596_v63 = vmax.f32 %v6388_v20, 0.0  ;;  %v13704_v31 = vld [vmem:[#allocation116_spill] sm:$0xff] }
 0x710   : > { %v9687_v25 = vpack.c.bf16 %v6647_v62, %v6646_v42  ;;  %v9817_v16 = vpack.c.bf16 %v6699_v50, %v6698_v40  ;;  %v4092_v18 = vpop.f32.mrf.mxu0  ;;  %v4612_v43 = vpop.f32.mrf.mxu1  ;;  %v6020_v36 = vmax.f32 %v13685_v32, %v5130_v49  ;;  %v6072_v17 = vmax.f32 %v13686_v0, %v5650_v26  ;;  %v13697_v40 = vld [vmem:[#allocation88_spill] sm:$0xff]  ;;  %v13698_v50 = vld [vmem:[#allocation177_spill] sm:$0xff]  ;;  %v13699_v26 = vld [vmem:[#allocation146_spill] sm:$0xff] }
 0x711   : > { %v5917_v56 = vmax.f32 %v13683_v23, %v4092_v18  ;;  %v5969_v2 = vmax.f32 %v13684_v44, %v4612_v43  ;;  %v13701_v18 = vld [vmem:[#allocation58_spill] sm:$0xff]  ;;  %v13702_v43 = vld [vmem:[#allocation205_spill] sm:$0xff] }
 0x712   : > { %9903 = vst [vmem:[%s10891_s14 + $0x258] sm:$0xff] %v9687_v25   ;;  %v6228_v29 = vmax.f32 %v5812_v35, %v6020_v36  ;;  %v6280_v30 = vmax.f32 %v5864_v7, %v6072_v17  ;;  %v13700_v25 = vld [vmem:[#allocation204_spill] sm:$0xff]  ;;  %v5762_v9 = vmax.f32 %v13702_v43, %v13701_v18  ;;  %v13703_v17 = vld [vmem:[#allocation150_spill] sm:$0xff]  ;;  %v13709_v7 = vld [vmem:[#allocation89_spill] sm:$0xff] }
 0x713   : > { %9929 = vst [vmem:[%s10891_s14 + $0x328] sm:$0xff] %v9817_v16   ;;  %v6125_v55 = vmax.f32 %v5709_v39, %v5917_v56  ;;  %v6177_v58 = vmax.f32 %v5761_v24, %v5969_v2  ;;  %v5710_v16 = vmax.f32 %v13700_v25, %v13699_v26  ;;  %v5711_v20 = vmax.f32 %v13704_v31, %v13703_v17 }
 0x714   : > { %v6440_v34 = vadd.f32 %v12516_v6, %v6228_v29  ;;  %v6492_v28 = vadd.f32 %v12516_v6, %v6280_v30 }
 0x715   : > { %v6337_v4 = vadd.f32 %v12516_v6, %v6125_v55  ;;  %v6389_v37 = vadd.f32 %v12516_v6, %v6177_v58  ;;  %v13705_v55 = vld [vmem:[#allocation62_spill] sm:$0xff]  ;;  %v13706_v58 = vld [vmem:[#allocation28_spill] sm:$0xff] }
 0x716   : > { %v6648_v10 = vmax.f32 %v6440_v34, 0.0  ;;  %v6700_v39 = vmax.f32 %v6492_v28, 0.0  ;;  %v5763_v13 = vmax.f32 %v13706_v58, %v13705_v55  ;;  %v13716_v34 = vld [vmem:[#allocation117_spill] sm:$0xff] }
 0x717   : > { %v6545_v12 = vmax.f32 %v6337_v4, 0.0  ;;  %v6597_v21 = vmax.f32 %v6389_v37, 0.0  ;;  %v5132_v46 = vpop.f32.mrf.mxu2  ;;  %v5652_v53 = vpop.f32.mrf.mxu3  ;;  %v13710_v37 = vld [vmem:[#allocation261_spill] sm:$0xff] }
 0x718   : > { %v6021_v60 = vmax.f32 %v13695_v48, %v5132_v46  ;;  %v6073_v47 = vmax.f32 %v13696_v33, %v5652_v53  ;;  %v4095_v8 = vpop.f32.mrf.mxu0  ;;  %v4615_v5 = vpop.f32.mrf.mxu1  ;;  %v13712_v46 = vld [vmem:[#allocation202_spill] sm:$0xff] }
 0x719   : > { %v9432_v19 = vpack.c.bf16 %v6545_v12, %v6544_v14  ;;  %v9562_v22 = vpack.c.bf16 %v6597_v21, %v6596_v63  ;;  %v5918_v62 = vmax.f32 %v13697_v40, %v4095_v8  ;;  %v5970_v15 = vmax.f32 %v13698_v50, %v4615_v5  ;;  %v13711_v21 = vld [vmem:[#allocation147_spill] sm:$0xff] }
 0x71a   : > { %v6229_v59 = vmax.f32 %v5813_v11, %v6021_v60  ;;  %v6281_v42 = vmax.f32 %v5865_v1, %v6073_v47  ;;  %v5814_v53 = vmax.f32 %v13712_v46, %v13711_v21  ;;  %v5866_v11 = vmax.f32 %v13714_v61, %v13713_v57 }
 0x71b   : > { %9852 = vst [vmem:[%s10891_s14 + $0xc0] sm:$0xff] %v9432_v19   ;;  %v6126_v24 = vmax.f32 %v5710_v16, %v5918_v62  ;;  %v6178_v23 = vmax.f32 %v5762_v9, %v5970_v15  ;;  %v13719_v62 = vld [vmem:[#allocation264_spill] sm:$0xff]  ;;  %v13720_v15 = vld [vmem:[#allocation265_spill] sm:$0xff] }
 0x71c   : > { %9878 = vst [vmem:[%s10891_s14 + $0x190] sm:$0xff] %v9562_v22   ;;  %v6441_v45 = vadd.f32 %v12516_v6, %v6229_v59  ;;  %v6493_v49 = vadd.f32 %v12516_v6, %v6281_v42  ;;  %v13715_v22 = vld [vmem:[#allocation151_spill] sm:$0xff]  ;;  %v13718_v42 = vld [vmem:[#allocation29_spill] sm:$0xff] }
 0x71d   : > { %v6338_v30 = vadd.f32 %v12516_v6, %v6126_v24  ;;  %v6390_v14 = vadd.f32 %v12516_v6, %v6178_v23  ;;  %v5815_v28 = vmax.f32 %v13716_v34, %v13715_v22  ;;  %v13717_v59 = vld [vmem:[#allocation63_spill] sm:$0xff] }
 0x71e   : > { %v6649_v54 = vmax.f32 %v6441_v45, 0.0  ;;  %v6701_v41 = vmax.f32 %v6493_v49, 0.0  ;;  %v5867_v40 = vmax.f32 %v13718_v42, %v13717_v59 }
 0x71f   : > { %v5135_v56 = vpop.f32.mrf.mxu2  ;;  %v5655_v44 = vpop.f32.mrf.mxu3  ;;  %v6546_v60 = vmax.f32 %v6338_v30, 0.0  ;;  %v6598_v33 = vmax.f32 %v6390_v14, 0.0 }
 0x720   : > { %v9692_v2 = vpack.c.bf16 %v6649_v54, %v6648_v10  ;;  %v9822_v32 = vpack.c.bf16 %v6701_v41, %v6700_v39  ;;  %v4097_v36 = vpop.f32.mrf.mxu0  ;;  %v4617_v0 = vpop.f32.mrf.mxu1  ;;  %v6022_v4 = vmax.f32 %v13709_v7, %v5135_v56  ;;  %v6074_v29 = vmax.f32 %v13710_v37, %v5655_v44 }
 0x721   : > { %v5919_v35 = vmax.f32 %v13707_v38, %v4097_v36  ;;  %v5971_v52 = vmax.f32 %v13708_v27, %v4617_v0 }
 0x722   : > { %9904 = vst [vmem:[%s10891_s14 + $0x260] sm:$0xff] %v9692_v2   ;;  %v6230_v1 = vmax.f32 %v5814_v53, %v6022_v4  ;;  %v6282_v48 = vmax.f32 %v5866_v11, %v6074_v29 }
 0x723   : > { %9930 = vst [vmem:[%s10891_s14 + $0x330] sm:$0xff] %v9822_v32   ;;  %v6127_v63 = vmax.f32 %v5711_v20, %v5919_v35  ;;  %v6179_v12 = vmax.f32 %v5763_v13, %v5971_v52 }
 0x724   : > { %v6442_v25 = vadd.f32 %v12516_v6, %v6230_v1  ;;  %v6494_v16 = vadd.f32 %v12516_v6, %v6282_v48 }
 0x725   : > { %v6339_v51 = vadd.f32 %v12516_v6, %v6127_v63  ;;  %v6391_v3 = vadd.f32 %v12516_v6, %v6179_v12 }
 0x726   : > { %v6650_v39 = vmax.f32 %v6442_v25, 0.0  ;;  %v6702_v54 = vmax.f32 %v6494_v16, 0.0 }
 0x727   : > { %v6547_v47 = vmax.f32 %v6339_v51, 0.0  ;;  %v6599_v8 = vmax.f32 %v6391_v3, 0.0  ;;  %v5137_v5 = vpop.f32.mrf.mxu2  ;;  %v5657_v19 = vpop.f32.mrf.mxu3 }
 0x728   : > { %v6023_v50 = vmax.f32 %v13719_v62, %v5137_v5  ;;  %v6075_v45 = vmax.f32 %v13720_v15, %v5657_v19 }
 0x729   : > { %v9437_v49 = vpack.c.bf16 %v6547_v47, %v6546_v60  ;;  %v9567_v26 = vpack.c.bf16 %v6599_v8, %v6598_v33 }
 0x72a   : > { %v6231_v18 = vmax.f32 %v5815_v28, %v6023_v50  ;;  %v6283_v43 = vmax.f32 %v5867_v40, %v6075_v45 }
 0x72b   : > { %9853 = vst [vmem:[%s10891_s14 + $0xc8] sm:$0xff] %v9437_v49  }
 0x72c   : > { %9879 = vst [vmem:[%s10891_s14 + $0x198] sm:$0xff] %v9567_v26   ;;  %v6443_v9 = vadd.f32 %v12516_v6, %v6231_v18  ;;  %v6495_v10 = vadd.f32 %v12516_v6, %v6283_v43 }
 0x72e   : > { %v6651_v41 = vmax.f32 %v6443_v9, 0.0  ;;  %v6703_v24 = vmax.f32 %v6495_v10, 0.0 }
 0x730   : > { %v9697_v23 = vpack.c.bf16 %v6651_v41, %v6650_v39  ;;  %v9827_v56 = vpack.c.bf16 %v6703_v24, %v6702_v54 }
 0x732   : > { %9905 = vst [vmem:[%s10891_s14 + $0x268] sm:$0xff] %v9697_v23  }
 0x733   : > { %9931 = vst [vmem:[%s10891_s14 + $0x338] sm:$0xff] %v9827_v56  }
 0x734 PF: > { %s13_s12 = sadd.s32 1, %s9976_s12  }
 0x735   : > { %p10_p4 = scmp.ge.s32.totalorder %s13_s12, 4  }
 0x737   :  { %12 = sbr.rel (!%p10_p4) target bundleno = 1 (0x1), region = 62 }

// kernel: modelfedcon_forward.3
= control target key start
LH: loop header
LB: loop body
LE: loop exit
PB: predicated region body
PF: predicated region fallthrough
CT: control target
= control target key end

     0   :  { %s7786_s0 = inlined_call_operand.vmem [shape: bf16[16,128,256], index: 0, kind: input, shape index: {}]   ;;  %s7787_s1 = inlined_call_operand.vmem [shape: bf16[256,128], index: 1, kind: input, shape index: {}]   ;;  %s7788_s2 = inlined_call_operand.vmem [shape: f32[1,128], index: 2, kind: input, shape index: {}]   ;;  %s7789_s3 = inlined_call_operand.vmem [shape: f32[25,128,128], index: 3, kind: input, shape index: {}]   ;;  %s7790_s4 = inlined_call_operand.vmem [shape: f32[1,128], index: 4, kind: input, shape index: {}]   ;;  %s7791_s5 = inlined_call_operand.vmem [shape: f32[128,128], index: 5, kind: input, shape index: {}]   ;;  %s7792_s6 = inlined_call_operand.vmem [shape: f32[1,128], index: 6, kind: input, shape index: {}]   ;;  %s7793_s7 = inlined_call_operand.vmem [shape: f32[128,128], index: 7, kind: input, shape index: {}]   ;;  %s7794_s8 = inlined_call_operand.vmem [shape: f32[1,128], index: 8, kind: input, shape index: {}]   ;;  %s7795_s9 = inlined_call_operand.vmem [shape: f32[16,128], index: 9, kind: output, shape index: {0}]   ;;  %s7796_s10 = inlined_call_operand.hbm [shape: f32[16,128], index: 10, kind: output, shape index: {1}]  }
   0x1   :  { %7809 = sst [smem:[#allocation50_spill]] %s7786_s0 }
   0x2   :  { %7810 = sst [smem:[#allocation51_spill]] %s7787_s1 }
   0x3   :  { %16 = vsyncpa [#allocation3], 0 }
   0x4   :  { %18 = vsyncpa [#allocation3 + $0x1], 0  ;;  %s4946_s13 = smov 0   ;;  %s4948_s14 = smov 0  }
   0x5   :  { %s4950_s15 = smov 0   ;;  %s4952_s16 = smov 0  }
   0x6 LB: > { %s4967_s17 = sadd.s32 4294967295, %s4889_s16   ;;  %s3648_s18 = sadd.s32 4294967294, %s4889_s16   ;;  %s4889_s16 = sphi %s4952_s16, %s7931_s16   ;;  %s4885_s15 = sphi %s4950_s15, %s7930_s15   ;;  %s4881_s14 = sphi %s4948_s14, %s7929_s14   ;;  %s4877_s13 = sphi %s4946_s13, %s7928_s13  }
   0x7   : > { %s4971_s19 = sadd.s32 1, %s4889_s16   ;;  %s251_s20 = sadd.s32 1, %s4885_s15 }
   0x8   : > { %s248_s21 = ssub.s32 %s4889_s16, %s4971_s19  ;;  %p261_p0 = scmp.ne.s32.totalorder %s4885_s15, %s4881_s14 }
   0x9   : > { %p249_p1 = scmp.eq.s32.totalorder %s248_s21, 0  ;;  %p262_p2 = scmp.eq.s32.totalorder %s4967_s17, 1 }
   0xa   : > { %p267_p3 = scmp.ne.s32.totalorder %s4881_s14, %s4877_s13  ;;  %p268_p4 = scmp.eq.s32.totalorder %s3648_s18, 1 }
   0xb   : > { %s4982_s22 = scalar_select %p249_p1, %s4885_s15, %s251_s20  }
   0xc   : > { %p4984_p5 = por %p262_p2, %p261_p0  ;;  %p4988_p6 = por %p268_p4, %p267_p3 }
   0xd   : > { %7811 = sst [smem:[#allocation5_spill]] %s4982_s22  ;;  %p3651_p7 = scmp.ge.s32.totalorder %s4889_s16, 1 }
   0xe   : > { %p320_p8 = scmp.lt.s32.totalorder %s4889_s16, 3 }
  0x10   : > { %p321_p9 = pnand %p3651_p7, %p320_p8 }
  0x12   : > { %324 = sbr.rel (%p321_p9) target bundleno = 1672 (0x688), region = 56 }
  0x17   : > { %s7814_s1 = sld [smem:[#allocation51_spill]]  ;;  %s5013_s26 = sshll.u32 %s4967_s17, 3  ;;  %vm2134_vm0 = vcmask 1041409   ;;  %vm2137_vm1 = vcmask 1042434   ;;  %vm2140_vm2 = vcmask 1043459   ;;  %vm2143_vm3 = vcmask 1044484  }
  0x18   : > { %p364_p10 = scmp.lt.s32.totalorder %s5013_s26, 15  ;;  %s7815_s0 = sld [smem:[#allocation50_spill]]  ;;  %vm2146_vm4 = vcmask 1045509   ;;  %vm2149_vm5 = vcmask 1046534   ;;  %vm2152_vm6 = vcmask 1047559  }
  0x19   : > { %p370_p11 = scmp.lt.s32.totalorder %s4967_s17, 1  ;;  %s360_s11 = sand.u32 1, %s4881_s14  }
  0x1a   : > { %s365_s21 = scalar_select %p364_p10, %s5013_s26, 15 }
  0x1b   : > { %s7933_s17 = smov (!%p370_p11, %s4967_s17), 1  ;;  %s3652_s22 = sshll.u32 %s360_s11, 3 }
  0x1c   : > { %s4621_s30 = sshll.u32 %s365_s21, 7  ;;  %s3656_s25 = sshll.u32 %s7933_s17, 3 }
  0x1d   : > { %v4757_v0 = vld [vmem:[%s7814_s1 + $0x38] sm:$0xff]  ;;  %v4756_v2 = vld [vmem:[%s7814_s1 + $0x30] sm:$0xff]  ;;  %v4755_v4 = vld [vmem:[%s7814_s1 + $0x28] sm:$0xff]  ;;  %s373_s29 = scalar_lea.vmem %s7795_s9, %s3656_s25  ;;  %s3560_s18 = scalar_lea.hbm %s7796_s10, %s5013_s26 }
  0x1e   : > { %v4765_v1 = vld [vmem:[%s7814_s1 + $0x78] sm:$0xff]  ;;  %1270 = vmatpush.bf16.msra.mxu0 %v4757_v0  ;;  %v4764_v3 = vld [vmem:[%s7814_s1 + $0x70] sm:$0xff]  ;;  %4766 = vmatpush.bf16.msra.mxu3 %v4757_v0  ;;  %v4763_v5 = vld [vmem:[%s7814_s1 + $0x68] sm:$0xff]  ;;  %s5044_s27 = scalar_lea.vmem %s7815_s0, %s4621_s30  ;;  %s362_s17 = scalar_lea.vmem [#allocation2], %s3652_s22 }
  0x1f   : > { %1599 = vmatpush.bf16.msra.mxu1 %v4765_v1  ;;  %4774 = vmatpush.bf16.msra.mxu2 %v4765_v1  ;;  %v4754_v6 = vld [vmem:[%s7814_s1 + $0x20] sm:$0xff]  ;;  %v4753_v8 = vld [vmem:[%s7814_s1 + $0x18] sm:$0xff]  ;;  %v4752_v10 = vld [vmem:[%s7814_s1 + $0x10] sm:$0xff]  ;;  %s3562_s20 = sshll.u32 %s362_s17, 4  ;;  %s3547_s25 = scalar_lea.sflag [#allocation3], %s360_s11  ;;  %s3563_s20 = int_to_ptr.vmem [resolvable:$true] %s3562_s20 }
  0x20   : > { %v4762_v7 = vld [vmem:[%s7814_s1 + $0x60] sm:$0xff]  ;;  %v4761_v9 = vld [vmem:[%s7814_s1 + $0x58] sm:$0xff]  ;;  %v4760_v11 = vld [vmem:[%s7814_s1 + $0x50] sm:$0xff]  ;;  %s4847_s0 = scalar_lea.hbm %s7796_s10, 16 }
  0x21   : > { %v4751_v12 = vld [vmem:[%s7814_s1 + $0x8] sm:$0xff]  ;;  %v4750_v14 = vld [vmem:[%s7814_s1] sm:$0xff]  ;;  %v3667_v22 = vld [vmem:[%s5044_s27 + $0x10] sm:$0xf] }
  0x22   : > { %1271 = vmatpush.bf16.msra.mxu0 %v4756_v2  ;;  %4767 = vmatpush.bf16.msra.mxu3 %v4756_v2  ;;  %v4759_v13 = vld [vmem:[%s7814_s1 + $0x48] sm:$0xff]  ;;  %v4758_v15 = vld [vmem:[%s7814_s1 + $0x40] sm:$0xff]  ;;  %v4625_v23 = vld [vmem:[%s5044_s27 + $0x14] sm:$0xf0]  ;;  %s3564_s1 = sshll.u32 %s3560_s18, 4  ;;  %s3565_s1 = int_to_ptr.hbm [resolvable:$true] %s3564_s1 }
  0x23   : > { %1600 = vmatpush.bf16.msra.mxu1 %v4764_v3  ;;  %4775 = vmatpush.bf16.msra.mxu2 %v4764_v3  ;;  %v3659_v16 = vld [vmem:[%s5044_s27] sm:$0xf]  ;;  %v4623_v17 = vld [vmem:[%s5044_s27 + $0x4] sm:$0xf0]  ;;  %v4622_v18 = vld [vmem:[%s5044_s27 + $0x4] sm:$0xf]  ;;  %v3668_v26 = vor.u32 %v4625_v23, %v3667_v22 }
  0x24   : > { %v3661_v19 = vld [vmem:[%s5044_s27 + $0x8] sm:$0xf0]  ;;  %v3660_v20 = vor.u32 %v4623_v17, %v3659_v16  ;;  %v4624_v24 = vld [vmem:[%s5044_s27 + $0x14] sm:$0xf]  ;;  %v3669_v25 = vld [vmem:[%s5044_s27 + $0x18] sm:$0xf0] }
  0x25   : > { %v3664_v21 = vor.u32 %v4622_v18, %v3661_v19  ;;  %v3672_v27 = vor.u32 %v4624_v24, %v3669_v25  ;;  %v3675_v28 = vld [vmem:[%s5044_s27 + $0x20] sm:$0xf]  ;;  %v4627_v29 = vld [vmem:[%s5044_s27 + $0x24] sm:$0xf0]  ;;  %v4626_v30 = vld [vmem:[%s5044_s27 + $0x24] sm:$0xf] }
  0x26   : > { %1272 = vmatpush.bf16.msra.mxu0 %v4755_v4  ;;  %4768 = vmatpush.bf16.msra.mxu3 %v4755_v4  ;;  %v3677_v31 = vld [vmem:[%s5044_s27 + $0x28] sm:$0xf0]  ;;  %v3676_v32 = vor.u32 %v4627_v29, %v3675_v28  ;;  %v3683_v34 = vld [vmem:[%s5044_s27 + $0x30] sm:$0xf]  ;;  %v4629_v35 = vld [vmem:[%s5044_s27 + $0x34] sm:$0xf0] }
  0x27   : > { %1601 = vmatpush.bf16.msra.mxu1 %v4763_v5  ;;  %4776 = vmatpush.bf16.msra.mxu2 %v4763_v5  ;;  %v3680_v33 = vor.u32 %v4626_v30, %v3677_v31  ;;  %v4628_v36 = vld [vmem:[%s5044_s27 + $0x34] sm:$0xf]  ;;  %v3685_v37 = vld [vmem:[%s5044_s27 + $0x38] sm:$0xf0]  ;;  %v3684_v38 = vor.u32 %v4629_v35, %v3683_v34  ;;  %v3691_v40 = vld [vmem:[%s5044_s27 + $0x40] sm:$0xf] }
  0x28   : > { %v3688_v39 = vor.u32 %v4628_v36, %v3685_v37  ;;  %v4631_v41 = vld [vmem:[%s5044_s27 + $0x44] sm:$0xf0]  ;;  %v4630_v42 = vld [vmem:[%s5044_s27 + $0x44] sm:$0xf]  ;;  %v3693_v43 = vld [vmem:[%s5044_s27 + $0x48] sm:$0xf0] }
  0x29   : > { %v3692_v44 = vor.u32 %v4631_v41, %v3691_v40  ;;  %v3696_v45 = vor.u32 %v4630_v42, %v3693_v43  ;;  %v3699_v46 = vld [vmem:[%s5044_s27 + $0x50] sm:$0xf]  ;;  %v4633_v47 = vld [vmem:[%s5044_s27 + $0x54] sm:$0xf0]  ;;  %v4632_v48 = vld [vmem:[%s5044_s27 + $0x54] sm:$0xf] }
  0x2a   : > { %1273 = vmatpush.bf16.msra.mxu0 %v4754_v6  ;;  %4769 = vmatpush.bf16.msra.mxu3 %v4754_v6  ;;  %v3701_v49 = vld [vmem:[%s5044_s27 + $0x58] sm:$0xf0]  ;;  %v3700_v50 = vor.u32 %v4633_v47, %v3699_v46  ;;  %v3707_v52 = vld [vmem:[%s5044_s27 + $0x60] sm:$0xf]  ;;  %v4635_v53 = vld [vmem:[%s5044_s27 + $0x64] sm:$0xf0] }
  0x2b   : > { %1602 = vmatpush.bf16.msra.mxu1 %v4762_v7  ;;  %4777 = vmatpush.bf16.msra.mxu2 %v4762_v7  ;;  %v3704_v51 = vor.u32 %v4632_v48, %v3701_v49  ;;  %v4634_v54 = vld [vmem:[%s5044_s27 + $0x64] sm:$0xf]  ;;  %v3709_v55 = vld [vmem:[%s5044_s27 + $0x68] sm:$0xf0]  ;;  %v3708_v56 = vor.u32 %v4635_v53, %v3707_v52  ;;  %v3715_v58 = vld [vmem:[%s5044_s27 + $0x70] sm:$0xf] }
  0x2c   : > { %v3712_v57 = vor.u32 %v4634_v54, %v3709_v55  ;;  %v4637_v59 = vld [vmem:[%s5044_s27 + $0x74] sm:$0xf0]  ;;  %v4636_v60 = vld [vmem:[%s5044_s27 + $0x74] sm:$0xf]  ;;  %v3717_v61 = vld [vmem:[%s5044_s27 + $0x78] sm:$0xf0] }
  0x2d   : > { %v3716_v62 = vor.u32 %v4637_v59, %v3715_v58  ;;  %v3720_v63 = vor.u32 %v4636_v60, %v3717_v61  ;;  %v3723_v0 = vld [vmem:[%s5044_s27 + $0x80] sm:$0xf]  ;;  %v4639_v1 = vld [vmem:[%s5044_s27 + $0x84] sm:$0xf0]  ;;  %v4638_v2 = vld [vmem:[%s5044_s27 + $0x84] sm:$0xf] }
  0x2e   : > { %1274 = vmatpush.bf16.msra.mxu0 %v4753_v8  ;;  %4770 = vmatpush.bf16.msra.mxu3 %v4753_v8  ;;  %v3725_v3 = vld [vmem:[%s5044_s27 + $0x88] sm:$0xf0]  ;;  %v3724_v4 = vor.u32 %v4639_v1, %v3723_v0  ;;  %v3739_v24 = vld [vmem:[%s5044_s27 + $0xa0] sm:$0xf]  ;;  %v4643_v25 = vld [vmem:[%s5044_s27 + $0xa4] sm:$0xf0] }
  0x2f   : > { %1603 = vmatpush.bf16.msra.mxu1 %v4761_v9  ;;  %4778 = vmatpush.bf16.msra.mxu2 %v4761_v9  ;;  %v3728_v5 = vor.u32 %v4638_v2, %v3725_v3  ;;  %v3740_v28 = vor.u32 %v4643_v25, %v3739_v24  ;;  %v4644_v40 = vld [vmem:[%s5044_s27 + $0xb4] sm:$0xf]  ;;  %v3749_v41 = vld [vmem:[%s5044_s27 + $0xb8] sm:$0xf0]  ;;  %v3755_v52 = vld [vmem:[%s5044_s27 + $0xc0] sm:$0xf] }
  0x30   : > { %v3752_v43 = vor.u32 %v4644_v40, %v3749_v41  ;;  %v4647_v53 = vld [vmem:[%s5044_s27 + $0xc4] sm:$0xf0]  ;;  %v4646_v54 = vld [vmem:[%s5044_s27 + $0xc4] sm:$0xf]  ;;  %v3757_v55 = vld [vmem:[%s5044_s27 + $0xc8] sm:$0xf0] }
  0x31   : > { %v3763_v0 = vld [vmem:[%s5044_s27 + $0xd0] sm:$0xf]  ;;  %v4649_v1 = vld [vmem:[%s5044_s27 + $0xd4] sm:$0xf0]  ;;  %v4648_v2 = vld [vmem:[%s5044_s27 + $0xd4] sm:$0xf] }
  0x32   : > { %1275 = vmatpush.bf16.msra.mxu0 %v4752_v10  ;;  %4771 = vmatpush.bf16.msra.mxu3 %v4752_v10  ;;  %v3765_v3 = vld [vmem:[%s5044_s27 + $0xd8] sm:$0xf0]  ;;  %s4841_s21 = sshra.s32 %s3565_s1, 4  ;;  %s4842_s21 = int_to_ptr.hbm [resolvable:$true] %s4841_s21 }
  0x33   : > { %1604 = vmatpush.bf16.msra.mxu1 %v4760_v11  ;;  %4779 = vmatpush.bf16.msra.mxu2 %v4760_v11  ;;  %s4843_s28 = scalar_lea.hbm %s4842_s21, 8  ;;  %p4848_p1 = scmp.lt.s32.totalorder %s4842_s21, %s7796_s10 }
  0x34   : > { %p4844_p12 = scmp.ne.s32.totalorder %s4842_s21, %s4843_s28  ;;  %p4849_p2 = scmp.lt.s32.totalorder %s4847_s0, %s4843_s28 }
  0x36   : > { %1276 = vmatpush.bf16.msra.mxu0 %v4751_v12  ;;  %4772 = vmatpush.bf16.msra.mxu3 %v4751_v12  ;;  %v3731_v12 = vld [vmem:[%s5044_s27 + $0x90] sm:$0xf]  ;;  %p4845_p13 = pnand %p4844_p12, %p4984_p5  ;;  %p4850_p3 = por %p4849_p2, %p4848_p1 }
  0x37   : > { %1605 = vmatpush.bf16.msra.mxu1 %v4759_v13  ;;  %4780 = vmatpush.bf16.msra.mxu2 %v4759_v13  ;;  %v4641_v13 = vld [vmem:[%s5044_s27 + $0x94] sm:$0xf0] }
  0x38   : > { %v3732_v16 = vor.u32 %v4641_v13, %v3731_v12  ;;  %p4846_p0 = pneg %p4845_p13 }
  0x3a   : > { %1277 = vmatpush.bf16.msra.mxu0 %v4750_v14  ;;  %4773 = vmatpush.bf16.msra.mxu3 %v4750_v14  ;;  %v4640_v14 = vld [vmem:[%s5044_s27 + $0x94] sm:$0xf]  ;;  %p4851_p4 = pnand %p4850_p3, %p4846_p0 }
  0x3b   : > { %1606 = vmatpush.bf16.msra.mxu1 %v4758_v15  ;;  %4781 = vmatpush.bf16.msra.mxu2 %v4758_v15  ;;  %v3733_v15 = vld [vmem:[%s5044_s27 + $0x98] sm:$0xf0] }
  0x3c   : > { %v3736_v17 = vor.u32 %v4640_v14, %v3733_v15  ;;  %v3771_v14 = vld [vmem:[%s5044_s27 + $0xe0] sm:$0xf]  ;;  %v4651_v15 = vld [vmem:[%s5044_s27 + $0xe4] sm:$0xf0] }
  0x3d   : > { %1278 = vmatmul.bf16.vlgmr.msra.gmra.mxu0 %v3660_v20 }
  0x3e   : > { %1607 = vmatmul.bf16.vlgmr.msra.gmra.mxu1 %v3664_v21 }
  0x4d   : > { %1283 = vmatmul.bf16.gmra.mxu0 %v3668_v26  ;;  %v4642_v26 = vld [vmem:[%s5044_s27 + $0xa4] sm:$0xf] }
  0x4e   : > { %1612 = vmatmul.bf16.gmra.mxu1 %v3672_v27  ;;  %v3741_v27 = vld [vmem:[%s5044_s27 + $0xa8] sm:$0xf0] }
  0x4f   : > { %v3744_v29 = vor.u32 %v4642_v26, %v3741_v27 }
  0x5d   : > { %1288 = vmatmul.bf16.gmra.mxu0 %v3676_v32 }
  0x5e   : > { %1617 = vmatmul.bf16.gmra.mxu1 %v3680_v33 }
  0x6d   : > { %1293 = vmatmul.bf16.gmra.mxu0 %v3684_v38  ;;  %v3747_v38 = vld [vmem:[%s5044_s27 + $0xb0] sm:$0xf] }
  0x6e   : > { %1622 = vmatmul.bf16.gmra.mxu1 %v3688_v39  ;;  %v4645_v39 = vld [vmem:[%s5044_s27 + $0xb4] sm:$0xf0] }
  0x6f   : > { %v3748_v42 = vor.u32 %v4645_v39, %v3747_v38  ;;  %v3781_v38 = vld [vmem:[%s5044_s27 + $0xf8] sm:$0xf0] }
  0x7d   : > { %1298 = vmatmul.bf16.gmra.mxu0 %v3692_v44 }
  0x7e   : > { %1627 = vmatmul.bf16.gmra.mxu1 %v3696_v45 }
  0x8d   : > { %1303 = vmatmul.bf16.gmra.mxu0 %v3700_v50 }
  0x8e   : > { %1632 = vmatmul.bf16.gmra.mxu1 %v3704_v51 }
  0x9d   : > { %1308 = vmatmul.bf16.gmra.mxu0 %v3708_v56  ;;  %v3756_v56 = vor.u32 %v4647_v53, %v3755_v52  ;;  %v3789_v52 = vld [vmem:[%s5044_s27 + $0x108] sm:$0xf0] }
  0x9e   : > { %1637 = vmatmul.bf16.gmra.mxu1 %v3712_v57  ;;  %v3760_v57 = vor.u32 %v4646_v54, %v3757_v55 }
  0xad   : > { %1313 = vmatmul.bf16.gmra.mxu0 %v3716_v62 }
  0xae   : > { %1642 = vmatmul.bf16.gmra.mxu1 %v3720_v63 }
  0xba   : > { %v1279_v6 = vpop.f32.mrf.mxu0 }
  0xbb   : > { %v1608_v7 = vpop.f32.mrf.mxu1 }
  0xbc   : > { %v5088_v8 = vadd.f32 %v1608_v7, %v1279_v6 }
  0xbd   : > { %1318 = vmatmul.bf16.gmra.mxu0 %v3724_v4  ;;  %v3764_v4 = vor.u32 %v4649_v1, %v3763_v0 }
  0xbe   : > { %1647 = vmatmul.bf16.gmra.mxu1 %v3728_v5  ;;  %v3768_v5 = vor.u32 %v4648_v2, %v3765_v3 }
  0xc2   : > { %v1281_v9 = vpop.f32.mrf.mxu0 }
  0xc3   : > { %v1610_v10 = vpop.f32.mrf.mxu1 }
  0xc4   : > { %v5090_v11 = vadd.f32 %v1610_v10, %v1281_v9 }
  0xca   : > { %v1284_v18 = vpop.f32.mrf.mxu0 }
  0xcb   : > { %v1613_v19 = vpop.f32.mrf.mxu1 }
  0xcc   : > { %v5096_v20 = vadd.f32 %v1613_v19, %v1284_v18  ;;  %v3772_v18 = vor.u32 %v4651_v15, %v3771_v14 }
  0xcd   : > { %1323 = vmatmul.bf16.gmra.mxu0 %v3732_v16  ;;  %v4650_v16 = vld [vmem:[%s5044_s27 + $0xe4] sm:$0xf] }
  0xce   : > { %1652 = vmatmul.bf16.gmra.mxu1 %v3736_v17  ;;  %v3773_v17 = vld [vmem:[%s5044_s27 + $0xe8] sm:$0xf0] }
  0xcf   : > { %v3776_v19 = vor.u32 %v4650_v16, %v3773_v17  ;;  %v4019_v16 = vld [vmem:[%s5044_s27 + $0x2d0] sm:$0xf]  ;;  %v4713_v17 = vld [vmem:[%s5044_s27 + $0x2d4] sm:$0xf0] }
  0xd2   : > { %v1286_v21 = vpop.f32.mrf.mxu0 }
  0xd3   : > { %v1615_v22 = vpop.f32.mrf.mxu1 }
  0xd4   : > { %v5098_v23 = vadd.f32 %v1615_v22, %v1286_v21 }
  0xda   : > { %v1289_v30 = vpop.f32.mrf.mxu0 }
  0xdb   : > { %v1618_v31 = vpop.f32.mrf.mxu1 }
  0xdc   : > { %v5104_v32 = vadd.f32 %v1618_v31, %v1289_v30  ;;  %v3779_v31 = vld [vmem:[%s5044_s27 + $0xf0] sm:$0xf] }
  0xdd   : > { %1328 = vmatmul.bf16.gmra.mxu0 %v3740_v28 }
  0xde   : > { %v1928_v33 = vmax.f32 %v5088_v8, %v5104_v32  ;;  %1657 = vmatmul.bf16.gmra.mxu1 %v3744_v29 }
  0xe2   : > { %v1291_v34 = vpop.f32.mrf.mxu0 }
  0xe3   : > { %v1620_v35 = vpop.f32.mrf.mxu1 }
  0xe4   : > { %v5108_v36 = vadd.f32 %v1620_v35, %v1291_v34  ;;  %v4653_v34 = vld [vmem:[%s5044_s27 + $0xf4] sm:$0xf0]  ;;  %v4652_v35 = vld [vmem:[%s5044_s27 + $0xf4] sm:$0xf] }
  0xe5   : > { %v3780_v40 = vor.u32 %v4653_v34, %v3779_v31  ;;  %v3784_v8 = vor.u32 %v4652_v35, %v3781_v38  ;;  %v4660_v31 = vld [vmem:[%s5044_s27 + $0x134] sm:$0xf]  ;;  %v3813_v34 = vld [vmem:[%s5044_s27 + $0x138] sm:$0xf0] }
  0xe6   : > { %v1929_v37 = vmax.f32 %v5090_v11, %v5108_v36  ;;  %v3816_v38 = vor.u32 %v4660_v31, %v3813_v34 }
  0xea   : > { %v1294_v44 = vpop.f32.mrf.mxu0 }
  0xeb   : > { %v1623_v45 = vpop.f32.mrf.mxu1 }
  0xec   : > { %v5116_v46 = vadd.f32 %v1623_v45, %v1294_v44  ;;  %v3787_v45 = vld [vmem:[%s5044_s27 + $0x100] sm:$0xf] }
  0xed   : > { %1333 = vmatmul.bf16.gmra.mxu0 %v3748_v42 }
  0xee   : > { %v1930_v47 = vmax.f32 %v5096_v20, %v5116_v46  ;;  %1662 = vmatmul.bf16.gmra.mxu1 %v3752_v43 }
  0xf2   : > { %v1296_v48 = vpop.f32.mrf.mxu0 }
  0xf3   : > { %v1625_v49 = vpop.f32.mrf.mxu1 }
  0xf4   : > { %v5120_v50 = vadd.f32 %v1625_v49, %v1296_v48  ;;  %v4655_v48 = vld [vmem:[%s5044_s27 + $0x104] sm:$0xf0]  ;;  %v4654_v49 = vld [vmem:[%s5044_s27 + $0x104] sm:$0xf] }
  0xf5   : > { %v3788_v20 = vor.u32 %v4655_v48, %v3787_v45  ;;  %v3792_v46 = vor.u32 %v4654_v49, %v3789_v52 }
  0xf6   : > { %v1931_v51 = vmax.f32 %v5098_v23, %v5120_v50  ;;  %v4656_v23 = vld [vmem:[%s5044_s27 + $0x114] sm:$0xf]  ;;  %v3797_v50 = vld [vmem:[%s5044_s27 + $0x118] sm:$0xf0] }
  0xfa   : > { %v1299_v58 = vpop.f32.mrf.mxu0 }
  0xfb   : > { %v1628_v59 = vpop.f32.mrf.mxu1 }
  0xfc   : > { %v1629_v60 = vadd.f32 %v1628_v59, %v1299_v58  ;;  %v3795_v59 = vld [vmem:[%s5044_s27 + $0x110] sm:$0xf] }
  0xfd   : > { %1338 = vmatmul.bf16.gmra.mxu0 %v3756_v56 }
  0xfe   : > { %1667 = vmatmul.bf16.gmra.mxu1 %v3760_v57 }
 0x102   : > { %v1301_v61 = vpop.f32.mrf.mxu0 }
 0x103   : > { %v1630_v62 = vpop.f32.mrf.mxu1 }
 0x104   : > { %v1631_v63 = vadd.f32 %v1630_v62, %v1301_v61  ;;  %v3800_v61 = vor.u32 %v4656_v23, %v3797_v50  ;;  %v4035_v50 = vld [vmem:[%s5044_s27 + $0x2f0] sm:$0xf] }
 0x10a   : > { %v1304_v6 = vpop.f32.mrf.mxu0 }
 0x10b   : > { %v1633_v7 = vpop.f32.mrf.mxu1 }
 0x10c   : > { %v1634_v9 = vadd.f32 %v1633_v7, %v1304_v6  ;;  %v4658_v6 = vld [vmem:[%s5044_s27 + $0x124] sm:$0xf]  ;;  %v3805_v7 = vld [vmem:[%s5044_s27 + $0x128] sm:$0xf0] }
 0x10d   : > { %1343 = vmatmul.bf16.gmra.mxu0 %v3764_v4  ;;  %v3803_v4 = vld [vmem:[%s5044_s27 + $0x120] sm:$0xf] }
 0x10e   : > { %1672 = vmatmul.bf16.gmra.mxu1 %v3768_v5  ;;  %v4659_v5 = vld [vmem:[%s5044_s27 + $0x124] sm:$0xf0] }
 0x112   : > { %v1306_v10 = vpop.f32.mrf.mxu0 }
 0x113   : > { %v1635_v12 = vpop.f32.mrf.mxu1 }
 0x114   : > { %v1636_v13 = vadd.f32 %v1635_v12, %v1306_v10  ;;  %v3808_v10 = vor.u32 %v4658_v6, %v3805_v7  ;;  %v3827_v6 = vld [vmem:[%s5044_s27 + $0x150] sm:$0xf]  ;;  %v4665_v7 = vld [vmem:[%s5044_s27 + $0x154] sm:$0xf0] }
 0x11a   : > { %v1309_v21 = vpop.f32.mrf.mxu0 }
 0x11b   : > { %v1638_v22 = vpop.f32.mrf.mxu1 }
 0x11c   : > { %v1639_v24 = vadd.f32 %v1638_v22, %v1309_v21  ;;  %v4021_v21 = vld [vmem:[%s5044_s27 + $0x2d8] sm:$0xf0] }
 0x11d   : > { %1348 = vmatmul.bf16.gmra.mxu0 %v3772_v18  ;;  %v4712_v18 = vld [vmem:[%s5044_s27 + $0x2d4] sm:$0xf] }
 0x11e   : > { %v1960_v25 = vmax.f32 %v1629_v60, %v1639_v24  ;;  %1677 = vmatmul.bf16.gmra.mxu1 %v3776_v19  ;;  %v4657_v60 = vld [vmem:[%s5044_s27 + $0x114] sm:$0xf0]  ;;  %v4020_v19 = vor.u32 %v4713_v17, %v4019_v16  ;;  %v4024_v22 = vor.u32 %v4712_v18, %v4021_v21  ;;  %v4719_v21 = vld [vmem:[%s5044_s27 + $0x304] sm:$0xf0] }
 0x120   : > { %v5139_v26 = vmax.f32 %v1928_v33, %v1960_v25  ;;  %1503 = vmatmul.bf16.vlgmr.msra.gmra.mxu3 %v4020_v19  ;;  %1832 = vmatmul.bf16.vlgmr.msra.gmra.mxu2 %v4024_v22  ;;  %v4043_v19 = vld [vmem:[%s5044_s27 + $0x300] sm:$0xf]  ;;  %v4718_v22 = vld [vmem:[%s5044_s27 + $0x304] sm:$0xf] }
 0x122   : > { %v1311_v27 = vpop.f32.mrf.mxu0 }
 0x123   : > { %v1640_v28 = vpop.f32.mrf.mxu1 }
 0x124   : > { %v1641_v29 = vadd.f32 %v1640_v28, %v1311_v27 }
 0x126   : > { %v1961_v30 = vmax.f32 %v1631_v63, %v1641_v29  ;;  %v3811_v29 = vld [vmem:[%s5044_s27 + $0x130] sm:$0xf] }
 0x128   : > { %v5148_v39 = vmax.f32 %v1929_v37, %v1961_v30  ;;  %v4661_v30 = vld [vmem:[%s5044_s27 + $0x134] sm:$0xf0] }
 0x129   : > { %v3812_v35 = vor.u32 %v4661_v30, %v3811_v29 }
 0x12a   : > { %v1314_v32 = vpop.f32.mrf.mxu0 }
 0x12b   : > { %v1643_v33 = vpop.f32.mrf.mxu1 }
 0x12c   : > { %v1644_v41 = vadd.f32 %v1643_v33, %v1314_v32 }
 0x12d   : > { %1353 = vmatmul.bf16.gmra.mxu0 %v3780_v40 }
 0x12e   : > { %v1962_v42 = vmax.f32 %v1634_v9, %v1644_v41  ;;  %1682 = vmatmul.bf16.gmra.mxu1 %v3784_v8  ;;  %v3804_v9 = vor.u32 %v4659_v5, %v3803_v4  ;;  %v4027_v41 = vld [vmem:[%s5044_s27 + $0x2e0] sm:$0xf] }
 0x130   : > { %v5153_v43 = vmax.f32 %v1930_v47, %v1962_v42  ;;  %v4715_v42 = vld [vmem:[%s5044_s27 + $0x2e4] sm:$0xf0] }
 0x132   : > { %v1316_v44 = vpop.f32.mrf.mxu0 }
 0x133   : > { %v1645_v11 = vpop.f32.mrf.mxu1 }
 0x134   : > { %v1646_v36 = vadd.f32 %v1645_v11, %v1316_v44  ;;  %v4714_v44 = vld [vmem:[%s5044_s27 + $0x2e4] sm:$0xf]  ;;  %v4028_v11 = vor.u32 %v4715_v42, %v4027_v41  ;;  %v3837_v41 = vld [vmem:[%s5044_s27 + $0x168] sm:$0xf0] }
 0x136   : > { %v1963_v37 = vmax.f32 %v1636_v13, %v1646_v36  ;;  %v4029_v36 = vld [vmem:[%s5044_s27 + $0x2e8] sm:$0xf0]  ;;  %1508 = vmatmul.bf16.gmra.mxu3 %v4028_v11 }
 0x138   : > { %v5162_v53 = vmax.f32 %v1931_v51, %v1963_v37  ;;  %v3796_v51 = vor.u32 %v4657_v60, %v3795_v59  ;;  %v4032_v37 = vor.u32 %v4714_v44, %v4029_v36 }
 0x13a   : > { %v1319_v47 = vpop.f32.mrf.mxu0  ;;  %1837 = vmatmul.bf16.gmra.mxu2 %v4032_v37 }
 0x13b   : > { %v1648_v54 = vpop.f32.mrf.mxu1 }
 0x13c   : > { %v5164_v55 = vadd.f32 %v1648_v54, %v1319_v47  ;;  %v4662_v47 = vld [vmem:[%s5044_s27 + $0x144] sm:$0xf]  ;;  %v3821_v54 = vld [vmem:[%s5044_s27 + $0x148] sm:$0xf0] }
 0x13d   : > { %1358 = vmatmul.bf16.gmra.mxu0 %v3788_v20  ;;  %v3819_v20 = vld [vmem:[%s5044_s27 + $0x140] sm:$0xf] }
 0x13e   : > { %1687 = vmatmul.bf16.gmra.mxu1 %v3792_v46  ;;  %v4663_v46 = vld [vmem:[%s5044_s27 + $0x144] sm:$0xf0] }
 0x142   : > { %v1321_v56 = vpop.f32.mrf.mxu0 }
 0x143   : > { %v1650_v57 = vpop.f32.mrf.mxu1 }
 0x144   : > { %v5166_v58 = vadd.f32 %v1650_v57, %v1321_v56  ;;  %v3820_v56 = vor.u32 %v4663_v46, %v3819_v20  ;;  %v3824_v57 = vor.u32 %v4662_v47, %v3821_v54  ;;  %v4051_v46 = vld [vmem:[%s5044_s27 + $0x310] sm:$0xf]  ;;  %v4721_v47 = vld [vmem:[%s5044_s27 + $0x314] sm:$0xf0]  ;;  %v4720_v54 = vld [vmem:[%s5044_s27 + $0x314] sm:$0xf] }
 0x14a   : > { %v1324_v62 = vpop.f32.mrf.mxu0 }
 0x14b   : > { %v1653_v63 = vpop.f32.mrf.mxu1 }
 0x14c   : > { %v5172_v0 = vadd.f32 %v1653_v63, %v1324_v62  ;;  %v4037_v63 = vld [vmem:[%s5044_s27 + $0x2f8] sm:$0xf0] }
 0x14d   : > { %1363 = vmatmul.bf16.gmra.mxu0 %v3796_v51  ;;  %v4717_v51 = vld [vmem:[%s5044_s27 + $0x2f4] sm:$0xf0] }
 0x14e   : > { %1692 = vmatmul.bf16.gmra.mxu1 %v3800_v61  ;;  %v4716_v61 = vld [vmem:[%s5044_s27 + $0x2f4] sm:$0xf]  ;;  %v4036_v62 = vor.u32 %v4717_v51, %v4035_v50 }
 0x150   : > { %1513 = vmatmul.bf16.gmra.mxu3 %v4036_v62 }
 0x152   : > { %v1326_v1 = vpop.f32.mrf.mxu0 }
 0x153   : > { %v1655_v2 = vpop.f32.mrf.mxu1 }
 0x154   : > { %v5174_v3 = vadd.f32 %v1655_v2, %v1326_v1  ;;  %v4040_v1 = vor.u32 %v4716_v61, %v4037_v63 }
 0x156   : > { %1842 = vmatmul.bf16.gmra.mxu2 %v4040_v1 }
 0x15a   : > { %v1329_v12 = vpop.f32.mrf.mxu0 }
 0x15b   : > { %v1658_v13 = vpop.f32.mrf.mxu1 }
 0x15c   : > { %v5180_v14 = vadd.f32 %v1658_v13, %v1329_v12  ;;  %v3828_v12 = vor.u32 %v4665_v7, %v3827_v6 }
 0x15d   : > { %1368 = vmatmul.bf16.gmra.mxu0 %v3804_v9  ;;  %v4664_v9 = vld [vmem:[%s5044_s27 + $0x154] sm:$0xf] }
 0x15e   : > { %v1932_v15 = vmax.f32 %v5164_v55, %v5180_v14  ;;  %1697 = vmatmul.bf16.gmra.mxu1 %v3808_v10  ;;  %v3829_v10 = vld [vmem:[%s5044_s27 + $0x158] sm:$0xf0] }
 0x15f   : > { %v3832_v13 = vor.u32 %v4664_v9, %v3829_v10  ;;  %v4669_v10 = vld [vmem:[%s5044_s27 + $0x174] sm:$0xf0] }
 0x162   : > { %v1331_v24 = vpop.f32.mrf.mxu0 }
 0x163   : > { %v1660_v25 = vpop.f32.mrf.mxu1 }
 0x164   : > { %v5188_v27 = vadd.f32 %v1660_v25, %v1331_v24  ;;  %v4044_v24 = vor.u32 %v4719_v21, %v4043_v19  ;;  %v4045_v25 = vld [vmem:[%s5044_s27 + $0x308] sm:$0xf0]  ;;  %v3845_v19 = vld [vmem:[%s5044_s27 + $0x178] sm:$0xf0] }
 0x165   : > { %v4048_v29 = vor.u32 %v4718_v22, %v4045_v25 }
 0x166   : > { %v1933_v28 = vmax.f32 %v5166_v58, %v5188_v27  ;;  %1518 = vmatmul.bf16.gmra.mxu3 %v4044_v24 }
 0x167   : > { %1847 = vmatmul.bf16.gmra.mxu2 %v4048_v29 }
 0x16a   : > { %v1334_v40 = vpop.f32.mrf.mxu0 }
 0x16b   : > { %v1663_v8 = vpop.f32.mrf.mxu1 }
 0x16c   : > { %v5196_v32 = vadd.f32 %v1663_v8, %v1334_v40  ;;  %v4667_v40 = vld [vmem:[%s5044_s27 + $0x164] sm:$0xf0]  ;;  %v4666_v8 = vld [vmem:[%s5044_s27 + $0x164] sm:$0xf] }
 0x16d   : > { %1373 = vmatmul.bf16.gmra.mxu0 %v3812_v35  ;;  %v5233_v35 = vld [vmem:[%s7788_s2] ss:$0 sm:$0xff]  ;;  %v3840_v11 = vor.u32 %v4666_v8, %v3837_v41 }
 0x16e   : > { %v1934_v33 = vmax.f32 %v5172_v0, %v5196_v32  ;;  %1702 = vmatmul.bf16.gmra.mxu1 %v3816_v38  ;;  %v3835_v38 = vld [vmem:[%s5044_s27 + $0x160] sm:$0xf]  ;;  %v2028_v42 = vadd.f32 %v5233_v35, %v5139_v26  ;;  %v2029_v26 = vadd.f32 %v5233_v35, %v5148_v39 }
 0x16f   : > { %v3836_v44 = vor.u32 %v4667_v40, %v3835_v38 }
 0x170   : > { %v5251_v39 = vmax.f32 %v2029_v26, 0.0  ;;  %v4723_v26 = vld [vmem:[%s5044_s27 + $0x324] sm:$0xf0] }
 0x172   : > { %v1336_v45 = vpop.f32.mrf.mxu0 }
 0x173   : > { %v1665_v48 = vpop.f32.mrf.mxu1 }
 0x174   : > { %v5204_v49 = vadd.f32 %v1665_v48, %v1336_v45  ;;  %v2060_v48 = vmax.f32 %v2028_v42, 0.0 }
 0x176   : > { %v1935_v52 = vmax.f32 %v5174_v3, %v5204_v49  ;;  %v2133_v61 = vrot.slane %v2060_v48, 1  ;;  %v2227_v62 = vrot.slane %v2060_v48, 2  ;;  %v2280_v55 = vrot.slane %v2060_v48, 3 }
 0x177   : > { %v2333_v63 = vrot.slane %v2060_v48, 4  ;;  %v2386_v1 = vrot.slane %v2060_v48, 5  ;;  %v2439_v6 = vrot.slane %v2060_v48, 6  ;;  %v2492_v7 = vrot.slane %v2060_v48, 7 }
 0x17a   : > { %v1339_v59 = vpop.f32.mrf.mxu0 }
 0x17b   : > { %v1668_v60 = vpop.f32.mrf.mxu1 }
 0x17c   : > { %v1669_v23 = vadd.f32 %v1668_v60, %v1339_v59  ;;  %v4053_v59 = vld [vmem:[%s5044_s27 + $0x318] sm:$0xf0] }
 0x17d   : > { %1378 = vmatmul.bf16.gmra.mxu0 %v3820_v56  ;;  %v4056_v60 = vor.u32 %v4720_v54, %v4053_v59  ;;  %v2871_v54 = vrot.slane %v5251_v39, 6  ;;  %v4059_v59 = vld [vmem:[%s5044_s27 + $0x320] sm:$0xf] }
 0x17e   : > { %1707 = vmatmul.bf16.gmra.mxu1 %v3824_v57  ;;  %v4052_v57 = vor.u32 %v4721_v47, %v4051_v46  ;;  %v2818_v47 = vrot.slane %v5251_v39, 5 }
 0x17f   : > { %1852 = vmatmul.bf16.gmra.mxu2 %v4056_v60  ;;  %v4722_v60 = vld [vmem:[%s5044_s27 + $0x324] sm:$0xf] }
 0x180   : > { %1523 = vmatmul.bf16.gmra.mxu3 %v4052_v57 }
 0x182   : > { %v1341_v2 = vpop.f32.mrf.mxu0 }
 0x183   : > { %v1670_v4 = vpop.f32.mrf.mxu1 }
 0x184   : > { %v5216_v5 = vadd.f32 %v1670_v4, %v1341_v2  ;;  %v2030_v2 = vadd.f32 %v5233_v35, %v5153_v43  ;;  %v3843_v4 = vld [vmem:[%s5044_s27 + $0x170] sm:$0xf] }
 0x185   : > { %v3844_v27 = vor.u32 %v4669_v10, %v3843_v4 }
 0x186   : > { %v5292_v46 = vmax.f32 %v2030_v2, 0.0 }
 0x18a   : > { %v1344_v16 = vpop.f32.mrf.mxu0 }
 0x18b   : > { %v1673_v17 = vpop.f32.mrf.mxu1 }
 0x18c   : > { %v5222_v18 = vadd.f32 %v1673_v17, %v1344_v16 }
 0x18d   : > { %1383 = vmatmul.bf16.gmra.mxu0 %v3828_v12  ;;  %v4668_v12 = vld [vmem:[%s5044_s27 + $0x174] sm:$0xf] }
 0x18e   : > { %1712 = vmatmul.bf16.gmra.mxu1 %v3832_v13 }
 0x192   : > { %v1346_v30 = vpop.f32.mrf.mxu0 }
 0x193   : > { %v1675_v31 = vpop.f32.mrf.mxu1 }
 0x194   : > { %v5228_v34 = vadd.f32 %v1675_v31, %v1346_v30 }
 0x19a   : > { %v1349_v36 = vpop.f32.mrf.mxu0 }
 0x19b   : > { %v1678_v37 = vpop.f32.mrf.mxu1 }
 0x19c   : > { %v1679_v45 = vadd.f32 %v1678_v37, %v1349_v36  ;;  %v2659_v36 = vrot.slane %v5251_v39, 2 }
 0x19d   : > { %1388 = vmatmul.bf16.gmra.mxu0 %v3836_v44 }
 0x19e   : > { %v1964_v20 = vmax.f32 %v1669_v23, %v1679_v45  ;;  %1717 = vmatmul.bf16.gmra.mxu1 %v3840_v11  ;;  %v2606_v11 = vrot.slane %v5251_v39, 1 }
 0x1a0   : > { %v1996_v56 = vmax.f32 %v1932_v15, %v1964_v20  ;;  %v2765_v20 = vrot.slane %v5251_v39, 4 }
 0x1a2   : > { %v2032_v50 = vadd.f32 %v5233_v35, %v1996_v56  ;;  %v1351_v23 = vpop.f32.mrf.mxu0  ;;  %v2924_v56 = vrot.slane %v5251_v39, 7 }
 0x1a3   : > { %v1680_v51 = vpop.f32.mrf.mxu1 }
 0x1a4   : > { %v2064_v14 = vmax.f32 %v2032_v50, 0.0  ;;  %v1681_v15 = vadd.f32 %v1680_v51, %v1351_v23  ;;  %v4060_v23 = vor.u32 %v4723_v26, %v4059_v59  ;;  %v4061_v51 = vld [vmem:[%s5044_s27 + $0x328] sm:$0xf0] }
 0x1a6   : > { %v1965_v9 = vmax.f32 %v5216_v5, %v1681_v15  ;;  %v5260_v13 = vsel %vm2134_vm0, %v2064_v14, %v2133_v61  ;;  %v2175_v16 = vrot.slane %v2064_v14, 7  ;;  %v2228_v17 = vrot.slane %v2064_v14, 1  ;;  %1528 = vmatmul.bf16.gmra.mxu3 %v4060_v23 }
 0x1a7   : > { %v2281_v21 = vrot.slane %v2064_v14, 2  ;;  %v2334_v22 = vrot.slane %v2064_v14, 3  ;;  %v2387_v24 = vrot.slane %v2064_v14, 4  ;;  %v2440_v25 = vrot.slane %v2064_v14, 5 }
 0x1a8   : > { %v1997_v43 = vmax.f32 %v1933_v28, %v1965_v9  ;;  %v5267_v29 = vsel %vm2134_vm0, %v2175_v16, %v2060_v48  ;;  %v5270_v5 = vsel %vm2134_vm0, %v2228_v17, %v2227_v62  ;;  %v2493_v30 = vrot.slane %v2064_v14, 6 }
 0x1a9   : > { %v5273_v31 = vsel %vm2134_vm0, %v2281_v21, %v2280_v55  ;;  %v5276_v38 = vsel %vm2134_vm0, %v2334_v22, %v2333_v63  ;;  %v5279_v40 = vsel %vm2134_vm0, %v2387_v24, %v2386_v1  ;;  %v5282_v8 = vsel %vm2134_vm0, %v2440_v25, %v2439_v6 }
 0x1aa   : > { %v2033_v58 = vadd.f32 %v5233_v35, %v1997_v43  ;;  %v3848_v28 = vor.u32 %v4668_v12, %v3845_v19  ;;  %v5286_v41 = vsel %vm2134_vm0, %v2493_v30, %v2492_v7  ;;  %v1354_v42 = vpop.f32.mrf.mxu0  ;;  %v2712_v48 = vrot.slane %v5251_v39, 3  ;;  %v3851_v43 = vld [vmem:[%s5044_s27 + $0x180] sm:$0xf] }
 0x1ab   : > { %v1683_v44 = vpop.f32.mrf.mxu1  ;;  %v4064_v15 = vor.u32 %v4722_v60, %v4061_v51  ;;  %v3038_v12 = vrot.slane %v5292_v46, 1  ;;  %v3091_v16 = vrot.slane %v5292_v46, 2  ;;  %v3144_v17 = vrot.slane %v5292_v46, 3 }
 0x1ac   : > { %v2065_v37 = vmax.f32 %v2033_v58, 0.0  ;;  %v1684_v45 = vadd.f32 %v1683_v44, %v1354_v42  ;;  %v3197_v24 = vrot.slane %v5292_v46, 4  ;;  %v2031_v25 = vadd.f32 %v5233_v35, %v5162_v53  ;;  %v4671_v42 = vld [vmem:[%s5044_s27 + $0x184] sm:$0xf0]  ;;  %v4670_v44 = vld [vmem:[%s5044_s27 + $0x184] sm:$0xf] }
 0x1ad   : > { %1393 = vmatmul.bf16.gmra.mxu0 %v3844_v27  ;;  %1857 = vmatmul.bf16.gmra.mxu2 %v4064_v15  ;;  %v3250_v30 = vrot.slane %v5292_v46, 5  ;;  %v3303_v58 = vrot.slane %v5292_v46, 6  ;;  %v3356_v27 = vrot.slane %v5292_v46, 7 }
 0x1ae   : > { %v1966_v57 = vmax.f32 %v5222_v18, %v1684_v45  ;;  %1722 = vmatmul.bf16.gmra.mxu1 %v3848_v28  ;;  %v5302_v50 = vsel %vm2134_vm0, %v2065_v37, %v2606_v11  ;;  %v2553_v61 = vrot.slane %v2065_v37, 7  ;;  %v2660_v62 = vrot.slane %v2065_v37, 1  ;;  %v3853_v45 = vld [vmem:[%s5044_s27 + $0x188] sm:$0xf0] }
 0x1af   : > { %v2713_v55 = vrot.slane %v2065_v37, 2  ;;  %v2766_v63 = vrot.slane %v2065_v37, 3  ;;  %v2819_v18 = vrot.slane %v2065_v37, 4  ;;  %v2872_v6 = vrot.slane %v2065_v37, 5 }
 0x1b0   : > { %v1998_v14 = vmax.f32 %v1934_v33, %v1966_v57  ;;  %v5310_v1 = vsel %vm2134_vm0, %v2553_v61, %v5251_v39  ;;  %v5313_v2 = vsel %vm2134_vm0, %v2660_v62, %v2659_v36  ;;  %v2925_v33 = vrot.slane %v2065_v37, 6 }
 0x1b1   : > { %v5316_v4 = vsel %vm2134_vm0, %v2713_v55, %v2712_v48  ;;  %v5320_v0 = vsel %vm2134_vm0, %v2766_v63, %v2765_v20  ;;  %v5323_v32 = vsel %vm2134_vm0, %v2819_v18, %v2818_v47  ;;  %v5326_v10 = vsel %vm2134_vm0, %v2872_v6, %v2871_v54  ;;  %v4067_v63 = vld [vmem:[%s5044_s27 + $0x330] sm:$0xf]  ;;  %v4725_v18 = vld [vmem:[%s5044_s27 + $0x334] sm:$0xf0] }
 0x1b2   : > { %v2034_v7 = vadd.f32 %v5233_v35, %v1998_v14  ;;  %v1356_v39 = vpop.f32.mrf.mxu0  ;;  %v5332_v22 = vsel %vm2134_vm0, %v2925_v33, %v2924_v56  ;;  %v2063_v14 = vmax.f32 %v2031_v25, 0.0  ;;  %v4068_v6 = vor.u32 %v4725_v18, %v4067_v63  ;;  %v4069_v33 = vld [vmem:[%s5044_s27 + $0x338] sm:$0xf0]  ;;  %v4083_v63 = vld [vmem:[%s5044_s27 + $0x350] sm:$0xf] }
 0x1b3   : > { %v1685_v9 = vpop.f32.mrf.mxu1  ;;  %v3861_v25 = vld [vmem:[%s5044_s27 + $0x198] sm:$0xf0]  ;;  %v4729_v18 = vld [vmem:[%s5044_s27 + $0x354] sm:$0xf0] }
 0x1b4   : > { %v2066_v19 = vmax.f32 %v2034_v7, 0.0  ;;  %v1686_v21 = vadd.f32 %v1685_v9, %v1356_v39  ;;  %v4724_v7 = vld [vmem:[%s5044_s27 + $0x334] sm:$0xf] }
 0x1b5   : > { %v4072_v9 = vor.u32 %v4724_v7, %v4069_v33  ;;  %v4084_v7 = vor.u32 %v4729_v18, %v4083_v63  ;;  %v4085_v33 = vld [vmem:[%s5044_s27 + $0x358] sm:$0xf0] }
 0x1b6   : > { %v1967_v28 = vmax.f32 %v5228_v34, %v1686_v21  ;;  %v2985_v11 = vrot.slane %v2066_v19, 7  ;;  %v5345_v36 = vsel %vm2134_vm0, %v2066_v19, %v3038_v12  ;;  %v3092_v37 = vrot.slane %v2066_v19, 1  ;;  %1533 = vmatmul.bf16.gmra.mxu3 %v4068_v6  ;;  %v4673_v21 = vld [vmem:[%s5044_s27 + $0x194] sm:$0xf0]  ;;  %v4728_v6 = vld [vmem:[%s5044_s27 + $0x354] sm:$0xf] }
 0x1b7   : > { %v3145_v48 = vrot.slane %v2066_v19, 2  ;;  %v3198_v20 = vrot.slane %v2066_v19, 3  ;;  %v3251_v53 = vrot.slane %v2066_v19, 4  ;;  %v3304_v47 = vrot.slane %v2066_v19, 5 }
 0x1b8   : > { %v1999_v54 = vmax.f32 %v1935_v52, %v1967_v28  ;;  %v5353_v56 = vsel %vm2134_vm0, %v2985_v11, %v5292_v46  ;;  %v5356_v34 = vsel %vm2134_vm0, %v3092_v37, %v3091_v16  ;;  %v3357_v57 = vrot.slane %v2066_v19, 6  ;;  %v3859_v19 = vld [vmem:[%s5044_s27 + $0x190] sm:$0xf]  ;;  %v4726_v11 = vld [vmem:[%s5044_s27 + $0x344] sm:$0xf] }
 0x1b9   : > { %v5359_v59 = vsel %vm2134_vm0, %v3145_v48, %v3144_v17  ;;  %v5362_v26 = vsel %vm2134_vm0, %v3198_v20, %v3197_v24  ;;  %v5365_v60 = vsel %vm2134_vm0, %v3251_v53, %v3250_v30  ;;  %v5368_v3 = vsel %vm2134_vm0, %v3304_v47, %v3303_v58  ;;  %v4672_v24 = vld [vmem:[%s5044_s27 + $0x194] sm:$0xf] }
 0x1ba   : > { %v2035_v49 = vadd.f32 %v5233_v35, %v1999_v54  ;;  %v3852_v52 = vor.u32 %v4671_v42, %v3851_v43  ;;  %v3856_v46 = vor.u32 %v4670_v44, %v3853_v45  ;;  %v5372_v23 = vsel %vm2134_vm0, %v3357_v57, %v3356_v27  ;;  %v1359_v51 = vpop.f32.mrf.mxu0  ;;  %v4075_v42 = vld [vmem:[%s5044_s27 + $0x340] sm:$0xf]  ;;  %v4727_v44 = vld [vmem:[%s5044_s27 + $0x344] sm:$0xf0]  ;;  %v4077_v45 = vld [vmem:[%s5044_s27 + $0x348] sm:$0xf0] }
 0x1bb   : > { %v1688_v61 = vpop.f32.mrf.mxu1  ;;  %v3860_v43 = vor.u32 %v4673_v21, %v3859_v19  ;;  %v3864_v30 = vor.u32 %v4672_v24, %v3861_v25  ;;  %v4076_v37 = vor.u32 %v4727_v44, %v4075_v42  ;;  %v4080_v48 = vor.u32 %v4726_v11, %v4077_v45  ;;  %v3867_v54 = vld [vmem:[%s5044_s27 + $0x1a0] sm:$0xf]  ;;  %v4675_v57 = vld [vmem:[%s5044_s27 + $0x1a4] sm:$0xf0]  ;;  %v1504_v21 = vpop.f32.mrf.mxu3  ;;  %v3877_v42 = vld [vmem:[%s5044_s27 + $0x1b8] sm:$0xf0] }
 0x1bc   : > { %v2067_v62 = vmax.f32 %v2035_v49, 0.0  ;;  %v5374_v55 = vadd.f32 %v1688_v61, %v1359_v51  ;;  %v4674_v49 = vld [vmem:[%s5044_s27 + $0x1a4] sm:$0xf]  ;;  %v1833_v24 = vpop.f32.mrf.mxu2 }
 0x1bd   : > { %1398 = vmatmul.bf16.gmra.mxu0 %v3852_v52  ;;  %1862 = vmatmul.bf16.gmra.mxu2 %v4072_v9  ;;  %v3869_v52 = vld [vmem:[%s5044_s27 + $0x1a8] sm:$0xf0]  ;;  %v4088_v9 = vor.u32 %v4728_v6, %v4085_v33 }
 0x1be   : > { %v3417_v15 = vrot.slane %v2067_v62, 7  ;;  %1727 = vmatmul.bf16.gmra.mxu1 %v3856_v46  ;;  %v3868_v46 = vor.u32 %v4675_v57, %v3867_v54  ;;  %v3872_v51 = vor.u32 %v4674_v49, %v3869_v52  ;;  %v4091_v49 = vld [vmem:[%s5044_s27 + $0x360] sm:$0xf]  ;;  %v4731_v52 = vld [vmem:[%s5044_s27 + $0x364] sm:$0xf0] }
 0x1c0   : > { %v5381_v39 = vsel %vm2134_vm0, %v3417_v15, %v2063_v14 }
 0x1c2   : > { %v1361_v12 = vpop.f32.mrf.mxu0 }
 0x1c3   : > { %v1690_v16 = vpop.f32.mrf.mxu1 }
 0x1c4   : > { %v5383_v17 = vadd.f32 %v1690_v16, %v1361_v12 }
 0x1c6   : > { %1538 = vmatmul.bf16.gmra.mxu3 %v4076_v37 }
 0x1ca   : > { %v1364_v58 = vpop.f32.mrf.mxu0 }
 0x1cb   : > { %v1693_v27 = vpop.f32.mrf.mxu1 }
 0x1cc   : > { %v5389_v28 = vadd.f32 %v1693_v27, %v1364_v58  ;;  %v4677_v58 = vld [vmem:[%s5044_s27 + $0x1b4] sm:$0xf0]  ;;  %v4676_v27 = vld [vmem:[%s5044_s27 + $0x1b4] sm:$0xf] }
 0x1cd   : > { %1403 = vmatmul.bf16.gmra.mxu0 %v3860_v43  ;;  %1867 = vmatmul.bf16.gmra.mxu2 %v4080_v48  ;;  %v3875_v43 = vld [vmem:[%s5044_s27 + $0x1b0] sm:$0xf]  ;;  %v3880_v11 = vor.u32 %v4676_v27, %v3877_v42 }
 0x1ce   : > { %1732 = vmatmul.bf16.gmra.mxu1 %v3864_v30  ;;  %v5414_v30 = vadd.f32 %v1833_v24, %v1504_v21  ;;  %v3876_v44 = vor.u32 %v4677_v58, %v3875_v43  ;;  %v4679_v21 = vld [vmem:[%s5044_s27 + $0x1c4] sm:$0xf0]  ;;  %v4678_v24 = vld [vmem:[%s5044_s27 + $0x1c4] sm:$0xf]  ;;  %v3885_v43 = vld [vmem:[%s5044_s27 + $0x1c8] sm:$0xf0] }
 0x1cf   : > { %v3888_v27 = vor.u32 %v4678_v24, %v3885_v43  ;;  %v4680_v24 = vld [vmem:[%s5044_s27 + $0x1d4] sm:$0xf]  ;;  %v3893_v43 = vld [vmem:[%s5044_s27 + $0x1d8] sm:$0xf0] }
 0x1d0   : > { %7816 = vst [vmem:[#allocation6_spill] sm:$0xff] %v5414_v30  ;;  %v4749_v30 = vld [vmem:[%s5044_s27 + $0x3f4] sm:$0xf0] }
 0x1d2   : > { %v1366_v20 = vpop.f32.mrf.mxu0 }
 0x1d3   : > { %v1695_v53 = vpop.f32.mrf.mxu1 }
 0x1d4   : > { %v5395_v47 = vadd.f32 %v1695_v53, %v1366_v20  ;;  %v1506_v20 = vpop.f32.mrf.mxu3  ;;  %v1835_v53 = vpop.f32.mrf.mxu2 }
 0x1d5   : > { %v5423_v57 = vadd.f32 %v1835_v53, %v1506_v20  ;;  %v4099_v20 = vld [vmem:[%s5044_s27 + $0x370] sm:$0xf]  ;;  %v4733_v53 = vld [vmem:[%s5044_s27 + $0x374] sm:$0xf0] }
 0x1d6   : > { %1543 = vmatmul.bf16.gmra.mxu3 %v4084_v7 }
 0x1d7   : > { %7817 = vst [vmem:[#allocation7_spill] sm:$0xff] %v5423_v57 }
 0x1da   : > { %v1369_v61 = vpop.f32.mrf.mxu0 }
 0x1db   : > { %v1698_v62 = vpop.f32.mrf.mxu1 }
 0x1dc   : > { %v5401_v14 = vadd.f32 %v1698_v62, %v1369_v61  ;;  %v4093_v61 = vld [vmem:[%s5044_s27 + $0x368] sm:$0xf0]  ;;  %v1509_v7 = vpop.f32.mrf.mxu3  ;;  %v1838_v33 = vpop.f32.mrf.mxu2 }
 0x1dd   : > { %1408 = vmatmul.bf16.gmra.mxu0 %v3868_v46  ;;  %1872 = vmatmul.bf16.gmra.mxu2 %v4088_v9  ;;  %v4730_v46 = vld [vmem:[%s5044_s27 + $0x364] sm:$0xf]  ;;  %v4736_v9 = vld [vmem:[%s5044_s27 + $0x394] sm:$0xf] }
 0x1de   : > { %v1936_v15 = vmax.f32 %v5374_v55, %v5401_v14  ;;  %1737 = vmatmul.bf16.gmra.mxu1 %v3872_v51  ;;  %v4092_v51 = vor.u32 %v4731_v52, %v4091_v49  ;;  %v4096_v62 = vor.u32 %v4730_v46, %v4093_v61  ;;  %v4732_v49 = vld [vmem:[%s5044_s27 + $0x374] sm:$0xf]  ;;  %v4100_v52 = vor.u32 %v4733_v53, %v4099_v20  ;;  %v4101_v46 = vld [vmem:[%s5044_s27 + $0x378] sm:$0xf0]  ;;  %v3907_v14 = vld [vmem:[%s5044_s27 + $0x1f0] sm:$0xf] }
 0x1e2   : > { %v1371_v12 = vpop.f32.mrf.mxu0 }
 0x1e3   : > { %v1700_v16 = vpop.f32.mrf.mxu1 }
 0x1e4   : > { %v5409_v19 = vadd.f32 %v1700_v16, %v1371_v12  ;;  %v3883_v12 = vld [vmem:[%s5044_s27 + $0x1c0] sm:$0xf]  ;;  %v5434_v16 = vadd.f32 %v1838_v33, %v1509_v7  ;;  %v3891_v33 = vld [vmem:[%s5044_s27 + $0x1d0] sm:$0xf] }
 0x1e5   : > { %v3884_v58 = vor.u32 %v4679_v21, %v3883_v12  ;;  %v4681_v21 = vld [vmem:[%s5044_s27 + $0x1d4] sm:$0xf0] }
 0x1e6   : > { %v1937_v25 = vmax.f32 %v5383_v17, %v5409_v19  ;;  %1548 = vmatmul.bf16.gmra.mxu3 %v4092_v51  ;;  %7818 = vst [vmem:[#allocation8_spill] sm:$0xff] %v5434_v16  ;;  %v4104_v51 = vor.u32 %v4732_v49, %v4101_v46  ;;  %v4735_v46 = vld [vmem:[%s5044_s27 + $0x384] sm:$0xf0] }
 0x1ea   : > { %v1374_v37 = vpop.f32.mrf.mxu0 }
 0x1eb   : > { %v1703_v45 = vpop.f32.mrf.mxu1 }
 0x1ec   : > { %v5419_v48 = vadd.f32 %v1703_v45, %v1374_v37  ;;  %v1511_v37 = vpop.f32.mrf.mxu3  ;;  %v1840_v45 = vpop.f32.mrf.mxu2 }
 0x1ed   : > { %1413 = vmatmul.bf16.gmra.mxu0 %v3876_v44  ;;  %1877 = vmatmul.bf16.gmra.mxu2 %v4096_v62 }
 0x1ee   : > { %1742 = vmatmul.bf16.gmra.mxu1 %v3880_v11 }
 0x1f2   : > { %v1376_v63 = vpop.f32.mrf.mxu0 }
 0x1f3   : > { %v1705_v18 = vpop.f32.mrf.mxu1 }
 0x1f4   : > { %v5429_v6 = vadd.f32 %v1705_v18, %v1376_v63  ;;  %v5447_v18 = vadd.f32 %v1840_v45, %v1511_v37  ;;  %v1514_v7 = vpop.f32.mrf.mxu3  ;;  %v1843_v12 = vpop.f32.mrf.mxu2  ;;  %v4115_v45 = vld [vmem:[%s5044_s27 + $0x390] sm:$0xf] }
 0x1f5   : > { %v5455_v53 = vadd.f32 %v1843_v12, %v1514_v7 }
 0x1f6   : > { %1553 = vmatmul.bf16.gmra.mxu3 %v4100_v52  ;;  %7819 = vst [vmem:[#allocation9_spill] sm:$0xff] %v5447_v18  ;;  %v4107_v52 = vld [vmem:[%s5044_s27 + $0x380] sm:$0xf]  ;;  %v4747_v18 = vld [vmem:[%s5044_s27 + $0x3e4] sm:$0xf0] }
 0x1f7   : > { %7820 = vst [vmem:[#allocation10_spill] sm:$0xff] %v5455_v53  ;;  %v4163_v53 = vld [vmem:[%s5044_s27 + $0x3f0] sm:$0xf] }
 0x1fa   : > { %v1379_v42 = vpop.f32.mrf.mxu0 }
 0x1fb   : > { %v1708_v44 = vpop.f32.mrf.mxu1 }
 0x1fc   : > { %v5439_v11 = vadd.f32 %v1708_v44, %v1379_v42  ;;  %v1516_v37 = vpop.f32.mrf.mxu3  ;;  %v1845_v49 = vpop.f32.mrf.mxu2 }
 0x1fd   : > { %1418 = vmatmul.bf16.gmra.mxu0 %v3884_v58  ;;  %1882 = vmatmul.bf16.gmra.mxu2 %v4104_v51  ;;  %v3892_v58 = vor.u32 %v4681_v21, %v3891_v33  ;;  %v4734_v51 = vld [vmem:[%s5044_s27 + $0x384] sm:$0xf] }
 0x1fe   : > { %1747 = vmatmul.bf16.gmra.mxu1 %v3888_v27  ;;  %v3896_v27 = vor.u32 %v4680_v24, %v3893_v43  ;;  %v5465_v24 = vadd.f32 %v1845_v49, %v1516_v37 }
 0x200   : > { %7821 = vst [vmem:[#allocation11_spill] sm:$0xff] %v5465_v24 }
 0x202   : > { %v1381_v61 = vpop.f32.mrf.mxu0 }
 0x203   : > { %v1710_v62 = vpop.f32.mrf.mxu1 }
 0x204   : > { %v5445_v63 = vadd.f32 %v1710_v62, %v1381_v61  ;;  %v4108_v61 = vor.u32 %v4735_v46, %v4107_v52  ;;  %v4109_v62 = vld [vmem:[%s5044_s27 + $0x388] sm:$0xf0]  ;;  %v1519_v43 = vpop.f32.mrf.mxu3  ;;  %v4682_v52 = vld [vmem:[%s5044_s27 + $0x1e4] sm:$0xf] }
 0x205   : > { %v4112_v33 = vor.u32 %v4734_v51, %v4109_v62  ;;  %v3901_v46 = vld [vmem:[%s5044_s27 + $0x1e8] sm:$0xf0] }
 0x206   : > { %1558 = vmatmul.bf16.gmra.mxu3 %v4108_v61  ;;  %v3904_v61 = vor.u32 %v4682_v52, %v3901_v46  ;;  %v4117_v46 = vld [vmem:[%s5044_s27 + $0x398] sm:$0xf0] }
 0x20a   : > { %v1384_v42 = vpop.f32.mrf.mxu0 }
 0x20b   : > { %v1713_v44 = vpop.f32.mrf.mxu1 }
 0x20c   : > { %v5453_v20 = vadd.f32 %v1713_v44, %v1384_v42  ;;  %v1848_v42 = vpop.f32.mrf.mxu2  ;;  %v4683_v44 = vld [vmem:[%s5044_s27 + $0x1e4] sm:$0xf0]  ;;  %v1521_v37 = vpop.f32.mrf.mxu3 }
 0x20d   : > { %1423 = vmatmul.bf16.gmra.mxu0 %v3892_v58  ;;  %1887 = vmatmul.bf16.gmra.mxu2 %v4112_v33  ;;  %v3899_v58 = vld [vmem:[%s5044_s27 + $0x1e0] sm:$0xf] }
 0x20e   : > { %1752 = vmatmul.bf16.gmra.mxu1 %v3896_v27  ;;  %v3900_v51 = vor.u32 %v4683_v44, %v3899_v58  ;;  %v4737_v27 = vld [vmem:[%s5044_s27 + $0x394] sm:$0xf0]  ;;  %v5480_v58 = vadd.f32 %v1848_v42, %v1519_v43 }
 0x20f   : > { %v4116_v52 = vor.u32 %v4737_v27, %v4115_v45  ;;  %v4685_v42 = vld [vmem:[%s5044_s27 + $0x1f4] sm:$0xf0] }
 0x210   : > { %7822 = vst [vmem:[#allocation12_spill] sm:$0xff] %v5480_v58 }
 0x212   : > { %v1386_v7 = vpop.f32.mrf.mxu0 }
 0x213   : > { %v1715_v12 = vpop.f32.mrf.mxu1 }
 0x214   : > { %v5463_v21 = vadd.f32 %v1715_v12, %v1386_v7  ;;  %v1850_v12 = vpop.f32.mrf.mxu2 }
 0x215   : > { %v5482_v44 = vadd.f32 %v1850_v12, %v1521_v37 }
 0x216   : > { %1563 = vmatmul.bf16.gmra.mxu3 %v4116_v52 }
 0x217   : > { %7823 = vst [vmem:[#allocation13_spill] sm:$0xff] %v5482_v44  ;;  %v4696_v44 = vld [vmem:[%s5044_s27 + $0x254] sm:$0xf] }
 0x21a   : > { %v1389_v62 = vpop.f32.mrf.mxu0 }
 0x21b   : > { %v1718_v33 = vpop.f32.mrf.mxu1 }
 0x21c   : > { %v1719_v7 = vadd.f32 %v1718_v33, %v1389_v62  ;;  %v1853_v37 = vpop.f32.mrf.mxu2 }
 0x21d   : > { %1428 = vmatmul.bf16.gmra.mxu0 %v3900_v51 }
 0x21e   : > { %v1968_v49 = vmax.f32 %v5439_v11, %v1719_v7  ;;  %1757 = vmatmul.bf16.gmra.mxu1 %v3904_v61  ;;  %v4120_v11 = vor.u32 %v4736_v9, %v4117_v46  ;;  %v4684_v7 = vld [vmem:[%s5044_s27 + $0x1f4] sm:$0xf]  ;;  %v3909_v9 = vld [vmem:[%s5044_s27 + $0x1f8] sm:$0xf0] }
 0x220   : > { %v2000_v54 = vmax.f32 %v1936_v15, %v1968_v49  ;;  %1892 = vmatmul.bf16.gmra.mxu2 %v4120_v11  ;;  %v1524_v15 = vpop.f32.mrf.mxu3 }
 0x221   : > { %v5495_v49 = vadd.f32 %v1853_v37, %v1524_v15 }
 0x222   : > { %v2036_v51 = vadd.f32 %v5233_v35, %v2000_v54  ;;  %v1391_v61 = vpop.f32.mrf.mxu0 }
 0x223   : > { %v1720_v62 = vpop.f32.mrf.mxu1  ;;  %7824 = vst [vmem:[#allocation14_spill] sm:$0xff] %v5495_v49 }
 0x224   : > { %v2068_v33 = vmax.f32 %v2036_v51, 0.0  ;;  %v1721_v55 = vadd.f32 %v1720_v62, %v1391_v61 }
 0x226   : > { %v1969_v43 = vmax.f32 %v5445_v63, %v1721_v55  ;;  %v2136_v45 = vrot.slane %v2068_v33, 7  ;;  %v2177_v27 = vrot.slane %v2068_v33, 6  ;;  %v5492_v54 = vsel %vm2137_vm1, %v2068_v33, %v5270_v5 }
 0x227   : > { %v2283_v12 = vrot.slane %v2068_v33, 1  ;;  %v2336_v52 = vrot.slane %v2068_v33, 2  ;;  %v2389_v46 = vrot.slane %v2068_v33, 3  ;;  %v2442_v5 = vrot.slane %v2068_v33, 4 }
 0x228   : > { %v2001_v11 = vmax.f32 %v1937_v25, %v1969_v43  ;;  %v5502_v63 = vsel %vm2137_vm1, %v2136_v45, %v5260_v13  ;;  %v5506_v51 = vsel %vm2137_vm1, %v2177_v27, %v5267_v29  ;;  %v2495_v13 = vrot.slane %v2068_v33, 5  ;;  %v1526_v33 = vpop.f32.mrf.mxu3  ;;  %v4738_v45 = vld [vmem:[%s5044_s27 + $0x3a4] sm:$0xf] }
 0x229   : > { %v5510_v61 = vsel %vm2137_vm1, %v2283_v12, %v5273_v31  ;;  %v5514_v62 = vsel %vm2137_vm1, %v2336_v52, %v5276_v38  ;;  %v5518_v17 = vsel %vm2137_vm1, %v2389_v46, %v5279_v40  ;;  %v3908_v29 = vor.u32 %v4685_v42, %v3907_v14  ;;  %v1855_v14 = vpop.f32.mrf.mxu2  ;;  %v4123_v42 = vld [vmem:[%s5044_s27 + $0x3a0] sm:$0xf] }
 0x22a   : > { %v2037_v19 = vadd.f32 %v5233_v35, %v2001_v11  ;;  %v3912_v25 = vor.u32 %v4684_v7, %v3909_v9  ;;  %v5523_v31 = vsel %vm2137_vm1, %v2442_v5, %v5282_v8  ;;  %v1394_v55 = vpop.f32.mrf.mxu0  ;;  %v5527_v15 = vsel %vm2137_vm1, %v2495_v13, %v5286_v41  ;;  %v4739_v7 = vld [vmem:[%s5044_s27 + $0x3a4] sm:$0xf0]  ;;  %v4125_v9 = vld [vmem:[%s5044_s27 + $0x3a8] sm:$0xf0] }
 0x22b   : > { %v1723_v38 = vpop.f32.mrf.mxu1  ;;  %v5537_v27 = vadd.f32 %v1855_v14, %v1526_v33  ;;  %v4124_v41 = vor.u32 %v4739_v7, %v4123_v42  ;;  %v4128_v11 = vor.u32 %v4738_v45, %v4125_v9 }
 0x22c   : > { %v2069_v40 = vmax.f32 %v2037_v19, 0.0  ;;  %v1724_v43 = vadd.f32 %v1723_v38, %v1394_v55  ;;  %v3915_v38 = vld [vmem:[%s5044_s27 + $0x200] sm:$0xf] }
 0x22d   : > { %1433 = vmatmul.bf16.gmra.mxu0 %v3908_v29  ;;  %7825 = vst [vmem:[#allocation15_spill] sm:$0xff] %v5537_v27  ;;  %1568 = vmatmul.bf16.gmra.mxu3 %v4124_v41  ;;  %v4686_v41 = vld [vmem:[%s5044_s27 + $0x204] sm:$0xf]  ;;  %v4748_v27 = vld [vmem:[%s5044_s27 + $0x3f4] sm:$0xf] }
 0x22e   : > { %v1970_v37 = vmax.f32 %v5453_v20, %v1724_v43  ;;  %1762 = vmatmul.bf16.gmra.mxu1 %v3912_v25  ;;  %v5535_v8 = vsel %vm2137_vm1, %v2069_v40, %v5313_v2  ;;  %v2555_v12 = vrot.slane %v2069_v40, 6  ;;  %v2608_v52 = vrot.slane %v2069_v40, 7  ;;  %v4687_v43 = vld [vmem:[%s5044_s27 + $0x204] sm:$0xf0] }
 0x22f   : > { %v7826_v20 = vmax.f32 %v5389_v28, %v5419_v48  ;;  %v2715_v5 = vrot.slane %v2069_v40, 1  ;;  %v2768_v13 = vrot.slane %v2069_v40, 2  ;;  %v2821_v29 = vrot.slane %v2069_v40, 3 }
 0x230   : > { %v5545_v19 = vsel %vm2137_vm1, %v2555_v12, %v5310_v1  ;;  %v5549_v2 = vsel %vm2137_vm1, %v2608_v52, %v5302_v50  ;;  %v2874_v25 = vrot.slane %v2069_v40, 4  ;;  %v2927_v48 = vrot.slane %v2069_v40, 5  ;;  %1897 = vmatmul.bf16.gmra.mxu2 %v4128_v11  ;;  %v1529_v40 = vpop.f32.mrf.mxu3 }
 0x231   : > { %v2002_v46 = vmax.f32 %v7826_v20, %v1970_v37  ;;  %v5556_v28 = vsel %vm2137_vm1, %v2715_v5, %v5316_v4  ;;  %v5560_v1 = vsel %vm2137_vm1, %v2768_v13, %v5320_v0  ;;  %v5564_v37 = vsel %vm2137_vm1, %v2821_v29, %v5323_v32  ;;  %v1858_v9 = vpop.f32.mrf.mxu2 }
 0x232   : > { %v1396_v33 = vpop.f32.mrf.mxu0  ;;  %v5568_v14 = vsel %vm2137_vm1, %v2874_v25, %v5326_v10  ;;  %v5572_v7 = vsel %vm2137_vm1, %v2927_v48, %v5332_v22  ;;  %v3916_v0 = vor.u32 %v4687_v43, %v3915_v38  ;;  %v3917_v10 = vld [vmem:[%s5044_s27 + $0x208] sm:$0xf0]  ;;  %v5581_v20 = vadd.f32 %v1858_v9, %v1529_v40  ;;  %v4741_v40 = vld [vmem:[%s5044_s27 + $0x3b4] sm:$0xf0]  ;;  %v4133_v9 = vld [vmem:[%s5044_s27 + $0x3b8] sm:$0xf0] }
 0x233   : > { %v2038_v55 = vadd.f32 %v5233_v35, %v2002_v46  ;;  %v1725_v50 = vpop.f32.mrf.mxu1  ;;  %v7828_v22 = vmax.f32 %v5395_v47, %v5429_v6  ;;  %v3920_v6 = vor.u32 %v4686_v41, %v3917_v10  ;;  %v4740_v41 = vld [vmem:[%s5044_s27 + $0x3b4] sm:$0xf]  ;;  %v3947_v25 = vld [vmem:[%s5044_s27 + $0x240] sm:$0xf] }
 0x234   : > { %v1726_v4 = vadd.f32 %v1725_v50, %v1396_v33  ;;  %7827 = vst [vmem:[#allocation16_spill] sm:$0xff] %v5581_v20 }
 0x235   : > { %v2070_v42 = vmax.f32 %v2038_v55, 0.0 }
 0x236   : > { %v1971_v45 = vmax.f32 %v5463_v21, %v1726_v4 }
 0x237   : > { %v2987_v12 = vrot.slane %v2070_v42, 6  ;;  %v3040_v52 = vrot.slane %v2070_v42, 7  ;;  %v5578_v32 = vsel %vm2137_vm1, %v2070_v42, %v5356_v34  ;;  %v3147_v46 = vrot.slane %v2070_v42, 1 }
 0x238   : > { %v3200_v11 = vrot.slane %v2070_v42, 2  ;;  %v3253_v5 = vrot.slane %v2070_v42, 3  ;;  %v2003_v13 = vmax.f32 %v7828_v22, %v1971_v45  ;;  %v3306_v34 = vrot.slane %v2070_v42, 4  ;;  %v1531_v50 = vpop.f32.mrf.mxu3 }
 0x239   : > { %v5588_v21 = vsel %vm2137_vm1, %v2987_v12, %v5353_v56  ;;  %v5592_v29 = vsel %vm2137_vm1, %v3040_v52, %v5345_v36  ;;  %v5598_v55 = vsel %vm2137_vm1, %v3147_v46, %v5359_v59  ;;  %v3359_v59 = vrot.slane %v2070_v42, 5 }
 0x23a   : > { %v5602_v47 = vsel %vm2137_vm1, %v3200_v11, %v5362_v26  ;;  %v5606_v56 = vsel %vm2137_vm1, %v3253_v5, %v5365_v60  ;;  %v2039_v36 = vadd.f32 %v5233_v35, %v2003_v13  ;;  %v5611_v38 = vsel %vm2137_vm1, %v3306_v34, %v5368_v3  ;;  %v1399_v43 = vpop.f32.mrf.mxu0  ;;  %v1860_v35 = vpop.f32.mrf.mxu2  ;;  %v4131_v3 = vld [vmem:[%s5044_s27 + $0x3b0] sm:$0xf]  ;;  %v4689_v13 = vld [vmem:[%s5044_s27 + $0x214] sm:$0xf0]  ;;  %v4688_v34 = vld [vmem:[%s5044_s27 + $0x214] sm:$0xf] }
 0x23b   : > { %v1728_v48 = vpop.f32.mrf.mxu1  ;;  %v5617_v60 = vsel %vm2137_vm1, %v3359_v59, %v5372_v23  ;;  %v5621_v42 = vadd.f32 %v1860_v35, %v1531_v50  ;;  %v4132_v45 = vor.u32 %v4741_v40, %v4131_v3  ;;  %v4136_v12 = vor.u32 %v4740_v41, %v4133_v9  ;;  %v3923_v5 = vld [vmem:[%s5044_s27 + $0x210] sm:$0xf]  ;;  %v4139_v3 = vld [vmem:[%s5044_s27 + $0x3c0] sm:$0xf]  ;;  %v4743_v40 = vld [vmem:[%s5044_s27 + $0x3c4] sm:$0xf0] }
 0x23c   : > { %v2071_v26 = vmax.f32 %v2039_v36, 0.0  ;;  %v5613_v33 = vadd.f32 %v1728_v48, %v1399_v43  ;;  %v3924_v59 = vor.u32 %v4689_v13, %v3923_v5  ;;  %v4140_v9 = vor.u32 %v4743_v40, %v4139_v3 }
 0x23d   : > { %1438 = vmatmul.bf16.gmra.mxu0 %v3916_v0  ;;  %7829 = vst [vmem:[#allocation17_spill] sm:$0xff] %v5621_v42  ;;  %1573 = vmatmul.bf16.gmra.mxu3 %v4132_v45  ;;  %v4742_v45 = vld [vmem:[%s5044_s27 + $0x3c4] sm:$0xf]  ;;  %v4165_v42 = vld [vmem:[%s5044_s27 + $0x3f8] sm:$0xf0] }
 0x23e   : > { %v3419_v4 = vrot.slane %v2071_v26, 6  ;;  %1767 = vmatmul.bf16.gmra.mxu1 %v3920_v6 }
 0x240   : > { %v5627_v23 = vsel %vm2137_vm1, %v3419_v4, %v5381_v39  ;;  %1902 = vmatmul.bf16.gmra.mxu2 %v4136_v12  ;;  %v1534_v11 = vpop.f32.mrf.mxu3  ;;  %v3925_v39 = vld [vmem:[%s5044_s27 + $0x218] sm:$0xf0]  ;;  %v4141_v12 = vld [vmem:[%s5044_s27 + $0x3c8] sm:$0xf0] }
 0x241   : > { %v3928_v43 = vor.u32 %v4688_v34, %v3925_v39  ;;  %v3931_v34 = vld [vmem:[%s5044_s27 + $0x220] sm:$0xf] }
 0x242   : > { %v1401_v52 = vpop.f32.mrf.mxu0  ;;  %v1863_v22 = vpop.f32.mrf.mxu2 }
 0x243   : > { %v1730_v10 = vpop.f32.mrf.mxu1  ;;  %v5637_v36 = vadd.f32 %v1863_v22, %v1534_v11 }
 0x244   : > { %v5631_v46 = vadd.f32 %v1730_v10, %v1401_v52  ;;  %v4144_v52 = vor.u32 %v4742_v45, %v4141_v12  ;;  %v3939_v10 = vld [vmem:[%s5044_s27 + $0x230] sm:$0xf] }
 0x245   : > { %7830 = vst [vmem:[#allocation18_spill] sm:$0xff] %v5637_v36  ;;  %v3957_v36 = vld [vmem:[%s5044_s27 + $0x258] sm:$0xf0] }
 0x248   : > { %v1536_v4 = vpop.f32.mrf.mxu3 }
 0x24a   : > { %v1404_v48 = vpop.f32.mrf.mxu0  ;;  %v1865_v35 = vpop.f32.mrf.mxu2 }
 0x24b   : > { %v1733_v26 = vpop.f32.mrf.mxu1  ;;  %v5646_v41 = vadd.f32 %v1865_v35, %v1536_v4 }
 0x24c   : > { %v5641_v50 = vadd.f32 %v1733_v26, %v1404_v48  ;;  %v3933_v48 = vld [vmem:[%s5044_s27 + $0x228] sm:$0xf0] }
 0x24d   : > { %1443 = vmatmul.bf16.gmra.mxu0 %v3924_v59  ;;  %7831 = vst [vmem:[#allocation19_spill] sm:$0xff] %v5646_v41  ;;  %1578 = vmatmul.bf16.gmra.mxu3 %v4140_v9  ;;  %v4691_v59 = vld [vmem:[%s5044_s27 + $0x224] sm:$0xf0]  ;;  %v4155_v9 = vld [vmem:[%s5044_s27 + $0x3e0] sm:$0xf]  ;;  %v4164_v41 = vor.u32 %v4749_v30, %v4163_v53  ;;  %v3960_v30 = vor.u32 %v4696_v44, %v3957_v36 }
 0x24e   : > { %1772 = vmatmul.bf16.gmra.mxu1 %v3928_v43  ;;  %v4690_v43 = vld [vmem:[%s5044_s27 + $0x224] sm:$0xf]  ;;  %v3932_v26 = vor.u32 %v4691_v59, %v3931_v34  ;;  %v4149_v59 = vld [vmem:[%s5044_s27 + $0x3d8] sm:$0xf0]  ;;  %v4699_v44 = vld [vmem:[%s5044_s27 + $0x264] sm:$0xf0] }
 0x24f   : > { %v3936_v4 = vor.u32 %v4690_v43, %v3933_v48  ;;  %v4698_v36 = vld [vmem:[%s5044_s27 + $0x264] sm:$0xf] }
 0x250   : > { %1907 = vmatmul.bf16.gmra.mxu2 %v4144_v52  ;;  %v5653_v13 = vpop.f32.mrf.mxu3  ;;  %v4147_v52 = vld [vmem:[%s5044_s27 + $0x3d0] sm:$0xf] }
 0x251   : > { %7832 = vst [vmem:[#allocation20_spill] sm:$0xff] %v5653_v13 }
 0x252   : > { %v1406_v11 = vpop.f32.mrf.mxu0  ;;  %v5656_v39 = vpop.f32.mrf.mxu2 }
 0x253   : > { %v1735_v5 = vpop.f32.mrf.mxu1  ;;  %7833 = vst [vmem:[#allocation21_spill] sm:$0xff] %v5656_v39 }
 0x254   : > { %v5651_v22 = vadd.f32 %v1735_v5, %v1406_v11  ;;  %v4745_v11 = vld [vmem:[%s5044_s27 + $0x3d4] sm:$0xf0]  ;;  %v4744_v5 = vld [vmem:[%s5044_s27 + $0x3d4] sm:$0xf] }
 0x255   : > { %v4148_v34 = vor.u32 %v4745_v11, %v4147_v52  ;;  %v4152_v43 = vor.u32 %v4744_v5, %v4149_v59  ;;  %v4693_v52 = vld [vmem:[%s5044_s27 + $0x234] sm:$0xf0]  ;;  %v4692_v11 = vld [vmem:[%s5044_s27 + $0x234] sm:$0xf]  ;;  %v3941_v5 = vld [vmem:[%s5044_s27 + $0x238] sm:$0xf0] }
 0x256   : > { %v3944_v59 = vor.u32 %v4692_v11, %v3941_v5  ;;  %v4157_v11 = vld [vmem:[%s5044_s27 + $0x3e8] sm:$0xf0] }
 0x258   : > { %v5663_v45 = vpop.f32.mrf.mxu3 }
 0x259   : > { %7834 = vst [vmem:[#allocation22_spill] sm:$0xff] %v5663_v45 }
 0x25a   : > { %v1409_v35 = vpop.f32.mrf.mxu0  ;;  %v5667_v12 = vpop.f32.mrf.mxu2 }
 0x25b   : > { %v1738_v3 = vpop.f32.mrf.mxu1  ;;  %7835 = vst [vmem:[#allocation23_spill] sm:$0xff] %v5667_v12 }
 0x25c   : > { %v5661_v40 = vadd.f32 %v1738_v3, %v1409_v35 }
 0x25d   : > { %1448 = vmatmul.bf16.gmra.mxu0 %v3932_v26  ;;  %1583 = vmatmul.bf16.gmra.mxu3 %v4148_v34  ;;  %v3940_v34 = vor.u32 %v4693_v52, %v3939_v10  ;;  %v4746_v10 = vld [vmem:[%s5044_s27 + $0x3e4] sm:$0xf]  ;;  %v4156_v52 = vor.u32 %v4747_v18, %v4155_v9  ;;  %v4695_v18 = vld [vmem:[%s5044_s27 + $0x244] sm:$0xf0] }
 0x25e   : > { %1777 = vmatmul.bf16.gmra.mxu1 %v3936_v4  ;;  %v4160_v5 = vor.u32 %v4746_v10, %v4157_v11  ;;  %v4694_v9 = vld [vmem:[%s5044_s27 + $0x244] sm:$0xf]  ;;  %v3949_v10 = vld [vmem:[%s5044_s27 + $0x248] sm:$0xf0] }
 0x25f   : > { %v3952_v11 = vor.u32 %v4694_v9, %v3949_v10 }
 0x260   : > { %1912 = vmatmul.bf16.gmra.mxu2 %v4152_v43  ;;  %v5675_v26 = vpop.f32.mrf.mxu3 }
 0x261   : > { %7836 = vst [vmem:[#allocation24_spill] sm:$0xff] %v5675_v26 }
 0x262   : > { %v1411_v48 = vpop.f32.mrf.mxu0  ;;  %v5680_v0 = vpop.f32.mrf.mxu2 }
 0x263   : > { %v1740_v35 = vpop.f32.mrf.mxu1  ;;  %7837 = vst [vmem:[#allocation25_spill] sm:$0xff] %v5680_v0 }
 0x264   : > { %v5673_v3 = vadd.f32 %v1740_v35, %v1411_v48 }
 0x268   : > { %v5687_v6 = vpop.f32.mrf.mxu3 }
 0x269   : > { %7838 = vst [vmem:[#allocation26_spill] sm:$0xff] %v5687_v6 }
 0x26a   : > { %v1414_v43 = vpop.f32.mrf.mxu0  ;;  %v5691_v4 = vpop.f32.mrf.mxu2 }
 0x26b   : > { %v1743_v48 = vpop.f32.mrf.mxu1  ;;  %7839 = vst [vmem:[#allocation27_spill] sm:$0xff] %v5691_v4  ;;  %v3965_v4 = vld [vmem:[%s5044_s27 + $0x268] sm:$0xf0] }
 0x26c   : > { %v5685_v35 = vadd.f32 %v1743_v48, %v1414_v43 }
 0x26d   : > { %1453 = vmatmul.bf16.gmra.mxu0 %v3940_v34  ;;  %1588 = vmatmul.bf16.gmra.mxu3 %v4156_v52  ;;  %v3948_v52 = vor.u32 %v4695_v18, %v3947_v25  ;;  %v4168_v25 = vor.u32 %v4748_v27, %v4165_v42 }
 0x26e   : > { %1782 = vmatmul.bf16.gmra.mxu1 %v3944_v59 }
 0x270   : > { %1917 = vmatmul.bf16.gmra.mxu2 %v4160_v5  ;;  %v5699_v34 = vpop.f32.mrf.mxu3 }
 0x271   : > { %7840 = vst [vmem:[#allocation28_spill] sm:$0xff] %v5699_v34 }
 0x272   : > { %v1416_v43 = vpop.f32.mrf.mxu0  ;;  %v5704_v24 = vpop.f32.mrf.mxu2 }
 0x273   : > { %v1745_v48 = vpop.f32.mrf.mxu1  ;;  %7841 = vst [vmem:[#allocation29_spill] sm:$0xff] %v5704_v24 }
 0x274   : > { %v5697_v16 = vadd.f32 %v1745_v48, %v1416_v43 }
 0x278   : > { %v5709_v57 = vpop.f32.mrf.mxu3 }
 0x279   : > { %7842 = vst [vmem:[#allocation30_spill] sm:$0xff] %v5709_v57 }
 0x27a   : > { %v1419_v5 = vpop.f32.mrf.mxu0  ;;  %v5711_v59 = vpop.f32.mrf.mxu2 }
 0x27b   : > { %v1748_v43 = vpop.f32.mrf.mxu1  ;;  %7843 = vst [vmem:[#allocation31_spill] sm:$0xff] %v5711_v59  ;;  %v3973_v59 = vld [vmem:[%s5044_s27 + $0x278] sm:$0xf0] }
 0x27c   : > { %v1749_v48 = vadd.f32 %v1748_v43, %v1419_v5  ;;  %v4697_v43 = vld [vmem:[%s5044_s27 + $0x254] sm:$0xf0] }
 0x27d   : > { %1458 = vmatmul.bf16.gmra.mxu0 %v3948_v52  ;;  %1593 = vmatmul.bf16.gmra.mxu3 %v4164_v41  ;;  %v3955_v52 = vld [vmem:[%s5044_s27 + $0x250] sm:$0xf] }
 0x27e   : > { %1787 = vmatmul.bf16.gmra.mxu1 %v3952_v11  ;;  %v3956_v49 = vor.u32 %v4697_v43, %v3955_v52  ;;  %v3963_v52 = vld [vmem:[%s5044_s27 + $0x260] sm:$0xf] }
 0x280   : > { %1922 = vmatmul.bf16.gmra.mxu2 %v4168_v25  ;;  %v5717_v5 = vpop.f32.mrf.mxu3 }
 0x281   : > { %7844 = vst [vmem:[#allocation32_spill] sm:$0xff] %v5717_v5 }
 0x282   : > { %v1421_v18 = vpop.f32.mrf.mxu0  ;;  %v5720_v11 = vpop.f32.mrf.mxu2 }
 0x283   : > { %v1750_v9 = vpop.f32.mrf.mxu1  ;;  %7845 = vst [vmem:[#allocation33_spill] sm:$0xff] %v5720_v11 }
 0x284   : > { %v1751_v10 = vadd.f32 %v1750_v9, %v1421_v18 }
 0x288   : > { %v5727_v41 = vpop.f32.mrf.mxu3 }
 0x289   : > { %7846 = vst [vmem:[#allocation34_spill] sm:$0xff] %v5727_v41 }
 0x28a   : > { %v1424_v53 = vpop.f32.mrf.mxu0  ;;  %v5729_v25 = vpop.f32.mrf.mxu2 }
 0x28b   : > { %v1753_v27 = vpop.f32.mrf.mxu1  ;;  %7847 = vst [vmem:[#allocation35_spill] sm:$0xff] %v5729_v25 }
 0x28c   : > { %v5725_v42 = vadd.f32 %v1753_v27, %v1424_v53  ;;  %v3964_v53 = vor.u32 %v4699_v44, %v3963_v52  ;;  %v3968_v27 = vor.u32 %v4698_v36, %v3965_v4  ;;  %v5751_v4 = vld [vmem:[%s7788_s2] ss:$0 sm:$0xff] }
 0x28d   : > { %1463 = vmatmul.bf16.gmra.mxu0 %v3956_v49 }
 0x28e   : > { %1792 = vmatmul.bf16.gmra.mxu1 %v3960_v30 }
 0x290   : > { %v5733_v58 = vpop.f32.mrf.mxu3 }
 0x291   : > { %7848 = vst [vmem:[#allocation36_spill] sm:$0xff] %v5733_v58  ;;  %v4700_v58 = vld [vmem:[%s5044_s27 + $0x274] sm:$0xf] }
 0x292   : > { %v1426_v18 = vpop.f32.mrf.mxu0  ;;  %v5736_v43 = vpop.f32.mrf.mxu2 }
 0x293   : > { %v1755_v9 = vpop.f32.mrf.mxu1  ;;  %7849 = vst [vmem:[#allocation37_spill] sm:$0xff] %v5736_v43 }
 0x294   : > { %v5731_v20 = vadd.f32 %v1755_v9, %v1426_v18  ;;  %v7850_v9 = vmax.f32 %v5613_v33, %v5661_v40  ;;  %v4701_v33 = vld [vmem:[%s5044_s27 + $0x274] sm:$0xf0] }
 0x298   : > { %v5741_v41 = vpop.f32.mrf.mxu3 }
 0x29a   : > { %v1429_v6 = vpop.f32.mrf.mxu0  ;;  %v5743_v18 = vpop.f32.mrf.mxu2 }
 0x29b   : > { %v1758_v49 = vpop.f32.mrf.mxu1 }
 0x29c   : > { %v1759_v30 = vadd.f32 %v1758_v49, %v1429_v6 }
 0x29d   : > { %1468 = vmatmul.bf16.gmra.mxu0 %v3964_v53  ;;  %v3971_v53 = vld [vmem:[%s5044_s27 + $0x270] sm:$0xf] }
 0x29e   : > { %v1972_v25 = vmax.f32 %v1749_v48, %v1759_v30  ;;  %1797 = vmatmul.bf16.gmra.mxu1 %v3968_v27 }
 0x2a0   : > { %v2004_v43 = vmax.f32 %v7850_v9, %v1972_v25  ;;  %v5755_v27 = vpop.f32.mrf.mxu3 }
 0x2a2   : > { %v2040_v6 = vadd.f32 %v5751_v4, %v2004_v43  ;;  %v1431_v52 = vpop.f32.mrf.mxu0 }
 0x2a3   : > { %v1760_v44 = vpop.f32.mrf.mxu1  ;;  %v5758_v40 = vpop.f32.mrf.mxu2 }
 0x2a4   : > { %v2072_v48 = vmax.f32 %v2040_v6, 0.0  ;;  %v1761_v36 = vadd.f32 %v1760_v44, %v1431_v52  ;;  %v7851_v52 = vmax.f32 %v5631_v46, %v5673_v3 }
 0x2a6   : > { %v1973_v49 = vmax.f32 %v1751_v10, %v1761_v36  ;;  %v2139_v25 = vrot.slane %v2072_v48, 6  ;;  %v2179_v30 = vrot.slane %v2072_v48, 5  ;;  %v2231_v9 = vrot.slane %v2072_v48, 7 }
 0x2a7   : > { %v5764_v43 = vsel %vm2140_vm2, %v2072_v48, %v5510_v61  ;;  %v2338_v57 = vrot.slane %v2072_v48, 1  ;;  %v2391_v6 = vrot.slane %v2072_v48, 2  ;;  %v2444_v3 = vrot.slane %v2072_v48, 3 }
 0x2a8   : > { %v2005_v44 = vmax.f32 %v7851_v52, %v1973_v49  ;;  %v5771_v10 = vsel %vm2140_vm2, %v2139_v25, %v5502_v63  ;;  %v5775_v36 = vsel %vm2140_vm2, %v2179_v30, %v5506_v51  ;;  %v5779_v12 = vsel %vm2140_vm2, %v2231_v9, %v5492_v54 }
 0x2a9   : > { %v5783_v61 = vsel %vm2140_vm2, %v2338_v57, %v5514_v62  ;;  %v5787_v46 = vsel %vm2140_vm2, %v2391_v6, %v5518_v17  ;;  %v2497_v49 = vrot.slane %v2072_v48, 4  ;;  %v3972_v25 = vor.u32 %v4701_v33, %v3971_v53  ;;  %v5798_v17 = vpop.f32.mrf.mxu3 }
 0x2aa   : > { %v2041_v63 = vadd.f32 %v5751_v4, %v2005_v44  ;;  %v3976_v52 = vor.u32 %v4700_v58, %v3973_v59  ;;  %v1434_v51 = vpop.f32.mrf.mxu0  ;;  %v5792_v54 = vsel %vm2140_vm2, %v2444_v3, %v5523_v31  ;;  %v7852_v44 = vmax.f32 %v5641_v50, %v5685_v35 }
 0x2ab   : > { %v1763_v30 = vpop.f32.mrf.mxu1  ;;  %v5796_v57 = vsel %vm2140_vm2, %v2497_v49, %v5527_v15  ;;  %v5801_v53 = vpop.f32.mrf.mxu2 }
 0x2ac   : > { %v2073_v62 = vmax.f32 %v2041_v63, 0.0  ;;  %v1764_v9 = vadd.f32 %v1763_v30, %v1434_v51 }
 0x2ad   : > { %1473 = vmatmul.bf16.gmra.mxu0 %v3972_v25 }
 0x2ae   : > { %v1974_v48 = vmax.f32 %v5725_v42, %v1764_v9  ;;  %1802 = vmatmul.bf16.gmra.mxu1 %v3976_v52  ;;  %v2557_v58 = vrot.slane %v2073_v62, 5  ;;  %v2610_v59 = vrot.slane %v2073_v62, 6  ;;  %v2663_v33 = vrot.slane %v2073_v62, 7 }
 0x2af   : > { %v5805_v31 = vsel %vm2140_vm2, %v2073_v62, %v5556_v28  ;;  %v2770_v6 = vrot.slane %v2073_v62, 1  ;;  %v2823_v15 = vrot.slane %v2073_v62, 2  ;;  %v2876_v35 = vrot.slane %v2073_v62, 3 }
 0x2b0   : > { %v2006_v3 = vmax.f32 %v7852_v44, %v1974_v48  ;;  %v5812_v42 = vsel %vm2140_vm2, %v2557_v58, %v5545_v19  ;;  %v5816_v49 = vsel %vm2140_vm2, %v2610_v59, %v5549_v2  ;;  %v5820_v28 = vsel %vm2140_vm2, %v2663_v33, %v5535_v8  ;;  %v4703_v48 = vld [vmem:[%s5044_s27 + $0x284] sm:$0xf0] }
 0x2b1   : > { %v5824_v63 = vsel %vm2140_vm2, %v2770_v6, %v5560_v1  ;;  %v5828_v50 = vsel %vm2140_vm2, %v2823_v15, %v5564_v37  ;;  %v2929_v19 = vrot.slane %v2073_v62, 4  ;;  %v5833_v8 = vsel %vm2140_vm2, %v2876_v35, %v5568_v14  ;;  %v3979_v37 = vld [vmem:[%s5044_s27 + $0x280] sm:$0xf]  ;;  %v5840_v9 = vpop.f32.mrf.mxu3  ;;  %v4702_v15 = vld [vmem:[%s5044_s27 + $0x284] sm:$0xf] }
 0x2b2   : > { %v2042_v25 = vadd.f32 %v5751_v4, %v2006_v3  ;;  %v1436_v2 = vpop.f32.mrf.mxu0  ;;  %7853 = vst [vmem:[#allocation38_spill] sm:$0xff] %v5840_v9  ;;  %v3981_v14 = vld [vmem:[%s5044_s27 + $0x288] sm:$0xf0]  ;;  %v7855_v35 = vmax.f32 %v5651_v22, %v5697_v16 }
 0x2b3   : > { %v1765_v52 = vpop.f32.mrf.mxu1  ;;  %v5837_v1 = vsel %vm2140_vm2, %v2929_v19, %v5572_v7  ;;  %v5844_v58 = vpop.f32.mrf.mxu2 }
 0x2b4   : > { %v2074_v51 = vmax.f32 %v2042_v25, 0.0  ;;  %v1766_v30 = vadd.f32 %v1765_v52, %v1436_v2  ;;  %7854 = vst [vmem:[#allocation39_spill] sm:$0xff] %v5844_v58  ;;  %v3980_v52 = vor.u32 %v4703_v48, %v3979_v37 }
 0x2b6   : > { %v1975_v62 = vmax.f32 %v5731_v20, %v1766_v30  ;;  %v2989_v59 = vrot.slane %v2074_v51, 5  ;;  %v3042_v33 = vrot.slane %v2074_v51, 6  ;;  %v3095_v6 = vrot.slane %v2074_v51, 7 }
 0x2b7   : > { %v5850_v44 = vsel %vm2140_vm2, %v2074_v51, %v5598_v55  ;;  %v3202_v7 = vrot.slane %v2074_v51, 1  ;;  %v3255_v3 = vrot.slane %v2074_v51, 2  ;;  %v3308_v22 = vrot.slane %v2074_v51, 3 }
 0x2b8   : > { %v2007_v19 = vmax.f32 %v7855_v35, %v1975_v62  ;;  %v5857_v20 = vsel %vm2140_vm2, %v2989_v59, %v5588_v21  ;;  %v5861_v25 = vsel %vm2140_vm2, %v3042_v33, %v5592_v29  ;;  %v5865_v2 = vsel %vm2140_vm2, %v3095_v6, %v5578_v32 }
 0x2b9   : > { %v5869_v55 = vsel %vm2140_vm2, %v3202_v7, %v5602_v47  ;;  %v5873_v16 = vsel %vm2140_vm2, %v3255_v3, %v5606_v56  ;;  %v3984_v30 = vor.u32 %v4702_v15, %v3981_v14  ;;  %v3361_v62 = vrot.slane %v2074_v51, 4  ;;  %v5886_v37 = vpop.f32.mrf.mxu3  ;;  %v3987_v3 = vld [vmem:[%s5044_s27 + $0x290] sm:$0xf] }
 0x2ba   : > { %v2043_v21 = vadd.f32 %v5751_v4, %v2007_v19  ;;  %v1439_v29 = vpop.f32.mrf.mxu0  ;;  %v5878_v32 = vsel %vm2140_vm2, %v3308_v22, %v5611_v38  ;;  %v4704_v19 = vld [vmem:[%s5044_s27 + $0x294] sm:$0xf]  ;;  %v3989_v22 = vld [vmem:[%s5044_s27 + $0x298] sm:$0xf0] }
 0x2bb   : > { %v1768_v59 = vpop.f32.mrf.mxu1  ;;  %v5884_v56 = vsel %vm2140_vm2, %v3361_v62, %v5617_v60  ;;  %v5888_v48 = vpop.f32.mrf.mxu2  ;;  %v4705_v60 = vld [vmem:[%s5044_s27 + $0x294] sm:$0xf0] }
 0x2bc   : > { %v2075_v47 = vmax.f32 %v2043_v21, 0.0  ;;  %v5880_v33 = vadd.f32 %v1768_v59, %v1439_v29 }
 0x2bd   : > { %1478 = vmatmul.bf16.gmra.mxu0 %v3980_v52  ;;  %v3988_v52 = vor.u32 %v4705_v60, %v3987_v3  ;;  %v3995_v60 = vld [vmem:[%s5044_s27 + $0x2a0] sm:$0xf] }
 0x2be   : > { %v3421_v51 = vrot.slane %v2075_v47, 5  ;;  %1807 = vmatmul.bf16.gmra.mxu1 %v3984_v30  ;;  %v3992_v30 = vor.u32 %v4704_v19, %v3989_v22  ;;  %v4707_v22 = vld [vmem:[%s5044_s27 + $0x2a4] sm:$0xf0] }
 0x2c0   : > { %v5892_v38 = vsel %vm2140_vm2, %v3421_v51, %v5627_v23  ;;  %v4248_v51 = vld [vmem:[%s7789_s3 + $0xf8] sm:$0xff] }
 0x2c1   : > { %7856 = vst [vmem:[#allocation40_spill] sm:$0xff] %v5892_v38  ;;  %v1574_v7 = vpop.f32.mrf.mxu3  ;;  %2155 = vmatpush.msrb.mxu2 %v4248_v51 }
 0x2c2   : > { %v1441_v6 = vpop.f32.mrf.mxu0 }
 0x2c3   : > { %v1770_v15 = vpop.f32.mrf.mxu1  ;;  %v1903_v35 = vpop.f32.mrf.mxu2 }
 0x2c4   : > { %v5894_v14 = vadd.f32 %v1770_v15, %v1441_v6  ;;  %v5900_v21 = vadd.f32 %v1903_v35, %v1574_v7 }
 0x2c9   : > { %v1576_v59 = vpop.f32.mrf.mxu3 }
 0x2ca   : > { %v1444_v62 = vpop.f32.mrf.mxu0 }
 0x2cb   : > { %v1773_v29 = vpop.f32.mrf.mxu1  ;;  %v1905_v47 = vpop.f32.mrf.mxu2 }
 0x2cc   : > { %v5902_v23 = vadd.f32 %v1773_v29, %v1444_v62  ;;  %v5907_v6 = vadd.f32 %v1905_v47, %v1576_v59  ;;  %v3996_v62 = vor.u32 %v4707_v22, %v3995_v60 }
 0x2cd   : > { %1483 = vmatmul.bf16.gmra.mxu0 %v3988_v52  ;;  %v4706_v52 = vld [vmem:[%s5044_s27 + $0x2a4] sm:$0xf] }
 0x2ce   : > { %1812 = vmatmul.bf16.gmra.mxu1 %v3992_v30  ;;  %v3997_v30 = vld [vmem:[%s5044_s27 + $0x2a8] sm:$0xf0] }
 0x2cf   : > { %v4000_v29 = vor.u32 %v4706_v52, %v3997_v30  ;;  %v4003_v30 = vld [vmem:[%s5044_s27 + $0x2b0] sm:$0xf] }
 0x2d1   : > { %v5911_v35 = vpop.f32.mrf.mxu3 }
 0x2d2   : > { %v1446_v15 = vpop.f32.mrf.mxu0  ;;  %7857 = vst [vmem:[#allocation41_spill] sm:$0xff] %v5911_v35 }
 0x2d3   : > { %v1775_v7 = vpop.f32.mrf.mxu1  ;;  %v5914_v19 = vpop.f32.mrf.mxu2 }
 0x2d4   : > { %v5909_v3 = vadd.f32 %v1775_v7, %v1446_v15  ;;  %7858 = vst [vmem:[#allocation42_spill] sm:$0xff] %v5914_v19 }
 0x2d9   : > { %v1581_v59 = vpop.f32.mrf.mxu3 }
 0x2da   : > { %v1449_v58 = vpop.f32.mrf.mxu0 }
 0x2db   : > { %v1778_v9 = vpop.f32.mrf.mxu1  ;;  %v1910_v51 = vpop.f32.mrf.mxu2 }
 0x2dc   : > { %v5919_v45 = vadd.f32 %v1778_v9, %v1449_v58  ;;  %v1911_v15 = vadd.f32 %v1910_v51, %v1581_v59  ;;  %v4247_v9 = vld [vmem:[%s7789_s3 + $0xf0] sm:$0xff]  ;;  %v2107_v58 = vld [vmem:[%s7789_s3 + $0x78] sm:$0xff] }
 0x2dd   : > { %1488 = vmatmul.bf16.gmra.mxu0 %v3996_v62  ;;  %2156 = vmatpush.msrb.mxu2 %v4247_v9  ;;  %v4708_v59 = vld [vmem:[%s5044_s27 + $0x2b4] sm:$0xf]  ;;  %v1901_v9 = vadd.f32 %v5888_v48, %v5886_v37  ;;  %v1896_v37 = vadd.f32 %v5801_v53, %v5798_v17 }
 0x2de   : > { %1817 = vmatmul.bf16.gmra.mxu1 %v4000_v29  ;;  %2190 = vmatpush.msrb.mxu3 %v2107_v58  ;;  %v4709_v29 = vld [vmem:[%s5044_s27 + $0x2b4] sm:$0xf0] }
 0x2e1   : > { %v1584_v22 = vpop.f32.mrf.mxu3 }
 0x2e2   : > { %v1451_v7 = vpop.f32.mrf.mxu0 }
 0x2e3   : > { %v1780_v19 = vpop.f32.mrf.mxu1  ;;  %v1913_v62 = vpop.f32.mrf.mxu2 }
 0x2e4   : > { %v5923_v60 = vadd.f32 %v1780_v19, %v1451_v7  ;;  %v4005_v19 = vld [vmem:[%s5044_s27 + $0x2b8] sm:$0xf0]  ;;  %v1914_v51 = vadd.f32 %v1913_v62, %v1584_v22  ;;  %v4004_v7 = vor.u32 %v4709_v29, %v4003_v30 }
 0x2e5   : > { %v4008_v47 = vor.u32 %v4708_v59, %v4005_v19  ;;  %v4710_v59 = vld [vmem:[%s5044_s27 + $0x2c4] sm:$0xf]  ;;  %v4013_v19 = vld [vmem:[%s5044_s27 + $0x2c8] sm:$0xf0] }
 0x2e9   : > { %v1586_v0 = vpop.f32.mrf.mxu3 }
 0x2ea   : > { %v1454_v35 = vpop.f32.mrf.mxu0 }
 0x2eb   : > { %v1783_v11 = vpop.f32.mrf.mxu1  ;;  %v1915_v58 = vpop.f32.mrf.mxu2 }
 0x2ec   : > { %v5937_v5 = vadd.f32 %v1783_v11, %v1454_v35  ;;  %v1916_v52 = vadd.f32 %v1915_v58, %v1586_v0  ;;  %v4246_v11 = vld [vmem:[%s7789_s3 + $0xe8] sm:$0xff]  ;;  %v2106_v35 = vld [vmem:[%s7789_s3 + $0x70] sm:$0xff]  ;;  %v4011_v0 = vld [vmem:[%s5044_s27 + $0x2c0] sm:$0xf]  ;;  %v4016_v58 = vor.u32 %v4710_v59, %v4013_v19 }
 0x2ed   : > { %1493 = vmatmul.bf16.gmra.mxu0 %v4004_v7  ;;  %2157 = vmatpush.msrb.mxu2 %v4246_v11 }
 0x2ee   : > { %1822 = vmatmul.bf16.gmra.mxu1 %v4008_v47  ;;  %2191 = vmatpush.msrb.mxu3 %v2106_v35 }
 0x2f1   : > { %v5949_v62 = vpop.f32.mrf.mxu3 }
 0x2f2   : > { %v1456_v26 = vpop.f32.mrf.mxu0  ;;  %7859 = vst [vmem:[#allocation43_spill] sm:$0xff] %v5949_v62 }
 0x2f3   : > { %v1785_v22 = vpop.f32.mrf.mxu1  ;;  %v5954_v29 = vpop.f32.mrf.mxu2 }
 0x2f4   : > { %v5941_v30 = vadd.f32 %v1785_v22, %v1456_v26  ;;  %7860 = vst [vmem:[#allocation44_spill] sm:$0xff] %v5954_v29  ;;  %v4711_v26 = vld [vmem:[%s5044_s27 + $0x2c4] sm:$0xf0]  ;;  %v1891_v22 = vadd.f32 %v5743_v18, %v5741_v41  ;;  %v1894_v18 = vadd.f32 %v5758_v40, %v5755_v27  ;;  %v1959_v27 = vmax.f32 %v1896_v37, %v5907_v6 }
 0x2f5   : > { %v4012_v7 = vor.u32 %v4711_v26, %v4011_v0  ;;  %v7861_v6 = vmax.f32 %v5880_v33, %v5919_v45 }
 0x2f6   : > { %v1957_v34 = vmax.f32 %v1891_v22, %v1901_v9  ;;  %v1958_v19 = vmax.f32 %v1894_v18, %v5900_v21 }
 0x2f9   : > { %v1591_v24 = vpop.f32.mrf.mxu3 }
 0x2fa   : > { %v1459_v62 = vpop.f32.mrf.mxu0 }
 0x2fb   : > { %v1788_v11 = vpop.f32.mrf.mxu1  ;;  %v1920_v47 = vpop.f32.mrf.mxu2 }
 0x2fc   : > { %v1789_v35 = vadd.f32 %v1788_v11, %v1459_v62  ;;  %v1921_v29 = vadd.f32 %v1920_v47, %v1591_v24 }
 0x2fd   : > { %1498 = vmatmul.bf16.gmra.mxu0 %v4012_v7  ;;  %v2105_v7 = vld [vmem:[%s7789_s3 + $0x68] sm:$0xff] }
 0x2fe   : > { %1827 = vmatmul.bf16.gmra.mxu1 %v4016_v58  ;;  %v1989_v39 = vmax.f32 %v1911_v15, %v1921_v29  ;;  %2192 = vmatpush.msrb.mxu3 %v2105_v7 }
 0x300   : > { %v5963_v0 = vmax.f32 %v1957_v34, %v1989_v39  ;;  %v4245_v39 = vld [vmem:[%s7789_s3 + $0xe0] sm:$0xff] }
 0x301   : > { %v1594_v59 = vpop.f32.mrf.mxu3  ;;  %2158 = vmatpush.msrb.mxu2 %v4245_v39 }
 0x302   : > { %v1461_v13 = vpop.f32.mrf.mxu0 }
 0x303   : > { %v1790_v38 = vpop.f32.mrf.mxu1  ;;  %v1923_v41 = vpop.f32.mrf.mxu2 }
 0x304   : > { %v1791_v26 = vadd.f32 %v1790_v38, %v1461_v13  ;;  %v1924_v24 = vadd.f32 %v1923_v41, %v1594_v59  ;;  %v2104_v41 = vld [vmem:[%s7789_s3 + $0x60] sm:$0xff] }
 0x305   : > { %2193 = vmatpush.msrb.mxu3 %v2104_v41  ;;  %v7864_v41 = vmax.f32 %v5902_v23, %v5937_v5 }
 0x306   : > { %v1990_v34 = vmax.f32 %v1914_v51, %v1924_v24 }
 0x308   : > { %v5976_v15 = vmax.f32 %v1958_v19, %v1990_v34 }
 0x309   : > { %v1596_v13 = vpop.f32.mrf.mxu3 }
 0x30a   : > { %v1464_v48 = vpop.f32.mrf.mxu0 }
 0x30b   : > { %v1793_v62 = vpop.f32.mrf.mxu1  ;;  %v1925_v38 = vpop.f32.mrf.mxu2 }
 0x30c   : > { %v5970_v9 = vadd.f32 %v1793_v62, %v1464_v48  ;;  %v1926_v40 = vadd.f32 %v1925_v38, %v1596_v13 }
 0x30e   : > { %v1991_v17 = vmax.f32 %v1916_v52, %v1926_v40  ;;  %v4244_v52 = vld [vmem:[%s7789_s3 + $0xd8] sm:$0xff] }
 0x30f   : > { %2159 = vmatpush.msrb.mxu2 %v4244_v52 }
 0x310   : > { %v5978_v21 = vmax.f32 %v1959_v27, %v1991_v17  ;;  %v7862_v27 = vmax.f32 %v5894_v14, %v5923_v60 }
 0x312   : > { %v1466_v53 = vpop.f32.mrf.mxu0 }
 0x313   : > { %v1795_v47 = vpop.f32.mrf.mxu1 }
 0x314   : > { %v5980_v29 = vadd.f32 %v1795_v47, %v1466_v53 }
 0x31a   : > { %v1469_v58 = vpop.f32.mrf.mxu0 }
 0x31b   : > { %v1798_v51 = vpop.f32.mrf.mxu1 }
 0x31c   : > { %v1799_v22 = vadd.f32 %v1798_v51, %v1469_v58 }
 0x31e   : > { %v1976_v11 = vmax.f32 %v1789_v35, %v1799_v22 }
 0x320   : > { %v2008_v59 = vmax.f32 %v7861_v6, %v1976_v11 }
 0x322   : > { %v2044_v18 = vadd.f32 %v5751_v4, %v2008_v59  ;;  %v1471_v37 = vpop.f32.mrf.mxu0 }
 0x323   : > { %v1800_v48 = vpop.f32.mrf.mxu1 }
 0x324   : > { %v2076_v62 = vmax.f32 %v2044_v18, 0.0  ;;  %v1801_v35 = vadd.f32 %v1800_v48, %v1471_v37 }
 0x326   : > { %v1977_v19 = vmax.f32 %v1791_v26, %v1801_v35  ;;  %v2142_v45 = vrot.slane %v2076_v62, 5  ;;  %v2181_v33 = vrot.slane %v2076_v62, 4  ;;  %v2233_v24 = vrot.slane %v2076_v62, 6 }
 0x327   : > { %v2286_v39 = vrot.slane %v2076_v62, 7  ;;  %v5997_v13 = vsel %vm2143_vm3, %v2076_v62, %v5783_v61  ;;  %v2393_v34 = vrot.slane %v2076_v62, 1  ;;  %v2446_v38 = vrot.slane %v2076_v62, 2 }
 0x328   : > { %v2009_v40 = vmax.f32 %v7862_v27, %v1977_v19  ;;  %v6004_v17 = vsel %vm2143_vm3, %v2142_v45, %v5771_v10  ;;  %v6008_v26 = vsel %vm2143_vm3, %v2181_v33, %v5775_v36  ;;  %v6012_v53 = vsel %vm2143_vm3, %v2233_v24, %v5779_v12  ;;  %v4242_v45 = vld [vmem:[%s7789_s3 + $0xc8] sm:$0xff] }
 0x329   : > { %v6016_v61 = vsel %vm2143_vm3, %v2286_v39, %v5764_v43  ;;  %v6020_v14 = vsel %vm2143_vm3, %v2393_v34, %v5787_v46  ;;  %v6024_v10 = vsel %vm2143_vm3, %v2446_v38, %v5792_v54  ;;  %v2499_v60 = vrot.slane %v2076_v62, 3  ;;  %v4243_v46 = vld [vmem:[%s7789_s3 + $0xd0] sm:$0xff] }
 0x32a   : > { %v2045_v36 = vadd.f32 %v5751_v4, %v2009_v40  ;;  %v1474_v47 = vpop.f32.mrf.mxu0  ;;  %2160 = vmatpush.msrb.mxu2 %v4243_v46 }
 0x32b   : > { %v1803_v7 = vpop.f32.mrf.mxu1  ;;  %v6029_v12 = vsel %vm2143_vm3, %v2499_v60, %v5796_v57 }
 0x32c   : > { %v2077_v58 = vmax.f32 %v2045_v36, 0.0  ;;  %v1804_v43 = vadd.f32 %v1803_v7, %v1474_v47  ;;  %2161 = vmatpush.msrb.mxu2 %v4242_v45  ;;  %v7869_v36 = vmax.f32 %v5909_v3, %v5941_v30  ;;  %v2094_v45 = vld [vmem:[%s7789_s3 + $0x10] sm:$0xff] }
 0x32e   : > { %v1978_v51 = vmax.f32 %v5970_v9, %v1804_v43  ;;  %v2559_v54 = vrot.slane %v2077_v58, 4  ;;  %v2612_v22 = vrot.slane %v2077_v58, 5  ;;  %v2665_v11 = vrot.slane %v2077_v58, 6 }
 0x32f   : > { %v2718_v6 = vrot.slane %v2077_v58, 7  ;;  %v6037_v59 = vsel %vm2143_vm3, %v2077_v58, %v5824_v63  ;;  %v2825_v52 = vrot.slane %v2077_v58, 1  ;;  %v2878_v57 = vrot.slane %v2077_v58, 2 }
 0x330   : > { %7863 = vst [vmem:[#allocation45_spill] sm:$0xff] %v6037_v59  ;;  %v2010_v18 = vmax.f32 %v7864_v41, %v1978_v51  ;;  %v6044_v37 = vsel %vm2143_vm3, %v2559_v54, %v5812_v42  ;;  %v6048_v9 = vsel %vm2143_vm3, %v2612_v22, %v5816_v49  ;;  %v6052_v48 = vsel %vm2143_vm3, %v2665_v11, %v5820_v28  ;;  %v4240_v54 = vld [vmem:[%s7789_s3 + $0xb8] sm:$0xff]  ;;  %v7870_v41 = vld [vmem:[#allocation40_spill] sm:$0xff] }
 0x331   : > { %7865 = vst [vmem:[#allocation46_spill] sm:$0xff] %v6052_v48  ;;  %v6056_v63 = vsel %vm2143_vm3, %v2718_v6, %v5805_v31  ;;  %v6060_v5 = vsel %vm2143_vm3, %v2825_v52, %v5828_v50  ;;  %v6064_v42 = vsel %vm2143_vm3, %v2878_v57, %v5833_v8  ;;  %v2931_v23 = vrot.slane %v2077_v58, 3  ;;  %v2103_v50 = vld [vmem:[%s7789_s3 + $0x58] sm:$0xff]  ;;  %v2102_v8 = vld [vmem:[%s7789_s3 + $0x50] sm:$0xff]  ;;  %v4238_v52 = vld [vmem:[%s7789_s3 + $0xa8] sm:$0xff] }
 0x332   : > { %7866 = vst [vmem:[#allocation47_spill] sm:$0xff] %v6056_v63  ;;  %v2046_v49 = vadd.f32 %v5751_v4, %v2010_v18  ;;  %v1476_v62 = vpop.f32.mrf.mxu0  ;;  %2194 = vmatpush.msrb.mxu3 %v2103_v50  ;;  %v2099_v22 = vld [vmem:[%s7789_s3 + $0x38] sm:$0xff]  ;;  %v4239_v6 = vld [vmem:[%s7789_s3 + $0xb0] sm:$0xff]  ;;  %v2097_v57 = vld [vmem:[%s7789_s3 + $0x28] sm:$0xff] }
 0x333   : > { %7867 = vst [vmem:[#allocation48_spill] sm:$0xff] %v6064_v42  ;;  %v1805_v35 = vpop.f32.mrf.mxu1  ;;  %v6069_v28 = vsel %vm2143_vm3, %v2931_v23, %v5837_v1  ;;  %v2101_v1 = vld [vmem:[%s7789_s3 + $0x48] sm:$0xff]  ;;  %v4237_v23 = vld [vmem:[%s7789_s3 + $0xa0] sm:$0xff]  ;;  %v2095_v50 = vld [vmem:[%s7789_s3 + $0x18] sm:$0xff] }
 0x334   : > { %7868 = vst [vmem:[#allocation49_spill] sm:$0xff] %v6069_v28  ;;  %v2078_v19 = vmax.f32 %v2046_v49, 0.0  ;;  %v1806_v31 = vadd.f32 %v1805_v35, %v1476_v62  ;;  %2195 = vmatpush.msrb.mxu3 %v2102_v8  ;;  %v2096_v49 = vld [vmem:[%s7789_s3 + $0x20] sm:$0xff]  ;;  %v4235_v8 = vld [vmem:[%s7789_s3 + $0x90] sm:$0xff]  ;;  %v7911_v28 = vld [vmem:[#allocation11_spill] sm:$0xff] }
 0x336   : > { %v1979_v33 = vmax.f32 %v5980_v29, %v1806_v31  ;;  %v2991_v24 = vrot.slane %v2078_v19, 4  ;;  %v3044_v39 = vrot.slane %v2078_v19, 5  ;;  %v3097_v34 = vrot.slane %v2078_v19, 6  ;;  %2196 = vmatpush.msrb.mxu3 %v2101_v1  ;;  %v4236_v31 = vld [vmem:[%s7789_s3 + $0x98] sm:$0xff]  ;;  %v2093_v1 = vld [vmem:[%s7789_s3 + $0x8] sm:$0xff] }
 0x337   : > { %v3150_v38 = vrot.slane %v2078_v19, 7  ;;  %v6086_v27 = vsel %vm2143_vm3, %v2078_v19, %v5869_v55  ;;  %v3257_v40 = vrot.slane %v2078_v19, 1  ;;  %v3310_v60 = vrot.slane %v2078_v19, 2 }
 0x338   : > { %v2011_v47 = vmax.f32 %v7869_v36, %v1979_v33  ;;  %v6093_v29 = vsel %vm2143_vm3, %v2991_v24, %v5857_v20  ;;  %v6097_v7 = vsel %vm2143_vm3, %v3044_v39, %v5861_v25  ;;  %v6101_v58 = vsel %vm2143_vm3, %v3097_v34, %v5865_v2  ;;  %v4241_v2 = vld [vmem:[%s7789_s3 + $0xc0] sm:$0xff]  ;;  %v4234_v33 = vld [vmem:[%s7789_s3 + $0x88] sm:$0xff] }
 0x339   : > { %v6105_v55 = vsel %vm2143_vm3, %v3150_v38, %v5850_v44  ;;  %v6109_v3 = vsel %vm2143_vm3, %v3257_v40, %v5873_v16  ;;  %v6113_v20 = vsel %vm2143_vm3, %v3310_v60, %v5878_v32  ;;  %v3363_v30 = vrot.slane %v2078_v19, 3  ;;  %v2100_v44 = vld [vmem:[%s7789_s3 + $0x40] sm:$0xff]  ;;  %2162 = vmatpush.msrb.mxu2 %v4241_v2  ;;  %v4264_v40 = vld [vmem:[%s7789_s3 + $0x178] sm:$0xff]  ;;  %v4278_v2 = vld [vmem:[%s7789_s3 + $0x1e8] sm:$0xff] }
 0x33a   : > { %v2047_v25 = vadd.f32 %v5751_v4, %v2011_v47  ;;  %v1479_v43 = vpop.f32.mrf.mxu0  ;;  %2197 = vmatpush.msrb.mxu3 %v2100_v44  ;;  %v4233_v24 = vld [vmem:[%s7789_s3 + $0x80] sm:$0xff]  ;;  %v4280_v60 = vld [vmem:[%s7789_s3 + $0x1f8] sm:$0xff]  ;;  %v4263_v47 = vld [vmem:[%s7789_s3 + $0x170] sm:$0xff] }
 0x33b   : > { %v1808_v46 = vpop.f32.mrf.mxu1  ;;  %v6124_v16 = vsel %vm2143_vm3, %v3363_v30, %v5884_v56  ;;  %2163 = vmatpush.msrb.mxu2 %v4240_v54  ;;  %v2098_v56 = vld [vmem:[%s7789_s3 + $0x30] sm:$0xff]  ;;  %v2092_v39 = vld [vmem:[%s7789_s3] sm:$0xff]  ;;  %v4260_v54 = vld [vmem:[%s7789_s3 + $0x158] sm:$0xff] }
 0x33c   : > { %v2079_v32 = vmax.f32 %v2047_v25, 0.0  ;;  %v6126_v51 = vadd.f32 %v1808_v46, %v1479_v43  ;;  %2198 = vmatpush.msrb.mxu3 %v2099_v22  ;;  %v4279_v30 = vld [vmem:[%s7789_s3 + $0x1f0] sm:$0xff]  ;;  %v4262_v25 = vld [vmem:[%s7789_s3 + $0x168] sm:$0xff]  ;;  %v4261_v44 = vld [vmem:[%s7789_s3 + $0x160] sm:$0xff] }
 0x33d   : > { %2164 = vmatpush.msrb.mxu2 %v4239_v6  ;;  %v4277_v43 = vld [vmem:[%s7789_s3 + $0x1e0] sm:$0xff]  ;;  %v4276_v22 = vld [vmem:[%s7789_s3 + $0x1d8] sm:$0xff]  ;;  %v4259_v6 = vld [vmem:[%s7789_s3 + $0x150] sm:$0xff] }
 0x33e   : > { %v3423_v11 = vrot.slane %v2079_v32, 4  ;;  %2199 = vmatpush.msrb.mxu3 %v2098_v56  ;;  %v4275_v56 = vld [vmem:[%s7789_s3 + $0x1d0] sm:$0xff] }
 0x33f   : > { %2165 = vmatpush.msrb.mxu2 %v4238_v52  ;;  %v4258_v52 = vld [vmem:[%s7789_s3 + $0x148] sm:$0xff] }
 0x340   : > { %v6148_v18 = vsel %vm2143_vm3, %v3423_v11, %v7870_v41  ;;  %2200 = vmatpush.msrb.mxu3 %v2097_v57  ;;  %v4274_v57 = vld [vmem:[%s7789_s3 + $0x1c8] sm:$0xff]  ;;  %v7871_v41 = vld [vmem:[#allocation20_spill] sm:$0xff] }
 0x341   : > { %2166 = vmatpush.msrb.mxu2 %v4237_v23  ;;  %v7872_v23 = vld [vmem:[#allocation21_spill] sm:$0xff] }
 0x342   : > { %v1481_v62 = vpop.f32.mrf.mxu0  ;;  %2201 = vmatpush.msrb.mxu3 %v2096_v49  ;;  %v1869_v49 = vadd.f32 %v7872_v23, %v7871_v41  ;;  %v7885_v41 = vld [vmem:[#allocation34_spill] sm:$0xff]  ;;  %v7886_v23 = vld [vmem:[#allocation35_spill] sm:$0xff] }
 0x343   : > { %v1810_v35 = vpop.f32.mrf.mxu1  ;;  %2167 = vmatpush.msrb.mxu2 %v4236_v31 }
 0x344   : > { %v6156_v19 = vadd.f32 %v1810_v35, %v1481_v62  ;;  %2202 = vmatpush.msrb.mxu3 %v2095_v50  ;;  %v7873_v62 = vld [vmem:[#allocation28_spill] sm:$0xff]  ;;  %v7874_v35 = vld [vmem:[#allocation29_spill] sm:$0xff] }
 0x345   : > { %2168 = vmatpush.msrb.mxu2 %v4235_v8  ;;  %v1879_v31 = vadd.f32 %v7874_v35, %v7873_v62  ;;  %v4257_v50 = vld [vmem:[%s7789_s3 + $0x140] sm:$0xff]  ;;  %v4254_v62 = vld [vmem:[%s7789_s3 + $0x128] sm:$0xff] }
 0x346   : > { %2203 = vmatpush.msrb.mxu3 %v2094_v45  ;;  %v4273_v8 = vld [vmem:[%s7789_s3 + $0x1c0] sm:$0xff]  ;;  %v4270_v35 = vld [vmem:[%s7789_s3 + $0x1a8] sm:$0xff] }
 0x347   : > { %2169 = vmatpush.msrb.mxu2 %v4234_v33  ;;  %v7875_v45 = vld [vmem:[#allocation24_spill] sm:$0xff]  ;;  %v7876_v33 = vld [vmem:[#allocation25_spill] sm:$0xff] }
 0x348   : > { %2204 = vmatpush.msrb.mxu3 %v2093_v1  ;;  %v1874_v1 = vadd.f32 %v7876_v33, %v7875_v45 }
 0x349   : > { %2170 = vmatpush.msrb.mxu2 %v4233_v24  ;;  %v7877_v24 = vld [vmem:[#allocation32_spill] sm:$0xff] }
 0x34a   : > { %v1484_v34 = vpop.f32.mrf.mxu0  ;;  %2205 = vmatpush.msrb.mxu3 %v2092_v39  ;;  %v7878_v39 = vld [vmem:[#allocation33_spill] sm:$0xff] }
 0x34b   : > { %v1813_v38 = vpop.f32.mrf.mxu1  ;;  %2242 = vmatpush.msra.mxu2 %v4264_v40 }
 0x34c   : > { %v6188_v36 = vadd.f32 %v1813_v38, %v1484_v34  ;;  %2295 = vmatpush.msra.mxu3 %v4280_v60  ;;  %v1884_v34 = vadd.f32 %v7878_v39, %v7877_v24  ;;  %v4256_v60 = vld [vmem:[%s7789_s3 + $0x138] sm:$0xff]  ;;  %v4269_v24 = vld [vmem:[%s7789_s3 + $0x1a0] sm:$0xff]  ;;  %v7890_v39 = vld [vmem:[#allocation14_spill] sm:$0xff] }
 0x34d   : > { %2243 = vmatpush.msra.mxu2 %v4263_v47  ;;  %v4272_v47 = vld [vmem:[%s7789_s3 + $0x1b8] sm:$0xff] }
 0x34e   : > { %2296 = vmatpush.msra.mxu3 %v4279_v30  ;;  %v7879_v30 = vld [vmem:[#allocation22_spill] sm:$0xff] }
 0x34f   : > { %2244 = vmatpush.msra.mxu2 %v4262_v25  ;;  %v7880_v25 = vld [vmem:[#allocation23_spill] sm:$0xff] }
 0x350   : > { %2297 = vmatpush.msra.mxu3 %v4278_v2  ;;  %v1871_v2 = vadd.f32 %v7880_v25, %v7879_v30 }
 0x351   : > { %2245 = vmatpush.msra.mxu2 %v4261_v44  ;;  %v1984_v44 = vmax.f32 %v1869_v49, %v1879_v31  ;;  %v1886_v49 = vadd.f32 %v7886_v23, %v7885_v41  ;;  %v7887_v31 = vld [vmem:[#allocation12_spill] sm:$0xff]  ;;  %v7898_v23 = vld [vmem:[#allocation38_spill] sm:$0xff] }
 0x352   : > { %2298 = vmatpush.msra.mxu3 %v4277_v43  ;;  %v1486_v46 = vpop.f32.mrf.mxu0  ;;  %v7881_v43 = vld [vmem:[#allocation30_spill] sm:$0xff] }
 0x353   : > { %v1815_v32 = vpop.f32.mrf.mxu1  ;;  %2246 = vmatpush.msra.mxu2 %v4260_v54  ;;  %v4255_v54 = vld [vmem:[%s7789_s3 + $0x130] sm:$0xff] }
 0x354   : > { %v6214_v11 = vadd.f32 %v1815_v32, %v1486_v46  ;;  %2299 = vmatpush.msra.mxu3 %v4276_v22  ;;  %v7882_v46 = vld [vmem:[#allocation31_spill] sm:$0xff]  ;;  %v4271_v22 = vld [vmem:[%s7789_s3 + $0x1b0] sm:$0xff] }
 0x355   : > { %2247 = vmatpush.msra.mxu2 %v4259_v6  ;;  %v1881_v32 = vadd.f32 %v7882_v46, %v7881_v43  ;;  %v7883_v6 = vld [vmem:[#allocation26_spill] sm:$0xff]  ;;  %v4268_v43 = vld [vmem:[%s7789_s3 + $0x198] sm:$0xff] }
 0x356   : > { %2300 = vmatpush.msra.mxu3 %v4275_v56  ;;  %v7884_v56 = vld [vmem:[#allocation27_spill] sm:$0xff] }
 0x357   : > { %2248 = vmatpush.msra.mxu2 %v4258_v52  ;;  %v1876_v52 = vadd.f32 %v7884_v56, %v7883_v6  ;;  %v1985_v33 = vmax.f32 %v1871_v2, %v1881_v32  ;;  %v4252_v2 = vld [vmem:[%s7789_s3 + $0x118] sm:$0xff]  ;;  %v7893_v32 = vld [vmem:[#allocation13_spill] sm:$0xff] }
 0x358   : > { %2301 = vmatpush.msra.mxu3 %v4274_v57  ;;  %v1986_v57 = vmax.f32 %v1874_v1, %v1884_v34  ;;  %v4253_v1 = vld [vmem:[%s7789_s3 + $0x120] sm:$0xff]  ;;  %v7891_v34 = vld [vmem:[#allocation18_spill] sm:$0xff] }
 0x359   : > { %2249 = vmatpush.msra.mxu2 %v4257_v50  ;;  %v7888_v50 = vld [vmem:[#allocation16_spill] sm:$0xff]  ;;  %v1987_v30 = vmax.f32 %v1876_v52, %v1886_v49  ;;  %v7899_v49 = vld [vmem:[#allocation39_spill] sm:$0xff] }
 0x35a   : > { %2302 = vmatpush.msra.mxu3 %v4273_v8  ;;  %v6242_v38 = vpop.f32.mrf.mxu0  ;;  %v7889_v8 = vmax.f32 %v7887_v31, %v7888_v50  ;;  %v7896_v52 = vld [vmem:[#allocation36_spill] sm:$0xff]  ;;  %v7901_v31 = vld [vmem:[#allocation42_spill] sm:$0xff] }
 0x35b   : > { %v6244_v40 = vpop.f32.mrf.mxu1  ;;  %2250 = vmatpush.msra.mxu2 %v4256_v60  ;;  %v7892_v60 = vmax.f32 %v7890_v39, %v7891_v34 }
 0x35c   : > { %2303 = vmatpush.msra.mxu3 %v4272_v47  ;;  %v2016_v45 = vmax.f32 %v7889_v8, %v1984_v44  ;;  %v7902_v8 = vld [vmem:[#allocation43_spill] sm:$0xff] }
 0x35d   : > { %2251 = vmatpush.msra.mxu2 %v4255_v54  ;;  %v2018_v47 = vmax.f32 %v7892_v60, %v1986_v57  ;;  %v7894_v54 = vld [vmem:[#allocation17_spill] sm:$0xff]  ;;  %v7904_v60 = vld [vmem:[#allocation15_spill] sm:$0xff] }
 0x35e   : > { %2304 = vmatpush.msra.mxu3 %v4271_v22  ;;  %v2052_v46 = vadd.f32 %v5751_v4, %v2016_v45  ;;  %v7895_v22 = vmax.f32 %v7893_v32, %v7894_v54  ;;  %v7897_v57 = vld [vmem:[#allocation37_spill] sm:$0xff] }
 0x35f   : > { %2252 = vmatpush.msra.mxu2 %v4254_v62  ;;  %v1889_v41 = vadd.f32 %v7897_v57, %v7896_v52  ;;  %v1899_v62 = vadd.f32 %v7899_v49, %v7898_v23  ;;  %v2054_v34 = vadd.f32 %v5751_v4, %v2018_v47  ;;  %v4266_v32 = vld [vmem:[%s7789_s3 + $0x188] sm:$0xff]  ;;  %v4265_v57 = vld [vmem:[%s7789_s3 + $0x180] sm:$0xff]  ;;  %v2058_v23 = vadd.f32 %v5751_v4, %v5976_v15 }
 0x360   : > { %2305 = vmatpush.msra.mxu3 %v4270_v35  ;;  %v2017_v6 = vmax.f32 %v7895_v22, %v1985_v33  ;;  %v7900_v35 = vld [vmem:[#allocation41_spill] sm:$0xff]  ;;  %v4251_v33 = vld [vmem:[%s7789_s3 + $0x110] sm:$0xff]  ;;  %v6322_v54 = vmax.f32 %v2052_v46, 0.0  ;;  %v6345_v15 = vadd.f32 %v5751_v4, %v5978_v21 }
 0x361   : > { %2253 = vmatpush.msra.mxu2 %v4253_v1  ;;  %v1909_v50 = vadd.f32 %v7901_v31, %v7900_v35  ;;  %v7903_v1 = vld [vmem:[#allocation44_spill] sm:$0xff]  ;;  %v1956_v52 = vmax.f32 %v1889_v41, %v1899_v62  ;;  %v6333_v49 = vmax.f32 %v2054_v34, 0.0 }
 0x362   : > { %2306 = vmatpush.msra.mxu3 %v4269_v24  ;;  %v1491_v25 = vpop.f32.mrf.mxu0  ;;  %v1919_v45 = vadd.f32 %v7903_v1, %v7902_v8  ;;  %v4267_v24 = vld [vmem:[%s7789_s3 + $0x190] sm:$0xff]  ;;  %v2053_v22 = vadd.f32 %v5751_v4, %v2017_v6  ;;  %v6341_v8 = vmax.f32 %v2058_v23, 0.0  ;;  %v2091_v23 = vmax.f32 %v6345_v15, 0.0 }
 0x363   : > { %v1820_v44 = vpop.f32.mrf.mxu1  ;;  %2254 = vmatpush.msra.mxu2 %v4252_v2  ;;  %v3101_v21 = vrot.slane %v6333_v49, 4 }
 0x364   : > { %v6294_v56 = vadd.f32 %v1820_v44, %v1491_v25  ;;  %2307 = vmatpush.msra.mxu3 %v4268_v43  ;;  %v7905_v25 = vld [vmem:[#allocation19_spill] sm:$0xff]  ;;  %v4250_v43 = vld [vmem:[%s7789_s3 + $0x108] sm:$0xff]  ;;  %v1988_v47 = vmax.f32 %v1909_v50, %v1919_v45  ;;  %v6338_v35 = vmax.f32 %v2053_v22, 0.0  ;;  %v3315_v15 = vrot.slane %v6341_v8, 7 }
 0x365   : > { %2255 = vmatpush.msra.mxu2 %v4251_v33  ;;  %v7906_v44 = vmax.f32 %v7904_v60, %v7905_v25  ;;  %v2995_v60 = vrot.slane %v6333_v49, 2  ;;  %v7907_v25 = vld [vmem:[#allocation6_spill] sm:$0xff] }
 0x366   : > { %2308 = vmatpush.msra.mxu3 %v4267_v24  ;;  %v2020_v31 = vmax.f32 %v1956_v52, %v1988_v47  ;;  %v3207_v52 = vrot.slane %v6333_v49, 6  ;;  %v3260_v47 = vrot.slane %v6333_v49, 7 }
 0x367   : > { %v2019_v2 = vmax.f32 %v7906_v44, %v1987_v30  ;;  %2256 = vmatpush.msra.mxu2 %v4250_v43  ;;  %v4249_v30 = vld [vmem:[%s7789_s3 + $0x100] sm:$0xff]  ;;  %v7908_v44 = vld [vmem:[#allocation10_spill] sm:$0xff] }
 0x368   : > { %2309 = vmatpush.msra.mxu3 %v4266_v32  ;;  %v3048_v32 = vrot.slane %v6333_v49, 3  ;;  %v2056_v22 = vadd.f32 %v5751_v4, %v2020_v31  ;;  %v3050_v31 = vrot.slane %v6341_v8, 2 }
 0x369   : > { %2257 = vmatpush.msra.mxu2 %v4249_v30  ;;  %v6336_v46 = vadd.f32 %v5751_v4, %v2019_v2  ;;  %v7909_v2 = vmax.f32 %v7907_v25, %v7908_v44  ;;  %v3103_v25 = vrot.slane %v6341_v8, 3  ;;  %v3156_v44 = vrot.slane %v6341_v8, 4 }
 0x36a   : > { %2310 = vmatpush.msra.mxu3 %v4265_v57  ;;  %v1494_v6 = vpop.f32.mrf.mxu0  ;;  %v6365_v57 = vadd.f32 %v5751_v4, %v5963_v0  ;;  %v3262_v0 = vrot.slane %v6341_v8, 6 }
 0x36b   : > { %v1823_v41 = vpop.f32.mrf.mxu1 }
 0x36c   : > { %v1824_v62 = vadd.f32 %v1823_v41, %v1494_v6  ;;  %v2997_v41 = vrot.slane %v6341_v8, 1 }
 0x36e   : > { %v1950_v1 = vmax.f32 %v6188_v36, %v1824_v62  ;;  %v3154_v36 = vrot.slane %v6333_v49, 5 }
 0x370   : > { %v2014_v43 = vmax.f32 %v1950_v1, %v7909_v2  ;;  %v3209_v2 = vrot.slane %v6341_v8, 5 }
 0x372   : > { %v2050_v6 = vadd.f32 %v5751_v4, %v2014_v43  ;;  %v1496_v62 = vpop.f32.mrf.mxu0  ;;  %v1819_v4 = vadd.f32 %v6244_v40, %v6242_v38 }
 0x373   : > { %v1825_v1 = vpop.f32.mrf.mxu1 }
 0x374   : > { %v2082_v34 = vmax.f32 %v2050_v6, 0.0  ;;  %v1826_v24 = vadd.f32 %v1825_v1, %v1496_v62  ;;  %v7910_v1 = vld [vmem:[#allocation7_spill] sm:$0xff] }
 0x375   : > { %v7912_v42 = vmax.f32 %v7910_v1, %v7911_v28  ;;  %v2669_v1 = vrot.slane %v6338_v35, 4 }
 0x376   : > { %v1951_v43 = vmax.f32 %v6214_v11, %v1826_v24  ;;  %v2993_v45 = vrot.slane %v2082_v34, 3  ;;  %v3046_v50 = vrot.slane %v2082_v34, 4  ;;  %v3099_v39 = vrot.slane %v2082_v34, 5 }
 0x377   : > { %v3152_v30 = vrot.slane %v2082_v34, 6  ;;  %v3205_v33 = vrot.slane %v2082_v34, 7  ;;  %v3259_v6 = vsel %vm2146_vm4, %v2082_v34, %v6109_v3  ;;  %v3312_v62 = vrot.slane %v2082_v34, 1 }
 0x378   : > { %v2015_v59 = vmax.f32 %v1951_v43, %v7912_v42  ;;  %v2994_v38 = vsel %vm2146_vm4, %v2993_v45, %v6093_v29  ;;  %v3047_v40 = vsel %vm2146_vm4, %v3046_v50, %v6097_v7  ;;  %v3100_v11 = vsel %vm2146_vm4, %v3099_v39, %v6101_v58  ;;  %v6398_v42 = vld [vmem:[%s7788_s2] ss:$0 sm:$0xff] }
 0x379   : > { %v2996_v24 = vsel %vm2149_vm5, %v2995_v60, %v2994_v38  ;;  %v3049_v63 = vsel %vm2149_vm5, %v3048_v32, %v3047_v40  ;;  %v3102_v3 = vsel %vm2149_vm5, %v3101_v21, %v3100_v11  ;;  %v3153_v48 = vsel %vm2146_vm4, %v3152_v30, %v6105_v55 }
 0x37a   : > { %v2051_v28 = vadd.f32 %v6398_v42, %v2015_v59  ;;  %v6402_v29 = vsel %vm2152_vm6, %v2997_v41, %v2996_v24  ;;  %v6405_v7 = vsel %vm2152_vm6, %v3050_v31, %v3049_v63  ;;  %v6408_v58 = vsel %vm2152_vm6, %v3103_v25, %v3102_v3  ;;  %v1499_v39 = vpop.f32.mrf.mxu0 }
 0x37b   : > { %v1828_v50 = vpop.f32.mrf.mxu1  ;;  %v3155_v55 = vsel %vm2149_vm5, %v3154_v36, %v3153_v48  ;;  %v3206_v45 = vsel %vm2146_vm4, %v3205_v33, %v6086_v27  ;;  %v3261_v60 = vsel %vm2149_vm5, %v3260_v47, %v3259_v6  ;;  %v3313_v59 = vsel %vm2146_vm4, %v3312_v62, %v6113_v20  ;;  %v7913_v47 = vld [vmem:[#allocation8_spill] sm:$0xff] }
 0x37c   : > { %v2083_v32 = vmax.f32 %v2051_v28, 0.0  ;;  %v1829_v21 = vadd.f32 %v1828_v50, %v1499_v39  ;;  %v6417_v63 = vsel %vm2152_vm6, %v3156_v44, %v3155_v55  ;;  %v3208_v30 = vsel %vm2149_vm5, %v3207_v52, %v3206_v45 }
 0x37d   : > { %v6421_v41 = vsel %vm2152_vm6, %v3209_v2, %v3208_v30  ;;  %v6424_v48 = vsel %vm2152_vm6, %v3262_v0, %v3261_v60  ;;  %v3314_v27 = vsel %vm2149_vm5, %v6333_v49, %v3313_v59  ;;  %v3365_v33 = vrot.slane %v2082_v34, 2 }
 0x37e   : > { %v1948_v36 = vmax.f32 %v6126_v51, %v1819_v4  ;;  %v3425_v20 = vrot.slane %v2083_v32, 3  ;;  %v1980_v31 = vmax.f32 %v1829_v21, %v7913_v47  ;;  %v6431_v25 = vsel %vm2152_vm6, %v3315_v15, %v3314_v27  ;;  %v7916_v32 = vld [vmem:[#allocation9_spill] sm:$0xff] }
 0x37f   : > { %v7914_v52 = vmax.f32 %v6336_v46, 0.0  ;;  %v6435_v2 = vmax.f32 %v2056_v22, 0.0  ;;  %v2503_v0 = vrot.slane %v6322_v54, 1  ;;  %v3366_v43 = vsel %vm2146_vm4, %v3365_v33, %v6124_v16 }
 0x380   : > { %v3429_v6 = vrot.slane %v2091_v23, 1  ;;  %v2012_v34 = vmax.f32 %v1948_v36, %v1980_v31  ;;  %v7915_v51 = vrot.slane %v6333_v49, 1  ;;  %v3426_v15 = vsel %vm2146_vm4, %v3425_v20, %v6148_v18 }
 0x381   : > { %v3427_v44 = vrot.slane %v7914_v52, 2  ;;  %v6446_v62 = vmax.f32 %v6365_v57, 0.0  ;;  %v2563_v46 = vrot.slane %v6338_v35, 2  ;;  %v2616_v49 = vrot.slane %v6338_v35, 3 }
 0x382   : > { %v3368_v4 = vsel %vm2149_vm5, %v7915_v51, %v3366_v43  ;;  %v2048_v23 = vadd.f32 %v6398_v42, %v2012_v34  ;;  %v1501_v18 = vpop.f32.mrf.mxu0  ;;  %v2722_v40 = vrot.slane %v6338_v35, 5  ;;  %v2775_v11 = vrot.slane %v6338_v35, 6 }
 0x383   : > { %v6451_v22 = vsel %vm2152_vm6, %v6341_v8, %v3368_v4  ;;  %v3428_v16 = vsel %vm2149_vm5, %v3427_v44, %v3426_v15  ;;  %v1830_v57 = vpop.f32.mrf.mxu1  ;;  %v2828_v8 = vrot.slane %v6338_v35, 7  ;;  %v2935_v24 = vrot.slane %v6338_v35, 1 }
 0x384   : > { %v6458_v38 = vsel %vm2152_vm6, %v3429_v6, %v3428_v16  ;;  %v2080_v3 = vmax.f32 %v2048_v23, 0.0  ;;  %v1831_v28 = vadd.f32 %v1830_v57, %v1501_v18  ;;  %v2151_v39 = vrot.slane %v6435_v2, 2 }
 0x385   : > { %v2187_v50 = vrot.slane %v6435_v2, 1  ;;  %v2239_v55 = vrot.slane %v6435_v2, 3  ;;  %v2292_v45 = vrot.slane %v6435_v2, 4  ;;  %v2451_v60 = vrot.slane %v6435_v2, 7 }
 0x386   : > { %v2565_v59 = vrot.slane %v6446_v62, 1  ;;  %v1981_v21 = vmax.f32 %v1831_v28, %v7916_v32  ;;  %v2145_v30 = vrot.slane %v2080_v3, 4  ;;  %v2183_v27 = vrot.slane %v2080_v3, 3  ;;  %v4295_v28 = vld [vmem:[%s7789_s3 + $0x270] sm:$0xff] }
 0x387   : > { %v2235_v33 = vrot.slane %v2080_v3, 5  ;;  %v2288_v36 = vrot.slane %v2080_v3, 6  ;;  %v2341_v20 = vrot.slane %v2080_v3, 7  ;;  %v6473_v47 = vsel %vm2146_vm4, %v2080_v3, %v6020_v14 }
 0x388   : > { %v2618_v31 = vrot.slane %v6446_v62, 2  ;;  %v7917_v52 = vmax.f32 %v6156_v19, %v6294_v56  ;;  %v2147_v43 = vsel %vm2146_vm4, %v2145_v30, %v6004_v17  ;;  %v2184_v6 = vsel %vm2146_vm4, %v2183_v27, %v6008_v26  ;;  %v4296_v19 = vld [vmem:[%s7789_s3 + $0x278] sm:$0xff] }
 0x389   : > { %v2236_v34 = vsel %vm2146_vm4, %v2235_v33, %v6012_v53  ;;  %v7918_v51 = vrot.slane %v6322_v54, 3  ;;  %v7919_v4 = vrot.slane %v6322_v54, 2  ;;  %v4312_v17 = vld [vmem:[%s7789_s3 + $0x2f8] sm:$0xff]  ;;  %v2289_v26 = vsel %vm2146_vm4, %v2288_v36, %v6016_v61  ;;  %v4311_v61 = vld [vmem:[%s7789_s3 + $0x2f0] sm:$0xff] }
 0x38a   : > { %v2013_v44 = vmax.f32 %v7917_v52, %v1981_v21  ;;  %v2448_v53 = vrot.slane %v2080_v3, 1  ;;  %v7920_v18 = vrot.slane %v6322_v54, 4  ;;  %v2501_v32 = vrot.slane %v2080_v3, 2  ;;  %v4294_v52 = vld [vmem:[%s7789_s3 + $0x268] sm:$0xff] }
 0x38b   : > { %v2150_v14 = vsel %vm2149_vm5, %v7918_v51, %v2147_v43  ;;  %v2186_v15 = vsel %vm2149_vm5, %v7919_v4, %v2184_v6  ;;  %v2671_v21 = vrot.slane %v6446_v62, 3  ;;  %v2724_v27 = vrot.slane %v6446_v62, 4 }
 0x38c   : > { %v2049_v56 = vadd.f32 %v6398_v42, %v2013_v44  ;;  %v2153_v16 = vsel %vm2152_vm6, %v2151_v39, %v2150_v14  ;;  %v2188_v23 = vsel %vm2152_vm6, %v2187_v50, %v2186_v15  ;;  %v2238_v57 = vsel %vm2149_vm5, %v7920_v18, %v2236_v34 }
 0x38d   : > { %2171 = vmatmul.f32.vlgmr.msrb.gmra.mxu2 %v2153_v16  ;;  %2206 = vmatmul.f32.vlgmr.msrb.gmra.mxu3 %v2188_v23  ;;  %v7921_v42 = vrot.slane %v6322_v54, 5  ;;  %v6516_v50 = vsel %vm2146_vm4, %v2341_v20, %v5997_v13  ;;  %v2777_v33 = vrot.slane %v6446_v62, 5  ;;  %v2830_v36 = vrot.slane %v6446_v62, 6  ;;  %v4310_v13 = vld [vmem:[%s7789_s3 + $0x2e8] sm:$0xff] }
 0x38e   : > { %v6519_v30 = vmax.f32 %v2049_v56, 0.0  ;;  %2348 = vmatpush.msrb.mxu2 %v4296_v19  ;;  %2401 = vmatpush.msrb.mxu3 %v4312_v17  ;;  %v2240_v3 = vsel %vm2152_vm6, %v2239_v55, %v2238_v57  ;;  %v2449_v44 = vsel %vm2146_vm4, %v2448_v53, %v6024_v10  ;;  %v2502_v43 = vsel %vm2146_vm4, %v2501_v32, %v6029_v12  ;;  %v4293_v10 = vld [vmem:[%s7789_s3 + $0x260] sm:$0xff]  ;;  %v4308_v53 = vld [vmem:[%s7789_s3 + $0x2d8] sm:$0xff]  ;;  %v7922_v56 = vld [vmem:[#allocation46_spill] sm:$0xff] }
 0x38f   : > { %v2291_v39 = vsel %vm2149_vm5, %v7921_v42, %v2289_v26  ;;  %v2450_v6 = vsel %vm2149_vm5, %v6322_v54, %v2449_v44  ;;  %v2504_v34 = vsel %vm2149_vm5, %v2503_v0, %v2502_v43  ;;  %v4309_v12 = vld [vmem:[%s7789_s3 + $0x2e0] sm:$0xff]  ;;  %v4292_v26 = vld [vmem:[%s7789_s3 + $0x258] sm:$0xff] }
 0x390   : > { %v2293_v20 = vsel %vm2152_vm6, %v2292_v45, %v2291_v39  ;;  %2349 = vmatpush.msrb.mxu2 %v4295_v28  ;;  %2402 = vmatpush.msrb.mxu3 %v4311_v61  ;;  %v2561_v51 = vrot.slane %v6519_v30, 3  ;;  %v2614_v55 = vrot.slane %v6519_v30, 4  ;;  %v6550_v45 = vsel %vm2152_vm6, %v2451_v60, %v2450_v6  ;;  %v4291_v28 = vld [vmem:[%s7789_s3 + $0x250] sm:$0xff] }
 0x391   : > { %v6554_v14 = vsel %vm2152_vm6, %v6435_v2, %v2504_v34  ;;  %v2667_v0 = vrot.slane %v6519_v30, 5  ;;  %v2720_v4 = vrot.slane %v6519_v30, 6  ;;  %v2773_v17 = vrot.slane %v6519_v30, 7 }
 0x392   : > { %2350 = vmatpush.msrb.mxu2 %v4294_v52  ;;  %2403 = vmatpush.msrb.mxu3 %v4310_v13  ;;  %v2562_v15 = vsel %vm2146_vm4, %v2561_v51, %v6044_v37  ;;  %v2615_v19 = vsel %vm2146_vm4, %v2614_v55, %v6048_v9  ;;  %v2827_v60 = vsel %vm2146_vm4, %v6519_v30, %v6060_v5  ;;  %v7923_v5 = vld [vmem:[#allocation47_spill] sm:$0xff]  ;;  %v2880_v57 = vrot.slane %v6519_v30, 1  ;;  %v4290_v13 = vld [vmem:[%s7789_s3 + $0x248] sm:$0xff]  ;;  %v4287_v55 = vld [vmem:[%s7789_s3 + $0x230] sm:$0xff] }
 0x393   : > { %v2564_v37 = vsel %vm2149_vm5, %v2563_v46, %v2562_v15  ;;  %v2617_v9 = vsel %vm2149_vm5, %v2616_v49, %v2615_v19  ;;  %v2668_v16 = vsel %vm2146_vm4, %v2667_v0, %v7922_v56  ;;  %v2721_v23 = vsel %vm2146_vm4, %v2720_v4, %v7923_v5  ;;  %v4285_v0 = vld [vmem:[%s7789_s3 + $0x220] sm:$0xff]  ;;  %v4284_v15 = vld [vmem:[%s7789_s3 + $0x218] sm:$0xff] }
 0x394   : > { %2351 = vmatpush.msrb.mxu2 %v4293_v10  ;;  %2404 = vmatpush.msrb.mxu3 %v4309_v12  ;;  %v6585_v18 = vsel %vm2152_vm6, %v2565_v59, %v2564_v37  ;;  %v6590_v46 = vsel %vm2152_vm6, %v2618_v31, %v2617_v9  ;;  %v2670_v49 = vsel %vm2149_vm5, %v2669_v1, %v2668_v16  ;;  %v4307_v59 = vld [vmem:[%s7789_s3 + $0x2d0] sm:$0xff]  ;;  %v7924_v1 = vld [vmem:[#allocation45_spill] sm:$0xff]  ;;  %v2933_v39 = vrot.slane %v6519_v30, 2  ;;  %v4301_v4 = vld [vmem:[%s7789_s3 + $0x2a0] sm:$0xff] }
 0x395   : > { %2258 = vmatmul.f32.vlgmr.msra.gmra.mxu2 %v2240_v3  ;;  %2311 = vmatmul.f32.vlgmr.msra.gmra.mxu3 %v2293_v20  ;;  %v6603_v61 = vsel %vm2152_vm6, %v2671_v21, %v2670_v49  ;;  %v2723_v31 = vsel %vm2149_vm5, %v2722_v40, %v2721_v23  ;;  %v2774_v42 = vsel %vm2146_vm4, %v2773_v17, %v7924_v1  ;;  %v2883_v40 = vrot.slane %v6446_v62, 7  ;;  %v4306_v30 = vld [vmem:[%s7789_s3 + $0x2c8] sm:$0xff]  ;;  %v4300_v19 = vld [vmem:[%s7789_s3 + $0x298] sm:$0xff]  ;;  %v4283_v17 = vld [vmem:[%s7789_s3 + $0x210] sm:$0xff] }
 0x396   : > { %2352 = vmatpush.msrb.mxu2 %v4292_v26  ;;  %2405 = vmatpush.msrb.mxu3 %v4308_v53  ;;  %v6612_v32 = vsel %vm2152_vm6, %v2724_v27, %v2723_v31  ;;  %v2776_v52 = vsel %vm2149_vm5, %v2775_v11, %v2774_v42  ;;  %v2829_v21 = vsel %vm2149_vm5, %v2828_v8, %v2827_v60  ;;  %v7925_v11 = vld [vmem:[#allocation48_spill] sm:$0xff]  ;;  %v7926_v8 = vld [vmem:[#allocation49_spill] sm:$0xff]  ;;  %v4299_v60 = vld [vmem:[%s7789_s3 + $0x290] sm:$0xff]  ;;  %v2343_v37 = vrot.slane %v6322_v54, 6 }
 0x397   : > { %v6628_v27 = vsel %vm2152_vm6, %v2777_v33, %v2776_v52  ;;  %v6631_v3 = vsel %vm2152_vm6, %v2830_v36, %v2829_v21  ;;  %v2881_v20 = vsel %vm2146_vm4, %v2880_v57, %v7925_v11  ;;  %v2934_v44 = vsel %vm2146_vm4, %v2933_v39, %v7926_v8  ;;  %v4289_v33 = vld [vmem:[%s7789_s3 + $0x240] sm:$0xff]  ;;  %v4286_v10 = vld [vmem:[%s7789_s3 + $0x228] sm:$0xff]  ;;  %v4328_v57 = vld [vmem:[%s7789_s3 + $0x378] sm:$0xff] }
 0x398   : > { %2353 = vmatpush.msrb.mxu2 %v4291_v28  ;;  %2406 = vmatpush.msrb.mxu3 %v4307_v59  ;;  %v2882_v43 = vsel %vm2149_vm5, %v6338_v35, %v2881_v20  ;;  %v2936_v6 = vsel %vm2149_vm5, %v2935_v24, %v2934_v44  ;;  %v4305_v36 = vld [vmem:[%s7789_s3 + $0x2c0] sm:$0xff]  ;;  %v4288_v35 = vld [vmem:[%s7789_s3 + $0x238] sm:$0xff]  ;;  %v4302_v12 = vld [vmem:[%s7789_s3 + $0x2a8] sm:$0xff]  ;;  %v2396_v9 = vrot.slane %v6322_v54, 7  ;;  %v2344_v5 = vsel %vm2149_vm5, %v2343_v37, %v6516_v50 }
 0x399   : > { %v6649_v34 = vsel %vm2152_vm6, %v2883_v40, %v2882_v43  ;;  %v6653_v51 = vsel %vm2152_vm6, %v6446_v62, %v2936_v6  ;;  %v4304_v24 = vld [vmem:[%s7789_s3 + $0x2b8] sm:$0xff]  ;;  %v4303_v62 = vld [vmem:[%s7789_s3 + $0x2b0] sm:$0xff]  ;;  %v4282_v26 = vld [vmem:[%s7789_s3 + $0x208] sm:$0xff]  ;;  %v2345_v54 = vrot.slane %v6435_v2, 5  ;;  %v2398_v49 = vrot.slane %v6435_v2, 6 }
 0x39a   : > { %2354 = vmatpush.msrb.mxu2 %v4290_v13  ;;  %2407 = vmatpush.msrb.mxu3 %v4306_v30  ;;  %v4298_v53 = vld [vmem:[%s7789_s3 + $0x288] sm:$0xff]  ;;  %v4281_v56 = vld [vmem:[%s7789_s3 + $0x200] sm:$0xff]  ;;  %v2397_v23 = vsel %vm2149_vm5, %v2396_v9, %v6473_v47  ;;  %v4344_v28 = vld [vmem:[%s7789_s3 + $0x3f8] sm:$0xff] }
 0x39b   : > { %v4297_v16 = vld [vmem:[%s7789_s3 + $0x280] sm:$0xff]  ;;  %v2346_v50 = vsel %vm2152_vm6, %v2345_v54, %v2344_v5  ;;  %v2399_v47 = vsel %vm2152_vm6, %v2398_v49, %v2397_v23  ;;  %v4327_v2 = vld [vmem:[%s7789_s3 + $0x370] sm:$0xff]  ;;  %v4326_v31 = vld [vmem:[%s7789_s3 + $0x368] sm:$0xff] }
 0x39c   : > { %2355 = vmatpush.msrb.mxu2 %v4289_v33  ;;  %2408 = vmatpush.msrb.mxu3 %v4305_v36  ;;  %v4343_v59 = vld [vmem:[%s7789_s3 + $0x3f0] sm:$0xff]  ;;  %v4342_v1 = vld [vmem:[%s7789_s3 + $0x3e8] sm:$0xff]  ;;  %v4325_v42 = vld [vmem:[%s7789_s3 + $0x360] sm:$0xff] }
 0x39d   : > { %v4341_v39 = vld [vmem:[%s7789_s3 + $0x3e0] sm:$0xff]  ;;  %v4324_v52 = vld [vmem:[%s7789_s3 + $0x358] sm:$0xff]  ;;  %v4323_v40 = vld [vmem:[%s7789_s3 + $0x350] sm:$0xff] }
 0x39e   : > { %2356 = vmatpush.msrb.mxu2 %v4288_v35  ;;  %2409 = vmatpush.msrb.mxu3 %v4304_v24  ;;  %v4340_v21 = vld [vmem:[%s7789_s3 + $0x3d8] sm:$0xff]  ;;  %v4339_v13 = vld [vmem:[%s7789_s3 + $0x3d0] sm:$0xff]  ;;  %v4322_v30 = vld [vmem:[%s7789_s3 + $0x348] sm:$0xff] }
 0x39f   : > { %v4338_v11 = vld [vmem:[%s7789_s3 + $0x3c8] sm:$0xff]  ;;  %v4321_v20 = vld [vmem:[%s7789_s3 + $0x340] sm:$0xff]  ;;  %v4320_v44 = vld [vmem:[%s7789_s3 + $0x338] sm:$0xff] }
 0x3a0   : > { %2357 = vmatpush.msrb.mxu2 %v4287_v55  ;;  %2410 = vmatpush.msrb.mxu3 %v4303_v62  ;;  %v4337_v8 = vld [vmem:[%s7789_s3 + $0x3c0] sm:$0xff]  ;;  %v4336_v43 = vld [vmem:[%s7789_s3 + $0x3b8] sm:$0xff]  ;;  %v4319_v6 = vld [vmem:[%s7789_s3 + $0x330] sm:$0xff] }
 0x3a1   : > { %v4335_v33 = vld [vmem:[%s7789_s3 + $0x3b0] sm:$0xff]  ;;  %v4318_v36 = vld [vmem:[%s7789_s3 + $0x328] sm:$0xff]  ;;  %v4317_v24 = vld [vmem:[%s7789_s3 + $0x320] sm:$0xff] }
 0x3a2   : > { %2358 = vmatpush.msrb.mxu2 %v4286_v10  ;;  %2411 = vmatpush.msrb.mxu3 %v4302_v12  ;;  %v4334_v35 = vld [vmem:[%s7789_s3 + $0x3a8] sm:$0xff]  ;;  %v4333_v55 = vld [vmem:[%s7789_s3 + $0x3a0] sm:$0xff]  ;;  %v4316_v62 = vld [vmem:[%s7789_s3 + $0x318] sm:$0xff] }
 0x3a3   : > { %v4332_v10 = vld [vmem:[%s7789_s3 + $0x398] sm:$0xff]  ;;  %v4315_v12 = vld [vmem:[%s7789_s3 + $0x310] sm:$0xff]  ;;  %v4358_v9 = vld [vmem:[%s7789_s3 + $0x468] sm:$0xff] }
 0x3a4   : > { %2359 = vmatpush.msrb.mxu2 %v4285_v0  ;;  %2412 = vmatpush.msrb.mxu3 %v4301_v4  ;;  %v4331_v0 = vld [vmem:[%s7789_s3 + $0x390] sm:$0xff]  ;;  %v4314_v4 = vld [vmem:[%s7789_s3 + $0x308] sm:$0xff]  ;;  %v4372_v5 = vld [vmem:[%s7789_s3 + $0x4d8] sm:$0xff] }
 0x3a5   : > { %v4375_v37 = vld [vmem:[%s7789_s3 + $0x4f0] sm:$0xff]  ;;  %v4354_v49 = vld [vmem:[%s7789_s3 + $0x448] sm:$0xff] }
 0x3a6   : > { %2360 = vmatpush.msrb.mxu2 %v4284_v15  ;;  %2413 = vmatpush.msrb.mxu3 %v4300_v19  ;;  %v4330_v15 = vld [vmem:[%s7789_s3 + $0x388] sm:$0xff]  ;;  %v4313_v19 = vld [vmem:[%s7789_s3 + $0x300] sm:$0xff]  ;;  %v4355_v23 = vld [vmem:[%s7789_s3 + $0x450] sm:$0xff] }
 0x3a7   : > { %v4371_v54 = vld [vmem:[%s7789_s3 + $0x4d0] sm:$0xff] }
 0x3a8   : > { %2361 = vmatpush.msrb.mxu2 %v4283_v17  ;;  %2414 = vmatpush.msrb.mxu3 %v4299_v60  ;;  %v4329_v17 = vld [vmem:[%s7789_s3 + $0x380] sm:$0xff]  ;;  %v4360_v60 = vld [vmem:[%s7789_s3 + $0x478] sm:$0xff] }
 0x3aa   : > { %2362 = vmatpush.msrb.mxu2 %v4282_v26  ;;  %2415 = vmatpush.msrb.mxu3 %v4298_v53  ;;  %v4376_v26 = vld [vmem:[%s7789_s3 + $0x4f8] sm:$0xff]  ;;  %v4359_v53 = vld [vmem:[%s7789_s3 + $0x470] sm:$0xff] }
 0x3ac   : > { %2363 = vmatpush.msrb.mxu2 %v4281_v56  ;;  %2416 = vmatpush.msrb.mxu3 %v4297_v16  ;;  %v4373_v56 = vld [vmem:[%s7789_s3 + $0x4e0] sm:$0xff]  ;;  %v4356_v16 = vld [vmem:[%s7789_s3 + $0x458] sm:$0xff] }
 0x3ad   : > { %2364 = vmatmul.f32.vlgmr.msrb.gmra.mxu2 %v2346_v50  ;;  %2417 = vmatmul.f32.vlgmr.msrb.gmra.mxu3 %v2399_v47  ;;  %v4369_v50 = vld [vmem:[%s7789_s3 + $0x4c0] sm:$0xff]  ;;  %v4352_v47 = vld [vmem:[%s7789_s3 + $0x438] sm:$0xff] }
 0x3ae   : > { %2454 = vmatpush.msra.mxu2 %v4328_v57  ;;  %2507 = vmatpush.msra.mxu3 %v4344_v28  ;;  %v4370_v57 = vld [vmem:[%s7789_s3 + $0x4c8] sm:$0xff]  ;;  %v4353_v28 = vld [vmem:[%s7789_s3 + $0x440] sm:$0xff] }
 0x3b0   : > { %2455 = vmatpush.msra.mxu2 %v4327_v2  ;;  %2508 = vmatpush.msra.mxu3 %v4343_v59  ;;  %v4368_v2 = vld [vmem:[%s7789_s3 + $0x4b8] sm:$0xff]  ;;  %v4351_v59 = vld [vmem:[%s7789_s3 + $0x430] sm:$0xff] }
 0x3b2   : > { %2456 = vmatpush.msra.mxu2 %v4326_v31  ;;  %2509 = vmatpush.msra.mxu3 %v4342_v1  ;;  %v4367_v31 = vld [vmem:[%s7789_s3 + $0x4b0] sm:$0xff]  ;;  %v4350_v1 = vld [vmem:[%s7789_s3 + $0x428] sm:$0xff] }
 0x3b4   : > { %2457 = vmatpush.msra.mxu2 %v4325_v42  ;;  %2510 = vmatpush.msra.mxu3 %v4341_v39  ;;  %v4366_v42 = vld [vmem:[%s7789_s3 + $0x4a8] sm:$0xff]  ;;  %v4349_v39 = vld [vmem:[%s7789_s3 + $0x420] sm:$0xff] }
 0x3b6   : > { %2458 = vmatpush.msra.mxu2 %v4324_v52  ;;  %2511 = vmatpush.msra.mxu3 %v4340_v21  ;;  %v4365_v52 = vld [vmem:[%s7789_s3 + $0x4a0] sm:$0xff]  ;;  %v4348_v21 = vld [vmem:[%s7789_s3 + $0x418] sm:$0xff] }
 0x3b8   : > { %2459 = vmatpush.msra.mxu2 %v4323_v40  ;;  %2512 = vmatpush.msra.mxu3 %v4339_v13  ;;  %v4364_v40 = vld [vmem:[%s7789_s3 + $0x498] sm:$0xff]  ;;  %v4347_v13 = vld [vmem:[%s7789_s3 + $0x410] sm:$0xff] }
 0x3ba   : > { %2460 = vmatpush.msra.mxu2 %v4322_v30  ;;  %2513 = vmatpush.msra.mxu3 %v4338_v11  ;;  %v4363_v30 = vld [vmem:[%s7789_s3 + $0x490] sm:$0xff]  ;;  %v4346_v11 = vld [vmem:[%s7789_s3 + $0x408] sm:$0xff] }
 0x3bc   : > { %2461 = vmatpush.msra.mxu2 %v4321_v20  ;;  %2514 = vmatpush.msra.mxu3 %v4337_v8  ;;  %v4362_v20 = vld [vmem:[%s7789_s3 + $0x488] sm:$0xff]  ;;  %v4345_v8 = vld [vmem:[%s7789_s3 + $0x400] sm:$0xff] }
 0x3be   : > { %2462 = vmatpush.msra.mxu2 %v4320_v44  ;;  %2515 = vmatpush.msra.mxu3 %v4336_v43  ;;  %v4361_v44 = vld [vmem:[%s7789_s3 + $0x480] sm:$0xff]  ;;  %v4392_v43 = vld [vmem:[%s7789_s3 + $0x578] sm:$0xff] }
 0x3c0   : > { %2463 = vmatpush.msra.mxu2 %v4319_v6  ;;  %2516 = vmatpush.msra.mxu3 %v4335_v33  ;;  %v4408_v6 = vld [vmem:[%s7789_s3 + $0x5f8] sm:$0xff]  ;;  %v4391_v33 = vld [vmem:[%s7789_s3 + $0x570] sm:$0xff] }
 0x3c2   : > { %2464 = vmatpush.msra.mxu2 %v4318_v36  ;;  %2517 = vmatpush.msra.mxu3 %v4334_v35  ;;  %v4407_v36 = vld [vmem:[%s7789_s3 + $0x5f0] sm:$0xff]  ;;  %v4390_v35 = vld [vmem:[%s7789_s3 + $0x568] sm:$0xff] }
 0x3c4   : > { %2465 = vmatpush.msra.mxu2 %v4317_v24  ;;  %2518 = vmatpush.msra.mxu3 %v4333_v55  ;;  %v4405_v24 = vld [vmem:[%s7789_s3 + $0x5e0] sm:$0xff]  ;;  %v4388_v55 = vld [vmem:[%s7789_s3 + $0x558] sm:$0xff] }
 0x3c6   : > { %2466 = vmatpush.msra.mxu2 %v4316_v62  ;;  %2519 = vmatpush.msra.mxu3 %v4332_v10  ;;  %v4404_v62 = vld [vmem:[%s7789_s3 + $0x5d8] sm:$0xff]  ;;  %v4387_v10 = vld [vmem:[%s7789_s3 + $0x550] sm:$0xff] }
 0x3c8   : > { %2467 = vmatpush.msra.mxu2 %v4315_v12  ;;  %2520 = vmatpush.msra.mxu3 %v4331_v0  ;;  %v4403_v12 = vld [vmem:[%s7789_s3 + $0x5d0] sm:$0xff]  ;;  %v4386_v0 = vld [vmem:[%s7789_s3 + $0x548] sm:$0xff] }
 0x3ca   : > { %2468 = vmatpush.msra.mxu2 %v4314_v4  ;;  %2521 = vmatpush.msra.mxu3 %v4330_v15  ;;  %v4402_v4 = vld [vmem:[%s7789_s3 + $0x5c8] sm:$0xff]  ;;  %v4385_v15 = vld [vmem:[%s7789_s3 + $0x540] sm:$0xff] }
 0x3cc   : > { %2469 = vmatpush.msra.mxu2 %v4313_v19  ;;  %2522 = vmatpush.msra.mxu3 %v4329_v17  ;;  %v4401_v19 = vld [vmem:[%s7789_s3 + $0x5c0] sm:$0xff]  ;;  %v4384_v17 = vld [vmem:[%s7789_s3 + $0x538] sm:$0xff] }
 0x3cd   : > { %2470 = vmatmul.f32.vlgmr.msra.gmra.mxu2 %v6550_v45  ;;  %2523 = vmatmul.f32.vlgmr.msra.gmra.mxu3 %v6554_v14  ;;  %v4374_v45 = vld [vmem:[%s7789_s3 + $0x4e8] sm:$0xff]  ;;  %v4357_v14 = vld [vmem:[%s7789_s3 + $0x460] sm:$0xff] }
 0x3ce   : > { %2568 = vmatpush.msrb.mxu2 %v4360_v60  ;;  %2621 = vmatpush.msrb.mxu3 %v4376_v26  ;;  %v4400_v60 = vld [vmem:[%s7789_s3 + $0x5b8] sm:$0xff]  ;;  %v4383_v26 = vld [vmem:[%s7789_s3 + $0x530] sm:$0xff] }
 0x3d0   : > { %2569 = vmatpush.msrb.mxu2 %v4359_v53  ;;  %2622 = vmatpush.msrb.mxu3 %v4375_v37  ;;  %v4399_v53 = vld [vmem:[%s7789_s3 + $0x5b0] sm:$0xff]  ;;  %v4382_v37 = vld [vmem:[%s7789_s3 + $0x528] sm:$0xff] }
 0x3d2   : > { %2570 = vmatpush.msrb.mxu2 %v4358_v9  ;;  %2623 = vmatpush.msrb.mxu3 %v4374_v45  ;;  %v4398_v9 = vld [vmem:[%s7789_s3 + $0x5a8] sm:$0xff]  ;;  %v4381_v45 = vld [vmem:[%s7789_s3 + $0x520] sm:$0xff] }
 0x3d4   : > { %2571 = vmatpush.msrb.mxu2 %v4357_v14  ;;  %2624 = vmatpush.msrb.mxu3 %v4373_v56  ;;  %v4397_v14 = vld [vmem:[%s7789_s3 + $0x5a0] sm:$0xff]  ;;  %v4380_v56 = vld [vmem:[%s7789_s3 + $0x518] sm:$0xff] }
 0x3d6   : > { %2572 = vmatpush.msrb.mxu2 %v4356_v16  ;;  %2625 = vmatpush.msrb.mxu3 %v4372_v5  ;;  %v4396_v16 = vld [vmem:[%s7789_s3 + $0x598] sm:$0xff]  ;;  %v4379_v5 = vld [vmem:[%s7789_s3 + $0x510] sm:$0xff] }
 0x3d8   : > { %2573 = vmatpush.msrb.mxu2 %v4355_v23  ;;  %2626 = vmatpush.msrb.mxu3 %v4371_v54  ;;  %v4395_v23 = vld [vmem:[%s7789_s3 + $0x590] sm:$0xff]  ;;  %v4378_v54 = vld [vmem:[%s7789_s3 + $0x508] sm:$0xff] }
 0x3da   : > { %2574 = vmatpush.msrb.mxu2 %v4354_v49  ;;  %2627 = vmatpush.msrb.mxu3 %v4370_v57  ;;  %v4394_v49 = vld [vmem:[%s7789_s3 + $0x588] sm:$0xff]  ;;  %v4377_v57 = vld [vmem:[%s7789_s3 + $0x500] sm:$0xff] }
 0x3dc   : > { %2575 = vmatpush.msrb.mxu2 %v4353_v28  ;;  %2628 = vmatpush.msrb.mxu3 %v4369_v50  ;;  %v4393_v28 = vld [vmem:[%s7789_s3 + $0x580] sm:$0xff]  ;;  %v4424_v50 = vld [vmem:[%s7789_s3 + $0x678] sm:$0xff] }
 0x3de   : > { %2576 = vmatpush.msrb.mxu2 %v4352_v47  ;;  %2629 = vmatpush.msrb.mxu3 %v4368_v2  ;;  %v4440_v47 = vld [vmem:[%s7789_s3 + $0x6f8] sm:$0xff]  ;;  %v4423_v2 = vld [vmem:[%s7789_s3 + $0x670] sm:$0xff] }
 0x3e0   : > { %2577 = vmatpush.msrb.mxu2 %v4351_v59  ;;  %2630 = vmatpush.msrb.mxu3 %v4367_v31  ;;  %v4439_v59 = vld [vmem:[%s7789_s3 + $0x6f0] sm:$0xff]  ;;  %v4422_v31 = vld [vmem:[%s7789_s3 + $0x668] sm:$0xff] }
 0x3e2   : > { %2578 = vmatpush.msrb.mxu2 %v4350_v1  ;;  %2631 = vmatpush.msrb.mxu3 %v4366_v42  ;;  %v4437_v1 = vld [vmem:[%s7789_s3 + $0x6e0] sm:$0xff]  ;;  %v4420_v42 = vld [vmem:[%s7789_s3 + $0x658] sm:$0xff] }
 0x3e4   : > { %2579 = vmatpush.msrb.mxu2 %v4349_v39  ;;  %2632 = vmatpush.msrb.mxu3 %v4365_v52  ;;  %v4436_v39 = vld [vmem:[%s7789_s3 + $0x6d8] sm:$0xff]  ;;  %v4419_v52 = vld [vmem:[%s7789_s3 + $0x650] sm:$0xff] }
 0x3e6   : > { %2580 = vmatpush.msrb.mxu2 %v4348_v21  ;;  %2633 = vmatpush.msrb.mxu3 %v4364_v40  ;;  %v4435_v21 = vld [vmem:[%s7789_s3 + $0x6d0] sm:$0xff]  ;;  %v4418_v40 = vld [vmem:[%s7789_s3 + $0x648] sm:$0xff] }
 0x3e8   : > { %2581 = vmatpush.msrb.mxu2 %v4347_v13  ;;  %2634 = vmatpush.msrb.mxu3 %v4363_v30  ;;  %v4434_v13 = vld [vmem:[%s7789_s3 + $0x6c8] sm:$0xff]  ;;  %v4417_v30 = vld [vmem:[%s7789_s3 + $0x640] sm:$0xff] }
 0x3ea   : > { %2582 = vmatpush.msrb.mxu2 %v4346_v11  ;;  %2635 = vmatpush.msrb.mxu3 %v4362_v20  ;;  %v4433_v11 = vld [vmem:[%s7789_s3 + $0x6c0] sm:$0xff]  ;;  %v4416_v20 = vld [vmem:[%s7789_s3 + $0x638] sm:$0xff] }
 0x3ec   : > { %2583 = vmatpush.msrb.mxu2 %v4345_v8  ;;  %2636 = vmatpush.msrb.mxu3 %v4361_v44  ;;  %v4432_v8 = vld [vmem:[%s7789_s3 + $0x6b8] sm:$0xff]  ;;  %v4415_v44 = vld [vmem:[%s7789_s3 + $0x630] sm:$0xff] }
 0x3ed   : > { %2584 = vmatmul.f32.vlgmr.msrb.gmra.mxu2 %v6585_v18  ;;  %2637 = vmatmul.f32.vlgmr.msrb.gmra.mxu3 %v6590_v46  ;;  %v4406_v18 = vld [vmem:[%s7789_s3 + $0x5e8] sm:$0xff]  ;;  %v4389_v46 = vld [vmem:[%s7789_s3 + $0x560] sm:$0xff] }
 0x3ee   : > { %2674 = vmatpush.msra.mxu2 %v4392_v43  ;;  %2727 = vmatpush.msra.mxu3 %v4408_v6  ;;  %v4431_v43 = vld [vmem:[%s7789_s3 + $0x6b0] sm:$0xff]  ;;  %v4414_v6 = vld [vmem:[%s7789_s3 + $0x628] sm:$0xff] }
 0x3f0   : > { %2675 = vmatpush.msra.mxu2 %v4391_v33  ;;  %2728 = vmatpush.msra.mxu3 %v4407_v36  ;;  %v4430_v33 = vld [vmem:[%s7789_s3 + $0x6a8] sm:$0xff]  ;;  %v4413_v36 = vld [vmem:[%s7789_s3 + $0x620] sm:$0xff] }
 0x3f2   : > { %2676 = vmatpush.msra.mxu2 %v4390_v35  ;;  %2729 = vmatpush.msra.mxu3 %v4406_v18  ;;  %v4429_v35 = vld [vmem:[%s7789_s3 + $0x6a0] sm:$0xff]  ;;  %v4412_v18 = vld [vmem:[%s7789_s3 + $0x618] sm:$0xff] }
 0x3f4   : > { %2677 = vmatpush.msra.mxu2 %v4389_v46  ;;  %2730 = vmatpush.msra.mxu3 %v4405_v24  ;;  %v4428_v46 = vld [vmem:[%s7789_s3 + $0x698] sm:$0xff]  ;;  %v4411_v24 = vld [vmem:[%s7789_s3 + $0x610] sm:$0xff] }
 0x3f6   : > { %2678 = vmatpush.msra.mxu2 %v4388_v55  ;;  %2731 = vmatpush.msra.mxu3 %v4404_v62  ;;  %v4427_v55 = vld [vmem:[%s7789_s3 + $0x690] sm:$0xff]  ;;  %v4410_v62 = vld [vmem:[%s7789_s3 + $0x608] sm:$0xff] }
 0x3f8   : > { %2679 = vmatpush.msra.mxu2 %v4387_v10  ;;  %2732 = vmatpush.msra.mxu3 %v4403_v12  ;;  %v4426_v10 = vld [vmem:[%s7789_s3 + $0x688] sm:$0xff]  ;;  %v4409_v12 = vld [vmem:[%s7789_s3 + $0x600] sm:$0xff] }
 0x3fa   : > { %2680 = vmatpush.msra.mxu2 %v4386_v0  ;;  %2733 = vmatpush.msra.mxu3 %v4402_v4  ;;  %v4425_v0 = vld [vmem:[%s7789_s3 + $0x680] sm:$0xff]  ;;  %v4456_v4 = vld [vmem:[%s7789_s3 + $0x778] sm:$0xff] }
 0x3fc   : > { %2681 = vmatpush.msra.mxu2 %v4385_v15  ;;  %2734 = vmatpush.msra.mxu3 %v4401_v19  ;;  %v4472_v15 = vld [vmem:[%s7789_s3 + $0x7f8] sm:$0xff]  ;;  %v4455_v19 = vld [vmem:[%s7789_s3 + $0x770] sm:$0xff] }
 0x3fe   : > { %2682 = vmatpush.msra.mxu2 %v4384_v17  ;;  %2735 = vmatpush.msra.mxu3 %v4400_v60  ;;  %v4471_v17 = vld [vmem:[%s7789_s3 + $0x7f0] sm:$0xff]  ;;  %v4454_v60 = vld [vmem:[%s7789_s3 + $0x768] sm:$0xff] }
 0x400   : > { %2683 = vmatpush.msra.mxu2 %v4383_v26  ;;  %2736 = vmatpush.msra.mxu3 %v4399_v53  ;;  %v4469_v26 = vld [vmem:[%s7789_s3 + $0x7e0] sm:$0xff]  ;;  %v4452_v53 = vld [vmem:[%s7789_s3 + $0x758] sm:$0xff] }
 0x402   : > { %2684 = vmatpush.msra.mxu2 %v4382_v37  ;;  %2737 = vmatpush.msra.mxu3 %v4398_v9  ;;  %v4468_v37 = vld [vmem:[%s7789_s3 + $0x7d8] sm:$0xff]  ;;  %v4451_v9 = vld [vmem:[%s7789_s3 + $0x750] sm:$0xff] }
 0x404   : > { %2685 = vmatpush.msra.mxu2 %v4381_v45  ;;  %2738 = vmatpush.msra.mxu3 %v4397_v14  ;;  %v4467_v45 = vld [vmem:[%s7789_s3 + $0x7d0] sm:$0xff]  ;;  %v4450_v14 = vld [vmem:[%s7789_s3 + $0x748] sm:$0xff] }
 0x406   : > { %2686 = vmatpush.msra.mxu2 %v4380_v56  ;;  %2739 = vmatpush.msra.mxu3 %v4396_v16  ;;  %v4466_v56 = vld [vmem:[%s7789_s3 + $0x7c8] sm:$0xff]  ;;  %v4449_v16 = vld [vmem:[%s7789_s3 + $0x740] sm:$0xff] }
 0x408   : > { %2687 = vmatpush.msra.mxu2 %v4379_v5  ;;  %2740 = vmatpush.msra.mxu3 %v4395_v23  ;;  %v4465_v5 = vld [vmem:[%s7789_s3 + $0x7c0] sm:$0xff]  ;;  %v4448_v23 = vld [vmem:[%s7789_s3 + $0x738] sm:$0xff] }
 0x40a   : > { %2688 = vmatpush.msra.mxu2 %v4378_v54  ;;  %2741 = vmatpush.msra.mxu3 %v4394_v49  ;;  %v4464_v54 = vld [vmem:[%s7789_s3 + $0x7b8] sm:$0xff]  ;;  %v4447_v49 = vld [vmem:[%s7789_s3 + $0x730] sm:$0xff] }
 0x40c   : > { %2689 = vmatpush.msra.mxu2 %v4377_v57  ;;  %2742 = vmatpush.msra.mxu3 %v4393_v28  ;;  %v4463_v57 = vld [vmem:[%s7789_s3 + $0x7b0] sm:$0xff]  ;;  %v4446_v28 = vld [vmem:[%s7789_s3 + $0x728] sm:$0xff] }
 0x40d   : > { %2690 = vmatmul.f32.vlgmr.msra.gmra.mxu2 %v6603_v61  ;;  %2743 = vmatmul.f32.vlgmr.msra.gmra.mxu3 %v6612_v32  ;;  %v4438_v61 = vld [vmem:[%s7789_s3 + $0x6e8] sm:$0xff]  ;;  %v4421_v32 = vld [vmem:[%s7789_s3 + $0x660] sm:$0xff] }
 0x40e   : > { %2780 = vmatpush.msrb.mxu2 %v4424_v50  ;;  %2833 = vmatpush.msrb.mxu3 %v4440_v47  ;;  %v4462_v50 = vld [vmem:[%s7789_s3 + $0x7a8] sm:$0xff]  ;;  %v4445_v47 = vld [vmem:[%s7789_s3 + $0x720] sm:$0xff] }
 0x410   : > { %2781 = vmatpush.msrb.mxu2 %v4423_v2  ;;  %2834 = vmatpush.msrb.mxu3 %v4439_v59  ;;  %v4461_v2 = vld [vmem:[%s7789_s3 + $0x7a0] sm:$0xff]  ;;  %v4444_v59 = vld [vmem:[%s7789_s3 + $0x718] sm:$0xff] }
 0x412   : > { %2782 = vmatpush.msrb.mxu2 %v4422_v31  ;;  %2835 = vmatpush.msrb.mxu3 %v4438_v61  ;;  %v4460_v31 = vld [vmem:[%s7789_s3 + $0x798] sm:$0xff]  ;;  %v4443_v61 = vld [vmem:[%s7789_s3 + $0x710] sm:$0xff] }
 0x414   : > { %2783 = vmatpush.msrb.mxu2 %v4421_v32  ;;  %2836 = vmatpush.msrb.mxu3 %v4437_v1  ;;  %v4459_v32 = vld [vmem:[%s7789_s3 + $0x790] sm:$0xff]  ;;  %v4442_v1 = vld [vmem:[%s7789_s3 + $0x708] sm:$0xff] }
 0x416   : > { %2784 = vmatpush.msrb.mxu2 %v4420_v42  ;;  %2837 = vmatpush.msrb.mxu3 %v4436_v39  ;;  %v4458_v42 = vld [vmem:[%s7789_s3 + $0x788] sm:$0xff]  ;;  %v4441_v39 = vld [vmem:[%s7789_s3 + $0x700] sm:$0xff] }
 0x418   : > { %2785 = vmatpush.msrb.mxu2 %v4419_v52  ;;  %2838 = vmatpush.msrb.mxu3 %v4435_v21  ;;  %v4457_v52 = vld [vmem:[%s7789_s3 + $0x780] sm:$0xff]  ;;  %v4488_v21 = vld [vmem:[%s7789_s3 + $0x878] sm:$0xff] }
 0x41a   : > { %2786 = vmatpush.msrb.mxu2 %v4418_v40  ;;  %2839 = vmatpush.msrb.mxu3 %v4434_v13  ;;  %v4504_v40 = vld [vmem:[%s7789_s3 + $0x8f8] sm:$0xff]  ;;  %v4487_v13 = vld [vmem:[%s7789_s3 + $0x870] sm:$0xff] }
 0x41c   : > { %2787 = vmatpush.msrb.mxu2 %v4417_v30  ;;  %2840 = vmatpush.msrb.mxu3 %v4433_v11  ;;  %v4503_v30 = vld [vmem:[%s7789_s3 + $0x8f0] sm:$0xff]  ;;  %v4486_v11 = vld [vmem:[%s7789_s3 + $0x868] sm:$0xff] }
 0x41e   : > { %2788 = vmatpush.msrb.mxu2 %v4416_v20  ;;  %2841 = vmatpush.msrb.mxu3 %v4432_v8  ;;  %v4501_v20 = vld [vmem:[%s7789_s3 + $0x8e0] sm:$0xff]  ;;  %v4484_v8 = vld [vmem:[%s7789_s3 + $0x858] sm:$0xff] }
 0x420   : > { %2789 = vmatpush.msrb.mxu2 %v4415_v44  ;;  %2842 = vmatpush.msrb.mxu3 %v4431_v43  ;;  %v4500_v44 = vld [vmem:[%s7789_s3 + $0x8d8] sm:$0xff]  ;;  %v4483_v43 = vld [vmem:[%s7789_s3 + $0x850] sm:$0xff] }
 0x422   : > { %2790 = vmatpush.msrb.mxu2 %v4414_v6  ;;  %2843 = vmatpush.msrb.mxu3 %v4430_v33  ;;  %v4499_v6 = vld [vmem:[%s7789_s3 + $0x8d0] sm:$0xff]  ;;  %v4482_v33 = vld [vmem:[%s7789_s3 + $0x848] sm:$0xff] }
 0x424   : > { %2791 = vmatpush.msrb.mxu2 %v4413_v36  ;;  %2844 = vmatpush.msrb.mxu3 %v4429_v35  ;;  %v4498_v36 = vld [vmem:[%s7789_s3 + $0x8c8] sm:$0xff]  ;;  %v4481_v35 = vld [vmem:[%s7789_s3 + $0x840] sm:$0xff] }
 0x426   : > { %2792 = vmatpush.msrb.mxu2 %v4412_v18  ;;  %2845 = vmatpush.msrb.mxu3 %v4428_v46  ;;  %v4497_v18 = vld [vmem:[%s7789_s3 + $0x8c0] sm:$0xff]  ;;  %v4480_v46 = vld [vmem:[%s7789_s3 + $0x838] sm:$0xff] }
 0x428   : > { %2793 = vmatpush.msrb.mxu2 %v4411_v24  ;;  %2846 = vmatpush.msrb.mxu3 %v4427_v55  ;;  %v4496_v24 = vld [vmem:[%s7789_s3 + $0x8b8] sm:$0xff]  ;;  %v4479_v55 = vld [vmem:[%s7789_s3 + $0x830] sm:$0xff] }
 0x42a   : > { %2794 = vmatpush.msrb.mxu2 %v4410_v62  ;;  %2847 = vmatpush.msrb.mxu3 %v4426_v10  ;;  %v4495_v62 = vld [vmem:[%s7789_s3 + $0x8b0] sm:$0xff]  ;;  %v4478_v10 = vld [vmem:[%s7789_s3 + $0x828] sm:$0xff] }
 0x42c   : > { %2795 = vmatpush.msrb.mxu2 %v4409_v12  ;;  %2848 = vmatpush.msrb.mxu3 %v4425_v0  ;;  %v4494_v12 = vld [vmem:[%s7789_s3 + $0x8a8] sm:$0xff]  ;;  %v4477_v0 = vld [vmem:[%s7789_s3 + $0x820] sm:$0xff] }
 0x42d   : > { %2796 = vmatmul.f32.vlgmr.msrb.gmra.mxu2 %v6628_v27  ;;  %2849 = vmatmul.f32.vlgmr.msrb.gmra.mxu3 %v6631_v3  ;;  %v4470_v27 = vld [vmem:[%s7789_s3 + $0x7e8] sm:$0xff]  ;;  %v4453_v3 = vld [vmem:[%s7789_s3 + $0x760] sm:$0xff] }
 0x42e   : > { %2886 = vmatpush.msra.mxu2 %v4456_v4  ;;  %2939 = vmatpush.msra.mxu3 %v4472_v15  ;;  %v4493_v4 = vld [vmem:[%s7789_s3 + $0x8a0] sm:$0xff]  ;;  %v4476_v15 = vld [vmem:[%s7789_s3 + $0x818] sm:$0xff] }
 0x430   : > { %2887 = vmatpush.msra.mxu2 %v4455_v19  ;;  %2940 = vmatpush.msra.mxu3 %v4471_v17  ;;  %v4492_v19 = vld [vmem:[%s7789_s3 + $0x898] sm:$0xff]  ;;  %v4475_v17 = vld [vmem:[%s7789_s3 + $0x810] sm:$0xff] }
 0x432   : > { %2888 = vmatpush.msra.mxu2 %v4454_v60  ;;  %2941 = vmatpush.msra.mxu3 %v4470_v27  ;;  %v4491_v60 = vld [vmem:[%s7789_s3 + $0x890] sm:$0xff]  ;;  %v4474_v27 = vld [vmem:[%s7789_s3 + $0x808] sm:$0xff] }
 0x434   : > { %2889 = vmatpush.msra.mxu2 %v4453_v3  ;;  %2942 = vmatpush.msra.mxu3 %v4469_v26  ;;  %v4490_v3 = vld [vmem:[%s7789_s3 + $0x888] sm:$0xff]  ;;  %v4473_v26 = vld [vmem:[%s7789_s3 + $0x800] sm:$0xff] }
 0x436   : > { %2890 = vmatpush.msra.mxu2 %v4452_v53  ;;  %2943 = vmatpush.msra.mxu3 %v4468_v37  ;;  %v4489_v53 = vld [vmem:[%s7789_s3 + $0x880] sm:$0xff]  ;;  %v4520_v37 = vld [vmem:[%s7789_s3 + $0x978] sm:$0xff] }
 0x438   : > { %2891 = vmatpush.msra.mxu2 %v4451_v9  ;;  %2944 = vmatpush.msra.mxu3 %v4467_v45  ;;  %v4536_v9 = vld [vmem:[%s7789_s3 + $0x9f8] sm:$0xff]  ;;  %v4519_v45 = vld [vmem:[%s7789_s3 + $0x970] sm:$0xff] }
 0x43a   : > { %2892 = vmatpush.msra.mxu2 %v4450_v14  ;;  %2945 = vmatpush.msra.mxu3 %v4466_v56  ;;  %v4535_v14 = vld [vmem:[%s7789_s3 + $0x9f0] sm:$0xff]  ;;  %v4518_v56 = vld [vmem:[%s7789_s3 + $0x968] sm:$0xff] }
 0x43c   : > { %2893 = vmatpush.msra.mxu2 %v4449_v16  ;;  %2946 = vmatpush.msra.mxu3 %v4465_v5  ;;  %v4533_v16 = vld [vmem:[%s7789_s3 + $0x9e0] sm:$0xff]  ;;  %v4516_v5 = vld [vmem:[%s7789_s3 + $0x958] sm:$0xff] }
 0x43e   : > { %2894 = vmatpush.msra.mxu2 %v4448_v23  ;;  %2947 = vmatpush.msra.mxu3 %v4464_v54  ;;  %v4532_v23 = vld [vmem:[%s7789_s3 + $0x9d8] sm:$0xff]  ;;  %v4515_v54 = vld [vmem:[%s7789_s3 + $0x950] sm:$0xff] }
 0x440   : > { %2895 = vmatpush.msra.mxu2 %v4447_v49  ;;  %2948 = vmatpush.msra.mxu3 %v4463_v57  ;;  %v4531_v49 = vld [vmem:[%s7789_s3 + $0x9d0] sm:$0xff]  ;;  %v4514_v57 = vld [vmem:[%s7789_s3 + $0x948] sm:$0xff] }
 0x442   : > { %2896 = vmatpush.msra.mxu2 %v4446_v28  ;;  %2949 = vmatpush.msra.mxu3 %v4462_v50  ;;  %v4530_v28 = vld [vmem:[%s7789_s3 + $0x9c8] sm:$0xff]  ;;  %v4513_v50 = vld [vmem:[%s7789_s3 + $0x940] sm:$0xff] }
 0x444   : > { %2897 = vmatpush.msra.mxu2 %v4445_v47  ;;  %2950 = vmatpush.msra.mxu3 %v4461_v2  ;;  %v4529_v47 = vld [vmem:[%s7789_s3 + $0x9c0] sm:$0xff]  ;;  %v4512_v2 = vld [vmem:[%s7789_s3 + $0x938] sm:$0xff] }
 0x446   : > { %2898 = vmatpush.msra.mxu2 %v4444_v59  ;;  %2951 = vmatpush.msra.mxu3 %v4460_v31  ;;  %v4528_v59 = vld [vmem:[%s7789_s3 + $0x9b8] sm:$0xff]  ;;  %v4511_v31 = vld [vmem:[%s7789_s3 + $0x930] sm:$0xff] }
 0x448   : > { %2899 = vmatpush.msra.mxu2 %v4443_v61  ;;  %2952 = vmatpush.msra.mxu3 %v4459_v32  ;;  %v4527_v61 = vld [vmem:[%s7789_s3 + $0x9b0] sm:$0xff]  ;;  %v4510_v32 = vld [vmem:[%s7789_s3 + $0x928] sm:$0xff] }
 0x44a   : > { %2900 = vmatpush.msra.mxu2 %v4442_v1  ;;  %2953 = vmatpush.msra.mxu3 %v4458_v42  ;;  %v4526_v1 = vld [vmem:[%s7789_s3 + $0x9a8] sm:$0xff]  ;;  %v4509_v42 = vld [vmem:[%s7789_s3 + $0x920] sm:$0xff] }
 0x44c   : > { %2901 = vmatpush.msra.mxu2 %v4441_v39  ;;  %2954 = vmatpush.msra.mxu3 %v4457_v52  ;;  %v4525_v39 = vld [vmem:[%s7789_s3 + $0x9a0] sm:$0xff]  ;;  %v4508_v52 = vld [vmem:[%s7789_s3 + $0x918] sm:$0xff] }
 0x44d   : > { %2902 = vmatmul.f32.vlgmr.msra.gmra.mxu2 %v6649_v34  ;;  %2955 = vmatmul.f32.vlgmr.msra.gmra.mxu3 %v6653_v51  ;;  %v4502_v34 = vld [vmem:[%s7789_s3 + $0x8e8] sm:$0xff]  ;;  %v4485_v51 = vld [vmem:[%s7789_s3 + $0x860] sm:$0xff] }
 0x44e   : > { %3000 = vmatpush.msrb.mxu2 %v4488_v21  ;;  %3053 = vmatpush.msrb.mxu3 %v4504_v40  ;;  %v4524_v21 = vld [vmem:[%s7789_s3 + $0x998] sm:$0xff]  ;;  %v4507_v40 = vld [vmem:[%s7789_s3 + $0x910] sm:$0xff] }
 0x450   : > { %3001 = vmatpush.msrb.mxu2 %v4487_v13  ;;  %3054 = vmatpush.msrb.mxu3 %v4503_v30  ;;  %v4523_v13 = vld [vmem:[%s7789_s3 + $0x990] sm:$0xff]  ;;  %v4506_v30 = vld [vmem:[%s7789_s3 + $0x908] sm:$0xff] }
 0x452   : > { %3002 = vmatpush.msrb.mxu2 %v4486_v11  ;;  %3055 = vmatpush.msrb.mxu3 %v4502_v34  ;;  %v4522_v11 = vld [vmem:[%s7789_s3 + $0x988] sm:$0xff]  ;;  %v4505_v34 = vld [vmem:[%s7789_s3 + $0x900] sm:$0xff] }
 0x454   : > { %3003 = vmatpush.msrb.mxu2 %v4485_v51  ;;  %3056 = vmatpush.msrb.mxu3 %v4501_v20  ;;  %v4521_v51 = vld [vmem:[%s7789_s3 + $0x980] sm:$0xff]  ;;  %v4552_v20 = vld [vmem:[%s7789_s3 + $0xa78] sm:$0xff] }
 0x456   : > { %3004 = vmatpush.msrb.mxu2 %v4484_v8  ;;  %3057 = vmatpush.msrb.mxu3 %v4500_v44  ;;  %v4568_v8 = vld [vmem:[%s7789_s3 + $0xaf8] sm:$0xff]  ;;  %v4551_v44 = vld [vmem:[%s7789_s3 + $0xa70] sm:$0xff] }
 0x458   : > { %3005 = vmatpush.msrb.mxu2 %v4483_v43  ;;  %3058 = vmatpush.msrb.mxu3 %v4499_v6  ;;  %v4567_v43 = vld [vmem:[%s7789_s3 + $0xaf0] sm:$0xff]  ;;  %v4550_v6 = vld [vmem:[%s7789_s3 + $0xa68] sm:$0xff] }
 0x45a   : > { %3006 = vmatpush.msrb.mxu2 %v4482_v33  ;;  %3059 = vmatpush.msrb.mxu3 %v4498_v36  ;;  %v4565_v33 = vld [vmem:[%s7789_s3 + $0xae0] sm:$0xff]  ;;  %v4548_v36 = vld [vmem:[%s7789_s3 + $0xa58] sm:$0xff] }
 0x45c   : > { %3007 = vmatpush.msrb.mxu2 %v4481_v35  ;;  %3060 = vmatpush.msrb.mxu3 %v4497_v18  ;;  %v4564_v35 = vld [vmem:[%s7789_s3 + $0xad8] sm:$0xff]  ;;  %v4547_v18 = vld [vmem:[%s7789_s3 + $0xa50] sm:$0xff] }
 0x45e   : > { %3008 = vmatpush.msrb.mxu2 %v4480_v46  ;;  %3061 = vmatpush.msrb.mxu3 %v4496_v24  ;;  %v4563_v46 = vld [vmem:[%s7789_s3 + $0xad0] sm:$0xff]  ;;  %v4546_v24 = vld [vmem:[%s7789_s3 + $0xa48] sm:$0xff] }
 0x460   : > { %3009 = vmatpush.msrb.mxu2 %v4479_v55  ;;  %3062 = vmatpush.msrb.mxu3 %v4495_v62  ;;  %v4562_v55 = vld [vmem:[%s7789_s3 + $0xac8] sm:$0xff]  ;;  %v4545_v62 = vld [vmem:[%s7789_s3 + $0xa40] sm:$0xff] }
 0x462   : > { %3010 = vmatpush.msrb.mxu2 %v4478_v10  ;;  %3063 = vmatpush.msrb.mxu3 %v4494_v12  ;;  %v4561_v10 = vld [vmem:[%s7789_s3 + $0xac0] sm:$0xff]  ;;  %v4544_v12 = vld [vmem:[%s7789_s3 + $0xa38] sm:$0xff] }
 0x464   : > { %3011 = vmatpush.msrb.mxu2 %v4477_v0  ;;  %3064 = vmatpush.msrb.mxu3 %v4493_v4  ;;  %v4560_v0 = vld [vmem:[%s7789_s3 + $0xab8] sm:$0xff]  ;;  %v4543_v4 = vld [vmem:[%s7789_s3 + $0xa30] sm:$0xff] }
 0x466   : > { %3012 = vmatpush.msrb.mxu2 %v4476_v15  ;;  %3065 = vmatpush.msrb.mxu3 %v4492_v19  ;;  %v4559_v15 = vld [vmem:[%s7789_s3 + $0xab0] sm:$0xff]  ;;  %v4542_v19 = vld [vmem:[%s7789_s3 + $0xa28] sm:$0xff] }
 0x468   : > { %3013 = vmatpush.msrb.mxu2 %v4475_v17  ;;  %3066 = vmatpush.msrb.mxu3 %v4491_v60  ;;  %v4558_v17 = vld [vmem:[%s7789_s3 + $0xaa8] sm:$0xff]  ;;  %v4541_v60 = vld [vmem:[%s7789_s3 + $0xa20] sm:$0xff] }
 0x46a   : > { %3014 = vmatpush.msrb.mxu2 %v4474_v27  ;;  %3067 = vmatpush.msrb.mxu3 %v4490_v3  ;;  %v4557_v27 = vld [vmem:[%s7789_s3 + $0xaa0] sm:$0xff]  ;;  %v4540_v3 = vld [vmem:[%s7789_s3 + $0xa18] sm:$0xff] }
 0x46c   : > { %3015 = vmatpush.msrb.mxu2 %v4473_v26  ;;  %3068 = vmatpush.msrb.mxu3 %v4489_v53  ;;  %v4556_v26 = vld [vmem:[%s7789_s3 + $0xa98] sm:$0xff]  ;;  %v4539_v53 = vld [vmem:[%s7789_s3 + $0xa10] sm:$0xff] }
 0x46d   : > { %3016 = vmatmul.f32.vlgmr.msrb.gmra.mxu2 %v6402_v29  ;;  %3069 = vmatmul.f32.vlgmr.msrb.gmra.mxu3 %v6405_v7  ;;  %v4534_v29 = vld [vmem:[%s7789_s3 + $0x9e8] sm:$0xff]  ;;  %v4517_v7 = vld [vmem:[%s7789_s3 + $0x960] sm:$0xff] }
 0x46e   : > { %3106 = vmatpush.msra.mxu2 %v4520_v37  ;;  %3159 = vmatpush.msra.mxu3 %v4536_v9  ;;  %v4555_v37 = vld [vmem:[%s7789_s3 + $0xa90] sm:$0xff]  ;;  %v4538_v9 = vld [vmem:[%s7789_s3 + $0xa08] sm:$0xff] }
 0x470   : > { %3107 = vmatpush.msra.mxu2 %v4519_v45  ;;  %3160 = vmatpush.msra.mxu3 %v4535_v14  ;;  %v4554_v45 = vld [vmem:[%s7789_s3 + $0xa88] sm:$0xff]  ;;  %v4537_v14 = vld [vmem:[%s7789_s3 + $0xa00] sm:$0xff] }
 0x472   : > { %3108 = vmatpush.msra.mxu2 %v4518_v56  ;;  %3161 = vmatpush.msra.mxu3 %v4534_v29  ;;  %v4553_v56 = vld [vmem:[%s7789_s3 + $0xa80] sm:$0xff]  ;;  %v4584_v29 = vld [vmem:[%s7789_s3 + $0xb78] sm:$0xff] }
 0x474   : > { %3109 = vmatpush.msra.mxu2 %v4517_v7  ;;  %3162 = vmatpush.msra.mxu3 %v4533_v16  ;;  %v4600_v7 = vld [vmem:[%s7789_s3 + $0xbf8] sm:$0xff]  ;;  %v4583_v16 = vld [vmem:[%s7789_s3 + $0xb70] sm:$0xff] }
 0x476   : > { %3110 = vmatpush.msra.mxu2 %v4516_v5  ;;  %3163 = vmatpush.msra.mxu3 %v4532_v23  ;;  %v4599_v5 = vld [vmem:[%s7789_s3 + $0xbf0] sm:$0xff]  ;;  %v4582_v23 = vld [vmem:[%s7789_s3 + $0xb68] sm:$0xff] }
 0x478   : > { %3111 = vmatpush.msra.mxu2 %v4515_v54  ;;  %3164 = vmatpush.msra.mxu3 %v4531_v49  ;;  %v4597_v54 = vld [vmem:[%s7789_s3 + $0xbe0] sm:$0xff]  ;;  %v4580_v49 = vld [vmem:[%s7789_s3 + $0xb58] sm:$0xff] }
 0x47a   : > { %3112 = vmatpush.msra.mxu2 %v4514_v57  ;;  %3165 = vmatpush.msra.mxu3 %v4530_v28  ;;  %v4596_v57 = vld [vmem:[%s7789_s3 + $0xbd8] sm:$0xff]  ;;  %v4579_v28 = vld [vmem:[%s7789_s3 + $0xb50] sm:$0xff] }
 0x47c   : > { %3113 = vmatpush.msra.mxu2 %v4513_v50  ;;  %3166 = vmatpush.msra.mxu3 %v4529_v47  ;;  %v4595_v50 = vld [vmem:[%s7789_s3 + $0xbd0] sm:$0xff]  ;;  %v4578_v47 = vld [vmem:[%s7789_s3 + $0xb48] sm:$0xff] }
 0x47e   : > { %3114 = vmatpush.msra.mxu2 %v4512_v2  ;;  %3167 = vmatpush.msra.mxu3 %v4528_v59  ;;  %v4594_v2 = vld [vmem:[%s7789_s3 + $0xbc8] sm:$0xff]  ;;  %v4577_v59 = vld [vmem:[%s7789_s3 + $0xb40] sm:$0xff] }
 0x480   : > { %3115 = vmatpush.msra.mxu2 %v4511_v31  ;;  %3168 = vmatpush.msra.mxu3 %v4527_v61  ;;  %v4593_v31 = vld [vmem:[%s7789_s3 + $0xbc0] sm:$0xff]  ;;  %v4576_v61 = vld [vmem:[%s7789_s3 + $0xb38] sm:$0xff] }
 0x482   : > { %3116 = vmatpush.msra.mxu2 %v4510_v32  ;;  %3169 = vmatpush.msra.mxu3 %v4526_v1  ;;  %v4592_v32 = vld [vmem:[%s7789_s3 + $0xbb8] sm:$0xff]  ;;  %v4575_v1 = vld [vmem:[%s7789_s3 + $0xb30] sm:$0xff] }
 0x484   : > { %3117 = vmatpush.msra.mxu2 %v4509_v42  ;;  %3170 = vmatpush.msra.mxu3 %v4525_v39  ;;  %v4591_v42 = vld [vmem:[%s7789_s3 + $0xbb0] sm:$0xff]  ;;  %v4574_v39 = vld [vmem:[%s7789_s3 + $0xb28] sm:$0xff] }
 0x486   : > { %3118 = vmatpush.msra.mxu2 %v4508_v52  ;;  %3171 = vmatpush.msra.mxu3 %v4524_v21  ;;  %v4590_v52 = vld [vmem:[%s7789_s3 + $0xba8] sm:$0xff]  ;;  %v4573_v21 = vld [vmem:[%s7789_s3 + $0xb20] sm:$0xff] }
 0x488   : > { %3119 = vmatpush.msra.mxu2 %v4507_v40  ;;  %3172 = vmatpush.msra.mxu3 %v4523_v13  ;;  %v4589_v40 = vld [vmem:[%s7789_s3 + $0xba0] sm:$0xff]  ;;  %v4572_v13 = vld [vmem:[%s7789_s3 + $0xb18] sm:$0xff] }
 0x48a   : > { %3120 = vmatpush.msra.mxu2 %v4506_v30  ;;  %3173 = vmatpush.msra.mxu3 %v4522_v11  ;;  %v4588_v30 = vld [vmem:[%s7789_s3 + $0xb98] sm:$0xff]  ;;  %v4571_v11 = vld [vmem:[%s7789_s3 + $0xb10] sm:$0xff] }
 0x48c   : > { %3121 = vmatpush.msra.mxu2 %v4505_v34  ;;  %3174 = vmatpush.msra.mxu3 %v4521_v51  ;;  %v4587_v34 = vld [vmem:[%s7789_s3 + $0xb90] sm:$0xff]  ;;  %v4570_v51 = vld [vmem:[%s7789_s3 + $0xb08] sm:$0xff] }
 0x48d   : > { %3122 = vmatmul.f32.vlgmr.msra.gmra.mxu2 %v6408_v58  ;;  %3175 = vmatmul.f32.vlgmr.msra.gmra.mxu3 %v6417_v63  ;;  %v4566_v58 = vld [vmem:[%s7789_s3 + $0xae8] sm:$0xff]  ;;  %v4549_v63 = vld [vmem:[%s7789_s3 + $0xa60] sm:$0xff] }
 0x48e   : > { %3212 = vmatpush.msrb.mxu2 %v4552_v20  ;;  %3265 = vmatpush.msrb.mxu3 %v4568_v8  ;;  %v4586_v20 = vld [vmem:[%s7789_s3 + $0xb88] sm:$0xff]  ;;  %v4569_v8 = vld [vmem:[%s7789_s3 + $0xb00] sm:$0xff] }
 0x490   : > { %3213 = vmatpush.msrb.mxu2 %v4551_v44  ;;  %3266 = vmatpush.msrb.mxu3 %v4567_v43  ;;  %v4585_v44 = vld [vmem:[%s7789_s3 + $0xb80] sm:$0xff]  ;;  %v4616_v43 = vld [vmem:[%s7789_s3 + $0xc78] sm:$0xff] }
 0x492   : > { %3214 = vmatpush.msrb.mxu2 %v4550_v6  ;;  %3267 = vmatpush.msrb.mxu3 %v4566_v58  ;;  %v4615_v6 = vld [vmem:[%s7789_s3 + $0xc70] sm:$0xff]  ;;  %v4614_v58 = vld [vmem:[%s7789_s3 + $0xc68] sm:$0xff] }
 0x494   : > { %3215 = vmatpush.msrb.mxu2 %v4549_v63  ;;  %3268 = vmatpush.msrb.mxu3 %v4565_v33  ;;  %v4613_v63 = vld [vmem:[%s7789_s3 + $0xc60] sm:$0xff]  ;;  %v4610_v33 = vld [vmem:[%s7789_s3 + $0xc48] sm:$0xff] }
 0x496   : > { %3216 = vmatpush.msrb.mxu2 %v4548_v36  ;;  %3269 = vmatpush.msrb.mxu3 %v4564_v35  ;;  %v4609_v36 = vld [vmem:[%s7789_s3 + $0xc40] sm:$0xff]  ;;  %v4608_v35 = vld [vmem:[%s7789_s3 + $0xc38] sm:$0xff] }
 0x498   : > { %3217 = vmatpush.msrb.mxu2 %v4547_v18  ;;  %3270 = vmatpush.msrb.mxu3 %v4563_v46  ;;  %v4607_v18 = vld [vmem:[%s7789_s3 + $0xc30] sm:$0xff]  ;;  %v4606_v46 = vld [vmem:[%s7789_s3 + $0xc28] sm:$0xff] }
 0x49a   : > { %3218 = vmatpush.msrb.mxu2 %v4546_v24  ;;  %3271 = vmatpush.msrb.mxu3 %v4562_v55  ;;  %v4605_v24 = vld [vmem:[%s7789_s3 + $0xc20] sm:$0xff]  ;;  %v4604_v55 = vld [vmem:[%s7789_s3 + $0xc18] sm:$0xff] }
 0x49c   : > { %3219 = vmatpush.msrb.mxu2 %v4545_v62  ;;  %3272 = vmatpush.msrb.mxu3 %v4561_v10  ;;  %v4603_v62 = vld [vmem:[%s7789_s3 + $0xc10] sm:$0xff]  ;;  %v4602_v10 = vld [vmem:[%s7789_s3 + $0xc08] sm:$0xff] }
 0x49e   : > { %3220 = vmatpush.msrb.mxu2 %v4544_v12  ;;  %3273 = vmatpush.msrb.mxu3 %v4560_v0  ;;  %v4601_v12 = vld [vmem:[%s7789_s3 + $0xc00] sm:$0xff]  ;;  %v2172_v0 = vpop.f32.mrf.mxu2 }
 0x4a0   : > { %3221 = vmatpush.msrb.mxu2 %v4543_v4  ;;  %3274 = vmatpush.msrb.mxu3 %v4559_v15  ;;  %v2207_v4 = vpop.f32.mrf.mxu3 }
 0x4a2   : > { %3222 = vmatpush.msrb.mxu2 %v4542_v19  ;;  %3275 = vmatpush.msrb.mxu3 %v4558_v17 }
 0x4a4   : > { %3223 = vmatpush.msrb.mxu2 %v4541_v60  ;;  %3276 = vmatpush.msrb.mxu3 %v4557_v27 }
 0x4a6   : > { %3224 = vmatpush.msrb.mxu2 %v4540_v3  ;;  %3277 = vmatpush.msrb.mxu3 %v4556_v26  ;;  %v2259_v15 = vpop.f32.mrf.mxu2  ;;  %v2208_v3 = vadd.f32 %v2207_v4, %v2172_v0  ;;  %v3507_v4 = vld [vmem:[%s7793_s7 + $0x38] sm:$0xff] }
 0x4a8   : > { %3225 = vmatpush.msrb.mxu2 %v4539_v53  ;;  %3278 = vmatpush.msrb.mxu3 %v4555_v37  ;;  %v2312_v19 = vpop.f32.mrf.mxu3  ;;  %v2262_v53 = vadd.f32 %v2259_v15, %v2208_v3 }
 0x4aa   : > { %3226 = vmatpush.msrb.mxu2 %v4538_v9  ;;  %3279 = vmatpush.msrb.mxu3 %v4554_v45  ;;  %v2315_v9 = vadd.f32 %v2312_v19, %v2262_v53  ;;  %v3474_v45 = vld [vmem:[%s7791_s5 + $0x78] sm:$0xff]  ;;  %v3506_v19 = vld [vmem:[%s7793_s7 + $0x30] sm:$0xff] }
 0x4ab   : > { %v3503_v53 = vld [vmem:[%s7793_s7 + $0x18] sm:$0xff] }
 0x4ac   : > { %3227 = vmatpush.msrb.mxu2 %v4537_v14  ;;  %3280 = vmatpush.msrb.mxu3 %v4553_v56  ;;  %v3472_v56 = vld [vmem:[%s7791_s5 + $0x68] sm:$0xff] }
 0x4ad   : > { %3228 = vmatmul.f32.vlgmr.msrb.gmra.mxu2 %v6421_v41  ;;  %3281 = vmatmul.f32.vlgmr.msrb.gmra.mxu3 %v6424_v48  ;;  %v4598_v41 = vld [vmem:[%s7789_s3 + $0xbe8] sm:$0xff]  ;;  %v4581_v48 = vld [vmem:[%s7789_s3 + $0xb60] sm:$0xff] }
 0x4ae   : > { %3318 = vmatpush.msra.mxu2 %v4584_v29  ;;  %3371 = vmatpush.msra.mxu3 %v4600_v7  ;;  %v2365_v17 = vpop.f32.mrf.mxu2  ;;  %v3471_v7 = vld [vmem:[%s7791_s5 + $0x60] sm:$0xff] }
 0x4af   : > { %v2368_v14 = vadd.f32 %v2365_v17, %v2315_v9 }
 0x4b0   : > { %3319 = vmatpush.msra.mxu2 %v4583_v16  ;;  %3372 = vmatpush.msra.mxu3 %v4599_v5  ;;  %v2418_v60 = vpop.f32.mrf.mxu3 }
 0x4b1   : > { %v2421_v5 = vadd.f32 %v2418_v60, %v2368_v14 }
 0x4b2   : > { %3320 = vmatpush.msra.mxu2 %v4582_v23  ;;  %3373 = vmatpush.msra.mxu3 %v4598_v41  ;;  %v3470_v23 = vld [vmem:[%s7791_s5 + $0x58] sm:$0xff] }
 0x4b4   : > { %3321 = vmatpush.msra.mxu2 %v4581_v48  ;;  %3374 = vmatpush.msra.mxu3 %v4597_v54  ;;  %v3469_v48 = vld [vmem:[%s7791_s5 + $0x50] sm:$0xff]  ;;  %v3468_v54 = vld [vmem:[%s7791_s5 + $0x48] sm:$0xff] }
 0x4b6   : > { %3322 = vmatpush.msra.mxu2 %v4580_v49  ;;  %3375 = vmatpush.msra.mxu3 %v4596_v57  ;;  %v2471_v27 = vpop.f32.mrf.mxu2 }
 0x4b7   : > { %v2474_v41 = vadd.f32 %v2471_v27, %v2421_v5  ;;  %v3505_v27 = vld [vmem:[%s7793_s7 + $0x28] sm:$0xff]  ;;  %v3500_v5 = vld [vmem:[%s7793_s7] sm:$0xff] }
 0x4b8   : > { %3323 = vmatpush.msra.mxu2 %v4579_v28  ;;  %3376 = vmatpush.msra.mxu3 %v4595_v50  ;;  %v2524_v26 = vpop.f32.mrf.mxu3  ;;  %v3467_v28 = vld [vmem:[%s7791_s5 + $0x40] sm:$0xff] }
 0x4b9   : > { %v2527_v57 = vadd.f32 %v2524_v26, %v2474_v41  ;;  %v3504_v26 = vld [vmem:[%s7793_s7 + $0x20] sm:$0xff] }
 0x4ba   : > { %3324 = vmatpush.msra.mxu2 %v4578_v47  ;;  %3377 = vmatpush.msra.mxu3 %v4594_v2  ;;  %v3466_v2 = vld [vmem:[%s7791_s5 + $0x38] sm:$0xff] }
 0x4bc   : > { %3325 = vmatpush.msra.mxu2 %v4577_v59  ;;  %3378 = vmatpush.msra.mxu3 %v4593_v31  ;;  %v3465_v59 = vld [vmem:[%s7791_s5 + $0x30] sm:$0xff] }
 0x4be   : > { %3326 = vmatpush.msra.mxu2 %v4576_v61  ;;  %3379 = vmatpush.msra.mxu3 %v4592_v32  ;;  %v2585_v37 = vpop.f32.mrf.mxu2  ;;  %v3464_v61 = vld [vmem:[%s7791_s5 + $0x28] sm:$0xff] }
 0x4bf   : > { %v2588_v47 = vadd.f32 %v2585_v37, %v2527_v57 }
 0x4c0   : > { %3327 = vmatpush.msra.mxu2 %v4575_v1  ;;  %3380 = vmatpush.msra.mxu3 %v4591_v42  ;;  %v2638_v29 = vpop.f32.mrf.mxu3  ;;  %v3463_v42 = vld [vmem:[%s7791_s5 + $0x20] sm:$0xff] }
 0x4c1   : > { %v2641_v31 = vadd.f32 %v2638_v29, %v2588_v47 }
 0x4c2   : > { %3328 = vmatpush.msra.mxu2 %v4574_v39  ;;  %3381 = vmatpush.msra.mxu3 %v4590_v52 }
 0x4c4   : > { %3329 = vmatpush.msra.mxu2 %v4573_v21  ;;  %3382 = vmatpush.msra.mxu3 %v4589_v40 }
 0x4c6   : > { %3330 = vmatpush.msra.mxu2 %v4572_v13  ;;  %3383 = vmatpush.msra.mxu3 %v4588_v30  ;;  %v2691_v16 = vpop.f32.mrf.mxu2  ;;  %v3462_v13 = vld [vmem:[%s7791_s5 + $0x18] sm:$0xff] }
 0x4c7   : > { %v2694_v1 = vadd.f32 %v2691_v16, %v2641_v31  ;;  %v3501_v16 = vld [vmem:[%s7793_s7 + $0x8] sm:$0xff] }
 0x4c8   : > { %3331 = vmatpush.msra.mxu2 %v4571_v11  ;;  %3384 = vmatpush.msra.mxu3 %v4587_v34  ;;  %v2744_v49 = vpop.f32.mrf.mxu3  ;;  %v3461_v34 = vld [vmem:[%s7791_s5 + $0x10] sm:$0xff] }
 0x4c9   : > { %v2747_v52 = vadd.f32 %v2744_v49, %v2694_v1  ;;  %v4824_v49 = vld [vmem:[%s7794_s8] ss:$0 sm:$0xff] }
 0x4ca   : > { %3332 = vmatpush.msra.mxu2 %v4570_v51  ;;  %3385 = vmatpush.msra.mxu3 %v4586_v20  ;;  %v3460_v20 = vld [vmem:[%s7791_s5 + $0x8] sm:$0xff] }
 0x4cc   : > { %3333 = vmatpush.msra.mxu2 %v4569_v8  ;;  %3386 = vmatpush.msra.mxu3 %v4585_v44  ;;  %v3459_v8 = vld [vmem:[%s7791_s5] sm:$0xff] }
 0x4cd   : > { %3334 = vmatmul.f32.vlgmr.msra.gmra.mxu2 %v6431_v25  ;;  %3387 = vmatmul.f32.vlgmr.msra.gmra.mxu3 %v6451_v22  ;;  %v4612_v25 = vld [vmem:[%s7789_s3 + $0xc58] sm:$0xff]  ;;  %v4611_v22 = vld [vmem:[%s7789_s3 + $0xc50] sm:$0xff] }
 0x4ce   : > { %3432 = vmatpush.msrb.mxu2 %v4616_v43  ;;  %3479 = vmatpush.msrb.mxu3 %v3474_v45  ;;  %v2797_v50 = vpop.f32.mrf.mxu2  ;;  %v4822_v45 = vld [vmem:[%s7790_s4] ss:$0 sm:$0xff] }
 0x4cf   : > { %v2800_v21 = vadd.f32 %v2797_v50, %v2747_v52 }
 0x4d0   : > { %3433 = vmatpush.msrb.mxu2 %v4615_v6  ;;  %v2850_v32 = vpop.f32.mrf.mxu3  ;;  %v3515_v6 = vld [vmem:[%s7793_s7 + $0x78] sm:$0xff] }
 0x4d1   : > { %v2853_v11 = vadd.f32 %v2850_v32, %v2800_v21 }
 0x4d2   : > { %3434 = vmatpush.msrb.mxu2 %v4614_v58  ;;  %v3514_v58 = vld [vmem:[%s7793_s7 + $0x70] sm:$0xff] }
 0x4d4   : > { %3435 = vmatpush.msrb.mxu2 %v4613_v63 }
 0x4d6   : > { %3436 = vmatpush.msrb.mxu2 %v4612_v25  ;;  %v2903_v39 = vpop.f32.mrf.mxu2 }
 0x4d7   : > { %v2906_v51 = vadd.f32 %v2903_v39, %v2853_v11 }
 0x4d8   : > { %3437 = vmatpush.msrb.mxu2 %v4611_v22  ;;  %v2956_v40 = vpop.f32.mrf.mxu3  ;;  %v3513_v22 = vld [vmem:[%s7793_s7 + $0x68] sm:$0xff] }
 0x4d9   : > { %v2959_v43 = vadd.f32 %v2956_v40, %v2906_v51 }
 0x4da   : > { %3438 = vmatpush.msrb.mxu2 %v4610_v33  ;;  %v3512_v33 = vld [vmem:[%s7793_s7 + $0x60] sm:$0xff] }
 0x4dc   : > { %3439 = vmatpush.msrb.mxu2 %v4609_v36 }
 0x4de   : > { %3440 = vmatpush.msrb.mxu2 %v4608_v35  ;;  %v3511_v35 = vld [vmem:[%s7793_s7 + $0x58] sm:$0xff] }
 0x4e0   : > { %3441 = vmatpush.msrb.mxu2 %v4607_v18 }
 0x4e2   : > { %3442 = vmatpush.msrb.mxu2 %v4606_v46 }
 0x4e4   : > { %3443 = vmatpush.msrb.mxu2 %v4605_v24  ;;  %v3510_v24 = vld [vmem:[%s7793_s7 + $0x50] sm:$0xff] }
 0x4e6   : > { %3444 = vmatpush.msrb.mxu2 %v4604_v55 }
 0x4e8   : > { %3445 = vmatpush.msrb.mxu2 %v4603_v62  ;;  %v3509_v62 = vld [vmem:[%s7793_s7 + $0x48] sm:$0xff] }
 0x4ea   : > { %3446 = vmatpush.msrb.mxu2 %v4602_v10 }
 0x4ec   : > { %3447 = vmatpush.msrb.mxu2 %v4601_v12  ;;  %v3508_v12 = vld [vmem:[%s7793_s7 + $0x40] sm:$0xff] }
 0x4ed   : > { %3448 = vmatmul.f32.vlgmr.msrb.gmra.mxu2 %v6458_v38  ;;  %v3473_v38 = vld [vmem:[%s7791_s5 + $0x70] sm:$0xff] }
 0x4ee   : > { %3480 = vmatpush.msrb.mxu3 %v3473_v38  ;;  %3520 = vmatpush.msra.mxu2 %v3515_v6 }
 0x4f0   : > { %3481 = vmatpush.msrb.mxu3 %v3472_v56  ;;  %v3017_v30 = vpop.f32.mrf.mxu2  ;;  %v3070_v44 = vpop.f32.mrf.mxu3  ;;  %3521 = vmatpush.msra.mxu2 %v3514_v58 }
 0x4f1   : > { %v3020_v25 = vadd.f32 %v3017_v30, %v2959_v43 }
 0x4f2   : > { %3482 = vmatpush.msrb.mxu3 %v3471_v7  ;;  %3522 = vmatpush.msra.mxu2 %v3513_v22  ;;  %v3502_v7 = vld [vmem:[%s7793_s7 + $0x10] sm:$0xff] }
 0x4f3   : > { %v3073_v36 = vadd.f32 %v3070_v44, %v3020_v25 }
 0x4f4   : > { %3483 = vmatpush.msrb.mxu3 %v3470_v23  ;;  %3523 = vmatpush.msra.mxu2 %v3512_v33  ;;  %v4823_v23 = vld [vmem:[%s7792_s6] ss:$0 sm:$0xff] }
 0x4f6   : > { %3484 = vmatpush.msrb.mxu3 %v3469_v48  ;;  %3524 = vmatpush.msra.mxu2 %v3511_v35 }
 0x4f8   : > { %3485 = vmatpush.msrb.mxu3 %v3468_v54  ;;  %3525 = vmatpush.msra.mxu2 %v3510_v24 }
 0x4fa   : > { %3486 = vmatpush.msrb.mxu3 %v3467_v28  ;;  %3526 = vmatpush.msra.mxu2 %v3509_v62 }
 0x4fc   : > { %3487 = vmatpush.msrb.mxu3 %v3466_v2  ;;  %3527 = vmatpush.msra.mxu2 %v3508_v12 }
 0x4fe   : > { %3488 = vmatpush.msrb.mxu3 %v3465_v59  ;;  %3528 = vmatpush.msra.mxu2 %v3507_v4 }
 0x500   : > { %3489 = vmatpush.msrb.mxu3 %v3464_v61  ;;  %3529 = vmatpush.msra.mxu2 %v3506_v19 }
 0x502   : > { %3490 = vmatpush.msrb.mxu3 %v3463_v42  ;;  %3530 = vmatpush.msra.mxu2 %v3505_v27 }
 0x504   : > { %3491 = vmatpush.msrb.mxu3 %v3462_v13  ;;  %3531 = vmatpush.msra.mxu2 %v3504_v26 }
 0x506   : > { %3492 = vmatpush.msrb.mxu3 %v3461_v34  ;;  %3532 = vmatpush.msra.mxu2 %v3503_v53 }
 0x508   : > { %3493 = vmatpush.msrb.mxu3 %v3460_v20  ;;  %3533 = vmatpush.msra.mxu2 %v3502_v7 }
 0x50a   : > { %3494 = vmatpush.msrb.mxu3 %v3459_v8  ;;  %3534 = vmatpush.msra.mxu2 %v3501_v16 }
 0x50c   : > { %3535 = vmatpush.msra.mxu2 %v3500_v5 }
 0x510   : > { %v3123_v63 = vpop.f32.mrf.mxu2  ;;  %v3176_v18 = vpop.f32.mrf.mxu3 }
 0x511   : > { %v3126_v46 = vadd.f32 %v3123_v63, %v3073_v36 }
 0x513   : > { %v3179_v10 = vadd.f32 %v3176_v18, %v3126_v46 }
 0x530   : > { %v3229_v55 = vpop.f32.mrf.mxu2  ;;  %v3282_v15 = vpop.f32.mrf.mxu3 }
 0x531   : > { %v3232_v0 = vadd.f32 %v3229_v55, %v3179_v10 }
 0x533   : > { %v3285_v60 = vadd.f32 %v3282_v15, %v3232_v0 }
 0x550   : > { %v3335_v17 = vpop.f32.mrf.mxu2  ;;  %v3388_v37 = vpop.f32.mrf.mxu3 }
 0x551   : > { %v3338_v3 = vadd.f32 %v3335_v17, %v3285_v60 }
 0x553   : > { %v3391_v9 = vadd.f32 %v3388_v37, %v3338_v3 }
 0x570   : > { %v3449_v38 = vpop.f32.mrf.mxu2 }
 0x571   : > { %v3452_v14 = vadd.f32 %v3449_v38, %v3391_v9 }
 0x573   : > { %v3457_v56 = vadd.f32 %v4822_v45, %v3452_v14 }
 0x575   : > { %v3458_v29 = vmax.f32 %v3457_v56, 0.0 }
 0x577   : > { %3495 = vmatmul.f32.vlgmr.msrb.gmra.mxu3 %v3458_v29 }
 0x5fa   : > { %v3496_v41 = vpop.f32.mrf.mxu3 }
 0x5fb   : > { %v3497_v48 = vadd.f32 %v4823_v23, %v3496_v41 }
 0x5fd   : > { %v3499_v54 = vmax.f32 %v3497_v48, 0.0 }
 0x5ff   : > { %3540 = vst [vmem:[%s373_s29] sm:$0xff] %v3499_v54  ;;  %3536 = vmatmul.f32.vlgmr.msra.gmra.mxu2 %v3499_v54 }
 0x682   : > { %v3537_v57 = vpop.f32.mrf.mxu2 }
 0x683   : > { %v3538_v28 = vadd.f32 %v4824_v49, %v3537_v57 }
 0x685   : > { %3541 = vst [vmem:[%s362_s17] sm:$0xff] %v3538_v28 }
 0x686   : > { %4854 = shalt.err (!%p4851_p4)
}
 0x687   : > { %4782 = dma.vmem_to_hbm [thread:$0]  (%p4984_p5), %s3563_s20, 128, %s3565_s1, %s3547_s25  }
 0x688 PF: > { %p4788_p7 = scmp.ge.s32.totalorder %s4889_s16, 2  ;;  %s3583_s11 = sand.u32 1, %s4877_s13  }
 0x689   : > { %s3584_s12 = scalar_lea.sflag [#allocation3], %s3583_s11 }
 0x68a   : > { %p4785_p8 = pnand %p4788_p7, %p4988_p6 }
 0x68c   : > { %p4786_p9 = pneg %p4785_p8 }
 0x68e   : > { %4872 = dma.done.wait (%p4786_p9), %s3584_s12, 128  }
 0x68f   : > { %4874 = vsyncadd (%p4786_p9), %s3584_s12, 4294967168  ;;  %s7927_s18 = sld [smem:[#allocation5_spill]]  ;;  %p21_p10 = scmp.ge.s32.totalorder %s4971_s19, 4  }
 0x690   : > { %s7928_s13 = smov %s4881_s14  ;;  %s7929_s14 = smov %s4885_s15 }
 0x691   : > { %s7931_s16 = smov %s4971_s19  ;;  %23 = sbr.rel (!%p21_p10) target bundleno = 6 (0x6), region = 127 }
 0x695   : > { %s7930_s15 = smov %s7927_s18 }
 0x696   :  { %3590 = vsyncpa [#allocation3], 1 }
 0x697   :  { %3592 = vsyncpa [#allocation3 + $0x1], 1 }

</bundles_post_ra>
